<compile_context>
chip_gen: v6e
topology: v6e:2x2x1
jax: 0.10.0
libtpu: 0.0.40
codegen_flags: <defaults>
</compile_context>

<pallas_src>
import functools
import math

import jax
import jax.numpy as jnp
from jax import lax
from jax.experimental import pallas as pl
from jax.experimental.pallas import tpu as pltpu

BN_EPS = 1e-5


def _round_up(x, m):
    return -(-x // m) * m


# ---------------------------------------------------------------------------
# Fused  (3x3 conv + BN [+ residual] [+ preact] [+ ReLU])  [+ parallel 1x1 shortcut conv]
# ---------------------------------------------------------------------------
def _fused_conv_kernel(*args, taps0, sc_tap, mf, flat, cin, nb,
                       relu0, relu_sc, has_res, want_pre):
    """One (batch-block, cout-tile) grid step.

    args = (x, w0, b0, [w_sc, b_sc], [res], out0, [out_sc], [pre], patch_scratch)
      x      : (nb*flat, cin)        bf16   flat padded image(s)
      w0     : (9*cin, tco)          bf16   BN-folded 3x3 weights, tap-major along K
      b0     : (1, tco)              f32
      w_sc   : (cin, tco)            bf16   BN-folded 1x1 shortcut weights
      res    : (nb*mf, tco)          bf16   residual added before ReLU
      out0   : (nb*mf, tco)          bf16
      out_sc : (nb*mf, tco)          bf16
      pre    : (nb*mf, tco)          f32
      patch  : (nb*mf, 9*cin)        bf16   VMEM im2col scratch
    """
    it = iter(args)
    x_ref, w0_ref, b0_ref = next(it), next(it), next(it)
    if sc_tap is not None:
        wsc_ref, bsc_ref = next(it), next(it)
    if has_res:
        res_ref = next(it)
    out0_ref = next(it)
    if sc_tap is not None:
        outsc_ref = next(it)
    if want_pre:
        pre_ref = next(it)
    patch_ref = next(it)

    # ---- build the im2col patch: 9 plain slice copies per image (no relayout) ----
    for b in range(nb):
        base = b * flat
        obase = b * mf
        for t, off in enumerate(taps0):
            patch_ref[obase:obase + mf, t * cin:(t + 1) * cin] = \
                x_ref[base + off:base + off + mf, :]

    # ---- one concatenated-K dot: MXU accumulates over K internally ----
    y = jnp.dot(patch_ref[...], w0_ref[...], preferred_element_type=jnp.float32)
    y = y + b0_ref[...]
    if has_res:
        y = y + res_ref[...].astype(jnp.float32)
    if want_pre:
        pre_ref[...] = y
    if relu0:
        y = jnp.maximum(y, 0.0)
    out0_ref[...] = y.astype(out0_ref.dtype)

    # ---- parallel 1x1 shortcut conv on the shared input block ----
    if sc_tap is not None:
        for b in range(nb):
            xs = x_ref[b * flat + sc_tap:b * flat + sc_tap + mf, :]
            ysc = jnp.dot(xs, wsc_ref[...], preferred_element_type=jnp.float32)
            ysc = ysc + bsc_ref[...]
            if relu_sc:
                ysc = jnp.maximum(ysc, 0.0)
            outsc_ref[b * mf:(b + 1) * mf, :] = ysc.astype(outsc_ref.dtype)


def fused_conv(x, *, stride, w0, b0, relu0=True,
               w_sc=None, b_sc=None, relu_sc=False,
               residual_flat=None, want_preact=False,
               cout_tile=None, batch_block=None):
    """3x3 conv (pad=1, stride 1 or 2) + folded BN [+ residual] [+ preact] [+ ReLU],
    optionally fused with a parallel 1x1 (same-stride) shortcut conv, in ONE pallas_call.

    x : (B, H, W, Cin_p) bf16, channels already lane-padded.
    Returns (outputs_tuple, (oh, ow, pw_out, mf)); outputs are in flat (B*mf, Cout_p)
    layout: row m = r*pw_out + c, valid for c < ow (rest garbage columns/rows).
    """
    B, H, W, cin_p = x.shape
    k0, cout_p = w0.shape
    assert k0 == 9 * cin_p
    oh = (H + 2 - 3) // stride + 1
    ow = (W + 2 - 3) // stride + 1

    if stride == 1:
        ph, pw = H + 2, W + 2
        pw_out = pw
        mf = _round_up(oh * pw_out, 16)
        xp = jnp.pad(x, ((0, 0), (1, 1), (1, 1), (0, 0)))
        xf = xp.reshape(B, ph * pw, cin_p)
        taps0 = tuple(di * pw + dj for di in range(3) for dj in range(3))
        sc_tap = (pw + 1) if w_sc is not None else None
    else:
        assert stride == 2, "BasicBlock only uses stride 1 or 2"
        hp, wp = H + 2, W + 2
        xp = jnp.pad(x, ((0, 0), (1, 1 + hp % 2), (1, 1 + wp % 2), (0, 0)))
        hp += hp % 2
        wp += wp % 2
        php, pwp = hp // 2, wp // 2
        pw_out = pwp
        mf = _round_up(oh * pw_out, 16)
        flatp = _round_up(max(pwp + 1 + mf, php * pwp), 16)
        # Even/odd row/col phases: every stride-2 tap becomes a contiguous slice.
        phases = [xp[:, i::2, j::2, :].reshape(B, php * pwp, cin_p)
                  for i in (0, 1) for j in (0, 1)]
        phases = [jnp.pad(p, ((0, 0), (0, flatp - php * pwp), (0, 0))) for p in phases]
        xf = jnp.concatenate(phases, axis=1)
        taps0 = tuple(((di % 2) * 2 + (dj % 2)) * flatp + (di // 2) * pwp + (dj // 2)
                      for di in range(3) for dj in range(3))
        # 1x1 stride-2 conv reads x[2r, 2c] = padded[2r+1, 2c+1] = phase (1,1).
        sc_tap = 3 * flatp if w_sc is not None else None

    flat_img = xf.shape[1]
    need = max(taps0) + mf
    if sc_tap is not None:
        need = max(need, sc_tap + mf)
    flat = _round_up(max(need, flat_img), 16)
    if flat > flat_img:
        xf = jnp.pad(xf, ((0, 0), (0, flat - flat_img), (0, 0)))
    xf = xf.reshape(B * flat, cin_p)

    # Batch blocking: raise dot-M when the batch is large, but always keep >=2
    # parallel grid steps so both v7x TensorCores get work.
    if batch_block is None:
        nb = 1
        for cand in (4, 2):
            if B % cand == 0 and B // cand >= 2:
                nb = cand
                break
    else:
        nb = batch_block
    assert B % nb == 0

    tco = cout_tile if cout_tile is not None else (256 if cout_p % 256 == 0 else 128)
    assert cout_p % tco == 0
    n_co = cout_p // tco

    inputs = [xf, w0, b0]
    in_specs = [
        pl.BlockSpec((nb * flat, cin_p), lambda g, co: (g, 0)),
        pl.BlockSpec((9 * cin_p, tco), lambda g, co: (0, co)),
        pl.BlockSpec((1, tco), lambda g, co: (0, co)),
    ]
    if sc_tap is not None:
        assert w_sc.shape == (cin_p, cout_p)
        inputs += [w_sc, b_sc]
        in_specs += [pl.BlockSpec((cin_p, tco), lambda g, co: (0, co)),
                     pl.BlockSpec((1, tco), lambda g, co: (0, co))]
    if residual_flat is not None:
        assert residual_flat.shape == (B * mf, cout_p)
        inputs.append(residual_flat)
        in_specs.append(pl.BlockSpec((nb * mf, tco), lambda g, co: (g, co)))

    out_shape = [jax.ShapeDtypeStruct((B * mf, cout_p), jnp.bfloat16)]
    out_specs = [pl.BlockSpec((nb * mf, tco), lambda g, co: (g, co))]
    if sc_tap is not None:
        out_shape.append(jax.ShapeDtypeStruct((B * mf, cout_p), jnp.bfloat16))
        out_specs.append(pl.BlockSpec((nb * mf, tco), lambda g, co: (g, co)))
    if want_preact:
        out_shape.append(jax.ShapeDtypeStruct((B * mf, cout_p), jnp.float32))
        out_specs.append(pl.BlockSpec((nb * mf, tco), lambda g, co: (g, co)))

    flops = 2 * B * mf * 9 * cin_p * cout_p
    bytes_acc = xf.size * 2 + w0.size * 2 + B * mf * cout_p * 2 + b0.size * 4
    if sc_tap is not None:
        flops += 2 * B * mf * cin_p * cout_p
        bytes_acc += w_sc.size * 2 + B * mf * cout_p * 2
    if residual_flat is not None:
        bytes_acc += residual_flat.size * 2
    if want_preact:
        bytes_acc += B * mf * cout_p * 4
    cost = pl.CostEstimate(flops=int(flops), transcendentals=0,
                           bytes_accessed=int(bytes_acc))

    kern = functools.partial(
        _fused_conv_kernel, taps0=taps0, sc_tap=sc_tap, mf=mf, flat=flat,
        cin=cin_p, nb=nb, relu0=relu0, relu_sc=relu_sc,
        has_res=residual_flat is not None, want_pre=want_preact)

    outs = pl.pallas_call(
        kern,
        out_shape=out_shape,
        grid=(B // nb, n_co),
        in_specs=in_specs,
        out_specs=out_specs,
        scratch_shapes=[pltpu.VMEM((nb * mf, 9 * cin_p), jnp.bfloat16)],
        compiler_params=pltpu.CompilerParams(
            dimension_semantics=("parallel", "parallel"),
            vmem_limit_bytes=32 * 1024 * 1024),
        cost_estimate=cost,
    )(*inputs)

    if not isinstance(outs, (list, tuple)):
        outs = (outs,)
    return tuple(outs), (oh, ow, pw_out, mf)


# ---------------------------------------------------------------------------
# Layout helpers (tiny wrapper-side ops)
# ---------------------------------------------------------------------------
def _unflatten(flat_out, B, oh, ow, pw_out, mf):
    c = flat_out.shape[-1]
    t = flat_out.reshape(B, mf, c)[:, :oh * pw_out, :]
    return t.reshape(B, oh, pw_out, c)[:, :, :ow, :]


def _to_res_layout(x4d, pw_out, mf):
    B, oh, ow, c = x4d.shape
    r = jnp.pad(x4d, ((0, 0), (0, 0), (0, pw_out - ow), (0, 0))).reshape(B, oh * pw_out, c)
    if mf > oh * pw_out:
        r = jnp.pad(r, ((0, 0), (0, mf - oh * pw_out), (0, 0)))
    return r.reshape(B * mf, c)


# ---------------------------------------------------------------------------
# BasicBlock forward (Pallas)
# ---------------------------------------------------------------------------
@functools.partial(jax.jit, static_argnames=("stride", "planes", "is_last"))
def basic_block_forward(x_nchw, packed, *, stride, planes, is_last):
    """Forward of BasicBlock.  x: (B, C, H, W) f32 NCHW.  Returns NCHW f32 (+ preact)."""
    B, C, H, W = x_nchw.shape
    cin_p = _round_up(C, 128)
    x = jnp.transpose(x_nchw, (0, 2, 3, 1))
    x = jnp.pad(x, ((0, 0), (0, 0), (0, 0), (0, cin_p - C))).astype(jnp.bfloat16)

    has_sc = "ws" in packed
    if has_sc:
        # conv1 (3x3, stride s) and the 1x1 downsample shortcut share one pallas_call.
        (h_f, sc_f), meta1 = fused_conv(
            x, stride=stride, w0=packed["w1"], b0=packed["b1"], relu0=True,
            w_sc=packed["ws"], b_sc=packed["bs"], relu_sc=False)
    else:
        (h_f,), meta1 = fused_conv(
            x, stride=stride, w0=packed["w1"], b0=packed["b1"], relu0=True)
    oh, ow, pw1, mf1 = meta1
    h = _unflatten(h_f, B, oh, ow, pw1, mf1)
    sc = _unflatten(sc_f, B, oh, ow, pw1, mf1) if has_sc else x

    # Residual for conv2 must be in conv2's output flat layout.
    pw2 = ow + 2
    mf2 = _round_up(oh * pw2, 16)
    res_flat = _to_res_layout(sc, pw2, mf2)

    # conv2 -> bn2 -> (+shortcut) -> preact -> relu, all in one kernel epilogue.
    if is_last:
        (out_f, pre_f), meta2 = fused_conv(
            h, stride=1, w0=packed["w2"], b0=packed["b2"], relu0=True,
            residual_flat=res_flat, want_preact=True)
    else:
        (out_f,), meta2 = fused_conv(
            h, stride=1, w0=packed["w2"], b0=packed["b2"], relu0=True,
            residual_flat=res_flat, want_preact=False)
    oh2, ow2, pw2b, mf2b = meta2
    assert (oh2, ow2, pw2b, mf2b) == (oh, ow, pw2, mf2)

    out = _unflatten(out_f, B, oh2, ow2, pw2b, mf2b)

    def to_nchw(t):
        return jnp.transpose(t[..., :planes], (0, 3, 1, 2)).astype(jnp.float32)

    if is_last:
        pre = _unflatten(pre_f, B, oh2, ow2, pw2b, mf2b)
        return to_nchw(out), to_nchw(pre)
    return to_nchw(out)


# ---------------------------------------------------------------------------
# Parameter init / packing (done once, outside the hot path)
# ---------------------------------------------------------------------------
def pack_conv_bn(w_oihw, gamma, beta, mean, var):
    """Fold eval-mode BN into the conv; lay out weights tap-major along K for the
    concatenated-K MXU dot: (kh*kw*Cin_p, Cout_p) bf16."""
    s = gamma / jnp.sqrt(var + BN_EPS)
    bias = beta - mean * s
    w = w_oihw * s[:, None, None, None]
    o, i, kh, kw = w.shape
    ip, op = _round_up(i, 128), _round_up(o, 128)
    w = jnp.transpose(w, (2, 3, 1, 0))                              # (kh, kw, Cin, O)
    w = jnp.pad(w, ((0, 0), (0, 0), (0, ip - i), (0, op - o)))
    w = w.reshape(kh * kw * ip, op).astype(jnp.bfloat16)
    bias = jnp.pad(bias, (0, op - o)).reshape(1, op).astype(jnp.float32)
    return w, bias


def init_basic_block(key, in_planes, planes, stride):
    ks = iter(jax.random.split(key, 24))

    def conv_w(o, i, k):
        fan_in = i * k * k
        return jax.random.normal(next(ks), (o, i, k, k), jnp.float32) * math.sqrt(2.0 / fan_in)

    def bn_stats(c):
        g = 1.0 + 0.1 * jax.random.normal(next(ks), (c,), jnp.float32)
        b = 0.1 * jax.random.normal(next(ks), (c,), jnp.float32)
        m = 0.1 * jax.random.normal(next(ks), (c,), jnp.float32)
        v = jax.random.uniform(next(ks), (c,), jnp.float32, 0.8, 1.2)
        return (g, b, m, v)

    raw = {
        "conv1_w": conv_w(planes, in_planes, 3), "bn1": bn_stats(planes),
        "conv2_w": conv_w(planes, planes, 3), "bn2": bn_stats(planes),
    }
    if stride != 1 or in_planes != planes:
        raw["sc_w"] = conv_w(planes, in_planes, 1)
        raw["bn_sc"] = bn_stats(planes)

    packed = {}
    packed["w1"], packed["b1"] = pack_conv_bn(raw["conv1_w"], *raw["bn1"])
    packed["w2"], packed["b2"] = pack_conv_bn(raw["conv2_w"], *raw["bn2"])
    if "sc_w" in raw:
        packed["ws"], packed["bs"] = pack_conv_bn(raw["sc_w"], *raw["bn_sc"])
    return raw, packed


# ---------------------------------------------------------------------------
# Pure-JAX reference (matches the kernel's bf16-input / f32-accumulate numerics)
# ---------------------------------------------------------------------------
def basic_block_reference(x_nchw, raw, *, stride, is_last):
    f32 = jnp.float32

    def rb(t):  # round-trip through bf16 (activation storage dtype in the Pallas path)
        return t.astype(jnp.bfloat16).astype(f32)

    def conv_bn(x, w, bn, s_, p_):
        g, be, mu, va = bn
        sc = g / jnp.sqrt(va + BN_EPS)
        b = be - mu * sc
        wf = rb(w * sc[:, None, None, None])
        y = lax.conv_general_dilated(
            x, wf, (s_, s_), ((p_, p_), (p_, p_)),
            dimension_numbers=("NCHW", "OIHW", "NCHW"),
            precision=lax.Precision.HIGHEST)
        return y + b[None, :, None, None]

    x = rb(x_nchw)
    h = rb(jnp.maximum(conv_bn(x, raw["conv1_w"], raw["bn1"], stride, 1), 0.0))
    y = conv_bn(h, raw["conv2_w"], raw["bn2"], 1, 1)
    sc = rb(conv_bn(x, raw["sc_w"], raw["bn_sc"], stride, 0)) if "sc_w" in raw else x
    pre = y + sc
    out = rb(jnp.maximum(pre, 0.0))
    return (out, pre) if is_last else out


# ---------------------------------------------------------------------------
if __name__ == "__main__":
    key = jax.random.PRNGKey(0)
    kx, kp1, kp2 = jax.random.split(key, 3)

    B, C, H, W = 2, 64, 16, 16
    x = jax.random.normal(kx, (B, C, H, W), jnp.float32)

    # Block 1: stride-1, identity shortcut, is_last=False  -> returns out only.
    raw1, packed1 = init_basic_block(kp1, in_planes=64, planes=64, stride=1)
    out1 = basic_block_forward(x, packed1, stride=1, planes=64, is_last=False)
    out1 = jax.block_until_ready(out1)
    ref1 = basic_block_reference(x, raw1, stride=1, is_last=False)
    assert out1.shape == (B, 64, H, W), out1.shape
    assert bool(jnp.all(jnp.isfinite(out1)))
    assert bool(jnp.allclose(out1, ref1, atol=5e-2, rtol=5e-2)), \
        float(jnp.max(jnp.abs(out1 - ref1)))

    # Block 2: stride-2, 1x1-conv downsample shortcut, is_last=True -> (out, preact).
    raw2, packed2 = init_basic_block(kp2, in_planes=64, planes=128, stride=2)
    out2, pre2 = basic_block_forward(x, packed2, stride=2, planes=128, is_last=True)
    out2, pre2 = jax.block_until_ready((out2, pre2))
    rout2, rpre2 = basic_block_reference(x, raw2, stride=2, is_last=True)
    assert out2.shape == (B, 128, H // 2, W // 2) and pre2.shape == out2.shape
    assert bool(jnp.all(out2 >= 0.0))
    assert bool(jnp.allclose(out2, rout2, atol=5e-2, rtol=5e-2)), \
        float(jnp.max(jnp.abs(out2 - rout2)))
    assert bool(jnp.allclose(pre2, rpre2, atol=5e-2, rtol=5e-2)), \
        float(jnp.max(jnp.abs(pre2 - rpre2)))

    print("KERNEL_OK")
</pallas_src>

<mosaic_0001>
module attributes {stable_mosaic.version = 11 : i64} {
  func.func @_fused_conv_kernel(%arg0: i32, %arg1: i32, %arg2: memref<336x128xbf16, #tpu.memory_space<vmem>>, %arg3: memref<1152x128xbf16, #tpu.memory_space<vmem>>, %arg4: memref<1x128xf32, #tpu.memory_space<vmem>>, %arg5: memref<288x128xbf16, #tpu.memory_space<vmem>>, %arg6: memref<288x1152xbf16, #tpu.memory_space<vmem>>) attributes {dimension_semantics = [#tpu.dimension_semantics<parallel>, #tpu.dimension_semantics<parallel>], iteration_bounds = array<i64: 2, 1>, scalar_prefetch = 0 : i64, scratch_operands = 1 : i64, tpu.core_type = #tpu.core_type<tc>, window_params = [{transform_indices = @transform_0, window_bounds = array<i64: 336, 128>}, {transform_indices = @transform_1, window_bounds = array<i64: 1152, 128>}, {transform_indices = @transform_2, window_bounds = array<i64: 1, 128>}, {transform_indices = @transform_3, window_bounds = array<i64: 288, 128>}]} {
    %c0 = arith.constant 0 : index
    %c0_0 = arith.constant 0 : index
    %0 = vector.load %arg2[%c0, %c0_0] : memref<336x128xbf16, #tpu.memory_space<vmem>>, vector<288x128xbf16>
    %c0_1 = arith.constant 0 : index
    %c0_2 = arith.constant 0 : index
    %1 = vector.load %arg6[%c0_1, %c0_2] : memref<288x1152xbf16, #tpu.memory_space<vmem>>, vector<288x128xbf16>
    tpu.vector_store %arg6[%c0_1, %c0_2], %0 {strides = array<i32>} : memref<288x1152xbf16, #tpu.memory_space<vmem>>, vector<288x128xbf16>,
    %c1 = arith.constant 1 : index
    %c0_3 = arith.constant 0 : index
    %2 = vector.load %arg2[%c1, %c0_3] : memref<336x128xbf16, #tpu.memory_space<vmem>>, vector<288x128xbf16>
    %c0_4 = arith.constant 0 : index
    %c128 = arith.constant 128 : index
    %3 = vector.load %arg6[%c0_4, %c128] : memref<288x1152xbf16, #tpu.memory_space<vmem>>, vector<288x128xbf16>
    tpu.vector_store %arg6[%c0_4, %c128], %2 {strides = array<i32>} : memref<288x1152xbf16, #tpu.memory_space<vmem>>, vector<288x128xbf16>,
    %c2 = arith.constant 2 : index
    %c0_5 = arith.constant 0 : index
    %4 = vector.load %arg2[%c2, %c0_5] : memref<336x128xbf16, #tpu.memory_space<vmem>>, vector<288x128xbf16>
    %c0_6 = arith.constant 0 : index
    %c256 = arith.constant 256 : index
    %5 = vector.load %arg6[%c0_6, %c256] : memref<288x1152xbf16, #tpu.memory_space<vmem>>, vector<288x128xbf16>
    tpu.vector_store %arg6[%c0_6, %c256], %4 {strides = array<i32>} : memref<288x1152xbf16, #tpu.memory_space<vmem>>, vector<288x128xbf16>,
    %c18 = arith.constant 18 : index
    %c0_7 = arith.constant 0 : index
    %6 = vector.load %arg2[%c18, %c0_7] : memref<336x128xbf16, #tpu.memory_space<vmem>>, vector<288x128xbf16>
    %c0_8 = arith.constant 0 : index
    %c384 = arith.constant 384 : index
    %7 = vector.load %arg6[%c0_8, %c384] : memref<288x1152xbf16, #tpu.memory_space<vmem>>, vector<288x128xbf16>
    tpu.vector_store %arg6[%c0_8, %c384], %6 {strides = array<i32>} : memref<288x1152xbf16, #tpu.memory_space<vmem>>, vector<288x128xbf16>,
    %c19 = arith.constant 19 : index
    %c0_9 = arith.constant 0 : index
    %8 = vector.load %arg2[%c19, %c0_9] : memref<336x128xbf16, #tpu.memory_space<vmem>>, vector<288x128xbf16>
    %c0_10 = arith.constant 0 : index
    %c512 = arith.constant 512 : index
    %9 = vector.load %arg6[%c0_10, %c512] : memref<288x1152xbf16, #tpu.memory_space<vmem>>, vector<288x128xbf16>
    tpu.vector_store %arg6[%c0_10, %c512], %8 {strides = array<i32>} : memref<288x1152xbf16, #tpu.memory_space<vmem>>, vector<288x128xbf16>,
    %c20 = arith.constant 20 : index
    %c0_11 = arith.constant 0 : index
    %10 = vector.load %arg2[%c20, %c0_11] : memref<336x128xbf16, #tpu.memory_space<vmem>>, vector<288x128xbf16>
    %c0_12 = arith.constant 0 : index
    %c640 = arith.constant 640 : index
    %11 = vector.load %arg6[%c0_12, %c640] : memref<288x1152xbf16, #tpu.memory_space<vmem>>, vector<288x128xbf16>
    tpu.vector_store %arg6[%c0_12, %c640], %10 {strides = array<i32>} : memref<288x1152xbf16, #tpu.memory_space<vmem>>, vector<288x128xbf16>,
    %c36 = arith.constant 36 : index
    %c0_13 = arith.constant 0 : index
    %12 = vector.load %arg2[%c36, %c0_13] : memref<336x128xbf16, #tpu.memory_space<vmem>>, vector<288x128xbf16>
    %c0_14 = arith.constant 0 : index
    %c768 = arith.constant 768 : index
    %13 = vector.load %arg6[%c0_14, %c768] : memref<288x1152xbf16, #tpu.memory_space<vmem>>, vector<288x128xbf16>
    tpu.vector_store %arg6[%c0_14, %c768], %12 {strides = array<i32>} : memref<288x1152xbf16, #tpu.memory_space<vmem>>, vector<288x128xbf16>,
    %c37 = arith.constant 37 : index
    %c0_15 = arith.constant 0 : index
    %14 = vector.load %arg2[%c37, %c0_15] : memref<336x128xbf16, #tpu.memory_space<vmem>>, vector<288x128xbf16>
    %c0_16 = arith.constant 0 : index
    %c896 = arith.constant 896 : index
    %15 = vector.load %arg6[%c0_16, %c896] : memref<288x1152xbf16, #tpu.memory_space<vmem>>, vector<288x128xbf16>
    tpu.vector_store %arg6[%c0_16, %c896], %14 {strides = array<i32>} : memref<288x1152xbf16, #tpu.memory_space<vmem>>, vector<288x128xbf16>,
    %c38 = arith.constant 38 : index
    %c0_17 = arith.constant 0 : index
    %16 = vector.load %arg2[%c38, %c0_17] : memref<336x128xbf16, #tpu.memory_space<vmem>>, vector<288x128xbf16>
    %c0_18 = arith.constant 0 : index
    %c1024 = arith.constant 1024 : index
    %17 = vector.load %arg6[%c0_18, %c1024] : memref<288x1152xbf16, #tpu.memory_space<vmem>>, vector<288x128xbf16>
    tpu.vector_store %arg6[%c0_18, %c1024], %16 {strides = array<i32>} : memref<288x1152xbf16, #tpu.memory_space<vmem>>, vector<288x128xbf16>,
    %c0_19 = arith.constant 0 : index
    %c0_20 = arith.constant 0 : index
    %18 = vector.load %arg6[%c0_19, %c0_20] : memref<288x1152xbf16, #tpu.memory_space<vmem>>, vector<288x1152xbf16>
    %c0_21 = arith.constant 0 : index
    %c0_22 = arith.constant 0 : index
    %19 = vector.load %arg3[%c0_21, %c0_22] : memref<1152x128xbf16, #tpu.memory_space<vmem>>, vector<1152x128xbf16>
    %cst = arith.constant dense<0.000000e+00> : vector<288x128xf32>
    %20 = tpu.matmul %18, %19, %cst {dimension_numbers = #tpu.dot_dimension_numbers<[1], [0], [0], [1], [0, 0, 1, 1], [], []>} : vector<288x1152xbf16>, vector<1152x128xbf16>, vector<288x128xf32> -> vector<288x128xf32>
    %c0_23 = arith.constant 0 : index
    %c0_24 = arith.constant 0 : index
    %21 = vector.load %arg4[%c0_23, %c0_24] : memref<1x128xf32, #tpu.memory_space<vmem>>, vector<1x128xf32>
    %22 = vector.broadcast %21 : vector<1x128xf32> to vector<288x128xf32>
    %23 = arith.addf %20, %22 : vector<288x128xf32>
    %cst_25 = arith.constant 0.000000e+00 : f32
    %24 = vector.broadcast %cst_25 : f32 to vector<288x128xf32>
    %25 = arith.maximumf %23, %24 : vector<288x128xf32>
    %26 = arith.truncf %25 : vector<288x128xf32> to vector<288x128xbf16>
    %c0_26 = arith.constant 0 : index
    %c0_27 = arith.constant 0 : index
    %27 = vector.load %arg5[%c0_26, %c0_27] : memref<288x128xbf16, #tpu.memory_space<vmem>>, vector<288x128xbf16>
    tpu.vector_store %arg5[%c0_26, %c0_27], %26 {strides = array<i32>} : memref<288x128xbf16, #tpu.memory_space<vmem>>, vector<288x128xbf16>,
    return
  }
  func.func @transform_0(%arg0: i32, %arg1: i32) -> (i32, i32) {
    %c0_i32 = arith.constant 0 : i32
    %c0_i32_0 = arith.constant 0 : i32
    return %arg0, %c0_i32 : i32, i32
  }
  func.func @transform_1(%arg0: i32, %arg1: i32) -> (i32, i32) {
    %c0_i32 = arith.constant 0 : i32
    %c0_i32_0 = arith.constant 0 : i32
    return %c0_i32, %arg1 : i32, i32
  }
  func.func @transform_2(%arg0: i32, %arg1: i32) -> (i32, i32) {
    %c0_i32 = arith.constant 0 : i32
    %c0_i32_0 = arith.constant 0 : i32
    return %c0_i32, %arg1 : i32, i32
  }
  func.func @transform_3(%arg0: i32, %arg1: i32) -> (i32, i32) {
    %c0_i32 = arith.constant 0 : i32
    return %arg0, %arg1 : i32, i32
  }
}

module attributes {stable_mosaic.version = 11 : i64} {
  func.func @_fused_conv_kernel(%arg0: i32, %arg1: i32, %arg2: memref<336x128xbf16, #tpu.memory_space<vmem>>, %arg3: memref<1152x128xbf16, #tpu.memory_space<vmem>>, %arg4: memref<1x128xf32, #tpu.memory_space<vmem>>, %arg5: memref<288x128xbf16, #tpu.memory_space<vmem>>, %arg6: memref<288x128xbf16, #tpu.memory_space<vmem>>, %arg7: memref<288x1152xbf16, #tpu.memory_space<vmem>>) attributes {dimension_semantics = [#tpu.dimension_semantics<parallel>, #tpu.dimension_semantics<parallel>], iteration_bounds = array<i64: 2, 1>, scalar_prefetch = 0 : i64, scratch_operands = 1 : i64, tpu.core_type = #tpu.core_type<tc>, window_params = [{transform_indices = @transform_0, window_bounds = array<i64: 336, 128>}, {transform_indices = @transform_1, window_bounds = array<i64: 1152, 128>}, {transform_indices = @transform_2, window_bounds = array<i64: 1, 128>}, {transform_indices = @transform_3, window_bounds = array<i64: 288, 128>}, {transform_indices = @transform_4, window_bounds = array<i64: 288, 128>}]} {
    %c0 = arith.constant 0 : index
    %c0_0 = arith.constant 0 : index
    %0 = vector.load %arg2[%c0, %c0_0] : memref<336x128xbf16, #tpu.memory_space<vmem>>, vector<288x128xbf16>
    %c0_1 = arith.constant 0 : index
    %c0_2 = arith.constant 0 : index
    %1 = vector.load %arg7[%c0_1, %c0_2] : memref<288x1152xbf16, #tpu.memory_space<vmem>>, vector<288x128xbf16>
    tpu.vector_store %arg7[%c0_1, %c0_2], %0 {strides = array<i32>} : memref<288x1152xbf16, #tpu.memory_space<vmem>>, vector<288x128xbf16>,
    %c1 = arith.constant 1 : index
    %c0_3 = arith.constant 0 : index
    %2 = vector.load %arg2[%c1, %c0_3] : memref<336x128xbf16, #tpu.memory_space<vmem>>, vector<288x128xbf16>
    %c0_4 = arith.constant 0 : index
    %c128 = arith.constant 128 : index
    %3 = vector.load %arg7[%c0_4, %c128] : memref<288x1152xbf16, #tpu.memory_space<vmem>>, vector<288x128xbf16>
    tpu.vector_store %arg7[%c0_4, %c128], %2 {strides = array<i32>} : memref<288x1152xbf16, #tpu.memory_space<vmem>>, vector<288x128xbf16>,
    %c2 = arith.constant 2 : index
    %c0_5 = arith.constant 0 : index
    %4 = vector.load %arg2[%c2, %c0_5] : memref<336x128xbf16, #tpu.memory_space<vmem>>, vector<288x128xbf16>
    %c0_6 = arith.constant 0 : index
    %c256 = arith.constant 256 : index
    %5 = vector.load %arg7[%c0_6, %c256] : memref<288x1152xbf16, #tpu.memory_space<vmem>>, vector<288x128xbf16>
    tpu.vector_store %arg7[%c0_6, %c256], %4 {strides = array<i32>} : memref<288x1152xbf16, #tpu.memory_space<vmem>>, vector<288x128xbf16>,
    %c18 = arith.constant 18 : index
    %c0_7 = arith.constant 0 : index
    %6 = vector.load %arg2[%c18, %c0_7] : memref<336x128xbf16, #tpu.memory_space<vmem>>, vector<288x128xbf16>
    %c0_8 = arith.constant 0 : index
    %c384 = arith.constant 384 : index
    %7 = vector.load %arg7[%c0_8, %c384] : memref<288x1152xbf16, #tpu.memory_space<vmem>>, vector<288x128xbf16>
    tpu.vector_store %arg7[%c0_8, %c384], %6 {strides = array<i32>} : memref<288x1152xbf16, #tpu.memory_space<vmem>>, vector<288x128xbf16>,
    %c19 = arith.constant 19 : index
    %c0_9 = arith.constant 0 : index
    %8 = vector.load %arg2[%c19, %c0_9] : memref<336x128xbf16, #tpu.memory_space<vmem>>, vector<288x128xbf16>
    %c0_10 = arith.constant 0 : index
    %c512 = arith.constant 512 : index
    %9 = vector.load %arg7[%c0_10, %c512] : memref<288x1152xbf16, #tpu.memory_space<vmem>>, vector<288x128xbf16>
    tpu.vector_store %arg7[%c0_10, %c512], %8 {strides = array<i32>} : memref<288x1152xbf16, #tpu.memory_space<vmem>>, vector<288x128xbf16>,
    %c20 = arith.constant 20 : index
    %c0_11 = arith.constant 0 : index
    %10 = vector.load %arg2[%c20, %c0_11] : memref<336x128xbf16, #tpu.memory_space<vmem>>, vector<288x128xbf16>
    %c0_12 = arith.constant 0 : index
    %c640 = arith.constant 640 : index
    %11 = vector.load %arg7[%c0_12, %c640] : memref<288x1152xbf16, #tpu.memory_space<vmem>>, vector<288x128xbf16>
    tpu.vector_store %arg7[%c0_12, %c640], %10 {strides = array<i32>} : memref<288x1152xbf16, #tpu.memory_space<vmem>>, vector<288x128xbf16>,
    %c36 = arith.constant 36 : index
    %c0_13 = arith.constant 0 : index
    %12 = vector.load %arg2[%c36, %c0_13] : memref<336x128xbf16, #tpu.memory_space<vmem>>, vector<288x128xbf16>
    %c0_14 = arith.constant 0 : index
    %c768 = arith.constant 768 : index
    %13 = vector.load %arg7[%c0_14, %c768] : memref<288x1152xbf16, #tpu.memory_space<vmem>>, vector<288x128xbf16>
    tpu.vector_store %arg7[%c0_14, %c768], %12 {strides = array<i32>} : memref<288x1152xbf16, #tpu.memory_space<vmem>>, vector<288x128xbf16>,
    %c37 = arith.constant 37 : index
    %c0_15 = arith.constant 0 : index
    %14 = vector.load %arg2[%c37, %c0_15] : memref<336x128xbf16, #tpu.memory_space<vmem>>, vector<288x128xbf16>
    %c0_16 = arith.constant 0 : index
    %c896 = arith.constant 896 : index
    %15 = vector.load %arg7[%c0_16, %c896] : memref<288x1152xbf16, #tpu.memory_space<vmem>>, vector<288x128xbf16>
    tpu.vector_store %arg7[%c0_16, %c896], %14 {strides = array<i32>} : memref<288x1152xbf16, #tpu.memory_space<vmem>>, vector<288x128xbf16>,
    %c38 = arith.constant 38 : index
    %c0_17 = arith.constant 0 : index
    %16 = vector.load %arg2[%c38, %c0_17] : memref<336x128xbf16, #tpu.memory_space<vmem>>, vector<288x128xbf16>
    %c0_18 = arith.constant 0 : index
    %c1024 = arith.constant 1024 : index
    %17 = vector.load %arg7[%c0_18, %c1024] : memref<288x1152xbf16, #tpu.memory_space<vmem>>, vector<288x128xbf16>
    tpu.vector_store %arg7[%c0_18, %c1024], %16 {strides = array<i32>} : memref<288x1152xbf16, #tpu.memory_space<vmem>>, vector<288x128xbf16>,
    %c0_19 = arith.constant 0 : index
    %c0_20 = arith.constant 0 : index
    %18 = vector.load %arg7[%c0_19, %c0_20] : memref<288x1152xbf16, #tpu.memory_space<vmem>>, vector<288x1152xbf16>
    %c0_21 = arith.constant 0 : index
    %c0_22 = arith.constant 0 : index
    %19 = vector.load %arg3[%c0_21, %c0_22] : memref<1152x128xbf16, #tpu.memory_space<vmem>>, vector<1152x128xbf16>
    %cst = arith.constant dense<0.000000e+00> : vector<288x128xf32>
    %20 = tpu.matmul %18, %19, %cst {dimension_numbers = #tpu.dot_dimension_numbers<[1], [0], [0], [1], [0, 0, 1, 1], [], []>} : vector<288x1152xbf16>, vector<1152x128xbf16>, vector<288x128xf32> -> vector<288x128xf32>
    %c0_23 = arith.constant 0 : index
    %c0_24 = arith.constant 0 : index
    %21 = vector.load %arg4[%c0_23, %c0_24] : memref<1x128xf32, #tpu.memory_space<vmem>>, vector<1x128xf32>
    %22 = vector.broadcast %21 : vector<1x128xf32> to vector<288x128xf32>
    %23 = arith.addf %20, %22 : vector<288x128xf32>
    %c0_25 = arith.constant 0 : index
    %c0_26 = arith.constant 0 : index
    %24 = vector.load %arg5[%c0_25, %c0_26] : memref<288x128xbf16, #tpu.memory_space<vmem>>, vector<288x128xbf16>
    %25 = arith.extf %24 : vector<288x128xbf16> to vector<288x128xf32>
    %26 = arith.addf %23, %25 : vector<288x128xf32>
    %cst_27 = arith.constant 0.000000e+00 : f32
    %27 = vector.broadcast %cst_27 : f32 to vector<288x128xf32>
    %28 = arith.maximumf %26, %27 : vector<288x128xf32>
    %29 = arith.truncf %28 : vector<288x128xf32> to vector<288x128xbf16>
    %c0_28 = arith.constant 0 : index
    %c0_29 = arith.constant 0 : index
    %30 = vector.load %arg6[%c0_28, %c0_29] : memref<288x128xbf16, #tpu.memory_space<vmem>>, vector<288x128xbf16>
    tpu.vector_store %arg6[%c0_28, %c0_29], %29 {strides = array<i32>} : memref<288x128xbf16, #tpu.memory_space<vmem>>, vector<288x128xbf16>,
    return
  }
  func.func @transform_0(%arg0: i32, %arg1: i32) -> (i32, i32) {
    %c0_i32 = arith.constant 0 : i32
    %c0_i32_0 = arith.constant 0 : i32
    return %arg0, %c0_i32 : i32, i32
  }
  func.func @transform_1(%arg0: i32, %arg1: i32) -> (i32, i32) {
    %c0_i32 = arith.constant 0 : i32
    %c0_i32_0 = arith.constant 0 : i32
    return %c0_i32, %arg1 : i32, i32
  }
  func.func @transform_2(%arg0: i32, %arg1: i32) -> (i32, i32) {
    %c0_i32 = arith.constant 0 : i32
    %c0_i32_0 = arith.constant 0 : i32
    return %c0_i32, %arg1 : i32, i32
  }
  func.func @transform_3(%arg0: i32, %arg1: i32) -> (i32, i32) {
    %c0_i32 = arith.constant 0 : i32
    return %arg0, %arg1 : i32, i32
  }
  func.func @transform_4(%arg0: i32, %arg1: i32) -> (i32, i32) {
    %c0_i32 = arith.constant 0 : i32
    return %arg0, %arg1 : i32, i32
  }
}

</mosaic_0001>

<bundles_post_ra>
// kernel: basic_block_forward.2
= control target key start
LH: loop header
LB: loop body
LE: loop exit
PB: predicated region body
PF: predicated region fallthrough
CT: control target
= control target key end

     0   :  { %s6688_s12 = smov 0   ;;  %s6690_s13 = smov 0   ;;  %s8889_s0 = inlined_call_operand.vmem [shape: bf16[672,128], index: 0, kind: input, shape index: {}]   ;;  %s8890_s1 = inlined_call_operand.vmem [shape: bf16[1152,128], index: 1, kind: input, shape index: {}]   ;;  %s8891_s2 = inlined_call_operand.vmem [shape: f32[1,128], index: 2, kind: input, shape index: {}]   ;;  %s8892_s3 = inlined_call_operand.vmem [shape: bf16[576,128], index: 3, kind: output, shape index: {}]  }
   0x1   :  { %s6692_s14 = smov 0  }
   0x2 LB: > { %s25_s15 = sadd.s32 1, %s6661_s13  ;;  %p5818_p0 = scmp.ge.s32.totalorder %s6665_s14, 1  ;;  %s6665_s14 = sphi %s6692_s14, %s13_s14   ;;  %s6661_s13 = sphi %s6690_s13, %s8944_s13   ;;  %s6657_s12 = sphi %s6688_s12, %s8943_s12  }
   0x3   : > { %p27_p1 = scmp.ge.s32.totalorder %s25_s15, 2  ;;  %p169_p2 = scmp.lt.s32.totalorder %s6665_s14, 3 }
   0x5   : > { %s8946_s15 = smov (%p27_p1, %s25_s15), 0  ;;  %p170_p3 = pnand %p5818_p0, %p169_p2 }
   0x7   : > { %173 = sbr.rel (%p170_p3) target bundleno = 689 (0x2b1), region = 32 }
   0xc   : > { %v6361_v0 = vld [vmem:[%s8890_s1 + $0x38] sm:$0xff]   ;;  %v6667_v1 = vmov 0   ;;  %v6363_v3 = vld [vmem:[%s8890_s1 + $0x30] sm:$0xff]   ;;  %v6365_v5 = vld [vmem:[%s8890_s1 + $0x28] sm:$0xff]   ;;  %s203_s7 = smul.u32 42, %s6657_s12  ;;  %vm848_vm0 = vcmask 1042432  }
   0xd   : > { %4609 = vmatprep.subr.bf16.mxu0 %v6667_v1  ;;  %4786 = vmatprep.subr.bf16.mxu1 %v6667_v1  ;;  %v6362_v2 = vld [vmem:[%s8890_s1 + $0xb8] sm:$0xff]   ;;  %v6364_v4 = vld [vmem:[%s8890_s1 + $0xb0] sm:$0xff]   ;;  %v6366_v6 = vld [vmem:[%s8890_s1 + $0xa8] sm:$0xff]   ;;  %vm849_vm1 = vcmask 1046532   ;;  %vm335_vm2 = vsmask.f32 3328 }
   0xe   : > { %4610 = vmatpush1.bf16.msra.mxu0 %v6361_v0  ;;  %4787 = vmatpush1.bf16.msra.mxu1 %v6362_v2  ;;  %v6367_v7 = vld [vmem:[%s8890_s1 + $0x20] sm:$0xff]   ;;  %v6369_v9 = vld [vmem:[%s8890_s1 + $0x18] sm:$0xff]   ;;  %v6371_v11 = vld [vmem:[%s8890_s1 + $0x10] sm:$0xff]   ;;  %p204_p4 = scmp.lt.s32.totalorder %s203_s7, 83  ;;  %vm336_vm3 = vsmask.f32 7440 }
   0xf   : > { %4611 = vmatprep.subr.bf16.mxu0 %v6667_v1  ;;  %4788 = vmatprep.subr.bf16.mxu1 %v6667_v1  ;;  %v6368_v8 = vld [vmem:[%s8890_s1 + $0xa0] sm:$0xff]   ;;  %v6370_v10 = vld [vmem:[%s8890_s1 + $0x98] sm:$0xff]   ;;  %v6372_v12 = vld [vmem:[%s8890_s1 + $0x90] sm:$0xff]   ;;  %vm1324_vm6 = vsmask.f32 2304  ;;  %vm1841_vm8 = vcmask 1041408  }
  0x10   : > { %v6373_v13 = vld [vmem:[%s8890_s1 + $0x8] sm:$0xff]   ;;  %s8948_s7 = smov (!%p204_p4, %s203_s7), 83  ;;  %v6375_v15 = vld [vmem:[%s8890_s1] sm:$0xff]   ;;  %v6377_v17 = vld [vmem:[%s8890_s1 + $0x78] sm:$0xff]   ;;  %vm1325_vm7 = vsmask.f32 6416 }
  0x11   : > { %v6374_v14 = vld [vmem:[%s8890_s1 + $0x88] sm:$0xff]   ;;  %s5819_s24 = sshll.u32 %s8948_s7, 2  ;;  %v6376_v16 = vld [vmem:[%s8890_s1 + $0x80] sm:$0xff]   ;;  %v6378_v18 = vld [vmem:[%s8890_s1 + $0xf8] sm:$0xff]   ;;  %vm1842_vm9 = vcmask 1045508   ;;  %vm2834_vm15 = vcmask 1040384  }
  0x12   : > { %4612 = vmatpush1.bf16.msra.mxu0 %v6363_v3  ;;  %4789 = vmatpush1.bf16.msra.mxu1 %v6364_v4  ;;  %s6776_s29 = scalar_lea.vmem %s8889_s0, %s5819_s24  ;;  %v6379_v24 = vld [vmem:[%s8890_s1 + $0x70] sm:$0xff]   ;;  %v6381_v33 = vld [vmem:[%s8890_s1 + $0x68] sm:$0xff]   ;;  %vm6806_vm4 = vmor %vm848_vm0, %vm849_vm1  ;;  %vm2317_vm12 = vsmask.f32 1280  ;;  %vm2318_vm13 = vsmask.f32 5392 }
  0x13   : > { %4613 = vmatprep.subr.bf16.mxu0 %v6667_v1  ;;  %4790 = vmatprep.subr.bf16.mxu1 %v6667_v1  ;;  %v226_v19 = vld [vmem:[%s6776_s29] sm:$0xf]  ;;  %v227_v20 = vld [vmem:[%s6776_s29 + $0x4] sm:$0xf]  ;;  %v300_v23 = vld [vmem:[%s6776_s29 + $0x8] sm:$0xf] }
  0x14   : > { %v298_v21 = vld [vmem:[%s6776_s29] sm:$0xf]  ;;  %262 = vst [vmem:[#allocation2] sm:$0xf] %v226_v19  ;;  %263 = vst [vmem:[#allocation2 + $0x24] sm:$0xf] %v227_v20 }
  0x15   : > { %v299_v22 = vld [vmem:[%s6776_s29 + $0x4] sm:$0xf]  ;;  %v339_v25 = vshrl.u32 %v298_v21, 16  ;;  %v342_v26 = vshll.u32 %v298_v21, 16  ;;  %v6380_v28 = vld [vmem:[%s8890_s1 + $0xf0] sm:$0xff]   ;;  %v358_v30 = vshll.u32 %v300_v23, 16  ;;  %vm6819_vm5 = vmor %vm335_vm2, %vm336_vm3 }
  0x16   : > { %4614 = vmatpush1.bf16.msra.mxu0 %v6365_v5  ;;  %4791 = vmatpush1.bf16.msra.mxu1 %v6366_v6  ;;  %v348_v27 = vshll.u32 %v299_v22, 16  ;;  %v352_v29 = vshrl.u32 %v299_v22, 16  ;;  %v362_v31 = vshrl.u32 %v300_v23, 16  ;;  %v774_v32 = vld [vmem:[%s6776_s29] sm:$0xe]  ;;  %v6382_v45 = vld [vmem:[%s8890_s1 + $0xe8] sm:$0xff]   ;;  %vm7398_vm10 = vmor %vm1841_vm8, %vm1842_vm9 }
  0x17   : > { %4615 = vmatprep.subr.bf16.mxu0 %v6667_v1  ;;  %4792 = vmatprep.subr.bf16.mxu1 %v6667_v1  ;;  %v341_v34 = vrot.slane %v339_v25, 4  ;;  %v344_v35 = vrot.slane %v342_v26, 5  ;;  %v775_v37 = vld [vmem:[%s6776_s29 + $0x4] sm:$0xf]  ;;  %v5821_v39 = vrot.slane %v774_v32, 9  ;;  %v360_v41 = vrot.slane %v358_v30, 5  ;;  %vm7405_vm11 = vmor %vm1324_vm6, %vm1325_vm7 }
  0x18   : > { %v350_v36 = vrot.slane %v348_v27, 5  ;;  %v354_v40 = vrot.slane %v352_v29, 4  ;;  %v364_v42 = vrot.slane %v362_v31, 4  ;;  %v776_v43 = vld [vmem:[%s6776_s29 + $0x8] sm:$0xf]  ;;  %v853_v44 = vrot.slane %v775_v37, 5  ;;  %vm7453_vm14 = vmor %vm2317_vm12, %vm2318_vm13 }
  0x19   : > { %v345_v46 = vor.u32 %v344_v35, %v341_v34  ;;  %v856_v47 = vrot.slane %v776_v43, 5  ;;  %v1032_v48 = vld [vmem:[%s6776_s29 + $0x8] sm:$0xe]  ;;  %v1033_v49 = vld [vmem:[%s6776_s29 + $0xc] sm:$0xf]  ;;  %v6383_v59 = vld [vmem:[%s8890_s1 + $0x60] sm:$0xff]  }
  0x1a   : > { %4616 = vmatpush1.bf16.msra.mxu0 %v6367_v7  ;;  %4793 = vmatpush1.bf16.msra.mxu1 %v6368_v8  ;;  %v355_v51 = vor.u32 %v354_v40, %v350_v36  ;;  %v365_v52 = vor.u32 %v364_v42, %v360_v41  ;;  %v854_v53 = vsel %vm6806_vm4, %v5821_v39, %v853_v44  ;;  %v855_v54 = vrot.slane %v853_v44, 4  ;;  %v1034_v55 = vld [vmem:[%s6776_s29 + $0x10] sm:$0xf]  ;;  %v228_v0 = vld [vmem:[%s6776_s29 + $0x8] sm:$0xf]  ;;  %v6384_v8 = vld [vmem:[%s8890_s1 + $0xe0] sm:$0xff]  }
  0x1b   : > { %4617 = vmatprep.subr.bf16.mxu0 %v6667_v1  ;;  %4794 = vmatprep.subr.bf16.mxu1 %v6667_v1  ;;  %v346_v56 = vrot.slane %v345_v46, 4  ;;  %996 = vst [vmem:[#allocation2 + $0x8] sm:$0xf] %v854_v53  ;;  %v5822_v57 = vrot.slane %v1032_v48, 9  ;;  %v1108_v58 = vrot.slane %v1033_v49, 5  ;;  %v858_v62 = vrot.slane %v856_v47, 4 }
  0x1c   : > { %v356_v60 = vrot.slane %v355_v51, 4  ;;  %v857_v61 = vsel %vm6806_vm4, %v855_v54, %v856_v47  ;;  %v1111_v63 = vrot.slane %v1034_v55, 5  ;;  %v366_v3 = vrot.slane %v365_v52, 4  ;;  %v229_v6 = vld [vmem:[%s6776_s29 + $0xc] sm:$0xf]  ;;  %v6388_v48 = vld [vmem:[%s8890_s1 + $0xd0] sm:$0xff]  }
  0x1d   : > { %v351_v2 = vsel %vm6819_vm5, %v346_v56, %v350_v36  ;;  %997 = vst [vmem:[#allocation2 + $0x2c] sm:$0xf] %v857_v61  ;;  %v1109_v4 = vsel %vm6806_vm4, %v5822_v57, %v1108_v58  ;;  %v1110_v5 = vrot.slane %v1108_v58, 4  ;;  %264 = vst [vmem:[#allocation2 + $0x48] sm:$0xf] %v228_v0  ;;  %v6389_v54 = vld [vmem:[%s8890_s1 + $0x48] sm:$0xff]  }
  0x1e   : > { %4618 = vmatpush1.bf16.msra.mxu0 %v6369_v9  ;;  %4795 = vmatpush1.bf16.msra.mxu1 %v6370_v10  ;;  %v301_v7 = vld [vmem:[%s6776_s29 + $0xc] sm:$0xf]  ;;  %v361_v9 = vsel %vm6819_vm5, %v356_v60, %v360_v41  ;;  %738 = vst [vmem:[#allocation2 + $0x4] sm:$0xf] %v351_v2  ;;  %v1113_v10 = vrot.slane %v1111_v63, 4  ;;  %vm2835_vm0 = vcmask 1044484  }
  0x1f   : > { %4619 = vmatprep.subr.bf16.mxu0 %v6667_v1  ;;  %4796 = vmatprep.subr.bf16.mxu1 %v6667_v1  ;;  %1251 = vst [vmem:[#allocation2 + $0xc] sm:$0xf] %v1109_v4  ;;  %265 = vst [vmem:[#allocation2 + $0x6c] sm:$0xf] %v229_v6  ;;  %v778_v19 = vld [vmem:[%s6776_s29 + $0x10] sm:$0xf] }
  0x20   : > { %739 = vst [vmem:[#allocation2 + $0x28] sm:$0xf] %v361_v9  ;;  %v862_v23 = vrot.slane %v778_v19, 5  ;;  %v6856_v26 = vld [vmem:[%s6776_s29 + $0x18] sm:$0xf]  ;;  %v6392_v19 = vld [vmem:[%s8890_s1 + $0xc0] sm:$0xff]   ;;  %vm8473_vm1 = vmor %vm2834_vm15, %vm2835_vm0 }
  0x21   : > { %v1117_v36 = vrot.slane %v6856_v26, 5  ;;  %v230_v37 = vld [vmem:[%s6776_s29 + $0x10] sm:$0xf]  ;;  %v231_v41 = vld [vmem:[%s6776_s29 + $0x14] sm:$0xf] }
  0x22   : > { %4620 = vmatpush1.bf16.msra.mxu0 %v6371_v11  ;;  %4797 = vmatpush1.bf16.msra.mxu1 %v6372_v12  ;;  %v302_v11 = vld [vmem:[%s6776_s29 + $0x10] sm:$0xf]  ;;  %v368_v12 = vshll.u32 %v301_v7, 16  ;;  %266 = vst [vmem:[#allocation2 + $0x90] sm:$0xf] %v230_v37 }
  0x23   : > { %4621 = vmatprep.subr.bf16.mxu0 %v6667_v1  ;;  %4798 = vmatprep.subr.bf16.mxu1 %v6667_v1  ;;  %v303_v42 = vld [vmem:[%s6776_s29 + $0x14] sm:$0xf]  ;;  %267 = vst [vmem:[#allocation2 + $0xb4] sm:$0xf] %v231_v41  ;;  %v1037_v2 = vld [vmem:[%s6776_s29 + $0x1c] sm:$0xf] }
  0x24   : > { %v370_v20 = vrot.slane %v368_v12, 5  ;;  %v388_v46 = vshll.u32 %v303_v42, 16  ;;  %v392_v47 = vshrl.u32 %v303_v42, 16  ;;  %v779_v61 = vld [vmem:[%s6776_s29 + $0x14] sm:$0xf] }
  0x25   : > { %v865_v0 = vrot.slane %v779_v61, 5  ;;  %v782_v41 = vld [vmem:[%s6776_s29 + $0x20] sm:$0xf] }
  0x26   : > { %4622 = vmatpush1.bf16.msra.mxu0 %v6373_v13  ;;  %4799 = vmatpush1.bf16.msra.mxu1 %v6374_v14  ;;  %v372_v13 = vshrl.u32 %v301_v7, 16  ;;  %v6385_v14 = vld [vmem:[%s8890_s1 + $0x58] sm:$0xff]   ;;  %v371_v29 = vsel %vm6819_vm5, %v366_v3, %v370_v20  ;;  %v390_v56 = vrot.slane %v388_v46, 5  ;;  %v394_v58 = vrot.slane %v392_v47, 4  ;;  %v6390_v3 = vld [vmem:[%s8890_s1 + $0xc8] sm:$0xff]   ;;  %v6406_v47 = vld [vmem:[%s8890_s1 + $0x130] sm:$0xff]  }
  0x27   : > { %4623 = vmatprep.subr.bf16.mxu0 %v6667_v1  ;;  %4800 = vmatprep.subr.bf16.mxu1 %v6667_v1  ;;  %740 = vst [vmem:[#allocation2 + $0x4c] sm:$0xf] %v371_v29  ;;  %v6395_v49 = vld [vmem:[#allocation2 + $0x4] ss:$36 sps:$4 sm:$0xff]   ;;  %v1038_v7 = vld [vmem:[%s6776_s29 + $0x20] sm:$0xf] }
  0x28   : > { %v374_v21 = vrot.slane %v372_v13, 4  ;;  %4641 = vmatprep.mubr.bf16.mxu0 %v6395_v49  ;;  %v1123_v12 = vrot.slane %v1038_v7, 5  ;;  %v305_v29 = vld [vmem:[%s6776_s29 + $0x1c] sm:$0xf]  ;;  %v874_v46 = vrot.slane %v782_v41, 5  ;;  %v6426_v41 = vld [vmem:[%s8890_s1 + $0x1a0] sm:$0xff]  }
  0x29   : > { %v1039_v49 = vld [vmem:[%s6776_s29 + $0x24] sm:$0xf] }
  0x2a   : > { %4624 = vmatpush1.bf16.msra.mxu0 %v6375_v15  ;;  %4801 = vmatpush1.bf16.msra.mxu1 %v6376_v16  ;;  %v1112_v15 = vsel %vm6806_vm4, %v1110_v5, %v1111_v63  ;;  %v378_v16 = vshll.u32 %v302_v11, 16  ;;  %v375_v30 = vor.u32 %v374_v21, %v370_v20  ;;  %v864_v63 = vrot.slane %v862_v23, 4  ;;  %v6393_v20 = vld [vmem:[#allocation2] ss:$36 sps:$4 sm:$0xff]  }
  0x2b   : > { %4625 = vmatprep.subr.bf16.mxu0 %v6667_v1  ;;  %4802 = vmatprep.subr.bf16.mxu1 %v6667_v1  ;;  %1252 = vst [vmem:[#allocation2 + $0x30] sm:$0xf] %v1112_v15  ;;  %v395_v5 = vor.u32 %v394_v58, %v390_v56  ;;  %v6391_v15 = vld [vmem:[%s8890_s1 + $0x40] sm:$0xff]  }
  0x2c   : > { %v380_v25 = vrot.slane %v378_v16, 5  ;;  %v376_v39 = vrot.slane %v375_v30, 4  ;;  %v866_v9 = vsel %vm6806_vm4, %v864_v63, %v865_v0 }
  0x2d   : > { %v396_v13 = vrot.slane %v395_v5, 4  ;;  %1000 = vst [vmem:[#allocation2 + $0x98] sm:$0xf] %v866_v9 }
  0x2e   : > { %4626 = vmatpush2.bf16.msra.mxu0 %v6377_v17  ;;  %4803 = vmatpush2.bf16.msra.mxu1 %v6378_v18  ;;  %v382_v17 = vshrl.u32 %v302_v11, 16  ;;  %v777_v18 = vld [vmem:[%s6776_s29 + $0xc] sm:$0xf]  ;;  %v381_v51 = vsel %vm6819_vm5, %v376_v39, %v380_v25  ;;  %v1120_v11 = vrot.slane %v1037_v2, 5 }
  0x2f   : > { %4627 = vmatprep.subr.bf16.mxu0 %v6667_v1  ;;  %4804 = vmatprep.subr.bf16.mxu1 %v6667_v1  ;;  %v859_v22 = vrot.slane %v777_v18, 5  ;;  %741 = vst [vmem:[#allocation2 + $0x70] sm:$0xf] %v381_v51  ;;  %v6939_v51 = vld [vmem:[%s6776_s29 + $0x28] sm:$0xf] }
  0x30   : > { %v384_v43 = vrot.slane %v382_v17, 4  ;;  %v1122_v18 = vrot.slane %v1120_v11, 4 }
  0x31   : > { %v860_v31 = vsel %vm6806_vm4, %v858_v62, %v859_v22  ;;  %v861_v32 = vrot.slane %v859_v22, 4  ;;  %v780_v62 = vld [vmem:[%s6776_s29 + $0x18] sm:$0xf] }
  0x32   : > { %4628 = vmatpush2.bf16.msra.mxu0 %v6379_v24  ;;  %4805 = vmatpush2.bf16.msra.mxu1 %v6380_v28  ;;  %v1035_v24 = vld [vmem:[%s6776_s29 + $0x14] sm:$0xf]  ;;  %v6386_v28 = vld [vmem:[%s8890_s1 + $0xd8] sm:$0xff]   ;;  %998 = vst [vmem:[#allocation2 + $0x50] sm:$0xf] %v860_v31  ;;  %v385_v52 = vor.u32 %v384_v43, %v380_v25  ;;  %v868_v6 = vrot.slane %v780_v62, 5  ;;  %v1124_v26 = vsel %vm6806_vm4, %v1122_v18, %v1123_v12 }
  0x33   : > { %4629 = vmatprep.subr.bf16.mxu0 %v6667_v1  ;;  %4806 = vmatprep.subr.bf16.mxu1 %v6667_v1  ;;  %v1114_v27 = vrot.slane %v1035_v24, 5  ;;  %v863_v40 = vsel %vm6806_vm4, %v861_v32, %v862_v23  ;;  %v6398_v55 = vld [vmem:[#allocation2 + $0xc] ss:$36 sps:$4 sm:$0xff]   ;;  %v6399_v25 = vld [vmem:[%s8890_s1 + $0x138] sm:$0xff]   ;;  %1256 = vst [vmem:[#allocation2 + $0xc0] sm:$0xf] %v1124_v26 }
  0x34   : > { %999 = vst [vmem:[#allocation2 + $0x74] sm:$0xf] %v863_v40  ;;  %v386_v57 = vrot.slane %v385_v52, 4  ;;  %4818 = vmatprep.mubr.bf16.mxu1 %v6398_v55  ;;  %v870_v23 = vrot.slane %v868_v6, 4  ;;  %v6396_v24 = vld [vmem:[#allocation2 + $0x8] ss:$36 sps:$4 sm:$0xff]  }
  0x35   : > { %v1115_v34 = vsel %vm6806_vm4, %v1113_v10, %v1114_v27  ;;  %v1116_v35 = vrot.slane %v1114_v27, 4  ;;  %v867_v10 = vrot.slane %v865_v0, 4  ;;  %v232_v27 = vld [vmem:[%s6776_s29 + $0x18] sm:$0xf]  ;;  %v306_v31 = vld [vmem:[%s6776_s29 + $0x20] sm:$0xf] }
  0x36   : > { %4630 = vmatpush2.bf16.msra.mxu0 %v6381_v33  ;;  %4807 = vmatpush2.bf16.msra.mxu1 %v6382_v45  ;;  %v6387_v33 = vld [vmem:[%s8890_s1 + $0x50] sm:$0xff]   ;;  %1253 = vst [vmem:[#allocation2 + $0x54] sm:$0xf] %v1115_v34  ;;  %v304_v45 = vld [vmem:[%s6776_s29 + $0x18] sm:$0xf]  ;;  %v391_v4 = vsel %vm6819_vm5, %v386_v57, %v390_v56  ;;  %v412_v34 = vshrl.u32 %v305_v29, 16 }
  0x37   : > { %4631 = vmatprep.subr.bf16.mxu0 %v6667_v1  ;;  %4808 = vmatprep.subr.bf16.mxu1 %v6667_v1  ;;  %v1118_v44 = vsel %vm6806_vm4, %v1116_v35, %v1117_v36  ;;  %v398_v53 = vshll.u32 %v304_v45, 16  ;;  %v402_v60 = vshrl.u32 %v304_v45, 16  ;;  %742 = vst [vmem:[#allocation2 + $0x94] sm:$0xf] %v391_v4  ;;  %v869_v16 = vsel %vm6806_vm4, %v867_v10, %v868_v6  ;;  %v781_v40 = vld [vmem:[%s6776_s29 + $0x1c] sm:$0xf] }
  0x38   : > { %1254 = vst [vmem:[#allocation2 + $0x78] sm:$0xf] %v1118_v44  ;;  %1001 = vst [vmem:[#allocation2 + $0xbc] sm:$0xf] %v869_v16  ;;  %v1125_v35 = vrot.slane %v1123_v12, 4  ;;  %v418_v37 = vshll.u32 %v306_v31, 16 }
  0x39   : > { %268 = vst [vmem:[#allocation2 + $0xd8] sm:$0xf] %v232_v27  ;;  %v422_v39 = vshrl.u32 %v306_v31, 16  ;;  %v6400_v42 = vld [vmem:[#allocation2 + $0x4c] ss:$36 sps:$4 sm:$0xff]   ;;  %v414_v44 = vrot.slane %v412_v34, 4 }
  0x3a   : > { %4632 = vmatpush2.bf16.msra.mxu0 %v6383_v59  ;;  %4809 = vmatpush2.bf16.msra.mxu1 %v6384_v8  ;;  %v400_v59 = vrot.slane %v398_v53, 5  ;;  %v1119_v8 = vrot.slane %v1117_v36, 4  ;;  %v6405_v36 = vld [vmem:[%s8890_s1 + $0x1b8] sm:$0xff]   ;;  %v871_v45 = vrot.slane %v781_v40, 5  ;;  %v3028_v53 = vld [vmem:[#allocation2 + $0x48] sm:$0xff]  ;;  %v876_v6 = vrot.slane %v874_v46, 4 }
  0x3b   : > { %4633 = vmatprep.subr.bf16.mxu0 %v6667_v1  ;;  %4810 = vmatprep.subr.bf16.mxu1 %v6667_v1  ;;  %v424_v52 = vrot.slane %v422_v39, 4  ;;  %v3033_v58 = vld [vmem:[#allocation2 + $0x6c] sm:$0xff]  ;;  %v234_v10 = vld [vmem:[%s6776_s29 + $0x20] sm:$0xf]  ;;  %v307_v12 = vld [vmem:[%s6776_s29 + $0x24] sm:$0xf] }
  0x3c   : > { %v1121_v17 = vsel %vm6806_vm4, %v1119_v8, %v1120_v11  ;;  %v401_v21 = vsel %vm6819_vm5, %v396_v13, %v400_v59  ;;  %v872_v56 = vsel %vm6806_vm4, %v870_v23, %v871_v45  ;;  %v873_v57 = vrot.slane %v871_v45, 4  ;;  %v6404_v0 = vld [vmem:[#allocation2 + $0x50] ss:$36 sps:$4 sm:$0xff]   ;;  %v235_v11 = vld [vmem:[%s6776_s29 + $0x24] sm:$0xf]  ;;  %v6413_v13 = vld [vmem:[%s8890_s1 + $0x128] sm:$0xff]  }
  0x3d   : > { %1255 = vst [vmem:[#allocation2 + $0x9c] sm:$0xf] %v1121_v17  ;;  %743 = vst [vmem:[#allocation2 + $0xb8] sm:$0xf] %v401_v21  ;;  %v5836_v7 = vcombine.low %v3028_v53, %v3033_v58  ;;  %v428_v17 = vshll.u32 %v307_v12, 16  ;;  %v432_v18 = vshrl.u32 %v307_v12, 16 }
  0x3e   : > { %4634 = vmatpush2.bf16.msra.mxu0 %v6385_v14  ;;  %4811 = vmatpush2.bf16.msra.mxu1 %v6386_v28  ;;  %v404_v14 = vrot.slane %v402_v60, 4  ;;  %v233_v28 = vld [vmem:[%s6776_s29 + $0x1c] sm:$0xf]  ;;  %1002 = vst [vmem:[#allocation2 + $0xe0] sm:$0xf] %v872_v56  ;;  %v1129_v60 = vrot.slane %v6939_v51, 5  ;;  %v875_v63 = vsel %vm6806_vm4, %v873_v57, %v874_v46 }
  0x3f   : > { %4635 = vmatprep.subr.bf16.mxu0 %v6667_v1  ;;  %4812 = vmatprep.subr.bf16.mxu1 %v6667_v1  ;;  %v6402_v30 = vld [vmem:[#allocation2 + $0x54] ss:$36 sps:$4 sm:$0xff]   ;;  %269 = vst [vmem:[#allocation2 + $0xfc] sm:$0xf] %v233_v28  ;;  %1003 = vst [vmem:[#allocation2 + $0x104] sm:$0xf] %v875_v63 }
  0x40   : > { %v405_v22 = vor.u32 %v404_v14, %v400_v59  ;;  %v1126_v59 = vrot.slane %v1039_v49, 5  ;;  %270 = vst [vmem:[#allocation2 + $0x120] sm:$0xf] %v234_v10  ;;  %271 = vst [vmem:[#allocation2 + $0x144] sm:$0xf] %v235_v11  ;;  %v6972_v23 = vld [vmem:[#allocation2 + $0x90] sm:$0xff] }
  0x41   : > { %v783_v21 = vld [vmem:[%s6776_s29 + $0x24] sm:$0xf]  ;;  %v1041_v28 = vld [vmem:[%s6776_s29 + $0x2c] sm:$0xf]  ;;  %v6411_v51 = vld [vmem:[#allocation2 + $0x98] ss:$36 sps:$4 sm:$0xff]  }
  0x42   : > { %4636 = vmatpush2.bf16.msra.mxu0 %v6387_v33  ;;  %4813 = vmatpush2.bf16.msra.mxu1 %v6388_v48  ;;  %v406_v32 = vrot.slane %v405_v22, 4  ;;  %v408_v33 = vshll.u32 %v305_v29, 16  ;;  %v420_v48 = vrot.slane %v418_v37, 5  ;;  %v1127_v4 = vsel %vm6806_vm4, %v1125_v35, %v1126_v59  ;;  %v784_v22 = vld [vmem:[%s6776_s29 + $0x28] sm:$0xf]  ;;  %v6420_v29 = vld [vmem:[%s8890_s1 + $0x120] sm:$0xff]  }
  0x43   : > { %4637 = vmatprep.subr.bf16.mxu0 %v6667_v1  ;;  %4814 = vmatprep.subr.bf16.mxu1 %v6667_v1  ;;  %v1128_v5 = vrot.slane %v1126_v59, 4  ;;  %1257 = vst [vmem:[#allocation2 + $0xe4] sm:$0xf] %v1127_v4  ;;  %v877_v26 = vrot.slane %v783_v21, 5  ;;  %v880_v27 = vrot.slane %v784_v22, 5  ;;  %v1132_v34 = vrot.slane %v1041_v28, 5 }
  0x44   : > { %v410_v43 = vrot.slane %v408_v33, 5  ;;  %v425_v61 = vor.u32 %v424_v52, %v420_v48  ;;  %v6407_v2 = vld [vmem:[#allocation2 + $0x94] ss:$36 sps:$4 sm:$0xff]   ;;  %v6409_v8 = vld [vmem:[#allocation2 + $0x9c] ss:$36 sps:$4 sm:$0xff]   ;;  %v1131_v33 = vrot.slane %v1129_v60, 4 }
  0x45   : > { %v1130_v14 = vsel %vm6806_vm4, %v1128_v5, %v1129_v60  ;;  %v3043_v35 = vld [vmem:[#allocation2 + $0xb4] sm:$0xff]  ;;  %v878_v39 = vsel %vm6806_vm4, %v876_v6, %v877_v26  ;;  %v879_v40 = vrot.slane %v877_v26, 4 }
  0x46   : > { %4638 = vmatpush2.bf16.msra.mxu0 %v6389_v54  ;;  %4815 = vmatpush2.bf16.msra.mxu1 %v6390_v3  ;;  %v411_v54 = vsel %vm6819_vm5, %v406_v32, %v410_v43  ;;  %v415_v55 = vor.u32 %v414_v44, %v410_v43  ;;  %v6412_v3 = vld [vmem:[%s8890_s1 + $0x1b0] sm:$0xff]   ;;  %v426_v16 = vrot.slane %v425_v61, 4  ;;  %1258 = vst [vmem:[#allocation2 + $0x108] sm:$0xf] %v1130_v14  ;;  %1004 = vst [vmem:[#allocation2 + $0x128] sm:$0xf] %v878_v39 }
  0x47   : > { %4639 = vmatprep.subr.bf16.mxu0 %v6667_v1  ;;  %4816 = vmatprep.subr.bf16.mxu1 %v6667_v1  ;;  %744 = vst [vmem:[#allocation2 + $0xdc] sm:$0xf] %v411_v54  ;;  %v1042_v32 = vld [vmem:[%s6776_s29 + $0x30] sm:$0xf]  ;;  %v1134_v43 = vrot.slane %v1132_v34, 4  ;;  %v881_v46 = vsel %vm6806_vm4, %v879_v40, %v880_v27  ;;  %v5845_v49 = vcombine.low %v6972_v23, %v3043_v35  ;;  %v6427_v53 = vld [vmem:[%s8890_s1 + $0x118] sm:$0xff]  }
  0x48   : > { %v416_v62 = vrot.slane %v415_v55, 4  ;;  %v1135_v44 = vrot.slane %v1042_v32, 5  ;;  %1005 = vst [vmem:[#allocation2 + $0x14c] sm:$0xf] %v881_v46  ;;  %v309_v54 = vld [vmem:[%s6776_s29 + $0x2c] sm:$0xf] }
  0x49   : > { %v448_v59 = vshll.u32 %v309_v54, 16  ;;  %v6433_v60 = vld [vmem:[%s8890_s1 + $0x198] sm:$0xff]   ;;  %v310_v61 = vld [vmem:[%s6776_s29 + $0x30] sm:$0xf]  ;;  %v452_v63 = vshrl.u32 %v309_v54, 16  ;;  %v6445_v39 = vld [vmem:[%s8890_s1 + $0x108] sm:$0xff]  }
  0x4a   : > { %4640 = vmatpush2.bf16.msra.mxu0 %v6391_v15  ;;  %4817 = vmatpush2.bf16.msra.mxu1 %v6392_v19  ;;  %v421_v9 = vsel %vm6819_vm5, %v416_v62, %v420_v48  ;;  %v308_v15 = vld [vmem:[%s6776_s29 + $0x28] sm:$0xf]  ;;  %v237_v48 = vld [vmem:[%s6776_s29 + $0x2c] sm:$0xf]  ;;  %v1136_v52 = vsel %vm6806_vm4, %v1134_v43, %v1135_v44  ;;  %v458_v5 = vshll.u32 %v310_v61, 16  ;;  %v462_v6 = vshrl.u32 %v310_v61, 16 }
  0x4b   : > { %4963 = vmatprep.subr.bf16.mxu0 %v6667_v1  ;;  %5140 = vmatprep.subr.bf16.mxu1 %v6667_v1  ;;  %745 = vst [vmem:[#allocation2 + $0x100] sm:$0xf] %v421_v9  ;;  %v6419_v19 = vld [vmem:[%s8890_s1 + $0x1a8] sm:$0xff]   ;;  %v442_v31 = vshrl.u32 %v308_v15, 16  ;;  %273 = vst [vmem:[#allocation2 + $0x18c] sm:$0xf] %v237_v48 }
  0x4c   : > { %1260 = vst [vmem:[#allocation2 + $0x150] sm:$0xf] %v1136_v52  ;;  %v450_v4 = vrot.slane %v448_v59, 5  ;;  %v454_v10 = vrot.slane %v452_v63, 4  ;;  %v1043_v12 = vld [vmem:[%s6776_s29 + $0x34] sm:$0xf] }
  0x4d   : > { %4642 = vmatmul.mubr.bf16.vlgmr.msra.gmra.mxu0 %v6393_v20  ;;  %4819 = vmatmul.mubr.bf16.vlgmr.msra.gmra.mxu1 %v6396_v24  ;;  %v438_v20 = vshll.u32 %v308_v15, 16  ;;  %v430_v24 = vrot.slane %v428_v17, 5  ;;  %v444_v55 = vrot.slane %v442_v31, 4  ;;  %v6416_v57 = vld [vmem:[#allocation2 + $0xe4] ss:$36 sps:$4 sm:$0xff]   ;;  %v6434_v14 = vld [vmem:[%s8890_s1 + $0x110] sm:$0xff]  }
  0x4e   : > { %4964 = vmatpush1.bf16.msra.mxu0 %v6399_v25  ;;  %4649 = vmatprep.mubr.bf16.mxu0 %v6400_v42  ;;  %v434_v25 = vrot.slane %v432_v18, 4  ;;  %v1133_v42 = vsel %vm6806_vm4, %v1131_v33, %v1132_v34  ;;  %v6440_v21 = vld [vmem:[%s8890_s1 + $0x190] sm:$0xff]   ;;  %v455_v23 = vor.u32 %v454_v10, %v450_v4  ;;  %v464_v28 = vrot.slane %v462_v6, 4  ;;  %v240_v6 = vld [vmem:[%s6776_s29 + $0x38] sm:$0xf] }
  0x4f   : > { %4826 = vmatprep.mubr.bf16.mxu1 %v6402_v30  ;;  %4965 = vmatprep.subr.bf16.mxu0 %v6667_v1  ;;  %v440_v30 = vrot.slane %v438_v20, 5  ;;  %1259 = vst [vmem:[#allocation2 + $0x12c] sm:$0xf] %v1133_v42  ;;  %v1138_v20 = vrot.slane %v1043_v12, 5  ;;  %v238_v35 = vld [vmem:[%s6776_s29 + $0x30] sm:$0xf] }
  0x50   : > { %5141 = vmatpush1.bf16.msra.mxu1 %v6405_v36  ;;  %v431_v36 = vsel %vm6819_vm5, %v426_v16, %v430_v24  ;;  %v435_v37 = vor.u32 %v434_v25, %v430_v24  ;;  %v460_v16 = vrot.slane %v458_v5, 5  ;;  %v456_v32 = vrot.slane %v455_v23, 4  ;;  %v239_v43 = vld [vmem:[%s6776_s29 + $0x34] sm:$0xf]  ;;  %274 = vst [vmem:[#allocation2 + $0x1b0] sm:$0xf] %v238_v35 }
  0x51   : > { %5142 = vmatprep.subr.bf16.mxu1 %v6667_v1  ;;  %746 = vst [vmem:[#allocation2 + $0x124] sm:$0xf] %v431_v36  ;;  %v445_v62 = vor.u32 %v444_v55, %v440_v30  ;;  %275 = vst [vmem:[#allocation2 + $0x1d4] sm:$0xf] %v239_v43  ;;  %v1045_v55 = vld [vmem:[%s6776_s29 + $0x3c] sm:$0xf] }
  0x52   : > { %4966 = vmatpush1.bf16.msra.mxu0 %v6406_v47  ;;  %v436_v45 = vrot.slane %v435_v37, 4  ;;  %v236_v47 = vld [vmem:[%s6776_s29 + $0x28] sm:$0xf]  ;;  %v6414_v56 = vld [vmem:[#allocation2 + $0xdc] ss:$36 sps:$4 sm:$0xff]   ;;  %v465_v36 = vor.u32 %v464_v28, %v460_v16  ;;  %v461_v42 = vsel %vm6819_vm5, %v456_v32, %v460_v16 }
  0x53   : > { %4967 = vmatprep.subr.bf16.mxu0 %v6667_v1  ;;  %272 = vst [vmem:[#allocation2 + $0x168] sm:$0xf] %v236_v47  ;;  %v446_v9 = vrot.slane %v445_v62, 4  ;;  %v3053_v15 = vld [vmem:[#allocation2 + $0xfc] sm:$0xff]  ;;  %749 = vst [vmem:[#allocation2 + $0x190] sm:$0xf] %v461_v42 }
  0x54   : > { %5143 = vmatpush1.bf16.msra.mxu1 %v6412_v3  ;;  %v441_v58 = vsel %vm6819_vm5, %v436_v45, %v440_v30  ;;  %v7009_v3 = vld [vmem:[#allocation2 + $0xd8] sm:$0xff]  ;;  %v6418_v30 = vld [vmem:[#allocation2 + $0xe0] ss:$36 sps:$4 sm:$0xff]   ;;  %v466_v46 = vrot.slane %v465_v36, 4  ;;  %276 = vst [vmem:[#allocation2 + $0x1f8] sm:$0xf] %v240_v6 }
  0x55   : > { %4650 = vmatmul.mubr.bf16.gmra.mxu0 %v5836_v7  ;;  %5144 = vmatprep.subr.bf16.mxu1 %v6667_v1  ;;  %747 = vst [vmem:[#allocation2 + $0x148] sm:$0xf] %v441_v58  ;;  %v786_v7 = vld [vmem:[%s6776_s29 + $0x30] sm:$0xf]  ;;  %v451_v22 = vsel %vm6819_vm5, %v446_v9, %v450_v4  ;;  %v312_v45 = vld [vmem:[%s6776_s29 + $0x38] sm:$0xf] }
  0x56   : > { %4827 = vmatmul.mubr.bf16.gmra.mxu1 %v6404_v0  ;;  %4657 = vmatprep.mubr.bf16.mxu0 %v6407_v2  ;;  %v785_v0 = vld [vmem:[%s6776_s29 + $0x2c] sm:$0xf]  ;;  %v882_v2 = vrot.slane %v880_v27, 4  ;;  %v886_v11 = vrot.slane %v786_v7, 5  ;;  %748 = vst [vmem:[#allocation2 + $0x16c] sm:$0xf] %v451_v22 }
  0x57   : > { %4834 = vmatprep.mubr.bf16.mxu1 %v6409_v8  ;;  %4968 = vmatpush1.bf16.msra.mxu0 %v6413_v13  ;;  %v883_v8 = vrot.slane %v785_v0, 5  ;;  %v1137_v13 = vrot.slane %v1135_v44, 4  ;;  %v1140_v27 = vrot.slane %v1138_v20, 4  ;;  %v6423_v31 = vld [vmem:[#allocation2 + $0x12c] ss:$36 sps:$4 sm:$0xff]   ;;  %v482_v52 = vshrl.u32 %v312_v45, 16 }
  0x58   : > { %4969 = vmatprep.subr.bf16.mxu0 %v6667_v1  ;;  %5145 = vmatpush1.bf16.msra.mxu1 %v6419_v19  ;;  %v7021_v19 = vld [vmem:[%s6776_s29 + $0x38] sm:$0xf]  ;;  %v888_v37 = vrot.slane %v886_v11, 4  ;;  %v7042_v40 = vld [vmem:[#allocation2 + $0x120] sm:$0xff]  ;;  %v311_v44 = vld [vmem:[%s6776_s29 + $0x34] sm:$0xf] }
  0x59   : > { %5146 = vmatprep.subr.bf16.mxu1 %v6667_v1  ;;  %v884_v17 = vsel %vm6806_vm4, %v882_v2, %v883_v8  ;;  %v885_v18 = vrot.slane %v883_v8, 4  ;;  %v1141_v24 = vrot.slane %v7021_v19, 5  ;;  %v1139_v26 = vsel %vm6806_vm4, %v1137_v13, %v1138_v20  ;;  %v241_v10 = vld [vmem:[%s6776_s29 + $0x3c] sm:$0xf]  ;;  %v6425_v13 = vld [vmem:[#allocation2 + $0x128] ss:$36 sps:$4 sm:$0xff]  }
  0x5a   : > { %1006 = vst [vmem:[#allocation2 + $0x170] sm:$0xf] %v884_v17  ;;  %1261 = vst [vmem:[#allocation2 + $0x174] sm:$0xf] %v1139_v26  ;;  %v468_v47 = vshll.u32 %v311_v44, 16  ;;  %v472_v48 = vshrl.u32 %v311_v44, 16 }
  0x5b   : > { %4970 = vmatpush1.bf16.msra.mxu0 %v6420_v29  ;;  %v887_v25 = vsel %vm6806_vm4, %v885_v18, %v886_v11  ;;  %v5854_v29 = vcombine.low %v7009_v3, %v3053_v15  ;;  %v1142_v34 = vsel %vm6806_vm4, %v1140_v27, %v1141_v24  ;;  %v1143_v63 = vrot.slane %v1141_v24, 4  ;;  %v313_v11 = vld [vmem:[%s6776_s29 + $0x3c] sm:$0xf]  ;;  %277 = vst [vmem:[#allocation2 + $0x21c] sm:$0xf] %v241_v10  ;;  %v7076_v22 = vld [vmem:[#allocation2 + $0x18c] sm:$0xff] }
  0x5c   : > { %4971 = vmatprep.subr.bf16.mxu0 %v6667_v1  ;;  %5147 = vmatpush1.bf16.msra.mxu1 %v6426_v41  ;;  %1007 = vst [vmem:[#allocation2 + $0x194] sm:$0xf] %v887_v25  ;;  %v6421_v33 = vld [vmem:[#allocation2 + $0x124] ss:$36 sps:$4 sm:$0xff]   ;;  %1262 = vst [vmem:[#allocation2 + $0x198] sm:$0xf] %v1142_v34 }
  0x5d   : > { %4658 = vmatmul.mubr.bf16.gmra.mxu0 %v5845_v49  ;;  %5148 = vmatprep.subr.bf16.mxu1 %v6667_v1  ;;  %v7044_v41 = vld [vmem:[#allocation2 + $0x144] sm:$0xff]  ;;  %v478_v49 = vshll.u32 %v312_v45, 16  ;;  %v1144_v0 = vrot.slane %v1045_v55, 5  ;;  %v484_v12 = vrot.slane %v482_v52, 4  ;;  %v6428_v16 = vld [vmem:[#allocation2 + $0x16c] ss:$36 sps:$4 sm:$0xff]  }
  0x5e   : > { %4835 = vmatmul.mubr.bf16.gmra.mxu1 %v6411_v51  ;;  %4665 = vmatprep.mubr.bf16.mxu0 %v6414_v56  ;;  %v787_v51 = vld [vmem:[%s6776_s29 + $0x34] sm:$0xf]  ;;  %v470_v56 = vrot.slane %v468_v47, 5  ;;  %v5863_v2 = vcombine.low %v7042_v40, %v7044_v41  ;;  %v314_v18 = vld [vmem:[%s6776_s29 + $0x40] sm:$0xf]  ;;  %v488_v20 = vshll.u32 %v313_v11, 16 }
  0x5f   : > { %4842 = vmatprep.mubr.bf16.mxu1 %v6416_v57  ;;  %4972 = vmatpush1.bf16.msra.mxu0 %v6427_v53  ;;  %v788_v53 = vld [vmem:[%s6776_s29 + $0x38] sm:$0xf]  ;;  %v889_v54 = vrot.slane %v787_v51, 5  ;;  %v474_v57 = vrot.slane %v472_v48, 4  ;;  %v480_v58 = vrot.slane %v478_v49, 5  ;;  %v1145_v8 = vsel %vm6806_vm4, %v1143_v63, %v1144_v0  ;;  %v6451_v43 = vld [vmem:[%s8890_s1 + $0x188] sm:$0xff]  }
  0x60   : > { %4973 = vmatprep.subr.bf16.mxu0 %v6667_v1  ;;  %5149 = vmatpush1.bf16.msra.mxu1 %v6433_v60  ;;  %v892_v59 = vrot.slane %v788_v53, 5  ;;  %v1046_v60 = vld [vmem:[%s6776_s29 + $0x40] sm:$0xf]  ;;  %v471_v3 = vsel %vm6819_vm5, %v466_v46, %v470_v56  ;;  %v1146_v9 = vrot.slane %v1144_v0, 4  ;;  %1263 = vst [vmem:[#allocation2 + $0x1bc] sm:$0xf] %v1145_v8 }
  0x61   : > { %5150 = vmatprep.subr.bf16.mxu1 %v6667_v1  ;;  %v890_v61 = vsel %vm6806_vm4, %v888_v37, %v889_v54  ;;  %v891_v62 = vrot.slane %v889_v54, 4  ;;  %v475_v4 = vor.u32 %v474_v57, %v470_v56  ;;  %v1147_v5 = vrot.slane %v1046_v60, 5  ;;  %750 = vst [vmem:[#allocation2 + $0x1b4] sm:$0xf] %v471_v3  ;;  %v789_v26 = vld [vmem:[%s6776_s29 + $0x3c] sm:$0xf] }
  0x62   : > { %1008 = vst [vmem:[#allocation2 + $0x1b8] sm:$0xf] %v890_v61  ;;  %v485_v19 = vor.u32 %v484_v12, %v480_v58  ;;  %v492_v24 = vshrl.u32 %v313_v11, 16  ;;  %v498_v25 = vshll.u32 %v314_v18, 16  ;;  %v7082_v27 = vld [vmem:[%s6776_s29 + $0x40] sm:$0xf] }
  0x63   : > { %4974 = vmatpush1.bf16.msra.mxu0 %v6434_v14  ;;  %v893_v7 = vsel %vm6806_vm4, %v891_v62, %v892_v59  ;;  %v6430_v14 = vld [vmem:[#allocation2 + $0x174] ss:$36 sps:$4 sm:$0xff]   ;;  %v476_v15 = vrot.slane %v475_v4, 4  ;;  %v1148_v17 = vsel %vm6806_vm4, %v1146_v9, %v1147_v5  ;;  %v1047_v32 = vld [vmem:[%s6776_s29 + $0x44] sm:$0xf]  ;;  %v895_v35 = vrot.slane %v789_v26, 5 }
  0x64   : > { %4975 = vmatprep.subr.bf16.mxu0 %v6667_v1  ;;  %5151 = vmatpush1.bf16.msra.mxu1 %v6440_v21  ;;  %1009 = vst [vmem:[#allocation2 + $0x1dc] sm:$0xf] %v893_v7  ;;  %v7074_v21 = vld [vmem:[#allocation2 + $0x168] sm:$0xff]  ;;  %1264 = vst [vmem:[#allocation2 + $0x1e0] sm:$0xf] %v1148_v17  ;;  %v486_v28 = vrot.slane %v485_v19, 4 }
  0x65   : > { %4666 = vmatmul.mubr.bf16.gmra.mxu0 %v5854_v29  ;;  %5152 = vmatprep.subr.bf16.mxu1 %v6667_v1  ;;  %v481_v23 = vsel %vm6819_vm5, %v476_v15, %v480_v58  ;;  %v490_v29 = vrot.slane %v488_v20, 5  ;;  %v500_v34 = vrot.slane %v498_v25, 5  ;;  %v898_v36 = vrot.slane %v7082_v27, 5  ;;  %v7087_v37 = vld [vmem:[%s6776_s29 + $0x48] sm:$0xf]  ;;  %v6453_v61 = vld [vmem:[%s8890_s1 + $0x100] sm:$0xff]  }
  0x66   : > { %4843 = vmatmul.mubr.bf16.gmra.mxu1 %v6418_v30  ;;  %4673 = vmatprep.mubr.bf16.mxu0 %v6421_v33  ;;  %751 = vst [vmem:[#allocation2 + $0x1d8] sm:$0xf] %v481_v23  ;;  %v502_v30 = vshrl.u32 %v314_v18, 16  ;;  %v494_v33 = vrot.slane %v492_v24, 4  ;;  %v1149_v40 = vrot.slane %v1147_v5, 4  ;;  %v1150_v41 = vrot.slane %v1047_v32, 5 }
  0x67   : > { %4850 = vmatprep.mubr.bf16.mxu1 %v6423_v31  ;;  %4976 = vmatpush1.bf16.msra.mxu0 %v6445_v39  ;;  %v894_v31 = vrot.slane %v892_v59, 4  ;;  %v491_v39 = vsel %vm6819_vm5, %v486_v28, %v490_v29  ;;  %v1153_v42 = vrot.slane %v7087_v37, 5  ;;  %v6432_v44 = vld [vmem:[#allocation2 + $0x170] ss:$36 sps:$4 sm:$0xff]   ;;  %v897_v48 = vrot.slane %v895_v35, 4  ;;  %v6459_v8 = vld [vmem:[%s8890_s1 + $0x180] sm:$0xff]  }
  0x68   : > { %4977 = vmatprep.subr.bf16.mxu0 %v6667_v1  ;;  %v7095_v45 = vld [vmem:[#allocation2 + $0x1b0] sm:$0xff]  ;;  %v495_v46 = vor.u32 %v494_v33, %v490_v29  ;;  %752 = vst [vmem:[#allocation2 + $0x1fc] sm:$0xf] %v491_v39  ;;  %v242_v49 = vld [vmem:[%s6776_s29 + $0x40] sm:$0xf]  ;;  %v5872_v51 = vcombine.low %v7074_v21, %v7076_v22  ;;  %v1151_v52 = vsel %vm6806_vm4, %v1149_v40, %v1150_v41  ;;  %v1152_v53 = vrot.slane %v1150_v41, 4 }
  0x69   : > { %v896_v47 = vsel %vm6806_vm4, %v894_v31, %v895_v35  ;;  %v243_v54 = vld [vmem:[%s6776_s29 + $0x44] sm:$0xf]  ;;  %278 = vst [vmem:[#allocation2 + $0x240] sm:$0xf] %v242_v49  ;;  %5153 = vmatpush1.bf16.msra.mxu1 %v6451_v43  ;;  %v899_v57 = vsel %vm6806_vm4, %v897_v48, %v898_v36  ;;  %1265 = vst [vmem:[#allocation2 + $0x204] sm:$0xf] %v1151_v52 }
  0x6a   : > { %1010 = vst [vmem:[#allocation2 + $0x200] sm:$0xf] %v896_v47  ;;  %v315_v55 = vld [vmem:[%s6776_s29 + $0x44] sm:$0xf]  ;;  %v496_v56 = vrot.slane %v495_v46, 4  ;;  %v504_v59 = vrot.slane %v502_v30, 4  ;;  %5154 = vmatprep.subr.bf16.mxu1 %v6667_v1  ;;  %v1154_v63 = vsel %vm6806_vm4, %v1152_v53, %v1153_v42 }
  0x6b   : > { %279 = vst [vmem:[#allocation2 + $0x264] sm:$0xf] %v243_v54  ;;  %v316_v58 = vld [vmem:[%s6776_s29 + $0x48] sm:$0xf]  ;;  %v508_v60 = vshll.u32 %v315_v55, 16  ;;  %v512_v0 = vshrl.u32 %v315_v55, 16  ;;  %4978 = vmatpush1.bf16.msra.mxu0 %v6453_v61 }
  0x6c   : > { %v6437_v62 = vld [vmem:[#allocation2 + $0x1bc] ss:$36 sps:$4 sm:$0xff]   ;;  %1011 = vst [vmem:[#allocation2 + $0x224] sm:$0xf] %v899_v57  ;;  %v501_v4 = vsel %vm6819_vm5, %v496_v56, %v500_v34  ;;  %1266 = vst [vmem:[#allocation2 + $0x228] sm:$0xf] %v1154_v63  ;;  %v505_v5 = vor.u32 %v504_v59, %v500_v34  ;;  %4979 = vmatprep.subr.bf16.mxu0 %v6667_v1 }
  0x6d   : > { %4674 = vmatmul.mubr.bf16.gmra.mxu0 %v5863_v2  ;;  %v3083_v2 = vld [vmem:[#allocation2 + $0x1d4] sm:$0xff]  ;;  %v510_v6 = vrot.slane %v508_v60, 5  ;;  %v518_v7 = vshll.u32 %v316_v58, 16  ;;  %753 = vst [vmem:[#allocation2 + $0x220] sm:$0xf] %v501_v4  ;;  %v514_v10 = vrot.slane %v512_v0, 4  ;;  %5155 = vmatpush1.bf16.msra.mxu1 %v6459_v8 }
  0x6e   : > { %4851 = vmatmul.mubr.bf16.gmra.mxu1 %v6425_v13  ;;  %4681 = vmatprep.mubr.bf16.mxu0 %v6428_v16  ;;  %v6435_v3 = vld [vmem:[#allocation2 + $0x1b4] ss:$36 sps:$4 sm:$0xff]   ;;  %v5881_v9 = vcombine.low %v7095_v45, %v3083_v2  ;;  %v522_v11 = vshrl.u32 %v316_v58, 16  ;;  %v791_v12 = vld [vmem:[%s6776_s29 + $0x44] sm:$0xf]  ;;  %v900_v16 = vrot.slane %v898_v36, 4 }
  0x6f   : > { %4858 = vmatprep.mubr.bf16.mxu1 %v6430_v14  ;;  %v792_v13 = vld [vmem:[%s6776_s29 + $0x48] sm:$0xf]  ;;  %v506_v14 = vrot.slane %v505_v5, 4  ;;  %v520_v15 = vrot.slane %v518_v7, 5  ;;  %v901_v17 = vrot.slane %v791_v12, 5  ;;  %v515_v19 = vor.u32 %v514_v10, %v510_v6  ;;  %5156 = vmatprep.subr.bf16.mxu1 %v6667_v1  ;;  %v3088_v36 = vld [vmem:[#allocation2 + $0x1f8] sm:$0xff] }
  0x70   : > { %v1049_v18 = vld [vmem:[%s6776_s29 + $0x4c] sm:$0xf]  ;;  %v904_v20 = vrot.slane %v792_v13, 5  ;;  %v1050_v21 = vld [vmem:[%s6776_s29 + $0x50] sm:$0xf]  ;;  %v1155_v22 = vrot.slane %v1153_v42, 4 }
  0x71   : > { %v1156_v23 = vrot.slane %v1049_v18, 5  ;;  %v6439_v24 = vld [vmem:[#allocation2 + $0x1b8] ss:$36 sps:$4 sm:$0xff]   ;;  %v511_v25 = vsel %vm6819_vm5, %v506_v14, %v510_v6  ;;  %v902_v26 = vsel %vm6806_vm4, %v900_v16, %v901_v17  ;;  %v903_v27 = vrot.slane %v901_v17, 4  ;;  %v244_v34 = vld [vmem:[%s6776_s29 + $0x48] sm:$0xf] }
  0x72   : > { %v1159_v28 = vrot.slane %v1050_v21, 5  ;;  %v516_v29 = vrot.slane %v515_v19, 4  ;;  %754 = vst [vmem:[#allocation2 + $0x244] sm:$0xf] %v511_v25  ;;  %1012 = vst [vmem:[#allocation2 + $0x248] sm:$0xf] %v902_v26 }
  0x73   : > { %v1157_v30 = vsel %vm6806_vm4, %v1155_v22, %v1156_v23  ;;  %v1158_v31 = vrot.slane %v1156_v23, 4  ;;  %v524_v32 = vrot.slane %v522_v11, 4  ;;  %v905_v33 = vsel %vm6806_vm4, %v903_v27, %v904_v20  ;;  %v245_v35 = vld [vmem:[%s6776_s29 + $0x4c] sm:$0xf]  ;;  %v6443_v37 = vld [vmem:[#allocation2 + $0x204] ss:$36 sps:$4 sm:$0xff]  }
  0x74   : > { %1267 = vst [vmem:[#allocation2 + $0x24c] sm:$0xf] %v1157_v30  ;;  %v521_v39 = vsel %vm6819_vm5, %v516_v29, %v520_v15  ;;  %1013 = vst [vmem:[#allocation2 + $0x26c] sm:$0xf] %v905_v33  ;;  %v906_v42 = vrot.slane %v904_v20, 4  ;;  %v3093_v43 = vld [vmem:[#allocation2 + $0x21c] sm:$0xff] }
  0x75   : > { %4682 = vmatmul.mubr.bf16.gmra.mxu0 %v5872_v51  ;;  %v1160_v40 = vsel %vm6806_vm4, %v1158_v31, %v1159_v28  ;;  %280 = vst [vmem:[#allocation2 + $0x288] sm:$0xf] %v244_v34  ;;  %281 = vst [vmem:[#allocation2 + $0x2ac] sm:$0xf] %v245_v35  ;;  %v525_v41 = vor.u32 %v524_v32, %v520_v15  ;;  %v317_v45 = vld [vmem:[%s6776_s29 + $0x4c] sm:$0xf] }
  0x76   : > { %4859 = vmatmul.mubr.bf16.gmra.mxu1 %v6432_v44  ;;  %4689 = vmatprep.mubr.bf16.mxu0 %v6435_v3  ;;  %v6441_v44 = vld [vmem:[#allocation2 + $0x1fc] ss:$36 sps:$4 sm:$0xff]   ;;  %755 = vst [vmem:[#allocation2 + $0x268] sm:$0xf] %v521_v39  ;;  %1268 = vst [vmem:[#allocation2 + $0x270] sm:$0xf] %v1160_v40 }
  0x77   : > { %4866 = vmatprep.mubr.bf16.mxu1 %v6437_v62  ;;  %v1161_v46 = vrot.slane %v1159_v28, 4  ;;  %v318_v47 = vld [vmem:[%s6776_s29 + $0x50] sm:$0xf]  ;;  %v526_v48 = vrot.slane %v525_v41, 4  ;;  %v528_v49 = vshll.u32 %v317_v45, 16  ;;  %v532_v51 = vshrl.u32 %v317_v45, 16 }
  0x78   : > { %v6460_v52 = vld [vmem:[%s8890_s1 + $0x178] sm:$0xff]   ;;  %v538_v53 = vshll.u32 %v318_v47, 16  ;;  %v542_v54 = vshrl.u32 %v318_v47, 16  ;;  %v793_v55 = vld [vmem:[%s6776_s29 + $0x4c] sm:$0xf]  ;;  %v5890_v62 = vcombine.low %v3088_v36, %v3093_v43 }
  0x79   : > { %v794_v56 = vld [vmem:[%s6776_s29 + $0x50] sm:$0xf]  ;;  %v530_v57 = vrot.slane %v528_v49, 5  ;;  %v534_v58 = vrot.slane %v532_v51, 4  ;;  %v907_v59 = vrot.slane %v793_v55, 5  ;;  %4980 = vmatpush2.bf16.msra.mxu0 %v6460_v52  ;;  %v3098_v13 = vld [vmem:[#allocation2 + $0x240] sm:$0xff] }
  0x7a   : > { %v910_v60 = vrot.slane %v794_v56, 5  ;;  %v1051_v61 = vld [vmem:[%s6776_s29 + $0x54] sm:$0xf]  ;;  %v6446_v63 = vld [vmem:[#allocation2 + $0x200] ss:$36 sps:$4 sm:$0xff]   ;;  %v540_v0 = vrot.slane %v538_v53, 5  ;;  %4981 = vmatprep.subr.bf16.mxu0 %v6667_v1 }
  0x7b   : > { %v1052_v2 = vld [vmem:[%s6776_s29 + $0x58] sm:$0xf]  ;;  %v1162_v3 = vrot.slane %v1051_v61, 5  ;;  %v544_v4 = vrot.slane %v542_v54, 4  ;;  %v531_v5 = vsel %vm6819_vm5, %v526_v48, %v530_v57  ;;  %v535_v6 = vor.u32 %v534_v58, %v530_v57  ;;  %v246_v20 = vld [vmem:[%s6776_s29 + $0x50] sm:$0xf] }
  0x7c   : > { %v908_v7 = vsel %vm6806_vm4, %v906_v42, %v907_v59  ;;  %v909_v8 = vrot.slane %v907_v59, 4  ;;  %756 = vst [vmem:[#allocation2 + $0x28c] sm:$0xf] %v531_v5  ;;  %v1165_v11 = vrot.slane %v1052_v2, 5  ;;  %v912_v21 = vrot.slane %v910_v60, 4  ;;  %v6466_v51 = vld [vmem:[%s8890_s1 + $0x1f8] sm:$0xff]  }
  0x7d   : > { %4690 = vmatmul.mubr.bf16.gmra.mxu0 %v5881_v9  ;;  %1014 = vst [vmem:[#allocation2 + $0x290] sm:$0xf] %v908_v7  ;;  %v1163_v9 = vsel %vm6806_vm4, %v1161_v46, %v1162_v3  ;;  %v1164_v10 = vrot.slane %v1162_v3, 4  ;;  %v545_v12 = vor.u32 %v544_v4, %v540_v0  ;;  %v6447_v14 = vld [vmem:[#allocation2 + $0x244] ss:$36 sps:$4 sm:$0xff]   ;;  %v536_v15 = vrot.slane %v535_v6, 4  ;;  %5157 = vmatpush2.bf16.msra.mxu1 %v6466_v51 }
  0x7e   : > { %4867 = vmatmul.mubr.bf16.gmra.mxu1 %v6439_v24  ;;  %4697 = vmatprep.mubr.bf16.mxu0 %v6441_v44  ;;  %v911_v16 = vsel %vm6806_vm4, %v909_v8, %v910_v60  ;;  %1269 = vst [vmem:[#allocation2 + $0x294] sm:$0xf] %v1163_v9  ;;  %v3103_v17 = vld [vmem:[#allocation2 + $0x264] sm:$0xff]  ;;  %v6449_v18 = vld [vmem:[#allocation2 + $0x24c] ss:$36 sps:$4 sm:$0xff]   ;;  %v1167_v45 = vrot.slane %v1165_v11, 4 }
  0x7f   : > { %4874 = vmatprep.mubr.bf16.mxu1 %v6443_v37  ;;  %1015 = vst [vmem:[#allocation2 + $0x2b4] sm:$0xf] %v911_v16  ;;  %v1166_v19 = vsel %vm6806_vm4, %v1164_v10, %v1165_v11  ;;  %v541_v22 = vsel %vm6819_vm5, %v536_v15, %v540_v0  ;;  %v247_v23 = vld [vmem:[%s6776_s29 + $0x54] sm:$0xf]  ;;  %282 = vst [vmem:[#allocation2 + $0x2d0] sm:$0xf] %v246_v20  ;;  %v5899_v31 = vcombine.low %v3098_v13, %v3103_v17 }
  0x80   : > { %1270 = vst [vmem:[#allocation2 + $0x2b8] sm:$0xf] %v1166_v19  ;;  %v319_v24 = vld [vmem:[%s6776_s29 + $0x54] sm:$0xf]  ;;  %v320_v25 = vld [vmem:[%s6776_s29 + $0x58] sm:$0xf]  ;;  %5158 = vmatprep.subr.bf16.mxu1 %v6667_v1 }
  0x81   : > { %757 = vst [vmem:[#allocation2 + $0x2b0] sm:$0xf] %v541_v22  ;;  %283 = vst [vmem:[#allocation2 + $0x2f4] sm:$0xf] %v247_v23  ;;  %v546_v26 = vrot.slane %v545_v12, 4  ;;  %v548_v27 = vshll.u32 %v319_v24, 16 }
  0x82   : > { %v552_v28 = vshrl.u32 %v319_v24, 16  ;;  %v558_v29 = vshll.u32 %v320_v25, 16  ;;  %v795_v30 = vld [vmem:[%s6776_s29 + $0x54] sm:$0xf]  ;;  %v562_v32 = vshrl.u32 %v320_v25, 16 }
  0x83   : > { %v796_v33 = vld [vmem:[%s6776_s29 + $0x58] sm:$0xf]  ;;  %v913_v34 = vrot.slane %v795_v30, 5  ;;  %v1053_v35 = vld [vmem:[%s6776_s29 + $0x5c] sm:$0xf]  ;;  %v550_v37 = vrot.slane %v548_v27, 5 }
  0x84   : > { %v6452_v36 = vld [vmem:[#allocation2 + $0x248] ss:$36 sps:$4 sm:$0xff]   ;;  %v554_v39 = vrot.slane %v552_v28, 4  ;;  %v560_v40 = vrot.slane %v558_v29, 5  ;;  %v916_v41 = vrot.slane %v796_v33, 5  ;;  %v1168_v46 = vrot.slane %v1053_v35, 5 }
  0x85   : > { %4698 = vmatmul.mubr.bf16.gmra.mxu0 %v5890_v62  ;;  %v1054_v42 = vld [vmem:[%s6776_s29 + $0x60] sm:$0xf]  ;;  %v914_v43 = vsel %vm6806_vm4, %v912_v21, %v913_v34  ;;  %v915_v44 = vrot.slane %v913_v34, 4  ;;  %v551_v47 = vsel %vm6819_vm5, %v546_v26, %v550_v37  ;;  %v564_v52 = vrot.slane %v562_v32, 4  ;;  %v6467_v56 = vld [vmem:[%s8890_s1 + $0x170] sm:$0xff]   ;;  %v3108_v57 = vld [vmem:[#allocation2 + $0x288] sm:$0xff] }
  0x86   : > { %4875 = vmatmul.mubr.bf16.gmra.mxu1 %v6446_v63  ;;  %4705 = vmatprep.mubr.bf16.mxu0 %v6447_v14  ;;  %v555_v48 = vor.u32 %v554_v39, %v550_v37  ;;  %1016 = vst [vmem:[#allocation2 + $0x2d8] sm:$0xf] %v914_v43  ;;  %v1171_v49 = vrot.slane %v1054_v42, 5  ;;  %758 = vst [vmem:[#allocation2 + $0x2d4] sm:$0xf] %v551_v47  ;;  %v1169_v54 = vsel %vm6806_vm4, %v1167_v45, %v1168_v46  ;;  %v6473_v30 = vld [vmem:[%s8890_s1 + $0x1f0] sm:$0xff]  }
  0x87   : > { %4882 = vmatprep.mubr.bf16.mxu1 %v6449_v18  ;;  %v917_v53 = vsel %vm6806_vm4, %v915_v44, %v916_v41  ;;  %v1170_v55 = vrot.slane %v1168_v46, 4  ;;  %v6456_v58 = vld [vmem:[#allocation2 + $0x294] ss:$36 sps:$4 sm:$0xff]   ;;  %1271 = vst [vmem:[#allocation2 + $0x2dc] sm:$0xf] %v1169_v54  ;;  %v565_v60 = vor.u32 %v564_v52, %v560_v40  ;;  %v918_v2 = vrot.slane %v916_v41, 4  ;;  %4982 = vmatpush2.bf16.msra.mxu0 %v6467_v56 }
  0x88   : > { %v556_v59 = vrot.slane %v555_v48, 4  ;;  %1017 = vst [vmem:[#allocation2 + $0x2fc] sm:$0xf] %v917_v53  ;;  %v3113_v61 = vld [vmem:[#allocation2 + $0x2ac] sm:$0xff]  ;;  %v248_v0 = vld [vmem:[%s6776_s29 + $0x58] sm:$0xf]  ;;  %4983 = vmatprep.subr.bf16.mxu0 %v6667_v1  ;;  %5159 = vmatpush2.bf16.msra.mxu1 %v6473_v30 }
  0x89   : > { %v6454_v62 = vld [vmem:[#allocation2 + $0x28c] ss:$36 sps:$4 sm:$0xff]   ;;  %v1172_v63 = vsel %vm6806_vm4, %v1170_v55, %v1171_v49  ;;  %v249_v4 = vld [vmem:[%s6776_s29 + $0x5c] sm:$0xf]  ;;  %284 = vst [vmem:[#allocation2 + $0x318] sm:$0xf] %v248_v0  ;;  %v5908_v12 = vcombine.low %v3108_v57, %v3113_v61  ;;  %5160 = vmatprep.subr.bf16.mxu1 %v6667_v1 }
  0x8a   : > { %v561_v3 = vsel %vm6819_vm5, %v556_v59, %v560_v40  ;;  %1272 = vst [vmem:[#allocation2 + $0x300] sm:$0xf] %v1172_v63  ;;  %v321_v5 = vld [vmem:[%s6776_s29 + $0x5c] sm:$0xf]  ;;  %v322_v6 = vld [vmem:[%s6776_s29 + $0x60] sm:$0xf] }
  0x8b   : > { %759 = vst [vmem:[#allocation2 + $0x2f8] sm:$0xf] %v561_v3  ;;  %285 = vst [vmem:[#allocation2 + $0x33c] sm:$0xf] %v249_v4  ;;  %v566_v7 = vrot.slane %v565_v60, 4  ;;  %v568_v8 = vshll.u32 %v321_v5, 16 }
  0x8c   : > { %v572_v9 = vshrl.u32 %v321_v5, 16  ;;  %v578_v10 = vshll.u32 %v322_v6, 16  ;;  %v797_v11 = vld [vmem:[%s6776_s29 + $0x5c] sm:$0xf]  ;;  %v6458_v13 = vld [vmem:[#allocation2 + $0x290] ss:$36 sps:$4 sm:$0xff]  }
  0x8d   : > { %4706 = vmatmul.mubr.bf16.gmra.mxu0 %v5899_v31  ;;  %v582_v14 = vshrl.u32 %v322_v6, 16  ;;  %v798_v15 = vld [vmem:[%s6776_s29 + $0x60] sm:$0xf]  ;;  %v919_v16 = vrot.slane %v797_v11, 5  ;;  %v1055_v17 = vld [vmem:[%s6776_s29 + $0x64] sm:$0xf] }
  0x8e   : > { %4883 = vmatmul.mubr.bf16.gmra.mxu1 %v6452_v36  ;;  %4713 = vmatprep.mubr.bf16.mxu0 %v6454_v62  ;;  %v570_v18 = vrot.slane %v568_v8, 5  ;;  %v574_v19 = vrot.slane %v572_v9, 4  ;;  %v580_v20 = vrot.slane %v578_v10, 5  ;;  %v922_v21 = vrot.slane %v798_v15, 5  ;;  %v1056_v22 = vld [vmem:[%s6776_s29 + $0x68] sm:$0xf] }
  0x8f   : > { %4890 = vmatprep.mubr.bf16.mxu1 %v6456_v58  ;;  %v920_v23 = vsel %vm6806_vm4, %v918_v2, %v919_v16  ;;  %v921_v24 = vrot.slane %v919_v16, 4  ;;  %v1173_v25 = vrot.slane %v1171_v49, 4  ;;  %v1174_v26 = vrot.slane %v1055_v17, 5  ;;  %v6474_v35 = vld [vmem:[%s8890_s1 + $0x168] sm:$0xff]   ;;  %v3118_v36 = vld [vmem:[#allocation2 + $0x2d0] sm:$0xff]  ;;  %v6481_v17 = vld [vmem:[%s8890_s1 + $0x160] sm:$0xff]  }
  0x90   : > { %v571_v27 = vsel %vm6819_vm5, %v566_v7, %v570_v18  ;;  %v575_v28 = vor.u32 %v574_v19, %v570_v18  ;;  %1018 = vst [vmem:[#allocation2 + $0x320] sm:$0xf] %v920_v23  ;;  %v1177_v29 = vrot.slane %v1056_v22, 5  ;;  %v584_v31 = vrot.slane %v582_v14, 4  ;;  %4984 = vmatpush2.bf16.msra.mxu0 %v6474_v35  ;;  %v250_v44 = vld [vmem:[%s6776_s29 + $0x60] sm:$0xf] }
  0x91   : > { %760 = vst [vmem:[#allocation2 + $0x31c] sm:$0xf] %v571_v27  ;;  %v923_v32 = vsel %vm6806_vm4, %v921_v24, %v922_v21  ;;  %v1175_v33 = vsel %vm6806_vm4, %v1173_v25, %v1174_v26  ;;  %v1176_v34 = vrot.slane %v1174_v26, 4  ;;  %v6463_v37 = vld [vmem:[#allocation2 + $0x2dc] ss:$36 sps:$4 sm:$0xff]   ;;  %v924_v45 = vrot.slane %v922_v21, 4  ;;  %4985 = vmatprep.subr.bf16.mxu0 %v6667_v1 }
  0x92   : > { %v576_v39 = vrot.slane %v575_v28, 4  ;;  %1019 = vst [vmem:[#allocation2 + $0x344] sm:$0xf] %v923_v32  ;;  %1273 = vst [vmem:[#allocation2 + $0x324] sm:$0xf] %v1175_v33  ;;  %v585_v40 = vor.u32 %v584_v31, %v580_v20  ;;  %v3123_v41 = vld [vmem:[#allocation2 + $0x2f4] sm:$0xff] }
  0x93   : > { %v6461_v42 = vld [vmem:[#allocation2 + $0x2d4] ss:$36 sps:$4 sm:$0xff]   ;;  %v1178_v43 = vsel %vm6806_vm4, %v1176_v34, %v1177_v29  ;;  %v251_v47 = vld [vmem:[%s6776_s29 + $0x64] sm:$0xf]  ;;  %286 = vst [vmem:[#allocation2 + $0x360] sm:$0xf] %v250_v44  ;;  %v5917_v57 = vcombine.low %v3118_v36, %v3123_v41 }
  0x94   : > { %v581_v46 = vsel %vm6819_vm5, %v576_v39, %v580_v20  ;;  %1274 = vst [vmem:[#allocation2 + $0x348] sm:$0xf] %v1178_v43  ;;  %v323_v48 = vld [vmem:[%s6776_s29 + $0x64] sm:$0xf]  ;;  %v324_v49 = vld [vmem:[%s6776_s29 + $0x68] sm:$0xf]  ;;  %4986 = vmatpush2.bf16.msra.mxu0 %v6481_v17 }
  0x95   : > { %4714 = vmatmul.mubr.bf16.gmra.mxu0 %v5908_v12  ;;  %v6465_v51 = vld [vmem:[#allocation2 + $0x2d8] ss:$36 sps:$4 sm:$0xff]   ;;  %761 = vst [vmem:[#allocation2 + $0x340] sm:$0xf] %v581_v46  ;;  %287 = vst [vmem:[#allocation2 + $0x384] sm:$0xf] %v251_v47  ;;  %4987 = vmatprep.subr.bf16.mxu0 %v6667_v1 }
  0x96   : > { %4891 = vmatmul.mubr.bf16.gmra.mxu1 %v6458_v13  ;;  %4721 = vmatprep.mubr.bf16.mxu0 %v6461_v42  ;;  %v586_v52 = vrot.slane %v585_v40, 4  ;;  %v588_v53 = vshll.u32 %v323_v48, 16  ;;  %v592_v54 = vshrl.u32 %v323_v48, 16  ;;  %v598_v55 = vshll.u32 %v324_v49, 16  ;;  %v799_v56 = vld [vmem:[%s6776_s29 + $0x64] sm:$0xf] }
  0x97   : > { %4898 = vmatprep.mubr.bf16.mxu1 %v6463_v37  ;;  %v602_v58 = vshrl.u32 %v324_v49, 16  ;;  %v800_v59 = vld [vmem:[%s6776_s29 + $0x68] sm:$0xf]  ;;  %v925_v60 = vrot.slane %v799_v56, 5  ;;  %v1057_v61 = vld [vmem:[%s6776_s29 + $0x6c] sm:$0xf] }
  0x98   : > { %v590_v62 = vrot.slane %v588_v53, 5  ;;  %v594_v63 = vrot.slane %v592_v54, 4  ;;  %v600_v0 = vrot.slane %v598_v55, 5  ;;  %v928_v2 = vrot.slane %v800_v59, 5  ;;  %v1058_v3 = vld [vmem:[%s6776_s29 + $0x70] sm:$0xf] }
  0x99   : > { %v7227_v4 = vld [vmem:[#allocation2 + $0x318] sm:$0xff]  ;;  %v926_v5 = vsel %vm6806_vm4, %v924_v45, %v925_v60  ;;  %v927_v6 = vrot.slane %v925_v60, 4  ;;  %v1179_v7 = vrot.slane %v1177_v29, 4  ;;  %v1180_v8 = vrot.slane %v1057_v61, 5  ;;  %v6480_v12 = vld [vmem:[%s8890_s1 + $0x1e8] sm:$0xff]   ;;  %v6487_v56 = vld [vmem:[%s8890_s1 + $0x1e0] sm:$0xff]  }
  0x9a   : > { %v591_v9 = vsel %vm6819_vm5, %v586_v52, %v590_v62  ;;  %v595_v10 = vor.u32 %v594_v63, %v590_v62  ;;  %1020 = vst [vmem:[#allocation2 + $0x368] sm:$0xf] %v926_v5  ;;  %v1183_v11 = vrot.slane %v1058_v3, 5  ;;  %v604_v13 = vrot.slane %v602_v58, 4  ;;  %5161 = vmatpush2.bf16.msra.mxu1 %v6480_v12  ;;  %v252_v24 = vld [vmem:[%s6776_s29 + $0x68] sm:$0xf] }
  0x9b   : > { %762 = vst [vmem:[#allocation2 + $0x364] sm:$0xf] %v591_v9  ;;  %v929_v14 = vsel %vm6806_vm4, %v927_v6, %v928_v2  ;;  %v1181_v15 = vsel %vm6806_vm4, %v1179_v7, %v1180_v8  ;;  %v1182_v16 = vrot.slane %v1180_v8, 4  ;;  %v6470_v18 = vld [vmem:[#allocation2 + $0x324] ss:$36 sps:$4 sm:$0xff]   ;;  %v930_v25 = vrot.slane %v928_v2, 4  ;;  %5162 = vmatprep.subr.bf16.mxu1 %v6667_v1 }
  0x9c   : > { %v596_v19 = vrot.slane %v595_v10, 4  ;;  %1021 = vst [vmem:[#allocation2 + $0x38c] sm:$0xf] %v929_v14  ;;  %1275 = vst [vmem:[#allocation2 + $0x36c] sm:$0xf] %v1181_v15  ;;  %v605_v20 = vor.u32 %v604_v13, %v600_v0  ;;  %v3133_v21 = vld [vmem:[#allocation2 + $0x33c] sm:$0xff] }
  0x9d   : > { %4722 = vmatmul.mubr.bf16.gmra.mxu0 %v5917_v57  ;;  %v6468_v22 = vld [vmem:[#allocation2 + $0x31c] ss:$36 sps:$4 sm:$0xff]   ;;  %v1184_v23 = vsel %vm6806_vm4, %v1182_v16, %v1183_v11  ;;  %v5926_v26 = vcombine.low %v7227_v4, %v3133_v21  ;;  %v253_v29 = vld [vmem:[%s6776_s29 + $0x6c] sm:$0xf]  ;;  %288 = vst [vmem:[#allocation2 + $0x3a8] sm:$0xf] %v252_v24 }
  0x9e   : > { %4899 = vmatmul.mubr.bf16.gmra.mxu1 %v6465_v51  ;;  %v6472_v27 = vld [vmem:[#allocation2 + $0x320] ss:$36 sps:$4 sm:$0xff]   ;;  %v601_v28 = vsel %vm6819_vm5, %v596_v19, %v600_v0  ;;  %1276 = vst [vmem:[#allocation2 + $0x390] sm:$0xf] %v1184_v23  ;;  %v325_v30 = vld [vmem:[%s6776_s29 + $0x6c] sm:$0xf]  ;;  %4729 = vmatprep.mubr.bf16.mxu0 %v6468_v22 }
  0x9f   : > { %4906 = vmatprep.mubr.bf16.mxu1 %v6470_v18  ;;  %v326_v31 = vld [vmem:[%s6776_s29 + $0x70] sm:$0xf]  ;;  %763 = vst [vmem:[#allocation2 + $0x388] sm:$0xf] %v601_v28  ;;  %289 = vst [vmem:[#allocation2 + $0x3cc] sm:$0xf] %v253_v29  ;;  %5163 = vmatpush2.bf16.msra.mxu1 %v6487_v56 }
  0xa0   : > { %v606_v32 = vrot.slane %v605_v20, 4  ;;  %v608_v33 = vshll.u32 %v325_v30, 16  ;;  %v612_v34 = vshrl.u32 %v325_v30, 16  ;;  %v618_v35 = vshll.u32 %v326_v31, 16  ;;  %v801_v36 = vld [vmem:[%s6776_s29 + $0x6c] sm:$0xf]  ;;  %5164 = vmatprep.subr.bf16.mxu1 %v6667_v1 }
  0xa1   : > { %v622_v37 = vshrl.u32 %v326_v31, 16  ;;  %v802_v39 = vld [vmem:[%s6776_s29 + $0x70] sm:$0xf]  ;;  %v931_v40 = vrot.slane %v801_v36, 5  ;;  %v1059_v41 = vld [vmem:[%s6776_s29 + $0x74] sm:$0xf] }
  0xa2   : > { %v610_v42 = vrot.slane %v608_v33, 5  ;;  %v614_v43 = vrot.slane %v612_v34, 4  ;;  %v620_v44 = vrot.slane %v618_v35, 5  ;;  %v934_v45 = vrot.slane %v802_v39, 5  ;;  %v7258_v46 = vld [vmem:[%s6776_s29 + $0x78] sm:$0xf] }
  0xa3   : > { %v3138_v47 = vld [vmem:[#allocation2 + $0x360] sm:$0xff]  ;;  %v932_v48 = vsel %vm6806_vm4, %v930_v25, %v931_v40  ;;  %v933_v49 = vrot.slane %v931_v40, 4  ;;  %v1185_v51 = vrot.slane %v1183_v11, 4  ;;  %v1186_v52 = vrot.slane %v1059_v41, 5  ;;  %v6488_v61 = vld [vmem:[%s8890_s1 + $0x158] sm:$0xff]   ;;  %v6495_v41 = vld [vmem:[%s8890_s1 + $0x150] sm:$0xff]  }
  0xa4   : > { %v611_v53 = vsel %vm6819_vm5, %v606_v32, %v610_v42  ;;  %v615_v54 = vor.u32 %v614_v43, %v610_v42  ;;  %1022 = vst [vmem:[#allocation2 + $0x3b0] sm:$0xf] %v932_v48  ;;  %v1189_v55 = vrot.slane %v7258_v46, 5  ;;  %v624_v57 = vrot.slane %v622_v37, 4  ;;  %v6479_v4 = vld [vmem:[#allocation2 + $0x368] ss:$36 sps:$4 sm:$0xff]   ;;  %4988 = vmatpush2.bf16.msra.mxu0 %v6488_v61 }
  0xa5   : > { %4730 = vmatmul.mubr.bf16.gmra.mxu0 %v5926_v26  ;;  %764 = vst [vmem:[#allocation2 + $0x3ac] sm:$0xf] %v611_v53  ;;  %v935_v58 = vsel %vm6806_vm4, %v933_v49, %v934_v45  ;;  %v1187_v59 = vsel %vm6806_vm4, %v1185_v51, %v1186_v52  ;;  %v1188_v60 = vrot.slane %v1186_v52, 4  ;;  %v6477_v62 = vld [vmem:[#allocation2 + $0x36c] ss:$36 sps:$4 sm:$0xff]   ;;  %v936_v7 = vrot.slane %v934_v45, 4  ;;  %4989 = vmatprep.subr.bf16.mxu0 %v6667_v1 }
  0xa6   : > { %4907 = vmatmul.mubr.bf16.gmra.mxu1 %v6472_v27  ;;  %v616_v63 = vrot.slane %v615_v54, 4  ;;  %1023 = vst [vmem:[#allocation2 + $0x3d4] sm:$0xf] %v935_v58  ;;  %1277 = vst [vmem:[#allocation2 + $0x3b4] sm:$0xf] %v1187_v59  ;;  %v625_v0 = vor.u32 %v624_v57, %v620_v44  ;;  %v3143_v2 = vld [vmem:[#allocation2 + $0x384] sm:$0xff] }
  0xa7   : > { %v6475_v3 = vld [vmem:[#allocation2 + $0x364] ss:$36 sps:$4 sm:$0xff]   ;;  %v1190_v5 = vsel %vm6806_vm4, %v1188_v60, %v1189_v55  ;;  %v254_v6 = vld [vmem:[%s6776_s29 + $0x70] sm:$0xf]  ;;  %4914 = vmatprep.mubr.bf16.mxu1 %v6477_v62  ;;  %v5935_v8 = vcombine.low %v3138_v47, %v3143_v2  ;;  %v255_v10 = vld [vmem:[%s6776_s29 + $0x74] sm:$0xf] }
  0xa8   : > { %v621_v9 = vsel %vm6819_vm5, %v616_v63, %v620_v44  ;;  %1278 = vst [vmem:[#allocation2 + $0x3d8] sm:$0xf] %v1190_v5  ;;  %290 = vst [vmem:[#allocation2 + $0x3f0] sm:$0xf] %v254_v6  ;;  %v327_v11 = vld [vmem:[%s6776_s29 + $0x74] sm:$0xf]  ;;  %4737 = vmatprep.mubr.bf16.mxu0 %v6475_v3  ;;  %4990 = vmatpush2.bf16.msra.mxu0 %v6495_v41 }
  0xa9   : > { %v328_v12 = vld [vmem:[%s6776_s29 + $0x78] sm:$0xf]  ;;  %765 = vst [vmem:[#allocation2 + $0x3d0] sm:$0xf] %v621_v9  ;;  %291 = vst [vmem:[#allocation2 + $0x414] sm:$0xf] %v255_v10  ;;  %4991 = vmatprep.subr.bf16.mxu0 %v6667_v1 }
  0xaa   : > { %v626_v13 = vrot.slane %v625_v0, 4  ;;  %v628_v14 = vshll.u32 %v327_v11, 16  ;;  %v632_v15 = vshrl.u32 %v327_v11, 16  ;;  %v638_v16 = vshll.u32 %v328_v12, 16  ;;  %v803_v17 = vld [vmem:[%s6776_s29 + $0x74] sm:$0xf] }
  0xab   : > { %v642_v18 = vshrl.u32 %v328_v12, 16  ;;  %v804_v19 = vld [vmem:[%s6776_s29 + $0x78] sm:$0xf]  ;;  %v937_v20 = vrot.slane %v803_v17, 5  ;;  %v1061_v21 = vld [vmem:[%s6776_s29 + $0x7c] sm:$0xf] }
  0xac   : > { %v630_v22 = vrot.slane %v628_v14, 5  ;;  %v634_v23 = vrot.slane %v632_v15, 4  ;;  %v640_v24 = vrot.slane %v638_v16, 5  ;;  %v940_v25 = vrot.slane %v804_v19, 5  ;;  %v7289_v26 = vld [vmem:[%s6776_s29 + $0x80] sm:$0xf] }
  0xad   : > { %4738 = vmatmul.mubr.bf16.gmra.mxu0 %v5935_v8  ;;  %v3148_v27 = vld [vmem:[#allocation2 + $0x3a8] sm:$0xff]  ;;  %v938_v28 = vsel %vm6806_vm4, %v936_v7, %v937_v20  ;;  %v939_v29 = vrot.slane %v937_v20, 4  ;;  %v1191_v30 = vrot.slane %v1189_v55, 4  ;;  %v1192_v31 = vrot.slane %v1061_v21, 5  ;;  %v6494_v35 = vld [vmem:[%s8890_s1 + $0x1d8] sm:$0xff]   ;;  %v6501_v16 = vld [vmem:[%s8890_s1 + $0x1d0] sm:$0xff]  }
  0xae   : > { %4915 = vmatmul.mubr.bf16.gmra.mxu1 %v6479_v4  ;;  %v631_v32 = vsel %vm6819_vm5, %v626_v13, %v630_v22  ;;  %v635_v33 = vor.u32 %v634_v23, %v630_v22  ;;  %1024 = vst [vmem:[#allocation2 + $0x3f8] sm:$0xf] %v938_v28  ;;  %v1195_v34 = vrot.slane %v7289_v26, 5  ;;  %v644_v36 = vrot.slane %v642_v18, 4  ;;  %v6486_v43 = vld [vmem:[#allocation2 + $0x3b0] ss:$36 sps:$4 sm:$0xff]  }
  0xaf   : > { %766 = vst [vmem:[#allocation2 + $0x3f4] sm:$0xf] %v631_v32  ;;  %v941_v37 = vsel %vm6806_vm4, %v939_v29, %v940_v25  ;;  %v1193_v39 = vsel %vm6806_vm4, %v1191_v30, %v1192_v31  ;;  %v1194_v40 = vrot.slane %v1192_v31, 4  ;;  %v6484_v42 = vld [vmem:[#allocation2 + $0x3b4] ss:$36 sps:$4 sm:$0xff]   ;;  %5165 = vmatpush2.bf16.msra.mxu1 %v6494_v35  ;;  %v942_v51 = vrot.slane %v940_v25, 4 }
  0xb0   : > { %v636_v44 = vrot.slane %v635_v33, 4  ;;  %1025 = vst [vmem:[#allocation2 + $0x41c] sm:$0xf] %v941_v37  ;;  %1279 = vst [vmem:[#allocation2 + $0x3fc] sm:$0xf] %v1193_v39  ;;  %v645_v45 = vor.u32 %v644_v36, %v640_v24  ;;  %v3153_v46 = vld [vmem:[#allocation2 + $0x3cc] sm:$0xff]  ;;  %5166 = vmatprep.subr.bf16.mxu1 %v6667_v1  ;;  %4922 = vmatprep.mubr.bf16.mxu1 %v6484_v42 }
  0xb1   : > { %v6482_v47 = vld [vmem:[#allocation2 + $0x3ac] ss:$36 sps:$4 sm:$0xff]   ;;  %v1196_v48 = vsel %vm6806_vm4, %v1194_v40, %v1195_v34  ;;  %v256_v49 = vld [vmem:[%s6776_s29 + $0x78] sm:$0xf]  ;;  %v5944_v52 = vcombine.low %v3148_v27, %v3153_v46  ;;  %v257_v54 = vld [vmem:[%s6776_s29 + $0x7c] sm:$0xf] }
  0xb2   : > { %v641_v53 = vsel %vm6819_vm5, %v636_v44, %v640_v24  ;;  %1280 = vst [vmem:[#allocation2 + $0x420] sm:$0xf] %v1196_v48  ;;  %292 = vst [vmem:[#allocation2 + $0x438] sm:$0xf] %v256_v49  ;;  %v329_v55 = vld [vmem:[%s6776_s29 + $0x7c] sm:$0xf]  ;;  %4745 = vmatprep.mubr.bf16.mxu0 %v6482_v47 }
  0xb3   : > { %v330_v56 = vld [vmem:[%s6776_s29 + $0x80] sm:$0xf]  ;;  %767 = vst [vmem:[#allocation2 + $0x418] sm:$0xf] %v641_v53  ;;  %293 = vst [vmem:[#allocation2 + $0x45c] sm:$0xf] %v257_v54  ;;  %5167 = vmatpush2.bf16.msra.mxu1 %v6501_v16 }
  0xb4   : > { %v646_v57 = vrot.slane %v645_v45, 4  ;;  %v648_v58 = vshll.u32 %v329_v55, 16  ;;  %v652_v59 = vshrl.u32 %v329_v55, 16  ;;  %v658_v60 = vshll.u32 %v330_v56, 16  ;;  %v805_v61 = vld [vmem:[%s6776_s29 + $0x7c] sm:$0xf]  ;;  %5168 = vmatprep.subr.bf16.mxu1 %v6667_v1 }
  0xb5   : > { %v662_v62 = vshrl.u32 %v330_v56, 16  ;;  %v806_v63 = vld [vmem:[%s6776_s29 + $0x80] sm:$0xf]  ;;  %v943_v0 = vrot.slane %v805_v61, 5  ;;  %v1063_v2 = vld [vmem:[%s6776_s29 + $0x84] sm:$0xf]  ;;  %4746 = vmatmul.mubr.bf16.gmra.mxu0 %v5944_v52 }
  0xb6   : > { %v650_v3 = vrot.slane %v648_v58, 5  ;;  %v654_v4 = vrot.slane %v652_v59, 4  ;;  %v660_v5 = vrot.slane %v658_v60, 5  ;;  %v946_v6 = vrot.slane %v806_v63, 5  ;;  %v1064_v7 = vld [vmem:[%s6776_s29 + $0x88] sm:$0xf]  ;;  %4923 = vmatmul.mubr.bf16.gmra.mxu1 %v6486_v43 }
  0xb7   : > { %v3158_v8 = vld [vmem:[#allocation2 + $0x3f0] sm:$0xff]  ;;  %v944_v9 = vsel %vm6806_vm4, %v942_v51, %v943_v0  ;;  %v945_v10 = vrot.slane %v943_v0, 4  ;;  %v1197_v11 = vrot.slane %v1195_v34, 4  ;;  %v1198_v12 = vrot.slane %v1063_v2, 5  ;;  %v258_v21 = vld [vmem:[%s6776_s29 + $0x80] sm:$0xf] }
  0xb8   : > { %v651_v13 = vsel %vm6819_vm5, %v646_v57, %v650_v3  ;;  %v655_v14 = vor.u32 %v654_v4, %v650_v3  ;;  %1026 = vst [vmem:[#allocation2 + $0x440] sm:$0xf] %v944_v9  ;;  %v1201_v15 = vrot.slane %v1064_v7, 5  ;;  %v664_v17 = vrot.slane %v662_v62, 4  ;;  %v259_v22 = vld [vmem:[%s6776_s29 + $0x84] sm:$0xf] }
  0xb9   : > { %768 = vst [vmem:[#allocation2 + $0x43c] sm:$0xf] %v651_v13  ;;  %v947_v18 = vsel %vm6806_vm4, %v945_v10, %v946_v6  ;;  %v1199_v19 = vsel %vm6806_vm4, %v1197_v11, %v1198_v12  ;;  %v1200_v20 = vrot.slane %v1198_v12, 4  ;;  %v948_v23 = vrot.slane %v946_v6, 4  ;;  %v6491_v24 = vld [vmem:[#allocation2 + $0x3fc] ss:$36 sps:$4 sm:$0xff]  }
  0xba   : > { %v6493_v25 = vld [vmem:[#allocation2 + $0x3f8] ss:$36 sps:$4 sm:$0xff]   ;;  %v656_v26 = vrot.slane %v655_v14, 4  ;;  %1027 = vst [vmem:[#allocation2 + $0x464] sm:$0xf] %v947_v18  ;;  %v665_v27 = vor.u32 %v664_v17, %v660_v5  ;;  %v1203_v32 = vrot.slane %v1201_v15, 4  ;;  %4930 = vmatprep.mubr.bf16.mxu1 %v6491_v24 }
  0xbb   : > { %1281 = vst [vmem:[#allocation2 + $0x444] sm:$0xf] %v1199_v19  ;;  %294 = vst [vmem:[#allocation2 + $0x480] sm:$0xf] %v258_v21  ;;  %v3163_v28 = vld [vmem:[#allocation2 + $0x414] sm:$0xff]  ;;  %v1202_v30 = vsel %vm6806_vm4, %v1200_v20, %v1201_v15  ;;  %v6506_v54 = vld [vmem:[%s8890_s1 + $0x148] sm:$0xff]  }
  0xbc   : > { %295 = vst [vmem:[#allocation2 + $0x4a4] sm:$0xf] %v259_v22  ;;  %v6489_v29 = vld [vmem:[#allocation2 + $0x3f4] ss:$36 sps:$4 sm:$0xff]   ;;  %v331_v31 = vld [vmem:[%s6776_s29 + $0x84] sm:$0xf]  ;;  %v5953_v33 = vcombine.low %v3158_v8, %v3163_v28  ;;  %v661_v34 = vsel %vm6819_vm5, %v656_v26, %v660_v5  ;;  %4992 = vmatpush2.bf16.msra.mxu0 %v6506_v54 }
  0xbd   : > { %1282 = vst [vmem:[#allocation2 + $0x468] sm:$0xf] %v1202_v30  ;;  %v332_v35 = vld [vmem:[%s6776_s29 + $0x88] sm:$0xf]  ;;  %v666_v36 = vrot.slane %v665_v27, 4  ;;  %v668_v37 = vshll.u32 %v331_v31, 16  ;;  %4753 = vmatprep.mubr.bf16.mxu0 %v6489_v29  ;;  %4993 = vmatprep.subr.bf16.mxu0 %v6667_v1 }
  0xbe   : > { %v807_v39 = vld [vmem:[%s6776_s29 + $0x84] sm:$0xf]  ;;  %769 = vst [vmem:[#allocation2 + $0x460] sm:$0xf] %v661_v34  ;;  %v672_v40 = vshrl.u32 %v331_v31, 16  ;;  %v678_v41 = vshll.u32 %v332_v35, 16  ;;  %4754 = vmatmul.mubr.bf16.gmra.mxu0 %v5953_v33  ;;  %4931 = vmatmul.mubr.bf16.gmra.mxu1 %v6493_v25 }
  0xbf   : > { %v682_v42 = vshrl.u32 %v332_v35, 16  ;;  %v808_v43 = vld [vmem:[%s6776_s29 + $0x88] sm:$0xf]  ;;  %v949_v44 = vrot.slane %v807_v39, 5  ;;  %v670_v45 = vrot.slane %v668_v37, 5 }
  0xc0   : > { %v952_v46 = vrot.slane %v808_v43, 5  ;;  %v1065_v47 = vld [vmem:[%s6776_s29 + $0x8c] sm:$0xf]  ;;  %v1066_v48 = vld [vmem:[%s6776_s29 + $0x90] sm:$0xf]  ;;  %v674_v49 = vrot.slane %v672_v40, 4 }
  0xc1   : > { %v680_v51 = vrot.slane %v678_v41, 5  ;;  %v950_v52 = vsel %vm6806_vm4, %v948_v23, %v949_v44  ;;  %v951_v53 = vrot.slane %v949_v44, 4  ;;  %v3168_v55 = vld [vmem:[#allocation2 + $0x438] sm:$0xff]  ;;  %v671_v56 = vsel %vm6819_vm5, %v666_v36, %v670_v45  ;;  %v260_v62 = vld [vmem:[%s6776_s29 + $0x88] sm:$0xf]  ;;  %v6514_v40 = vld [vmem:[%s8890_s1 + $0x140] sm:$0xff]  }
  0xc2   : > { %1028 = vst [vmem:[#allocation2 + $0x488] sm:$0xf] %v950_v52  ;;  %v1204_v57 = vrot.slane %v1065_v47, 5  ;;  %v1207_v58 = vrot.slane %v1066_v48, 5  ;;  %v684_v59 = vrot.slane %v682_v42, 4  ;;  %v675_v60 = vor.u32 %v674_v49, %v670_v45  ;;  %v6512_v22 = vld [vmem:[%s8890_s1 + $0x1c8] sm:$0xff]   ;;  %4994 = vmatpush2.bf16.msra.mxu0 %v6514_v40 }
  0xc3   : > { %770 = vst [vmem:[#allocation2 + $0x484] sm:$0xf] %v671_v56  ;;  %v953_v61 = vsel %vm6806_vm4, %v951_v53, %v952_v46  ;;  %v261_v63 = vld [vmem:[%s6776_s29 + $0x8c] sm:$0xf]  ;;  %v954_v0 = vrot.slane %v952_v46, 4  ;;  %5169 = vmatpush2.bf16.msra.mxu1 %v6512_v22  ;;  %v6515_v41 = vld [vmem:[%s8890_s1 + $0x1c0] sm:$0xff]  }
  0xc4   : > { %1029 = vst [vmem:[#allocation2 + $0x4ac] sm:$0xf] %v953_v61  ;;  %v1205_v2 = vsel %vm6806_vm4, %v1203_v32, %v1204_v57  ;;  %v1206_v3 = vrot.slane %v1204_v57, 4  ;;  %296 = vst [vmem:[#allocation2 + $0x4c8] sm:$0xf] %v260_v62  ;;  %v685_v6 = vor.u32 %v684_v59, %v680_v51  ;;  %v1209_v7 = vrot.slane %v1207_v58, 4  ;;  %5170 = vmatprep.subr.bf16.mxu1 %v6667_v1 }
  0xc5   : > { %297 = vst [vmem:[#allocation2 + $0x4ec] sm:$0xf] %v261_v63  ;;  %v333_v4 = vld [vmem:[%s6776_s29 + $0x8c] sm:$0xf]  ;;  %v334_v5 = vld [vmem:[%s6776_s29 + $0x90] sm:$0x1] }
  0xc6   : > { %v6498_v8 = vld [vmem:[#allocation2 + $0x444] ss:$36 sps:$4 sm:$0xff]   ;;  %v676_v10 = vrot.slane %v675_v60, 4  ;;  %1283 = vst [vmem:[#allocation2 + $0x48c] sm:$0xf] %v1205_v2  ;;  %v3173_v11 = vld [vmem:[#allocation2 + $0x45c] sm:$0xff]  ;;  %v1208_v13 = vsel %vm6806_vm4, %v1206_v3, %v1207_v58 }
  0xc7   : > { %v6500_v9 = vld [vmem:[#allocation2 + $0x440] ss:$36 sps:$4 sm:$0xff]   ;;  %v686_v14 = vrot.slane %v685_v6, 4  ;;  %v688_v15 = vshll.u32 %v333_v4, 16  ;;  %v692_v16 = vshrl.u32 %v333_v4, 16  ;;  %4938 = vmatprep.mubr.bf16.mxu1 %v6498_v8  ;;  %v5962_v17 = vcombine.low %v3168_v55, %v3173_v11  ;;  %5171 = vmatpush2.bf16.msra.mxu1 %v6515_v41 }
  0xc8   : > { %v6496_v12 = vld [vmem:[#allocation2 + $0x43c] ss:$36 sps:$4 sm:$0xff]   ;;  %v681_v18 = vsel %vm6819_vm5, %v676_v10, %v680_v51  ;;  %1284 = vst [vmem:[#allocation2 + $0x4b0] sm:$0xf] %v1208_v13  ;;  %v698_v19 = vshll.u32 %v334_v5, 16  ;;  %4939 = vmatmul.mubr.bf16.gmra.mxu1 %v6500_v9 }
  0xc9   : > { %v809_v20 = vld [vmem:[%s6776_s29 + $0x8c] sm:$0xf]  ;;  %v810_v21 = vld [vmem:[%s6776_s29 + $0x90] sm:$0x1]  ;;  %4761 = vmatprep.mubr.bf16.mxu0 %v6496_v12  ;;  %771 = vst [vmem:[#allocation2 + $0x4a8] sm:$0xf] %v681_v18 }
  0xca   : > { %v690_v23 = vrot.slane %v688_v15, 5  ;;  %v694_v24 = vrot.slane %v692_v16, 4  ;;  %v955_v25 = vrot.slane %v809_v20, 5  ;;  %v958_v26 = vrot.slane %v810_v21, 5  ;;  %v1067_v27 = vld [vmem:[%s6776_s29 + $0x94] sm:$0xf]  ;;  %4762 = vmatmul.mubr.bf16.gmra.mxu0 %v5962_v17 }
  0xcb   : > { %v700_v28 = vrot.slane %v698_v19, 5  ;;  %v1068_v29 = vld [vmem:[%s6776_s29 + $0x98] sm:$0x1]  ;;  %v1210_v30 = vrot.slane %v1067_v27, 5  ;;  %v3178_v35 = vld [vmem:[#allocation2 + $0x480] sm:$0xff] }
  0xcc   : > { %v691_v31 = vsel %vm6819_vm5, %v686_v14, %v690_v23  ;;  %v695_v32 = vor.u32 %v694_v24, %v690_v23  ;;  %v956_v33 = vsel %vm6806_vm4, %v954_v0, %v955_v25  ;;  %v957_v34 = vrot.slane %v955_v25, 4  ;;  %v1287_v45 = vld [vmem:[%s6776_s29 + $0x8] sm:$0xe]  ;;  %v1288_v46 = vld [vmem:[%s6776_s29 + $0xc] sm:$0xf] }
  0xcd   : > { %772 = vst [vmem:[#allocation2 + $0x4cc] sm:$0xf] %v691_v31  ;;  %1030 = vst [vmem:[#allocation2 + $0x4d0] sm:$0xf] %v956_v33  ;;  %v1211_v36 = vsel %vm6806_vm4, %v1209_v7, %v1210_v30  ;;  %v1212_v37 = vrot.slane %v1210_v30, 4  ;;  %v1213_v39 = vrot.slane %v1068_v29, 5 }
  0xce   : > { %v696_v42 = vrot.slane %v695_v32, 4  ;;  %v959_v43 = vsel %vm6806_vm4, %v957_v34, %v958_v26  ;;  %1285 = vst [vmem:[#allocation2 + $0x4d4] sm:$0xf] %v1211_v36  ;;  %v1289_v47 = vld [vmem:[%s6776_s29 + $0x10] sm:$0xf]  ;;  %v1328_v51 = vshrl.u32 %v1287_v45, 16 }
  0xcf   : > { %1031 = vst [vmem:[#allocation2 + $0x4f4] sm:$0xf] %v959_v43  ;;  %v1214_v44 = vsel %vm6806_vm4, %v1212_v37, %v1213_v39  ;;  %v6504_v48 = vld [vmem:[#allocation2 + $0x48c] ss:$36 sps:$4 sm:$0xff]   ;;  %v1331_v38 = vshll.u32 %v1287_v45, 16  ;;  %v1337_v56 = vshrl.u32 %v1288_v46, 16 }
  0xd0   : > { %v6507_v1 = vld [vmem:[#allocation2 + $0x488] ss:$36 sps:$4 sm:$0xff]   ;;  %v701_v49 = vsel %vm6819_vm5, %v696_v42, %v700_v28  ;;  %1286 = vst [vmem:[#allocation2 + $0x4f8] sm:$0xf] %v1214_v44  ;;  %4946 = vmatprep.mubr.bf16.mxu1 %v6504_v48  ;;  %v1330_v55 = vrot.slane %v1328_v51, 5  ;;  %v1340_v58 = vshll.u32 %v1288_v46, 16 }
  0xd1   : > { %v3183_v52 = vld [vmem:[#allocation2 + $0x4a4] sm:$0xff]  ;;  %773 = vst [vmem:[#allocation2 + $0x4f0] sm:$0xf] %v701_v49  ;;  %4947 = vmatmul.mubr.bf16.gmra.mxu1 %v6507_v1  ;;  %v1333_v50 = vrot.slane %v1331_v38, 6  ;;  %v1347_v59 = vshrl.u32 %v1289_v47, 16  ;;  %v1350_v60 = vshll.u32 %v1289_v47, 16 }
  0xd2   : > { %v6502_v53 = vld [vmem:[#allocation2 + $0x484] ss:$36 sps:$4 sm:$0xff]   ;;  %v5971_v54 = vcombine.low %v3178_v35, %v3183_v52  ;;  %v1768_v61 = vld [vmem:[%s6776_s29 + $0xc] sm:$0xf]  ;;  %v1339_v63 = vrot.slane %v1337_v56, 5  ;;  %v1342_v3 = vrot.slane %v1340_v58, 6 }
  0xd3   : > { %v1767_v57 = vld [vmem:[%s6776_s29 + $0x8] sm:$0xc]  ;;  %4769 = vmatprep.mubr.bf16.mxu0 %v6502_v53  ;;  %v7396_v0 = vld [vmem:[%s6776_s29 + $0x10] sm:$0xf]  ;;  %v1334_v2 = vor.u32 %v1333_v50, %v1330_v55  ;;  %v1349_v4 = vrot.slane %v1347_v59, 5  ;;  %v1352_v5 = vrot.slane %v1350_v60, 6 }
  0xd4   : > { %4770 = vmatmul.mubr.bf16.gmra.mxu0 %v5971_v54  ;;  %v3188_v62 = vld [vmem:[#allocation2 + $0x4c8] sm:$0xff]  ;;  %v2025_v7 = vld [vmem:[%s6776_s29 + $0x10] sm:$0xc]  ;;  %v5823_v9 = vrot.slane %v1767_v57, 10  ;;  %v1846_v10 = vrot.slane %v1768_v61, 6  ;;  %v1849_v11 = vrot.slane %v7396_v0, 6  ;;  %v1343_v17 = vor.u32 %v1342_v3, %v1339_v63 }
  0xd5   : > { %v2026_v12 = vld [vmem:[%s6776_s29 + $0x14] sm:$0xf]  ;;  %v5824_v13 = vrot.slane %v2025_v7, 10  ;;  %v1335_v16 = vrot.slane %v1334_v2, 4  ;;  %v7411_v18 = vor.u32 %v1352_v5, %v1349_v4  ;;  %v7416_v23 = vld [vmem:[%s6776_s29 + $0x18] sm:$0xf] }
  0xd6   : > { %v6513_v15 = vld [vmem:[#allocation2 + $0x4d0] ss:$36 sps:$4 sm:$0xff]   ;;  %v1847_v21 = vsel %vm7398_vm10, %v5823_v9, %v1846_v10  ;;  %v1848_v22 = vrot.slane %v1846_v10, 4  ;;  %v1345_v26 = vrot.slane %v1343_v17, 4  ;;  %v2101_v27 = vrot.slane %v2026_v12, 6  ;;  %v7436_v37 = vld [vmem:[%s8890_s1 + $0x238] sm:$0xff]  }
  0xd7   : > { %v6510_v14 = vld [vmem:[#allocation2 + $0x4d4] ss:$36 sps:$4 sm:$0xff]   ;;  %v1344_v25 = vsel %vm7405_vm11, %v1335_v16, %v1343_v17  ;;  %1989 = vst [vmem:[#allocation2 + $0x14] sm:$0xf] %v1847_v21  ;;  %v2280_v28 = vld [vmem:[%s6776_s29 + $0x10] sm:$0xc]  ;;  %6268 = vmatprep.subr.bf16.mxu0 %v7436_v37  ;;  %6320 = vmatprep.subr.bf16.mxu1 %v7436_v37 }
  0xd8   : > { %v3193_v19 = vld [vmem:[#allocation2 + $0x4ec] sm:$0xff]  ;;  %4954 = vmatprep.mubr.bf16.mxu1 %v6510_v14  ;;  %v2281_v29 = vld [vmem:[%s6776_s29 + $0x14] sm:$0xf]  ;;  %1731 = vst [vmem:[#allocation2 + $0x10] sm:$0xf] %v1344_v25  ;;  %v1850_v30 = vsel %vm7398_vm10, %v1848_v22, %v1849_v11  ;;  %v2104_v31 = vrot.slane %v7416_v23, 6  ;;  %v1354_v34 = vsel %vm7405_vm11, %v1345_v26, %v7411_v18  ;;  %v2102_v35 = vsel %vm7398_vm10, %v5824_v13, %v2101_v27 }
  0xd9   : > { %v6508_v20 = vld [vmem:[#allocation2 + $0x4cc] ss:$36 sps:$4 sm:$0xff]   ;;  %v5980_v24 = vcombine.low %v3188_v62, %v3193_v19  ;;  %v2282_v32 = vld [vmem:[%s6776_s29 + $0x18] sm:$0xf]  ;;  %v2321_v33 = vshrl.u32 %v2280_v28, 16  ;;  %4955 = vmatmul.mubr.bf16.gmra.mxu1 %v6513_v15  ;;  %v2103_v36 = vrot.slane %v2101_v27, 4 }
  0xda   : > { %4777 = vmatprep.mubr.bf16.mxu0 %v6508_v20  ;;  %1990 = vst [vmem:[#allocation2 + $0x38] sm:$0xf] %v1850_v30  ;;  %1732 = vst [vmem:[#allocation2 + $0x34] sm:$0xf] %v1354_v34  ;;  %v2324_v40 = vshll.u32 %v2280_v28, 16  ;;  %v2330_v41 = vshrl.u32 %v2281_v29, 16 }
  0xdb   : > { %2244 = vst [vmem:[#allocation2 + $0x18] sm:$0xf] %v2102_v35  ;;  %v2323_v39 = vrot.slane %v2321_v33, 6  ;;  %v2333_v42 = vshll.u32 %v2281_v29, 16  ;;  %v2105_v43 = vsel %vm7398_vm10, %v2103_v36, %v2104_v31  ;;  %v2340_v44 = vshrl.u32 %v2282_v32, 16  ;;  %v7477_v19 = vld [vmem:[%s8890_s1 + $0x230] sm:$0xff]  }
  0xdc   : > { %4778 = vmatmul.mubr.bf16.gmra.mxu0 %v5980_v24  ;;  %v2343_v45 = vshll.u32 %v2282_v32, 16  ;;  %v1290_v46 = vld [vmem:[%s6776_s29 + $0x14] sm:$0xf]  ;;  %v1291_v47 = vld [vmem:[%s6776_s29 + $0x18] sm:$0xf]  ;;  %v2326_v48 = vrot.slane %v2324_v40, 7 }
  0xdd   : > { %2245 = vst [vmem:[#allocation2 + $0x3c] sm:$0xf] %v2105_v43  ;;  %v2332_v1 = vrot.slane %v2330_v41, 6  ;;  %v2335_v49 = vrot.slane %v2333_v42, 7  ;;  %v1355_v51 = vrot.slane %v7411_v18, 4  ;;  %v2342_v52 = vrot.slane %v2340_v44, 6 }
  0xde   : > { %v2345_v53 = vrot.slane %v2343_v45, 7  ;;  %v1357_v38 = vshrl.u32 %v1290_v46, 16  ;;  %v1360_v54 = vshll.u32 %v1290_v46, 16  ;;  %v2327_v55 = vor.u32 %v2326_v48, %v2323_v39  ;;  %v1770_v58 = vld [vmem:[%s6776_s29 + $0x14] sm:$0xf]  ;;  %v7502_v41 = vld [vmem:[%s8890_s1 + $0x228] sm:$0xff]  }
  0xdf   : > { %v2336_v56 = vor.u32 %v2335_v49, %v2332_v1  ;;  %v1367_v57 = vshrl.u32 %v1291_v47, 16  ;;  %v1370_v50 = vshll.u32 %v1291_v47, 16  ;;  %v7449_v59 = vld [vmem:[%s6776_s29 + $0x18] sm:$0xf]  ;;  %v1851_v2 = vrot.slane %v1849_v11, 4 }
  0xe0   : > { %v7457_v61 = vor.u32 %v2345_v53, %v2342_v52  ;;  %v1359_v62 = vrot.slane %v1357_v38, 5  ;;  %v1362_v63 = vrot.slane %v1360_v54, 6  ;;  %v2028_v3 = vld [vmem:[%s6776_s29 + $0x1c] sm:$0xf]  ;;  %v2328_v4 = vrot.slane %v2327_v55, 4 }
  0xe1   : > { %v2338_v5 = vrot.slane %v2336_v56, 4  ;;  %v1369_v7 = vrot.slane %v1367_v57, 5  ;;  %v1372_v9 = vrot.slane %v1370_v50, 6  ;;  %v7463_v10 = vld [vmem:[%s6776_s29 + $0x20] sm:$0xf]  ;;  %v1852_v15 = vrot.slane %v1770_v58, 6 }
  0xe2   : > { %v6516_v12 = vld [vmem:[#allocation2 + $0x10] ss:$36 sps:$4 sm:$0xff]   ;;  %v1363_v14 = vor.u32 %v1362_v63, %v1359_v62  ;;  %v2337_v16 = vsel %vm7453_vm14, %v2328_v4, %v2336_v56  ;;  %v1855_v17 = vrot.slane %v7449_v59, 6  ;;  %v2283_v18 = vld [vmem:[%s6776_s29 + $0x1c] sm:$0xf]  ;;  %v2106_v26 = vrot.slane %v2104_v31, 4 }
  0xe3   : > { %v6518_v13 = vld [vmem:[#allocation2 + $0x14] ss:$36 sps:$4 sm:$0xff]   ;;  %v2347_v0 = vsel %vm7453_vm14, %v2338_v5, %v7457_v61  ;;  %v7470_v11 = vor.u32 %v1372_v9, %v1369_v7  ;;  %2724 = vst [vmem:[#allocation2 + $0x1c] sm:$0xf] %v2337_v16  ;;  %v1853_v22 = vsel %vm7398_vm10, %v1851_v2, %v1852_v15  ;;  %v1854_v24 = vrot.slane %v1852_v15, 4  ;;  %v7519_v57 = vld [vmem:[%s8890_s1 + $0x220] sm:$0xff]  }
  0xe4   : > { %4995 = vmatprep.mubr.bf16.mxu0 %v6518_v13  ;;  %2725 = vst [vmem:[#allocation2 + $0x40] sm:$0xf] %v2347_v0  ;;  %v1364_v20 = vsel %vm7405_vm11, %v1355_v51, %v1363_v14  ;;  %v1365_v21 = vrot.slane %v1363_v14, 4  ;;  %v2284_v25 = vld [vmem:[%s6776_s29 + $0x20] sm:$0xf]  ;;  %v2107_v27 = vrot.slane %v2028_v3, 6 }
  0xe5   : > { %4996 = vmatmul.mubr.bf16.vlgmr.msra.gmra.mxu0 %v6516_v12  ;;  %1733 = vst [vmem:[#allocation2 + $0x58] sm:$0xf] %v1364_v20  ;;  %1991 = vst [vmem:[#allocation2 + $0x5c] sm:$0xf] %v1853_v22  ;;  %v2110_v28 = vrot.slane %v7463_v10, 6  ;;  %v2348_v29 = vrot.slane %v7457_v61, 4  ;;  %v1856_v33 = vsel %vm7398_vm10, %v1854_v24, %v1855_v17 }
  0xe6   : > { %v1292_v30 = vld [vmem:[%s6776_s29 + $0x1c] sm:$0xf]  ;;  %6269 = vmatpush3.bf16.msra.mxu0 %v7436_v37  ;;  %v1374_v32 = vsel %vm7405_vm11, %v1365_v21, %v7470_v11  ;;  %v2350_v34 = vshrl.u32 %v2283_v18, 16  ;;  %v2353_v23 = vshll.u32 %v2283_v18, 16  ;;  %1992 = vst [vmem:[#allocation2 + $0x80] sm:$0xf] %v1856_v33  ;;  %v2108_v31 = vsel %vm7398_vm10, %v2106_v26, %v2107_v27 }
  0xe7   : > { %1734 = vst [vmem:[#allocation2 + $0x7c] sm:$0xf] %v1374_v32  ;;  %v2109_v35 = vrot.slane %v2107_v27, 4  ;;  %v2360_v36 = vshrl.u32 %v2284_v25, 16  ;;  %v2363_v39 = vshll.u32 %v2284_v25, 16  ;;  %6270 = vmatprep.subr.bf16.mxu0 %v7477_v19  ;;  %v1375_v44 = vrot.slane %v7470_v11, 4 }
  0xe8   : > { %v1293_v40 = vld [vmem:[%s6776_s29 + $0x20] sm:$0xf]  ;;  %2246 = vst [vmem:[#allocation2 + $0x60] sm:$0xf] %v2108_v31  ;;  %v2352_v42 = vrot.slane %v2350_v34, 6  ;;  %v2355_v43 = vrot.slane %v2353_v23, 7 }
  0xe9   : > { %v1377_v45 = vshrl.u32 %v1292_v30, 16  ;;  %v1772_v46 = vld [vmem:[%s6776_s29 + $0x1c] sm:$0xf]  ;;  %v7507_v47 = vld [vmem:[%s6776_s29 + $0x20] sm:$0xf]  ;;  %v2111_v48 = vsel %vm7398_vm10, %v2109_v35, %v2110_v28  ;;  %v2362_v1 = vrot.slane %v2360_v36, 6 }
  0xea   : > { %v2365_v49 = vrot.slane %v2363_v39, 7  ;;  %v1380_v51 = vshll.u32 %v1292_v30, 16  ;;  %v2030_v52 = vld [vmem:[%s6776_s29 + $0x24] sm:$0xf]  ;;  %2247 = vst [vmem:[#allocation2 + $0x84] sm:$0xf] %v2111_v48  ;;  %v2356_v53 = vor.u32 %v2355_v43, %v2352_v42  ;;  %6271 = vmatpush3.bf16.msra.mxu0 %v7477_v19 }
  0xeb   : > { %v1379_v38 = vrot.slane %v1377_v45, 5  ;;  %v1387_v54 = vshrl.u32 %v1293_v40, 16  ;;  %v1390_v55 = vshll.u32 %v1293_v40, 16  ;;  %v7513_v56 = vld [vmem:[%s6776_s29 + $0x28] sm:$0xf]  ;;  %v1857_v61 = vrot.slane %v1855_v17, 4  ;;  %6272 = vmatprep.subr.bf16.mxu0 %v7502_v41 }
  0xec   : > { %v6519_v50 = vld [vmem:[#allocation2 + $0x18] ss:$36 sps:$4 sm:$0xff]   ;;  %v7521_v58 = vor.u32 %v2365_v49, %v2362_v1  ;;  %v1382_v59 = vrot.slane %v1380_v51, 6  ;;  %v2357_v2 = vsel %vm7453_vm14, %v2348_v29, %v2356_v53  ;;  %v2358_v3 = vrot.slane %v2356_v53, 4  ;;  %v2285_v7 = vld [vmem:[%s6776_s29 + $0x24] sm:$0xf] }
  0xed   : > { %v6521_v62 = vld [vmem:[#allocation2 + $0x1c] ss:$36 sps:$4 sm:$0xff]   ;;  %v1389_v4 = vrot.slane %v1387_v54, 5  ;;  %v1392_v5 = vrot.slane %v1390_v55, 6  ;;  %2726 = vst [vmem:[#allocation2 + $0x64] sm:$0xf] %v2357_v2 }
  0xee   : > { %v3030_v63 = vld [vmem:[#allocation2 + $0x58] sm:$0xff]  ;;  %v1383_v9 = vor.u32 %v1382_v59, %v1379_v38  ;;  %v1858_v10 = vrot.slane %v1772_v46, 6  ;;  %v1861_v12 = vrot.slane %v7507_v47, 6  ;;  %v2112_v13 = vrot.slane %v2110_v28, 4  ;;  %v2286_v14 = vld [vmem:[%s6776_s29 + $0x28] sm:$0xf]  ;;  %5172 = vmatprep.mubr.bf16.mxu1 %v6521_v62  ;;  %6273 = vmatpush3.bf16.msra.mxu0 %v7502_v41 }
  0xef   : > { %v3035_v15 = vld [vmem:[#allocation2 + $0x7c] sm:$0xff]  ;;  %v2367_v0 = vsel %vm7453_vm14, %v2358_v3, %v7521_v58  ;;  %v7532_v11 = vor.u32 %v1392_v5, %v1389_v4  ;;  %v2113_v17 = vrot.slane %v2030_v52, 6  ;;  %v2116_v18 = vrot.slane %v7513_v56, 6  ;;  %5173 = vmatmul.mubr.bf16.vlgmr.msra.gmra.mxu1 %v6519_v50  ;;  %6274 = vmatprep.subr.bf16.mxu0 %v7519_v57  ;;  %v1294_v30 = vld [vmem:[%s6776_s29 + $0x24] sm:$0xf]  ;;  %v7568_v42 = vld [vmem:[%s8890_s1 + $0x210] sm:$0xff]  }
  0xf0   : > { %v6523_v16 = vld [vmem:[#allocation2 + $0x5c] ss:$36 sps:$4 sm:$0xff]   ;;  %2727 = vst [vmem:[#allocation2 + $0x88] sm:$0xf] %v2367_v0  ;;  %v5840_v20 = vcombine.low %v3030_v63, %v3035_v15  ;;  %v1384_v21 = vsel %vm7405_vm11, %v1375_v44, %v1383_v9  ;;  %v1385_v22 = vrot.slane %v1383_v9, 4  ;;  %v1859_v24 = vsel %vm7398_vm10, %v1857_v61, %v1858_v10  ;;  %6328 = vmatpush3.bf16.msra.mxu1 %v7436_v37 }
  0xf1   : > { %v7544_v25 = vld [vmem:[%s8890_s1 + $0x218] sm:$0xff]   ;;  %5003 = vmatprep.mubr.bf16.mxu0 %v6523_v16  ;;  %1735 = vst [vmem:[#allocation2 + $0xa0] sm:$0xf] %v1384_v21  ;;  %v1860_v26 = vrot.slane %v1858_v10, 4  ;;  %1993 = vst [vmem:[#allocation2 + $0xa4] sm:$0xf] %v1859_v24  ;;  %v2114_v27 = vsel %vm7398_vm10, %v2112_v13, %v2113_v17  ;;  %6321 = vmatprep.subr.bf16.mxu1 %v7477_v19 }
  0xf2   : > { %v2115_v28 = vrot.slane %v2113_v17, 4  ;;  %v2368_v29 = vrot.slane %v7521_v58, 4  ;;  %5004 = vmatmul.mubr.bf16.gmra.mxu0 %v5840_v20  ;;  %v1394_v32 = vsel %vm7405_vm11, %v1385_v22, %v7532_v11  ;;  %2248 = vst [vmem:[#allocation2 + $0xa8] sm:$0xf] %v2114_v27  ;;  %v2370_v33 = vshrl.u32 %v2285_v7, 16 }
  0xf3   : > { %v2373_v34 = vshll.u32 %v2285_v7, 16  ;;  %v2380_v37 = vshrl.u32 %v2286_v14, 16  ;;  %v1295_v23 = vld [vmem:[%s6776_s29 + $0x28] sm:$0xf]  ;;  %1736 = vst [vmem:[#allocation2 + $0xc4] sm:$0xf] %v1394_v32  ;;  %v1862_v31 = vsel %vm7398_vm10, %v1860_v26, %v1861_v12  ;;  %6275 = vmatpush3.bf16.msra.mxu0 %v7519_v57 }
  0xf4   : > { %v2117_v35 = vsel %vm7398_vm10, %v2115_v28, %v2116_v18  ;;  %v2383_v36 = vshll.u32 %v2286_v14, 16  ;;  %v1395_v39 = vrot.slane %v7532_v11, 4  ;;  %v1774_v40 = vld [vmem:[%s6776_s29 + $0x24] sm:$0xf]  ;;  %1994 = vst [vmem:[#allocation2 + $0xc8] sm:$0xf] %v1862_v31  ;;  %6276 = vmatprep.subr.bf16.mxu0 %v7544_v25  ;;  %6329 = vmatpush3.bf16.msra.mxu1 %v7477_v19 }
  0xf5   : > { %2249 = vst [vmem:[#allocation2 + $0xcc] sm:$0xf] %v2117_v35  ;;  %v2372_v43 = vrot.slane %v2370_v33, 6  ;;  %v2375_v44 = vrot.slane %v2373_v34, 7  ;;  %v2382_v45 = vrot.slane %v2380_v37, 6  ;;  %v1397_v46 = vshrl.u32 %v1294_v30, 16  ;;  %6322 = vmatprep.subr.bf16.mxu1 %v7502_v41 }
  0xf6   : > { %v7571_v47 = vld [vmem:[%s6776_s29 + $0x28] sm:$0xf]  ;;  %v2385_v48 = vrot.slane %v2383_v36, 7  ;;  %v1400_v1 = vshll.u32 %v1294_v30, 16  ;;  %v1407_v49 = vshrl.u32 %v1295_v23, 16  ;;  %v1410_v51 = vshll.u32 %v1295_v23, 16 }
  0xf7   : > { %v2376_v52 = vor.u32 %v2375_v44, %v2372_v43  ;;  %v1399_v53 = vrot.slane %v1397_v46, 5  ;;  %v1863_v38 = vrot.slane %v1861_v12, 4  ;;  %v1864_v54 = vrot.slane %v1774_v40, 6  ;;  %v2032_v55 = vld [vmem:[%s6776_s29 + $0x2c] sm:$0xf]  ;;  %6277 = vmatpush3.bf16.msra.mxu0 %v7544_v25 }
  0xf8   : > { %v6525_v50 = vld [vmem:[#allocation2 + $0x64] ss:$36 sps:$4 sm:$0xff]   ;;  %v7577_v59 = vor.u32 %v2385_v48, %v2382_v45  ;;  %v1402_v61 = vrot.slane %v1400_v1, 6  ;;  %v1409_v63 = vrot.slane %v1407_v49, 5  ;;  %v1412_v2 = vrot.slane %v1410_v51, 6  ;;  %6278 = vmatprep.subr.bf16.mxu0 %v7568_v42  ;;  %6330 = vmatpush3.bf16.msra.mxu1 %v7502_v41 }
  0xf9   : > { %v6527_v58 = vld [vmem:[#allocation2 + $0x60] ss:$36 sps:$4 sm:$0xff]   ;;  %v2377_v62 = vsel %vm7453_vm14, %v2368_v29, %v2376_v52  ;;  %v2378_v19 = vrot.slane %v2376_v52, 4  ;;  %v7583_v3 = vld [vmem:[%s6776_s29 + $0x30] sm:$0xf]  ;;  %5180 = vmatprep.mubr.bf16.mxu1 %v6525_v50  ;;  %v1865_v7 = vsel %vm7398_vm10, %v1863_v38, %v1864_v54  ;;  %v1866_v9 = vrot.slane %v1864_v54, 4  ;;  %6323 = vmatprep.subr.bf16.mxu1 %v7519_v57 }
  0xfa   : > { %v3040_v4 = vld [vmem:[#allocation2 + $0xa0] sm:$0xff]  ;;  %2728 = vst [vmem:[#allocation2 + $0xac] sm:$0xf] %v2377_v62  ;;  %v1403_v5 = vor.u32 %v1402_v61, %v1399_v53  ;;  %v1867_v10 = vrot.slane %v7571_v47, 6  ;;  %v2287_v12 = vld [vmem:[%s6776_s29 + $0x2c] sm:$0xf]  ;;  %5181 = vmatmul.mubr.bf16.gmra.mxu1 %v6527_v58  ;;  %v7594_v14 = vor.u32 %v1412_v2, %v1409_v63 }
  0xfb   : > { %v2387_v13 = vsel %vm7453_vm14, %v2378_v19, %v7577_v59  ;;  %1995 = vst [vmem:[#allocation2 + $0xec] sm:$0xf] %v1865_v7  ;;  %v2118_v15 = vrot.slane %v2116_v18, 4  ;;  %v2119_v16 = vrot.slane %v2032_v55, 6  ;;  %v2288_v0 = vld [vmem:[%s6776_s29 + $0x30] sm:$0xf]  ;;  %6279 = vmatpush3.bf16.msra.mxu0 %v7568_v42 }
  0xfc   : > { %v1296_v11 = vld [vmem:[%s6776_s29 + $0x2c] sm:$0xf]  ;;  %v3045_v17 = vld [vmem:[#allocation2 + $0xc4] sm:$0xff]  ;;  %2729 = vst [vmem:[#allocation2 + $0xd0] sm:$0xf] %v2387_v13  ;;  %v1404_v41 = vsel %vm7405_vm11, %v1395_v39, %v1403_v5  ;;  %v1405_v21 = vrot.slane %v1403_v5, 4  ;;  %v1868_v22 = vsel %vm7398_vm10, %v1866_v9, %v1867_v10  ;;  %6331 = vmatpush3.bf16.msra.mxu1 %v7519_v57 }
  0xfd   : > { %v6528_v20 = vld [vmem:[#allocation2 + $0xa4] ss:$36 sps:$4 sm:$0xff]   ;;  %v2122_v24 = vrot.slane %v7583_v3, 6  ;;  %v5849_v56 = vcombine.low %v3040_v4, %v3045_v17  ;;  %1737 = vst [vmem:[#allocation2 + $0xe8] sm:$0xf] %v1404_v41  ;;  %v2120_v18 = vsel %vm7398_vm10, %v2118_v15, %v2119_v16  ;;  %v2121_v26 = vrot.slane %v2119_v16, 4  ;;  %6324 = vmatprep.subr.bf16.mxu1 %v7544_v25 }
  0xfe   : > { %1996 = vst [vmem:[#allocation2 + $0x110] sm:$0xf] %v1868_v22  ;;  %v2388_v27 = vrot.slane %v7577_v59, 4  ;;  %v1297_v28 = vld [vmem:[%s6776_s29 + $0x30] sm:$0xf]  ;;  %5011 = vmatprep.mubr.bf16.mxu0 %v6528_v20  ;;  %v1414_v29 = vsel %vm7405_vm11, %v1405_v21, %v7594_v14  ;;  %v2390_v30 = vshrl.u32 %v2287_v12, 16 }
  0xff   : > { %2250 = vst [vmem:[#allocation2 + $0xf0] sm:$0xf] %v2120_v18  ;;  %v2393_v32 = vshll.u32 %v2287_v12, 16  ;;  %v2400_v33 = vshrl.u32 %v2288_v0, 16  ;;  %5012 = vmatmul.mubr.bf16.gmra.mxu0 %v5849_v56  ;;  %1738 = vst [vmem:[#allocation2 + $0x10c] sm:$0xf] %v1414_v29  ;;  %v2123_v34 = vsel %vm7398_vm10, %v2121_v26, %v2122_v24 }
 0x100   : > { %v2403_v37 = vshll.u32 %v2288_v0, 16  ;;  %v1415_v23 = vrot.slane %v7594_v14, 4  ;;  %v1417_v31 = vshrl.u32 %v1296_v11, 16  ;;  %v1776_v35 = vld [vmem:[%s6776_s29 + $0x2c] sm:$0xf]  ;;  %v2392_v57 = vrot.slane %v2390_v30, 6  ;;  %6332 = vmatpush3.bf16.msra.mxu1 %v7544_v25 }
 0x101   : > { %v7623_v36 = vld [vmem:[%s8890_s1 + $0x208] sm:$0xff]   ;;  %2251 = vst [vmem:[#allocation2 + $0x114] sm:$0xf] %v2123_v34  ;;  %v2395_v39 = vrot.slane %v2393_v32, 7  ;;  %v2402_v40 = vrot.slane %v2400_v33, 6  ;;  %v1420_v43 = vshll.u32 %v1296_v11, 16  ;;  %6325 = vmatprep.subr.bf16.mxu1 %v7568_v42 }
 0x102   : > { %v7626_v44 = vld [vmem:[%s6776_s29 + $0x30] sm:$0xf]  ;;  %v2405_v45 = vrot.slane %v2403_v37, 7  ;;  %v1419_v46 = vrot.slane %v1417_v31, 5  ;;  %v1427_v47 = vshrl.u32 %v1297_v28, 16  ;;  %v1430_v48 = vshll.u32 %v1297_v28, 16  ;;  %6280 = vmatprep.subr.bf16.mxu0 %v7623_v36 }
 0x103   : > { %v2396_v1 = vor.u32 %v2395_v39, %v2392_v57  ;;  %v1422_v49 = vrot.slane %v1420_v43, 6  ;;  %v1869_v51 = vrot.slane %v1867_v10, 4  ;;  %v1870_v52 = vrot.slane %v1776_v35, 6  ;;  %v2034_v53 = vld [vmem:[%s6776_s29 + $0x34] sm:$0xf]  ;;  %6281 = vmatpush3.bf16.msra.mxu0 %v7623_v36 }
 0x104   : > { %v6530_v38 = vld [vmem:[#allocation2 + $0xac] ss:$36 sps:$4 sm:$0xff]   ;;  %v7632_v55 = vor.u32 %v2405_v45, %v2402_v40  ;;  %v1429_v50 = vrot.slane %v1427_v47, 5  ;;  %v1432_v19 = vrot.slane %v1430_v48, 6  ;;  %v7638_v63 = vld [vmem:[%s6776_s29 + $0x38] sm:$0xf]  ;;  %6333 = vmatpush3.bf16.msra.mxu1 %v7568_v42 }
 0x105   : > { %v6532_v54 = vld [vmem:[#allocation2 + $0xa8] ss:$36 sps:$4 sm:$0xff]   ;;  %v2397_v59 = vsel %vm7453_vm14, %v2388_v27, %v2396_v1  ;;  %v2398_v61 = vrot.slane %v2396_v1, 4  ;;  %v1423_v62 = vor.u32 %v1422_v49, %v1419_v46  ;;  %5188 = vmatprep.mubr.bf16.mxu1 %v6530_v38  ;;  %v1871_v25 = vsel %vm7398_vm10, %v1869_v51, %v1870_v52  ;;  %v2289_v5 = vld [vmem:[%s6776_s29 + $0x34] sm:$0xf]  ;;  %6326 = vmatprep.subr.bf16.mxu1 %v7623_v36 }
 0x106   : > { %v3050_v58 = vld [vmem:[#allocation2 + $0xe8] sm:$0xff]  ;;  %2730 = vst [vmem:[#allocation2 + $0xf4] sm:$0xf] %v2397_v59  ;;  %v1872_v2 = vrot.slane %v1870_v52, 4  ;;  %v1873_v3 = vrot.slane %v7626_v44, 6  ;;  %v2124_v4 = vrot.slane %v2122_v24, 4  ;;  %5189 = vmatmul.mubr.bf16.gmra.mxu1 %v6532_v54  ;;  %v7649_v14 = vor.u32 %v1432_v19, %v1429_v50 }
 0x107   : > { %v3055_v7 = vld [vmem:[#allocation2 + $0x10c] sm:$0xff]  ;;  %v2407_v10 = vsel %vm7453_vm14, %v2398_v61, %v7632_v55  ;;  %v1424_v12 = vsel %vm7405_vm11, %v1415_v23, %v1423_v62  ;;  %v1425_v13 = vrot.slane %v1423_v62, 4  ;;  %1997 = vst [vmem:[#allocation2 + $0x134] sm:$0xf] %v1871_v25  ;;  %v2290_v15 = vld [vmem:[%s6776_s29 + $0x38] sm:$0xf] }
 0x108   : > { %v6534_v9 = vld [vmem:[#allocation2 + $0xec] ss:$36 sps:$4 sm:$0xff]   ;;  %2731 = vst [vmem:[#allocation2 + $0x118] sm:$0xf] %v2407_v10  ;;  %v5858_v16 = vcombine.low %v3050_v58, %v3055_v7  ;;  %1739 = vst [vmem:[#allocation2 + $0x130] sm:$0xf] %v1424_v12  ;;  %v1874_v0 = vsel %vm7398_vm10, %v1872_v2, %v1873_v3  ;;  %6334 = vmatpush3.bf16.msra.mxu1 %v7623_v36 }
 0x109   : > { %v2125_v11 = vrot.slane %v2034_v53, 6  ;;  %v2128_v17 = vrot.slane %v7638_v63, 6  ;;  %v1298_v20 = vld [vmem:[%s6776_s29 + $0x34] sm:$0xf]  ;;  %5019 = vmatprep.mubr.bf16.mxu0 %v6534_v9  ;;  %v1434_v41 = vsel %vm7405_vm11, %v1425_v13, %v7649_v14  ;;  %1998 = vst [vmem:[#allocation2 + $0x158] sm:$0xf] %v1874_v0 }
 0x10a   : > { %v2408_v21 = vrot.slane %v7632_v55, 4  ;;  %v2410_v22 = vshrl.u32 %v2289_v5, 16  ;;  %v2413_v24 = vshll.u32 %v2289_v5, 16  ;;  %5020 = vmatmul.mubr.bf16.gmra.mxu0 %v5858_v16  ;;  %1740 = vst [vmem:[#allocation2 + $0x154] sm:$0xf] %v1434_v41  ;;  %v2420_v42 = vshrl.u32 %v2290_v15, 16 }
 0x10b   : > { %v2126_v56 = vsel %vm7398_vm10, %v2124_v4, %v2125_v11  ;;  %v2127_v18 = vrot.slane %v2125_v11, 4  ;;  %v2423_v26 = vshll.u32 %v2290_v15, 16  ;;  %v1299_v27 = vld [vmem:[%s6776_s29 + $0x38] sm:$0xf]  ;;  %v1435_v30 = vrot.slane %v7649_v14, 4 }
 0x10c   : > { %2252 = vst [vmem:[#allocation2 + $0x138] sm:$0xf] %v2126_v56  ;;  %v2412_v28 = vrot.slane %v2410_v22, 6  ;;  %v2415_v29 = vrot.slane %v2413_v24, 7  ;;  %v1437_v32 = vshrl.u32 %v1298_v20, 16  ;;  %v2422_v37 = vrot.slane %v2420_v42, 6 }
 0x10d   : > { %v1778_v33 = vld [vmem:[%s6776_s29 + $0x34] sm:$0xf]  ;;  %v2129_v34 = vsel %vm7398_vm10, %v2127_v18, %v2128_v17  ;;  %v2425_v23 = vrot.slane %v2423_v26, 7  ;;  %v1440_v31 = vshll.u32 %v1298_v20, 16  ;;  %v1447_v39 = vshrl.u32 %v1299_v27, 16  ;;  %v4643_v20 = vpop.f32.mrf.mxu0  ;;  %v7705_v56 = vpop.f32.mrf.mxu1 }
 0x10e   : > { %2253 = vst [vmem:[#allocation2 + $0x15c] sm:$0xf] %v2129_v34  ;;  %v2416_v35 = vor.u32 %v2415_v29, %v2412_v28  ;;  %v1439_v57 = vrot.slane %v1437_v32, 5  ;;  %v1450_v40 = vshll.u32 %v1299_v27, 16  ;;  %v7671_v43 = vld [vmem:[%s6776_s29 + $0x38] sm:$0xf] }
 0x10f   : > { %v7673_v44 = vor.u32 %v2425_v23, %v2422_v37  ;;  %v1442_v45 = vrot.slane %v1440_v31, 6  ;;  %v1875_v46 = vrot.slane %v1873_v3, 4  ;;  %v1876_v47 = vrot.slane %v1778_v33, 6  ;;  %v2036_v48 = vld [vmem:[%s6776_s29 + $0x3c] sm:$0xf]  ;;  %v3060_v38 = vld [vmem:[#allocation2 + $0x130] sm:$0xff]  ;;  %v4645_v32 = vpop.f32.mrf.mxu0 }
 0x110   : > { %v7677_v1 = vld [vmem:[%s6776_s29 + $0x40] sm:$0xf]  ;;  %v6536_v49 = vld [vmem:[#allocation2 + $0xf4] ss:$36 sps:$4 sm:$0xff]   ;;  %v2417_v36 = vsel %vm7453_vm14, %v2408_v21, %v2416_v35  ;;  %v2418_v52 = vrot.slane %v2416_v35, 4  ;;  %v1449_v55 = vrot.slane %v1447_v39, 5  ;;  %v4822_v35 = vpop.f32.mrf.mxu1 }
 0x111   : > { %v6538_v51 = vld [vmem:[#allocation2 + $0xf0] ss:$36 sps:$4 sm:$0xff]   ;;  %v2291_v53 = vld [vmem:[%s6776_s29 + $0x3c] sm:$0xf]  ;;  %2732 = vst [vmem:[#allocation2 + $0x13c] sm:$0xf] %v2417_v36  ;;  %v1443_v54 = vor.u32 %v1442_v45, %v1439_v57  ;;  %v1877_v58 = vsel %vm7398_vm10, %v1875_v46, %v1876_v47  ;;  %5196 = vmatprep.mubr.bf16.mxu1 %v6536_v49  ;;  %v4646_v45 = vpop.f32.mrf.mxu0 }
 0x112   : > { %v1452_v50 = vrot.slane %v1450_v40, 6  ;;  %v2292_v59 = vld [vmem:[%s6776_s29 + $0x40] sm:$0xf]  ;;  %v3065_v61 = vld [vmem:[#allocation2 + $0x154] sm:$0xff]  ;;  %v2427_v19 = vsel %vm7453_vm14, %v2418_v52, %v7673_v44  ;;  %v1878_v63 = vrot.slane %v1876_v47, 4  ;;  %v1879_v25 = vrot.slane %v7671_v43, 6  ;;  %5197 = vmatmul.mubr.bf16.gmra.mxu1 %v6538_v51  ;;  %v4823_v52 = vpop.f32.mrf.mxu1 }
 0x113   : > { %v6539_v62 = vld [vmem:[#allocation2 + $0x134] ss:$36 sps:$4 sm:$0xff]   ;;  %1999 = vst [vmem:[#allocation2 + $0x17c] sm:$0xf] %v1877_v58  ;;  %v2130_v2 = vrot.slane %v2128_v17, 4  ;;  %v5867_v3 = vcombine.low %v3060_v38, %v3065_v61  ;;  %v1444_v4 = vsel %vm7405_vm11, %v1435_v30, %v1443_v54  ;;  %v1445_v5 = vrot.slane %v1443_v54, 4 }
 0x114   : > { %2733 = vst [vmem:[#allocation2 + $0x160] sm:$0xf] %v2427_v19  ;;  %v7691_v7 = vor.u32 %v1452_v50, %v1449_v55  ;;  %v1300_v9 = vld [vmem:[%s6776_s29 + $0x3c] sm:$0xf]  ;;  %v1301_v10 = vld [vmem:[%s6776_s29 + $0x40] sm:$0xf]  ;;  %5027 = vmatprep.mubr.bf16.mxu0 %v6539_v62  ;;  %v1880_v12 = vsel %vm7398_vm10, %v1878_v63, %v1879_v25 }
 0x115   : > { %1741 = vst [vmem:[#allocation2 + $0x178] sm:$0xf] %v1444_v4  ;;  %v2131_v13 = vrot.slane %v2036_v48, 6  ;;  %v2134_v14 = vrot.slane %v7677_v1, 6  ;;  %v2428_v15 = vrot.slane %v7673_v44, 4  ;;  %5028 = vmatmul.mubr.bf16.gmra.mxu0 %v5867_v3  ;;  %v2430_v0 = vshrl.u32 %v2291_v53, 16 }
 0x116   : > { %v1454_v16 = vsel %vm7405_vm11, %v1445_v5, %v7691_v7  ;;  %2000 = vst [vmem:[#allocation2 + $0x1a0] sm:$0xf] %v1880_v12  ;;  %v2433_v11 = vshll.u32 %v2291_v53, 16  ;;  %v2440_v17 = vshrl.u32 %v2292_v59, 16  ;;  %v2443_v22 = vshll.u32 %v2292_v59, 16  ;;  %v6610_v46 = vld [vmem:[%s8890_s1 + $0x200] sm:$0xff]   ;;  %v4648_v59 = vpop.f32.mrf.mxu0 }
 0x117   : > { %1742 = vst [vmem:[#allocation2 + $0x19c] sm:$0xf] %v1454_v16  ;;  %v2132_v41 = vsel %vm7398_vm10, %v2130_v2, %v2131_v13  ;;  %v2133_v21 = vrot.slane %v2131_v13, 4  ;;  %v1455_v24 = vrot.slane %v7691_v7, 4  ;;  %v2432_v18 = vrot.slane %v2430_v0, 6  ;;  %6282 = vmatprep.subr.bf16.mxu0 %v6610_v46  ;;  %6327 = vmatprep.subr.bf16.mxu1 %v6610_v46  ;;  %v4825_v2 = vpop.f32.mrf.mxu1 }
 0x118   : > { %2254 = vst [vmem:[#allocation2 + $0x180] sm:$0xf] %v2132_v41  ;;  %v2435_v42 = vrot.slane %v2433_v11, 7  ;;  %v2442_v26 = vrot.slane %v2440_v17, 6  ;;  %v1457_v27 = vshrl.u32 %v1300_v9, 16  ;;  %v2445_v34 = vrot.slane %v2443_v22, 7  ;;  %6283 = vmatpush3.bf16.msra.mxu0 %v6610_v46  ;;  %v4651_v12 = vpop.f32.mrf.mxu0  ;;  %6335 = vmatpush3.bf16.msra.mxu1 %v6610_v46 }
 0x119   : > { %v1780_v28 = vld [vmem:[%s6776_s29 + $0x3c] sm:$0xf]  ;;  %v7709_v29 = vld [vmem:[%s6776_s29 + $0x40] sm:$0xf]  ;;  %v2135_v33 = vsel %vm7398_vm10, %v2133_v21, %v2134_v14  ;;  %v1460_v37 = vshll.u32 %v1300_v9, 16  ;;  %v1467_v23 = vshrl.u32 %v1301_v10, 16  ;;  %v7746_v0 = vpop.f32.mrf.mxu1 }
 0x11a   : > { %v7714_v30 = vld [vmem:[%s8891_s2] ss:$0 sm:$0xff]  ;;  %v2038_v31 = vld [vmem:[%s6776_s29 + $0x44] sm:$0xf]  ;;  %2255 = vst [vmem:[#allocation2 + $0x1a4] sm:$0xf] %v2135_v33  ;;  %v2436_v57 = vor.u32 %v2435_v42, %v2432_v18  ;;  %v7725_v1 = vor.u32 %v2445_v34, %v2442_v26  ;;  %v4653_v21 = vpop.f32.mrf.mxu0 }
 0x11b   : > { %v1459_v39 = vrot.slane %v1457_v27, 5  ;;  %v1470_v40 = vshll.u32 %v1301_v10, 16  ;;  %v1881_v43 = vrot.slane %v1879_v25, 4  ;;  %v7720_v44 = vld [vmem:[%s6776_s29 + $0x48] sm:$0xf]  ;;  %v1462_v49 = vrot.slane %v1460_v37, 6  ;;  %v4830_v27 = vpop.f32.mrf.mxu1 }
 0x11c   : > { %v6541_v47 = vld [vmem:[#allocation2 + $0x13c] ss:$36 sps:$4 sm:$0xff]   ;;  %v4644_v51 = vadd.f32 %v7714_v30, %v4643_v20  ;;  %v7729_v36 = vadd.f32 %v7714_v30, %v4646_v45  ;;  %v2437_v38 = vsel %vm7453_vm14, %v2428_v15, %v2436_v57  ;;  %v2438_v54 = vrot.slane %v2436_v57, 4  ;;  %v2293_v58 = vld [vmem:[%s6776_s29 + $0x44] sm:$0xf]  ;;  %v4654_v37 = vpop.f32.mrf.mxu0 }
 0x11d   : > { %v6543_v48 = vld [vmem:[#allocation2 + $0x138] ss:$36 sps:$4 sm:$0xff]   ;;  %v1469_v55 = vrot.slane %v1467_v23, 5  ;;  %v1472_v50 = vrot.slane %v1470_v40, 6  ;;  %5204 = vmatprep.mubr.bf16.mxu1 %v6541_v47  ;;  %2734 = vst [vmem:[#allocation2 + $0x184] sm:$0xf] %v2437_v38  ;;  %v1463_v61 = vor.u32 %v1462_v49, %v1459_v39  ;;  %v4652_v59 = vadd.f32 %v7714_v30, %v4651_v12 }
 0x11e   : > { %v3070_v53 = vld [vmem:[#allocation2 + $0x178] sm:$0xff]  ;;  %v1882_v62 = vrot.slane %v1780_v28, 6  ;;  %v1885_v19 = vrot.slane %v7709_v29, 6  ;;  %v2136_v63 = vrot.slane %v2134_v14, 4  ;;  %v2294_v25 = vld [vmem:[%s6776_s29 + $0x48] sm:$0xf]  ;;  %5205 = vmatmul.mubr.bf16.gmra.mxu1 %v6543_v48  ;;  %v2447_v5 = vsel %vm7453_vm14, %v2438_v54, %v7725_v1 }
 0x11f   : > { %v3075_v3 = vld [vmem:[#allocation2 + $0x19c] sm:$0xff]  ;;  %v7739_v7 = vor.u32 %v1472_v50, %v1469_v55  ;;  %v2137_v9 = vrot.slane %v2038_v31, 6  ;;  %v2140_v10 = vrot.slane %v7720_v44, 6  ;;  %2735 = vst [vmem:[#allocation2 + $0x1a8] sm:$0xf] %v2447_v5  ;;  %v1464_v14 = vsel %vm7405_vm11, %v1455_v24, %v1463_v61 }
 0x120   : > { %v6545_v4 = vld [vmem:[#allocation2 + $0x17c] ss:$36 sps:$4 sm:$0xff]   ;;  %v5876_v13 = vcombine.low %v3070_v53, %v3075_v3  ;;  %v1465_v15 = vrot.slane %v1463_v61, 4  ;;  %v1883_v16 = vsel %vm7398_vm10, %v1881_v43, %v1882_v62  ;;  %1743 = vst [vmem:[#allocation2 + $0x1c0] sm:$0xf] %v1464_v14  ;;  %v1884_v11 = vrot.slane %v1882_v62, 4  ;;  %v7772_v43 = vpop.f32.mrf.mxu1 }
 0x121   : > { %5035 = vmatprep.mubr.bf16.mxu0 %v6545_v4  ;;  %2001 = vst [vmem:[#allocation2 + $0x1c4] sm:$0xf] %v1883_v16  ;;  %v2138_v17 = vsel %vm7398_vm10, %v2136_v63, %v2137_v9  ;;  %v2139_v20 = vrot.slane %v2137_v9, 4  ;;  %v2448_v41 = vrot.slane %v7725_v1, 4  ;;  %v2450_v24 = vshrl.u32 %v2293_v58, 16  ;;  %v4656_v1 = vpop.f32.mrf.mxu0 }
 0x122   : > { %5036 = vmatmul.mubr.bf16.gmra.mxu0 %v5876_v13  ;;  %v1474_v22 = vsel %vm7405_vm11, %v1465_v15, %v7739_v7  ;;  %2256 = vst [vmem:[#allocation2 + $0x1c8] sm:$0xf] %v2138_v17  ;;  %v2453_v18 = vshll.u32 %v2293_v58, 16  ;;  %v2460_v42 = vshrl.u32 %v2294_v25, 16  ;;  %v1302_v26 = vld [vmem:[%s6776_s29 + $0x44] sm:$0xf]  ;;  %v1886_v28 = vsel %vm7398_vm10, %v1884_v11, %v1885_v19 }
 0x123   : > { %1744 = vst [vmem:[#allocation2 + $0x1e4] sm:$0xf] %v1474_v22  ;;  %v2141_v29 = vsel %vm7398_vm10, %v2139_v20, %v2140_v10  ;;  %v2463_v32 = vshll.u32 %v2294_v25, 16  ;;  %v7762_v33 = vadd.f32 %v7705_v56, %v4644_v51  ;;  %v1303_v34 = vld [vmem:[%s6776_s29 + $0x48] sm:$0xf]  ;;  %v2452_v23 = vrot.slane %v2450_v24, 6  ;;  %v7783_v62 = vpop.f32.mrf.mxu0 }
 0x124   : > { %2002 = vst [vmem:[#allocation2 + $0x1e8] sm:$0xf] %v1886_v28  ;;  %2257 = vst [vmem:[#allocation2 + $0x1ec] sm:$0xf] %v2141_v29  ;;  %v2455_v31 = vrot.slane %v2453_v18, 7  ;;  %v2462_v35 = vrot.slane %v2460_v42, 6  ;;  %v7766_v57 = vadd.f32 %v4823_v52, %v7729_v36  ;;  %v4833_v36 = vpop.f32.mrf.mxu1  ;;  %v4655_v61 = vadd.f32 %v7714_v30, %v4654_v37 }
 0x125   : > { %v1782_v39 = vld [vmem:[%s6776_s29 + $0x44] sm:$0xf]  ;;  %v7770_v40 = vld [vmem:[%s6776_s29 + $0x48] sm:$0xf]  ;;  %v2465_v45 = vrot.slane %v2463_v32, 7  ;;  %v1475_v56 = vrot.slane %v7739_v7, 4  ;;  %v4661_v13 = vpop.f32.mrf.mxu0 }
 0x126   : > { %v1477_v46 = vshrl.u32 %v1302_v26, 16  ;;  %v1480_v47 = vshll.u32 %v1302_v26, 16  ;;  %v2040_v48 = vld [vmem:[%s6776_s29 + $0x4c] sm:$0xf]  ;;  %v2456_v49 = vor.u32 %v2455_v31, %v2452_v23  ;;  %v1487_v51 = vshrl.u32 %v1303_v34, 16  ;;  %v7787_v3 = vpop.f32.mrf.mxu1 }
 0x127   : > { %v1490_v53 = vshll.u32 %v1303_v34, 16  ;;  %v1887_v38 = vrot.slane %v1885_v19, 4  ;;  %v7777_v54 = vld [vmem:[%s6776_s29 + $0x50] sm:$0xf]  ;;  %v6547_v52 = vld [vmem:[#allocation2 + $0x184] ss:$36 sps:$4 sm:$0xff]   ;;  %v7779_v50 = vor.u32 %v2465_v45, %v2462_v35  ;;  %v4662_v42 = vpop.f32.mrf.mxu0 }
 0x128   : > { %v6549_v55 = vld [vmem:[#allocation2 + $0x180] ss:$36 sps:$4 sm:$0xff]   ;;  %v1479_v58 = vrot.slane %v1477_v46, 5  ;;  %v2457_v63 = vsel %vm7453_vm14, %v2448_v41, %v2456_v49  ;;  %v2458_v25 = vrot.slane %v2456_v49, 4  ;;  %v1482_v2 = vrot.slane %v1480_v47, 6  ;;  %5212 = vmatprep.mubr.bf16.mxu1 %v6547_v52  ;;  %v4838_v41 = vpop.f32.mrf.mxu1 }
 0x129   : > { %v1489_v19 = vrot.slane %v1487_v51, 5  ;;  %v3080_v4 = vld [vmem:[#allocation2 + $0x1c0] sm:$0xff]  ;;  %2736 = vst [vmem:[#allocation2 + $0x1cc] sm:$0xf] %v2457_v63  ;;  %v1492_v5 = vrot.slane %v1490_v53, 6  ;;  %v1888_v7 = vrot.slane %v1782_v39, 6  ;;  %5213 = vmatmul.mubr.bf16.gmra.mxu1 %v6549_v55  ;;  %v4664_v39 = vpop.f32.mrf.mxu0  ;;  %v7818_v47 = vadd.f32 %v7746_v0, %v4652_v59 }
 0x12a   : > { %v1891_v9 = vrot.slane %v7770_v40, 6  ;;  %v2142_v12 = vrot.slane %v2140_v10, 4  ;;  %v2467_v14 = vsel %vm7453_vm14, %v2458_v25, %v7779_v50  ;;  %v1483_v15 = vor.u32 %v1482_v2, %v1479_v58  ;;  %v2295_v17 = vld [vmem:[%s6776_s29 + $0x4c] sm:$0xf]  ;;  %v2296_v20 = vld [vmem:[%s6776_s29 + $0x50] sm:$0xf]  ;;  %v7807_v32 = vpop.f32.mrf.mxu1 }
 0x12b   : > { %v2143_v16 = vrot.slane %v2040_v48, 6  ;;  %v2146_v11 = vrot.slane %v7777_v54, 6  ;;  %v3085_v21 = vld [vmem:[#allocation2 + $0x1e4] sm:$0xff]  ;;  %2737 = vst [vmem:[#allocation2 + $0x1f0] sm:$0xf] %v2467_v14  ;;  %v7798_v24 = vor.u32 %v1492_v5, %v1489_v19  ;;  %v1889_v44 = vsel %vm7398_vm10, %v1887_v38, %v1888_v7  ;;  %v7832_v55 = vpop.f32.mrf.mxu0 }
 0x12c   : > { %v6550_v22 = vld [vmem:[#allocation2 + $0x1c4] ss:$36 sps:$4 sm:$0xff]   ;;  %v1890_v10 = vrot.slane %v1888_v7, 4  ;;  %v2468_v18 = vrot.slane %v7779_v50, 4  ;;  %v5885_v26 = vcombine.low %v3080_v4, %v3085_v21  ;;  %v1484_v27 = vsel %vm7405_vm11, %v1475_v56, %v1483_v15  ;;  %2003 = vst [vmem:[#allocation2 + $0x20c] sm:$0xf] %v1889_v44  ;;  %v4841_v1 = vpop.f32.mrf.mxu1 }
 0x12d   : > { %v1485_v28 = vrot.slane %v1483_v15, 4  ;;  %v2144_v29 = vsel %vm7398_vm10, %v2142_v12, %v2143_v16  ;;  %5043 = vmatprep.mubr.bf16.mxu0 %v6550_v22  ;;  %1745 = vst [vmem:[#allocation2 + $0x208] sm:$0xf] %v1484_v27  ;;  %v2145_v37 = vrot.slane %v2143_v16, 4  ;;  %v2470_v23 = vshrl.u32 %v2295_v17, 16 }
 0x12e   : > { %v1892_v34 = vsel %vm7398_vm10, %v1890_v10, %v1891_v9  ;;  %2258 = vst [vmem:[#allocation2 + $0x210] sm:$0xf] %v2144_v29  ;;  %v2473_v31 = vshll.u32 %v2295_v17, 16  ;;  %v1304_v35 = vld [vmem:[%s6776_s29 + $0x4c] sm:$0xf]  ;;  %5044 = vmatmul.mubr.bf16.gmra.mxu0 %v5885_v26  ;;  %v2480_v56 = vshrl.u32 %v2296_v20, 16  ;;  %v7826_v38 = vadd.f32 %v7772_v43, %v4655_v61  ;;  %v7836_v25 = vpop.f32.mrf.mxu1  ;;  %v4669_v61 = vpop.f32.mrf.mxu0 }
 0x12f   : > { %v1494_v45 = vsel %vm7405_vm11, %v1485_v28, %v7798_v24  ;;  %2004 = vst [vmem:[#allocation2 + $0x230] sm:$0xf] %v1892_v34  ;;  %v2483_v46 = vshll.u32 %v2296_v20, 16  ;;  %v1305_v48 = vld [vmem:[%s6776_s29 + $0x50] sm:$0xf]  ;;  %v2147_v49 = vsel %vm7398_vm10, %v2145_v37, %v2146_v11  ;;  %v2472_v51 = vrot.slane %v2470_v23, 6 }
 0x130   : > { %1746 = vst [vmem:[#allocation2 + $0x22c] sm:$0xf] %v1494_v45  ;;  %v2475_v53 = vrot.slane %v2473_v31, 7  ;;  %v1784_v36 = vld [vmem:[%s6776_s29 + $0x4c] sm:$0xf]  ;;  %v2482_v0 = vrot.slane %v2480_v56, 6  ;;  %v4660_v14 = vadd.f32 %v7714_v30, %v7783_v62  ;;  %v4663_v15 = vadd.f32 %v7714_v30, %v4662_v42  ;;  %v4846_v16 = vpop.f32.mrf.mxu1 }
 0x131   : > { %v7830_v52 = vld [vmem:[%s6776_s29 + $0x50] sm:$0xf]  ;;  %2259 = vst [vmem:[#allocation2 + $0x234] sm:$0xf] %v2147_v49  ;;  %v2485_v50 = vrot.slane %v2483_v46, 7  ;;  %v1495_v58 = vrot.slane %v7798_v24, 4  ;;  %v7848_v24 = vpop.f32.mrf.mxu0 }
 0x132   : > { %v1497_v59 = vshrl.u32 %v1304_v35, 16  ;;  %v2042_v63 = vld [vmem:[%s6776_s29 + $0x54] sm:$0xf]  ;;  %v2476_v2 = vor.u32 %v2475_v53, %v2472_v51  ;;  %v1500_v19 = vshll.u32 %v1304_v35, 16  ;;  %v1507_v4 = vshrl.u32 %v1305_v48, 16 }
 0x133   : > { %v1510_v43 = vshll.u32 %v1305_v48, 16  ;;  %v6552_v5 = vld [vmem:[#allocation2 + $0x1cc] ss:$36 sps:$4 sm:$0xff]   ;;  %v7838_v12 = vor.u32 %v2485_v50, %v2482_v0  ;;  %v7846_v22 = vld [vmem:[%s6776_s29 + $0x58] sm:$0xf]  ;;  %v1893_v62 = vrot.slane %v1891_v9, 4  ;;  %v4672_v31 = vpop.f32.mrf.mxu0 }
 0x134   : > { %v6554_v7 = vld [vmem:[#allocation2 + $0x1c8] ss:$36 sps:$4 sm:$0xff]   ;;  %v1499_v13 = vrot.slane %v1497_v59, 5  ;;  %v2477_v17 = vsel %vm7453_vm14, %v2468_v18, %v2476_v2  ;;  %v2478_v20 = vrot.slane %v2476_v2, 4  ;;  %v1502_v41 = vrot.slane %v1500_v19, 6  ;;  %5220 = vmatprep.mubr.bf16.mxu1 %v6552_v5  ;;  %v7853_v18 = vpop.f32.mrf.mxu1 }
 0x135   : > { %v1509_v21 = vrot.slane %v1507_v4, 5  ;;  %v3090_v44 = vld [vmem:[#allocation2 + $0x208] sm:$0xff]  ;;  %2738 = vst [vmem:[#allocation2 + $0x214] sm:$0xf] %v2477_v17  ;;  %v1512_v10 = vrot.slane %v1510_v43, 6  ;;  %v1894_v42 = vrot.slane %v1784_v36, 6  ;;  %5221 = vmatmul.mubr.bf16.gmra.mxu1 %v6554_v7  ;;  %v7871_v49 = vpop.f32.mrf.mxu0  ;;  %v7890_v7 = vadd.f32 %v7787_v3, %v4660_v14 }
 0x136   : > { %v1897_v26 = vrot.slane %v7830_v52, 6  ;;  %v2487_v27 = vsel %vm7453_vm14, %v2478_v20, %v7838_v12  ;;  %v1503_v28 = vor.u32 %v1502_v41, %v1499_v13  ;;  %v2148_v29 = vrot.slane %v2146_v11, 4  ;;  %v2297_v37 = vld [vmem:[%s6776_s29 + $0x54] sm:$0xf]  ;;  %v2298_v23 = vld [vmem:[%s6776_s29 + $0x58] sm:$0xf]  ;;  %v4849_v46 = vpop.f32.mrf.mxu1 }
 0x137   : > { %v2149_v34 = vrot.slane %v2042_v63, 6  ;;  %v3095_v40 = vld [vmem:[#allocation2 + $0x22c] sm:$0xff]  ;;  %2739 = vst [vmem:[#allocation2 + $0x238] sm:$0xf] %v2487_v27  ;;  %v7862_v35 = vor.u32 %v1512_v10, %v1509_v21  ;;  %v1895_v39 = vsel %vm7398_vm10, %v1893_v62, %v1894_v42  ;;  %v1896_v45 = vrot.slane %v1894_v42, 4  ;;  %v4677_v43 = vpop.f32.mrf.mxu0 }
 0x138   : > { %v6556_v9 = vld [vmem:[#allocation2 + $0x20c] ss:$36 sps:$4 sm:$0xff]   ;;  %v2152_v56 = vrot.slane %v7846_v22, 6  ;;  %v5894_v48 = vcombine.low %v3090_v44, %v3095_v40  ;;  %v1504_v54 = vsel %vm7405_vm11, %v1495_v58, %v1503_v28  ;;  %v1505_v11 = vrot.slane %v1503_v28, 4  ;;  %2005 = vst [vmem:[#allocation2 + $0x254] sm:$0xf] %v1895_v39  ;;  %v7879_v58 = vpop.f32.mrf.mxu1 }
 0x139   : > { %v2150_v1 = vsel %vm7398_vm10, %v2148_v29, %v2149_v34  ;;  %5051 = vmatprep.mubr.bf16.mxu0 %v6556_v9  ;;  %1747 = vst [vmem:[#allocation2 + $0x250] sm:$0xf] %v1504_v54  ;;  %v1898_v51 = vsel %vm7398_vm10, %v1896_v45, %v1897_v26  ;;  %v2151_v53 = vrot.slane %v2149_v34, 4  ;;  %v2488_v36 = vrot.slane %v7838_v12, 4  ;;  %v1306_v50 = vld [vmem:[%s6776_s29 + $0x54] sm:$0xf]  ;;  %v7900_v10 = vpop.f32.mrf.mxu0 }
 0x13a   : > { %2260 = vst [vmem:[#allocation2 + $0x258] sm:$0xf] %v2150_v1  ;;  %v2490_v0 = vshrl.u32 %v2297_v37, 16  ;;  %5052 = vmatmul.mubr.bf16.gmra.mxu0 %v5894_v48  ;;  %v1514_v59 = vsel %vm7405_vm11, %v1505_v11, %v7862_v35  ;;  %2006 = vst [vmem:[#allocation2 + $0x278] sm:$0xf] %v1898_v51  ;;  %v2493_v63 = vshll.u32 %v2297_v37, 16  ;;  %v7893_v12 = vadd.f32 %v7807_v32, %v4663_v15  ;;  %v4854_v17 = vpop.f32.mrf.mxu1 }
 0x13b   : > { %v2500_v2 = vshrl.u32 %v2298_v23, 16  ;;  %v2503_v19 = vshll.u32 %v2298_v23, 16  ;;  %v1307_v4 = vld [vmem:[%s6776_s29 + $0x58] sm:$0xf]  ;;  %1748 = vst [vmem:[#allocation2 + $0x274] sm:$0xf] %v1514_v59  ;;  %v2153_v61 = vsel %vm7398_vm10, %v2151_v53, %v2152_v56  ;;  %v4668_v23 = vadd.f32 %v7714_v30, %v7832_v55  ;;  %v4680_v31 = vpop.f32.mrf.mxu0 }
 0x13c   : > { %v2492_v5 = vrot.slane %v2490_v0, 6  ;;  %v1786_v13 = vld [vmem:[%s6776_s29 + $0x54] sm:$0xf]  ;;  %v7897_v16 = vld [vmem:[%s6776_s29 + $0x58] sm:$0xf]  ;;  %v2495_v20 = vrot.slane %v2493_v63, 7  ;;  %v7903_v32 = vpop.f32.mrf.mxu1 }
 0x13d   : > { %2261 = vst [vmem:[#allocation2 + $0x27c] sm:$0xf] %v2153_v61  ;;  %v2502_v41 = vrot.slane %v2500_v2, 6  ;;  %v2505_v21 = vrot.slane %v2503_v19, 7  ;;  %v1515_v44 = vrot.slane %v7862_v35, 4  ;;  %v1517_v62 = vshrl.u32 %v1306_v50, 16  ;;  %v7917_v55 = vpop.f32.mrf.mxu0 }
 0x13e   : > { %v1520_v42 = vshll.u32 %v1306_v50, 16  ;;  %v1527_v3 = vshrl.u32 %v1307_v4, 16  ;;  %v1530_v14 = vshll.u32 %v1307_v4, 16  ;;  %v2044_v27 = vld [vmem:[%s6776_s29 + $0x5c] sm:$0xf]  ;;  %v2496_v29 = vor.u32 %v2495_v20, %v2492_v5  ;;  %v4857_v46 = vpop.f32.mrf.mxu1 }
 0x13f   : > { %v6558_v15 = vld [vmem:[#allocation2 + $0x214] ss:$36 sps:$4 sm:$0xff]   ;;  %v7905_v34 = vor.u32 %v2505_v21, %v2502_v41  ;;  %v1899_v37 = vrot.slane %v1897_v26, 4  ;;  %v1519_v40 = vrot.slane %v1517_v62, 5  ;;  %v7912_v45 = vld [vmem:[%s6776_s29 + $0x60] sm:$0xf] }
 0x140   : > { %v6560_v28 = vld [vmem:[#allocation2 + $0x210] ss:$36 sps:$4 sm:$0xff]   ;;  %v1522_v9 = vrot.slane %v1520_v42, 6  ;;  %v1529_v35 = vrot.slane %v1527_v3, 5  ;;  %v1532_v39 = vrot.slane %v1530_v14, 6  ;;  %5228 = vmatprep.mubr.bf16.mxu1 %v6558_v15  ;;  %v2497_v54 = vsel %vm7453_vm14, %v2488_v36, %v2496_v29  ;;  %v7925_v36 = vpop.f32.mrf.mxu1 }
 0x141   : > { %v3100_v48 = vld [vmem:[#allocation2 + $0x250] sm:$0xff]  ;;  %v2498_v52 = vrot.slane %v2496_v29, 4  ;;  %v1900_v26 = vrot.slane %v1786_v13, 6  ;;  %v1903_v11 = vrot.slane %v7897_v16, 6  ;;  %5229 = vmatmul.mubr.bf16.gmra.mxu1 %v6560_v28  ;;  %2740 = vst [vmem:[#allocation2 + $0x25c] sm:$0xf] %v2497_v54 }
 0x142   : > { %v1523_v1 = vor.u32 %v1522_v9, %v1519_v40  ;;  %v7919_v51 = vor.u32 %v1532_v39, %v1529_v35  ;;  %v2154_v53 = vrot.slane %v2152_v56, 4  ;;  %v2155_v0 = vrot.slane %v2044_v27, 6  ;;  %v2299_v50 = vld [vmem:[%s6776_s29 + $0x5c] sm:$0xf]  ;;  %v2300_v59 = vld [vmem:[%s6776_s29 + $0x60] sm:$0xf]  ;;  %v4685_v56 = vpop.f32.mrf.mxu0  ;;  %v4862_v21 = vpop.f32.mrf.mxu1 }
 0x143   : > { %v3105_v63 = vld [vmem:[#allocation2 + $0x274] sm:$0xff]  ;;  %v2507_v19 = vsel %vm7453_vm14, %v2498_v52, %v7905_v34  ;;  %v1901_v4 = vsel %vm7398_vm10, %v1899_v37, %v1900_v26  ;;  %v1902_v43 = vrot.slane %v1900_v26, 4  ;;  %v2158_v22 = vrot.slane %v7912_v45, 6  ;;  %v1308_v20 = vld [vmem:[%s6776_s29 + $0x5c] sm:$0xf] }
 0x144   : > { %v6561_v2 = vld [vmem:[#allocation2 + $0x254] ss:$36 sps:$4 sm:$0xff]   ;;  %2741 = vst [vmem:[#allocation2 + $0x280] sm:$0xf] %v2507_v19  ;;  %v5903_v61 = vcombine.low %v3100_v48, %v3105_v63  ;;  %v1524_v5 = vsel %vm7405_vm11, %v1515_v44, %v1523_v1  ;;  %v1525_v13 = vrot.slane %v1523_v1, 4  ;;  %v2156_v17 = vsel %vm7398_vm10, %v2154_v53, %v2155_v0  ;;  %v7944_v14 = vpop.f32.mrf.mxu0  ;;  %v7949_v37 = vpop.f32.mrf.mxu1 }
 0x145   : > { %2007 = vst [vmem:[#allocation2 + $0x29c] sm:$0xf] %v1901_v4  ;;  %v1309_v41 = vld [vmem:[%s6776_s29 + $0x60] sm:$0xf]  ;;  %5059 = vmatprep.mubr.bf16.mxu0 %v6561_v2  ;;  %1749 = vst [vmem:[#allocation2 + $0x298] sm:$0xf] %v1524_v5  ;;  %v1904_v62 = vsel %vm7398_vm10, %v1902_v43, %v1903_v11  ;;  %v7956_v40 = vadd.f32 %v7836_v25, %v4668_v23  ;;  %v4671_v9 = vadd.f32 %v7714_v30, %v7848_v24 }
 0x146   : > { %v2157_v42 = vrot.slane %v2155_v0, 4  ;;  %2262 = vst [vmem:[#allocation2 + $0x2a0] sm:$0xf] %v2156_v17  ;;  %v2508_v3 = vrot.slane %v7905_v34, 4  ;;  %v2510_v44 = vshrl.u32 %v2299_v50, 16  ;;  %5060 = vmatmul.mubr.bf16.gmra.mxu0 %v5903_v61  ;;  %v1534_v27 = vsel %vm7405_vm11, %v1525_v13, %v7919_v51  ;;  %v4688_v35 = vpop.f32.mrf.mxu0  ;;  %v4865_v26 = vpop.f32.mrf.mxu1 }
 0x147   : > { %2008 = vst [vmem:[#allocation2 + $0x2c0] sm:$0xf] %v1904_v62  ;;  %v2513_v15 = vshll.u32 %v2299_v50, 16  ;;  %v2520_v28 = vshrl.u32 %v2300_v59, 16  ;;  %v2523_v29 = vshll.u32 %v2300_v59, 16  ;;  %v1535_v54 = vrot.slane %v7919_v51, 4 }
 0x148   : > { %1750 = vst [vmem:[#allocation2 + $0x2bc] sm:$0xf] %v1534_v27  ;;  %v2159_v34 = vsel %vm7398_vm10, %v2157_v42, %v2158_v22  ;;  %v2512_v31 = vrot.slane %v2510_v44, 6  ;;  %v1788_v52 = vld [vmem:[%s6776_s29 + $0x5c] sm:$0xf]  ;;  %v7963_v1 = vadd.f32 %v7853_v18, %v4671_v9  ;;  %v1537_v53 = vshrl.u32 %v1308_v20, 16  ;;  %v7968_v24 = vpop.f32.mrf.mxu0  ;;  %v7978_v4 = vpop.f32.mrf.mxu1 }
 0x149   : > { %2263 = vst [vmem:[#allocation2 + $0x2c4] sm:$0xf] %v2159_v34  ;;  %v2515_v39 = vrot.slane %v2513_v15, 7  ;;  %v2522_v46 = vrot.slane %v2520_v28, 6  ;;  %v2525_v48 = vrot.slane %v2523_v29, 7  ;;  %v1540_v25 = vshll.u32 %v1308_v20, 16 }
 0x14a   : > { %v1547_v23 = vshrl.u32 %v1309_v41, 16  ;;  %v7966_v0 = vld [vmem:[%s6776_s29 + $0x60] sm:$0xf]  ;;  %v1550_v63 = vshll.u32 %v1309_v41, 16  ;;  %v1905_v2 = vrot.slane %v1903_v11, 4  ;;  %v1539_v56 = vrot.slane %v1537_v53, 5  ;;  %v4693_v16 = vpop.f32.mrf.mxu0  ;;  %v4870_v62 = vpop.f32.mrf.mxu1 }
 0x14b   : > { %v2516_v50 = vor.u32 %v2515_v39, %v2512_v31  ;;  %v7970_v59 = vor.u32 %v2525_v48, %v2522_v46  ;;  %v2046_v51 = vld [vmem:[%s6776_s29 + $0x64] sm:$0xf]  ;;  %v7976_v19 = vld [vmem:[%s6776_s29 + $0x68] sm:$0xf]  ;;  %v6563_v18 = vld [vmem:[#allocation2 + $0x25c] ss:$36 sps:$4 sm:$0xff]   ;;  %v4676_v61 = vadd.f32 %v7714_v30, %v7871_v49  ;;  %v4679_v5 = vadd.f32 %v7714_v30, %v7900_v10 }
 0x14c   : > { %v6565_v43 = vld [vmem:[#allocation2 + $0x258] ss:$36 sps:$4 sm:$0xff]   ;;  %v7986_v13 = vadd.f32 %v7714_v30, %v7917_v55  ;;  %v1542_v41 = vrot.slane %v1540_v25, 6  ;;  %v1549_v21 = vrot.slane %v1547_v23, 5  ;;  %5236 = vmatprep.mubr.bf16.mxu1 %v6563_v18  ;;  %v1552_v49 = vrot.slane %v1550_v63, 6  ;;  %v7994_v27 = vpop.f32.mrf.mxu0  ;;  %v8000_v9 = vpop.f32.mrf.mxu1 }
 0x14d   : > { %v3110_v11 = vld [vmem:[#allocation2 + $0x298] sm:$0xff]  ;;  %v2517_v17 = vsel %vm7453_vm14, %v2508_v3, %v2516_v50  ;;  %v2518_v20 = vrot.slane %v2516_v50, 4  ;;  %v1906_v42 = vrot.slane %v1788_v52, 6  ;;  %v1909_v44 = vrot.slane %v7966_v0, 6  ;;  %v2301_v55 = vld [vmem:[%s6776_s29 + $0x64] sm:$0xf]  ;;  %5237 = vmatmul.mubr.bf16.gmra.mxu1 %v6565_v43 }
 0x14e   : > { %2742 = vst [vmem:[#allocation2 + $0x2a4] sm:$0xf] %v2517_v17  ;;  %v2160_v10 = vrot.slane %v2158_v22, 4  ;;  %v6566_v3 = vld [vmem:[#allocation2 + $0x29c] ss:$36 sps:$4 sm:$0xff]   ;;  %v1543_v29 = vor.u32 %v1542_v41, %v1539_v56  ;;  %v2161_v34 = vrot.slane %v2046_v51, 6  ;;  %v8002_v22 = vor.u32 %v1552_v49, %v1549_v21  ;;  %v4696_v48 = vpop.f32.mrf.mxu0  ;;  %v4873_v23 = vpop.f32.mrf.mxu1 }
 0x14f   : > { %v3115_v15 = vld [vmem:[#allocation2 + $0x2bc] sm:$0xff]  ;;  %v2527_v28 = vsel %vm7453_vm14, %v2518_v20, %v7970_v59  ;;  %v2164_v31 = vrot.slane %v7976_v19, 6  ;;  %v1907_v35 = vsel %vm7398_vm10, %v1905_v2, %v1906_v42  ;;  %v1908_v39 = vrot.slane %v1906_v42, 4  ;;  %v2302_v46 = vld [vmem:[%s6776_s29 + $0x68] sm:$0xf]  ;;  %5067 = vmatprep.mubr.bf16.mxu0 %v6566_v3 }
 0x150   : > { %2743 = vst [vmem:[#allocation2 + $0x2c8] sm:$0xf] %v2527_v28  ;;  %v5912_v45 = vcombine.low %v3110_v11, %v3115_v15  ;;  %v1544_v52 = vsel %vm7405_vm11, %v1535_v54, %v1543_v29  ;;  %v1545_v26 = vrot.slane %v1543_v29, 4  ;;  %2009 = vst [vmem:[#allocation2 + $0x2e4] sm:$0xf] %v1907_v35  ;;  %v2162_v53 = vsel %vm7398_vm10, %v2160_v10, %v2161_v34  ;;  %v8017_v18 = vpop.f32.mrf.mxu0  ;;  %v8027_v17 = vpop.f32.mrf.mxu1 }
 0x151   : > { %v2163_v25 = vrot.slane %v2161_v34, 4  ;;  %1751 = vst [vmem:[#allocation2 + $0x2e0] sm:$0xf] %v1544_v52  ;;  %v1910_v50 = vsel %vm7398_vm10, %v1908_v39, %v1909_v44  ;;  %2264 = vst [vmem:[#allocation2 + $0x2e8] sm:$0xf] %v2162_v53  ;;  %v2528_v63 = vrot.slane %v7970_v59, 4  ;;  %v8030_v21 = vadd.f32 %v7879_v58, %v4676_v61 }
 0x152   : > { %5068 = vmatmul.mubr.bf16.gmra.mxu0 %v5912_v45  ;;  %v2530_v2 = vshrl.u32 %v2301_v55, 16  ;;  %v2533_v54 = vshll.u32 %v2301_v55, 16  ;;  %v1310_v51 = vld [vmem:[%s6776_s29 + $0x64] sm:$0xf]  ;;  %v1554_v43 = vsel %vm7405_vm11, %v1545_v26, %v8002_v22  ;;  %2010 = vst [vmem:[#allocation2 + $0x308] sm:$0xf] %v1910_v50  ;;  %v8033_v62 = vadd.f32 %v7903_v32, %v4679_v5  ;;  %v4701_v10 = vpop.f32.mrf.mxu0  ;;  %v4878_v34 = vpop.f32.mrf.mxu1 }
 0x153   : > { %v2165_v56 = vsel %vm7398_vm10, %v2163_v25, %v2164_v31  ;;  %v2540_v16 = vshrl.u32 %v2302_v46, 16  ;;  %v2543_v11 = vshll.u32 %v2302_v46, 16  ;;  %v1311_v59 = vld [vmem:[%s6776_s29 + $0x68] sm:$0xf]  ;;  %1752 = vst [vmem:[#allocation2 + $0x304] sm:$0xf] %v1554_v43  ;;  %v8047_v52 = vadd.f32 %v7925_v36, %v7986_v13 }
 0x154   : > { %2265 = vst [vmem:[#allocation2 + $0x30c] sm:$0xf] %v2165_v56  ;;  %v2532_v20 = vrot.slane %v2530_v2, 6  ;;  %v2535_v41 = vrot.slane %v2533_v54, 7  ;;  %v1790_v49 = vld [vmem:[%s6776_s29 + $0x64] sm:$0xf]  ;;  %v8041_v61 = vpop.f32.mrf.mxu0  ;;  %v8051_v26 = vpop.f32.mrf.mxu1 }
 0x155   : > { %v8037_v42 = vld [vmem:[%s6776_s29 + $0x68] sm:$0xf]  ;;  %v2542_v55 = vrot.slane %v2540_v16, 6  ;;  %v2545_v15 = vrot.slane %v2543_v11, 7  ;;  %v1555_v3 = vrot.slane %v8002_v22, 4  ;;  %v1557_v28 = vshrl.u32 %v1310_v51, 16 }
 0x156   : > { %v2048_v29 = vld [vmem:[%s6776_s29 + $0x6c] sm:$0xf]  ;;  %v2536_v45 = vor.u32 %v2535_v41, %v2532_v20  ;;  %v1560_v35 = vshll.u32 %v1310_v51, 16  ;;  %v1567_v39 = vshrl.u32 %v1311_v59, 16  ;;  %v1570_v58 = vshll.u32 %v1311_v59, 16  ;;  %v4704_v54 = vpop.f32.mrf.mxu0  ;;  %v4881_v51 = vpop.f32.mrf.mxu1 }
 0x157   : > { %v6568_v32 = vld [vmem:[#allocation2 + $0x2a4] ss:$36 sps:$4 sm:$0xff]   ;;  %v8043_v46 = vor.u32 %v2545_v15, %v2542_v55  ;;  %v1559_v48 = vrot.slane %v1557_v28, 5  ;;  %v4687_v22 = vadd.f32 %v7714_v30, %v7944_v14  ;;  %v8056_v2 = vld [vmem:[%s6776_s29 + $0x70] sm:$0xf]  ;;  %v1911_v13 = vrot.slane %v1909_v44, 4 }
 0x158   : > { %v6570_v5 = vld [vmem:[#allocation2 + $0x2a0] ss:$36 sps:$4 sm:$0xff]   ;;  %v2537_v53 = vsel %vm7453_vm14, %v2528_v63, %v2536_v45  ;;  %v2538_v25 = vrot.slane %v2536_v45, 4  ;;  %v1562_v23 = vrot.slane %v1560_v35, 6  ;;  %v1569_v50 = vrot.slane %v1567_v39, 5  ;;  %5244 = vmatprep.mubr.bf16.mxu1 %v6568_v32  ;;  %v8068_v20 = vpop.f32.mrf.mxu0  ;;  %v8077_v19 = vpop.f32.mrf.mxu1 }
 0x159   : > { %2744 = vst [vmem:[#allocation2 + $0x2ec] sm:$0xf] %v2537_v53  ;;  %v1572_v36 = vrot.slane %v1570_v58, 6  ;;  %v1912_v30 = vrot.slane %v1790_v49, 6  ;;  %v1915_v14 = vrot.slane %v8037_v42, 6  ;;  %5245 = vmatmul.mubr.bf16.gmra.mxu1 %v6570_v5  ;;  %v2166_v56 = vrot.slane %v2164_v31, 4 }
 0x15a   : > { %v2547_v63 = vsel %vm7453_vm14, %v2538_v25, %v8043_v46  ;;  %v1563_v43 = vor.u32 %v1562_v23, %v1559_v48  ;;  %v2167_v16 = vrot.slane %v2048_v29, 6  ;;  %v2303_v11 = vld [vmem:[%s6776_s29 + $0x6c] sm:$0xf]  ;;  %v2304_v59 = vld [vmem:[%s6776_s29 + $0x70] sm:$0xf]  ;;  %v8075_v10 = vadd.f32 %v7949_v37, %v4687_v22  ;;  %v4709_v34 = vpop.f32.mrf.mxu0  ;;  %v4886_v58 = vpop.f32.mrf.mxu1 }
 0x15b   : > { %v6572_v0 = vld [vmem:[#allocation2 + $0x2e0] ss:$36 sps:$4 sm:$0xff]   ;;  %2745 = vst [vmem:[#allocation2 + $0x310] sm:$0xf] %v2547_v63  ;;  %v8070_v41 = vor.u32 %v1572_v36, %v1569_v50  ;;  %v1913_v49 = vsel %vm7398_vm10, %v1911_v13, %v1912_v30  ;;  %v1914_v42 = vrot.slane %v1912_v30, 4  ;;  %v2170_v45 = vrot.slane %v8056_v2, 6 }
 0x15c   : > { %v6574_v44 = vld [vmem:[#allocation2 + $0x2e4] ss:$36 sps:$4 sm:$0xff]   ;;  %8906 = vst [vmem:[#allocation3_spill] sm:$0xff] %v8075_v10  ;;  %v1564_v31 = vsel %vm7405_vm11, %v1555_v3, %v1563_v43  ;;  %v1565_v55 = vrot.slane %v1563_v43, 4  ;;  %2011 = vst [vmem:[#allocation2 + $0x32c] sm:$0xf] %v1913_v49  ;;  %v2168_v15 = vsel %vm7398_vm10, %v2166_v56, %v2167_v16  ;;  %v8093_v25 = vpop.f32.mrf.mxu0  ;;  %v8101_v36 = vpop.f32.mrf.mxu1 }
 0x15d   : > { %v2169_v28 = vrot.slane %v2167_v16, 4  ;;  %v1312_v29 = vld [vmem:[%s6776_s29 + $0x6c] sm:$0xf]  ;;  %5075 = vmatprep.mubr.bf16.mxu0 %v6574_v44  ;;  %1753 = vst [vmem:[#allocation2 + $0x328] sm:$0xf] %v1564_v31  ;;  %v1916_v37 = vsel %vm7398_vm10, %v1914_v42, %v1915_v14  ;;  %v2548_v35 = vrot.slane %v8043_v46, 4 }
 0x15e   : > { %2266 = vst [vmem:[#allocation2 + $0x330] sm:$0xf] %v2168_v15  ;;  %v2550_v3 = vshrl.u32 %v2303_v11, 16  ;;  %v1313_v39 = vld [vmem:[%s6776_s29 + $0x70] sm:$0xf]  ;;  %5076 = vmatmul.mubr.bf16.gmra.mxu0 %v6572_v0  ;;  %v1574_v32 = vsel %vm7405_vm11, %v1565_v55, %v8070_v41  ;;  %v2553_v5 = vshll.u32 %v2303_v11, 16  ;;  %v4712_v43 = vpop.f32.mrf.mxu0  ;;  %v4889_v44 = vpop.f32.mrf.mxu1 }
 0x15f   : > { %2012 = vst [vmem:[#allocation2 + $0x350] sm:$0xf] %v1916_v37  ;;  %v2560_v48 = vshrl.u32 %v2304_v59, 16  ;;  %v2563_v22 = vshll.u32 %v2304_v59, 16  ;;  %v1792_v53 = vld [vmem:[%s6776_s29 + $0x6c] sm:$0xf]  ;;  %v2171_v46 = vsel %vm7398_vm10, %v2169_v28, %v2170_v45 }
 0x160   : > { %1754 = vst [vmem:[#allocation2 + $0x34c] sm:$0xf] %v1574_v32  ;;  %v2552_v23 = vrot.slane %v2550_v3, 6  ;;  %v1575_v50 = vrot.slane %v8070_v41, 4  ;;  %v1577_v2 = vshrl.u32 %v1312_v29, 16  ;;  %v2555_v13 = vrot.slane %v2553_v5, 7 }
 0x161   : > { %v8099_v54 = vld [vmem:[%s6776_s29 + $0x70] sm:$0xf]  ;;  %2267 = vst [vmem:[#allocation2 + $0x354] sm:$0xf] %v2171_v46  ;;  %v2562_v30 = vrot.slane %v2560_v48, 6  ;;  %v2565_v51 = vrot.slane %v2563_v22, 7 }
 0x162   : > { %v1580_v63 = vshll.u32 %v1312_v29, 16  ;;  %v1579_v56 = vrot.slane %v1577_v2, 5  ;;  %v1587_v16 = vshrl.u32 %v1313_v39, 16  ;;  %v1590_v11 = vshll.u32 %v1313_v39, 16  ;;  %v2050_v0 = vld [vmem:[%s6776_s29 + $0x74] sm:$0xf]  ;;  %v8113_v29 = vpop.f32.mrf.mxu0  ;;  %v8116_v39 = vpop.f32.mrf.mxu1 }
 0x163   : > { %v1917_v59 = vrot.slane %v1915_v14, 4  ;;  %v6575_v49 = vld [vmem:[#allocation2 + $0x2e8] ss:$36 sps:$4 sm:$0xff]   ;;  %v2556_v41 = vor.u32 %v2555_v13, %v2552_v23  ;;  %v8104_v31 = vor.u32 %v2565_v51, %v2562_v30  ;;  %v8109_v15 = vld [vmem:[%s8891_s2] ss:$0 sm:$0xff]  ;;  %v1918_v37 = vrot.slane %v1792_v53, 6 }
 0x164   : > { %v6577_v42 = vld [vmem:[#allocation2 + $0x2ec] ss:$36 sps:$4 sm:$0xff]   ;;  %v1582_v55 = vrot.slane %v1580_v63, 6  ;;  %v4692_v28 = vadd.f32 %v8109_v15, %v7968_v24  ;;  %v1589_v14 = vrot.slane %v1587_v16, 5  ;;  %v1592_v34 = vrot.slane %v1590_v11, 6  ;;  %v4717_v22 = vpop.f32.mrf.mxu0  ;;  %v4894_v51 = vpop.f32.mrf.mxu1 }
 0x165   : > { %v1921_v3 = vrot.slane %v8099_v54, 6  ;;  %5252 = vmatprep.mubr.bf16.mxu1 %v6577_v42  ;;  %v2557_v58 = vsel %vm7453_vm14, %v2548_v35, %v2556_v41  ;;  %v2558_v32 = vrot.slane %v2556_v41, 4  ;;  %v8121_v48 = vld [vmem:[%s6776_s29 + $0x78] sm:$0xf]  ;;  %v2172_v24 = vrot.slane %v2170_v45, 4 }
 0x166   : > { %v1583_v5 = vor.u32 %v1582_v55, %v1579_v56  ;;  %5253 = vmatmul.mubr.bf16.gmra.mxu1 %v6575_v49  ;;  %2746 = vst [vmem:[#allocation2 + $0x334] sm:$0xf] %v2557_v58  ;;  %v8123_v46 = vor.u32 %v1592_v34, %v1589_v14  ;;  %v1919_v53 = vsel %vm7398_vm10, %v1917_v59, %v1918_v37  ;;  %v1920_v23 = vrot.slane %v1918_v37, 4  ;;  %v2305_v13 = vld [vmem:[%s6776_s29 + $0x74] sm:$0xf]  ;;  %v8137_v11 = vpop.f32.mrf.mxu0  ;;  %v8147_v42 = vpop.f32.mrf.mxu1 }
 0x167   : > { %v2173_v2 = vrot.slane %v2050_v0, 6  ;;  %v2306_v30 = vld [vmem:[%s6776_s29 + $0x78] sm:$0xf]  ;;  %v6578_v35 = vld [vmem:[#allocation2 + $0x328] ss:$36 sps:$4 sm:$0xff]   ;;  %v2567_v45 = vsel %vm7453_vm14, %v2558_v32, %v8104_v31  ;;  %v8135_v16 = vadd.f32 %v7978_v4, %v4692_v28  ;;  %v2568_v41 = vrot.slane %v8104_v31, 4 }
 0x168   : > { %v6580_v63 = vld [vmem:[#allocation2 + $0x32c] ss:$36 sps:$4 sm:$0xff]   ;;  %v1584_v43 = vsel %vm7405_vm11, %v1575_v50, %v1583_v5  ;;  %v1585_v56 = vrot.slane %v1583_v5, 4  ;;  %2013 = vst [vmem:[#allocation2 + $0x374] sm:$0xf] %v1919_v53  ;;  %v1922_v59 = vsel %vm7398_vm10, %v1920_v23, %v1921_v3  ;;  %v2176_v50 = vrot.slane %v8121_v48, 6  ;;  %v4720_v34 = vpop.f32.mrf.mxu0 }
 0x169   : > { %8907 = vst [vmem:[#allocation4_spill] sm:$0xff] %v8135_v16  ;;  %2747 = vst [vmem:[#allocation2 + $0x358] sm:$0xf] %v2567_v45  ;;  %v2174_v0 = vsel %vm7398_vm10, %v2172_v24, %v2173_v2  ;;  %v2175_v44 = vrot.slane %v2173_v2, 4  ;;  %v1314_v49 = vld [vmem:[%s6776_s29 + $0x74] sm:$0xf]  ;;  %5083 = vmatprep.mubr.bf16.mxu0 %v6580_v63  ;;  %v4695_v5 = vadd.f32 %v8109_v15, %v7994_v27  ;;  %v4897_v24 = vpop.f32.mrf.mxu1 }
 0x16a   : > { %1755 = vst [vmem:[#allocation2 + $0x370] sm:$0xf] %v1584_v43  ;;  %v1594_v4 = vsel %vm7405_vm11, %v1585_v56, %v8123_v46  ;;  %2014 = vst [vmem:[#allocation2 + $0x398] sm:$0xf] %v1922_v59  ;;  %v2570_v55 = vshrl.u32 %v2305_v13, 16  ;;  %v2573_v28 = vshll.u32 %v2305_v13, 16  ;;  %5084 = vmatmul.mubr.bf16.gmra.mxu0 %v6578_v35  ;;  %v8162_v13 = vpop.f32.mrf.mxu0  ;;  %v4703_v24 = vadd.f32 %v8109_v15, %v8041_v61 }
 0x16b   : > { %2268 = vst [vmem:[#allocation2 + $0x378] sm:$0xf] %v2174_v0  ;;  %v1315_v14 = vld [vmem:[%s6776_s29 + $0x78] sm:$0xf]  ;;  %1756 = vst [vmem:[#allocation2 + $0x394] sm:$0xf] %v1594_v4  ;;  %v2177_v37 = vsel %vm7398_vm10, %v2175_v44, %v2176_v50  ;;  %v8167_v27 = vpop.f32.mrf.mxu1 }
 0x16c   : > { %v2580_v58 = vshrl.u32 %v2306_v30, 16  ;;  %v2583_v32 = vshll.u32 %v2306_v30, 16  ;;  %2269 = vst [vmem:[#allocation2 + $0x39c] sm:$0xf] %v2177_v37  ;;  %v2572_v31 = vrot.slane %v2570_v55, 6  ;;  %v2575_v22 = vrot.slane %v2573_v28, 7 }
 0x16d   : > { %v1595_v53 = vrot.slane %v8123_v46, 4  ;;  %v1597_v23 = vshrl.u32 %v1314_v49, 16  ;;  %v1794_v2 = vld [vmem:[%s6776_s29 + $0x74] sm:$0xf]  ;;  %v8165_v30 = vadd.f32 %v8000_v9, %v4695_v5  ;;  %v1600_v63 = vshll.u32 %v1314_v49, 16  ;;  %v4725_v46 = vpop.f32.mrf.mxu0  ;;  %v4902_v49 = vpop.f32.mrf.mxu1 }
 0x16e   : > { %v2582_v51 = vrot.slane %v2580_v58, 6  ;;  %v2585_v35 = vrot.slane %v2583_v32, 7  ;;  %v2576_v45 = vor.u32 %v2575_v22, %v2572_v31  ;;  %v1607_v56 = vshrl.u32 %v1315_v14, 16  ;;  %v8170_v0 = vld [vmem:[%s6776_s29 + $0x78] sm:$0xf] }
 0x16f   : > { %8908 = vst [vmem:[#allocation5_spill] sm:$0xff] %v8165_v30  ;;  %v1599_v43 = vrot.slane %v1597_v23, 5  ;;  %v1610_v59 = vshll.u32 %v1315_v14, 16  ;;  %v1602_v4 = vrot.slane %v1600_v63, 6  ;;  %v1923_v55 = vrot.slane %v1921_v3, 4  ;;  %v8186_v54 = vpop.f32.mrf.mxu0 }
 0x170   : > { %v8172_v44 = vor.u32 %v2585_v35, %v2582_v51  ;;  %v1924_v28 = vrot.slane %v1794_v2, 6  ;;  %v2052_v9 = vld [vmem:[%s6776_s29 + $0x7c] sm:$0xf]  ;;  %v8178_v34 = vld [vmem:[%s6776_s29 + $0x80] sm:$0xf]  ;;  %v2577_v14 = vsel %vm7453_vm14, %v2568_v41, %v2576_v45  ;;  %v2578_v32 = vrot.slane %v2576_v45, 4  ;;  %v8191_v51 = vpop.f32.mrf.mxu1 }
 0x171   : > { %v6581_v37 = vld [vmem:[#allocation2 + $0x330] ss:$36 sps:$4 sm:$0xff]   ;;  %v4700_v5 = vadd.f32 %v8109_v15, %v8017_v18  ;;  %2748 = vst [vmem:[#allocation2 + $0x37c] sm:$0xf] %v2577_v14  ;;  %v1603_v3 = vor.u32 %v1602_v4, %v1599_v43  ;;  %v1609_v31 = vrot.slane %v1607_v56, 5  ;;  %v1612_v22 = vrot.slane %v1610_v59, 6  ;;  %v4728_v43 = vpop.f32.mrf.mxu0 }
 0x172   : > { %v6583_v58 = vld [vmem:[#allocation2 + $0x334] ss:$36 sps:$4 sm:$0xff]   ;;  %v1925_v23 = vsel %vm7398_vm10, %v1923_v55, %v1924_v28  ;;  %v2307_v2 = vld [vmem:[%s6776_s29 + $0x7c] sm:$0xf]  ;;  %v2587_v18 = vsel %vm7453_vm14, %v2578_v32, %v8172_v44  ;;  %v1926_v61 = vrot.slane %v1924_v28, 4  ;;  %v8200_v45 = vadd.f32 %v8051_v26, %v4703_v24  ;;  %v4905_v28 = vpop.f32.mrf.mxu1 }
 0x173   : > { %5260 = vmatprep.mubr.bf16.mxu1 %v6583_v58  ;;  %v6585_v41 = vld [vmem:[#allocation2 + $0x370] ss:$36 sps:$4 sm:$0xff]   ;;  %2015 = vst [vmem:[#allocation2 + $0x3bc] sm:$0xf] %v1925_v23  ;;  %v8197_v63 = vadd.f32 %v8027_v17, %v4700_v5  ;;  %2749 = vst [vmem:[#allocation2 + $0x3a0] sm:$0xf] %v2587_v18  ;;  %v1604_v56 = vsel %vm7405_vm11, %v1595_v53, %v1603_v3  ;;  %v8204_v46 = vor.u32 %v1612_v22, %v1609_v31  ;;  %v8213_v53 = vpop.f32.mrf.mxu0 }
 0x174   : > { %v6587_v35 = vld [vmem:[#allocation2 + $0x374] ss:$36 sps:$4 sm:$0xff]   ;;  %8910 = vst [vmem:[#allocation7_spill] sm:$0xff] %v8200_v45  ;;  %5261 = vmatmul.mubr.bf16.gmra.mxu1 %v6581_v37  ;;  %v1605_v59 = vrot.slane %v1603_v3, 4  ;;  %v1927_v4 = vrot.slane %v8170_v0, 6  ;;  %v2178_v17 = vrot.slane %v2176_v50, 4  ;;  %v8220_v50 = vpop.f32.mrf.mxu1 }
 0x175   : > { %8909 = vst [vmem:[#allocation6_spill] sm:$0xff] %v8197_v63  ;;  %v2308_v55 = vld [vmem:[%s6776_s29 + $0x80] sm:$0xf]  ;;  %5091 = vmatprep.mubr.bf16.mxu0 %v6587_v35  ;;  %1757 = vst [vmem:[#allocation2 + $0x3b8] sm:$0xf] %v1604_v56  ;;  %v2179_v26 = vrot.slane %v2052_v9, 6  ;;  %v4733_v31 = vpop.f32.mrf.mxu0 }
 0x176   : > { %v8893_v49 = vrot.slane %v8178_v34, 6  ;;  %v2588_v37 = vrot.slane %v8172_v44, 4  ;;  %v1316_v58 = vld [vmem:[%s6776_s29 + $0x7c] sm:$0xf]  ;;  %5092 = vmatmul.mubr.bf16.gmra.mxu0 %v6585_v41  ;;  %v1614_v0 = vsel %vm7405_vm11, %v1605_v59, %v8204_v46  ;;  %v1928_v14 = vsel %vm7398_vm10, %v1926_v61, %v1927_v4  ;;  %v1317_v3 = vld [vmem:[%s6776_s29 + $0x80] sm:$0xf]  ;;  %v4910_v35 = vpop.f32.mrf.mxu1 }
 0x177   : > { %v2590_v32 = vshrl.u32 %v2307_v2, 16  ;;  %v2593_v48 = vshll.u32 %v2307_v2, 16  ;;  %1758 = vst [vmem:[#allocation2 + $0x3dc] sm:$0xf] %v1614_v0  ;;  %2016 = vst [vmem:[#allocation2 + $0x3e0] sm:$0xf] %v1928_v14  ;;  %v2180_v44 = vsel %vm7398_vm10, %v2178_v17, %v2179_v26 }
 0x178   : > { %v2181_v9 = vrot.slane %v2179_v26, 4  ;;  %v2600_v5 = vshrl.u32 %v2308_v55, 16  ;;  %v2603_v24 = vshll.u32 %v2308_v55, 16  ;;  %2270 = vst [vmem:[#allocation2 + $0x3c0] sm:$0xf] %v2180_v44  ;;  %v1615_v41 = vrot.slane %v8204_v46, 4  ;;  %v8231_v55 = vpop.f32.mrf.mxu0  ;;  %v8236_v14 = vpop.f32.mrf.mxu1 }
 0x179   : > { %v2592_v22 = vrot.slane %v2590_v32, 6  ;;  %v2595_v23 = vrot.slane %v2593_v48, 7  ;;  %v1617_v2 = vshrl.u32 %v1316_v58, 16  ;;  %v1620_v56 = vshll.u32 %v1316_v58, 16  ;;  %v1796_v59 = vld [vmem:[%s6776_s29 + $0x7c] sm:$0xf] }
 0x17a   : > { %v2183_v18 = vsel %vm7398_vm10, %v2181_v9, %v8893_v49  ;;  %v2602_v61 = vrot.slane %v2600_v5, 6  ;;  %v2605_v43 = vrot.slane %v2603_v24, 7  ;;  %v1627_v26 = vshrl.u32 %v1317_v3, 16  ;;  %v8234_v0 = vld [vmem:[%s6776_s29 + $0x80] sm:$0xf]  ;;  %v4736_v31 = vpop.f32.mrf.mxu0 }
 0x17b   : > { %2271 = vst [vmem:[#allocation2 + $0x3e4] sm:$0xf] %v2183_v18  ;;  %v2596_v28 = vor.u32 %v2595_v23, %v2592_v22  ;;  %v1619_v17 = vrot.slane %v1617_v2, 5  ;;  %v1630_v46 = vshll.u32 %v1317_v3, 16  ;;  %v6588_v32 = vld [vmem:[#allocation2 + $0x378] ss:$36 sps:$4 sm:$0xff]   ;;  %v4708_v24 = vadd.f32 %v8109_v15, %v8068_v20 }
 0x17c   : > { %v6590_v48 = vld [vmem:[#allocation2 + $0x37c] ss:$36 sps:$4 sm:$0xff]   ;;  %v8238_v44 = vor.u32 %v2605_v43, %v2602_v61  ;;  %v1622_v9 = vrot.slane %v1620_v56, 6  ;;  %v2054_v5 = vld [vmem:[%s6776_s29 + $0x84] sm:$0xf]  ;;  %v4711_v3 = vadd.f32 %v8109_v15, %v8093_v25  ;;  %v1629_v2 = vrot.slane %v1627_v26, 5  ;;  %v4913_v61 = vpop.f32.mrf.mxu1  ;;  %v8253_v63 = vpop.f32.mrf.mxu0 }
 0x17d   : > { %v8242_v58 = vld [vmem:[%s6776_s29 + $0x88] sm:$0xf]  ;;  %v2597_v22 = vsel %vm7453_vm14, %v2588_v37, %v2596_v28  ;;  %v2598_v23 = vrot.slane %v2596_v28, 4  ;;  %v1632_v35 = vrot.slane %v1630_v46, 6  ;;  %v2309_v18 = vld [vmem:[%s6776_s29 + $0x84] sm:$0xf]  ;;  %5268 = vmatprep.mubr.bf16.mxu1 %v6590_v48 }
 0x17e   : > { %2750 = vst [vmem:[#allocation2 + $0x3c4] sm:$0xf] %v2597_v22  ;;  %v1623_v43 = vor.u32 %v1622_v9, %v1619_v17  ;;  %v1929_v56 = vrot.slane %v1927_v4, 4  ;;  %v1930_v49 = vrot.slane %v1796_v59, 6  ;;  %v1933_v45 = vrot.slane %v8234_v0, 6  ;;  %5269 = vmatmul.mubr.bf16.gmra.mxu1 %v6588_v32  ;;  %v8265_v59 = vpop.f32.mrf.mxu1  ;;  %v4741_v9 = vpop.f32.mrf.mxu0 }
 0x17f   : > { %v2310_v20 = vld [vmem:[%s6776_s29 + $0x88] sm:$0xf]  ;;  %v6591_v25 = vld [vmem:[#allocation2 + $0x3b8] ss:$36 sps:$4 sm:$0xff]   ;;  %v2607_v37 = vsel %vm7453_vm14, %v2598_v23, %v8238_v44  ;;  %v8258_v28 = vor.u32 %v1632_v35, %v1629_v2  ;;  %v8911_v26 = vrot.slane %v8178_v34, 6  ;;  %v8263_v4 = vadd.f32 %v8077_v19, %v4708_v24 }
 0x180   : > { %v6593_v31 = vld [vmem:[#allocation2 + $0x3bc] ss:$36 sps:$4 sm:$0xff]   ;;  %2751 = vst [vmem:[#allocation2 + $0x3e8] sm:$0xf] %v2607_v37  ;;  %v1624_v17 = vsel %vm7405_vm11, %v1615_v41, %v1623_v43  ;;  %v1625_v0 = vrot.slane %v1623_v43, 4  ;;  %v1931_v32 = vsel %vm7398_vm10, %v1929_v56, %v1930_v49  ;;  %v1932_v48 = vrot.slane %v1930_v49, 4  ;;  %v4918_v23 = vpop.f32.mrf.mxu1 }
 0x181   : > { %v2184_v46 = vrot.slane %v8911_v26, 4  ;;  %8912 = vst [vmem:[#allocation8_spill] sm:$0xff] %v8263_v4  ;;  %5099 = vmatprep.mubr.bf16.mxu0 %v6593_v31  ;;  %1759 = vst [vmem:[#allocation2 + $0x400] sm:$0xf] %v1624_v17  ;;  %v2185_v34 = vrot.slane %v2054_v5, 6  ;;  %v2188_v19 = vrot.slane %v8242_v58, 6  ;;  %v8279_v5 = vpop.f32.mrf.mxu0  ;;  %v8287_v26 = vadd.f32 %v8101_v36, %v4711_v3 }
 0x182   : > { %2017 = vst [vmem:[#allocation2 + $0x404] sm:$0xf] %v1931_v32  ;;  %v2608_v24 = vrot.slane %v8238_v44, 4  ;;  %v2610_v22 = vshrl.u32 %v2309_v18, 16  ;;  %5100 = vmatmul.mubr.bf16.gmra.mxu0 %v6591_v25  ;;  %v1634_v41 = vsel %vm7405_vm11, %v1625_v0, %v8258_v28  ;;  %v1934_v49 = vsel %vm7398_vm10, %v1932_v48, %v1933_v45  ;;  %v1318_v61 = vld [vmem:[%s6776_s29 + $0x84] sm:$0xf]  ;;  %v8284_v31 = vpop.f32.mrf.mxu1 }
 0x183   : > { %v2613_v2 = vshll.u32 %v2309_v18, 16  ;;  %v2620_v35 = vshrl.u32 %v2310_v20, 16  ;;  %1760 = vst [vmem:[#allocation2 + $0x424] sm:$0xf] %v1634_v41  ;;  %2018 = vst [vmem:[#allocation2 + $0x428] sm:$0xf] %v1934_v49  ;;  %v2186_v44 = vsel %vm7398_vm10, %v2184_v46, %v2185_v34  ;;  %v4744_v32 = vpop.f32.mrf.mxu0 }
 0x184   : > { %v2187_v58 = vrot.slane %v2185_v34, 4  ;;  %v2612_v43 = vrot.slane %v2610_v22, 6  ;;  %v2623_v56 = vshll.u32 %v2310_v20, 16  ;;  %v1319_v25 = vld [vmem:[%s6776_s29 + $0x88] sm:$0xf]  ;;  %8913 = vst [vmem:[#allocation9_spill] sm:$0xff] %v8287_v26  ;;  %v4921_v22 = vpop.f32.mrf.mxu1 }
 0x185   : > { %2272 = vst [vmem:[#allocation2 + $0x408] sm:$0xf] %v2186_v44  ;;  %v2615_v37 = vrot.slane %v2613_v2, 7  ;;  %v2622_v18 = vrot.slane %v2620_v35, 6  ;;  %v1635_v17 = vrot.slane %v8258_v28, 4  ;;  %v1637_v9 = vshrl.u32 %v1318_v61, 16  ;;  %v8297_v2 = vpop.f32.mrf.mxu0 }
 0x186   : > { %v1798_v0 = vld [vmem:[%s6776_s29 + $0x84] sm:$0xf]  ;;  %v2189_v46 = vsel %vm7398_vm10, %v2187_v58, %v2188_v19  ;;  %v2625_v48 = vrot.slane %v2623_v56, 7  ;;  %v1640_v20 = vshll.u32 %v1318_v61, 16  ;;  %v8294_v34 = vld [vmem:[%s6776_s29 + $0x88] sm:$0xf]  ;;  %v4716_v61 = vadd.f32 %v8109_v15, %v8113_v29 }
 0x187   : > { %2273 = vst [vmem:[#allocation2 + $0x42c] sm:$0xf] %v2189_v46  ;;  %v2616_v23 = vor.u32 %v2615_v37, %v2612_v43  ;;  %v1647_v41 = vshrl.u32 %v1319_v25, 16  ;;  %v1650_v49 = vshll.u32 %v1319_v25, 16  ;;  %v1935_v36 = vrot.slane %v1933_v45, 4  ;;  %v8305_v43 = vpop.f32.mrf.mxu1 }
 0x188   : > { %v2056_v3 = vld [vmem:[%s6776_s29 + $0x8c] sm:$0xf]  ;;  %v6594_v28 = vld [vmem:[#allocation2 + $0x3c0] ss:$36 sps:$4 sm:$0xff]   ;;  %v8299_v44 = vor.u32 %v2625_v48, %v2622_v18  ;;  %v1639_v58 = vrot.slane %v1637_v9, 5  ;;  %v4719_v56 = vadd.f32 %v8109_v15, %v8137_v11  ;;  %v1642_v37 = vrot.slane %v1640_v20, 6  ;;  %v4749_v18 = vpop.f32.mrf.mxu0 }
 0x189   : > { %v6596_v35 = vld [vmem:[#allocation2 + $0x3c4] ss:$36 sps:$4 sm:$0xff]   ;;  %v2617_v45 = vsel %vm7453_vm14, %v2608_v24, %v2616_v23  ;;  %v2618_v25 = vrot.slane %v2616_v23, 4  ;;  %v1649_v32 = vrot.slane %v1647_v41, 5  ;;  %v8310_v46 = vld [vmem:[%s6776_s29 + $0x90] sm:$0xf]  ;;  %v4926_v26 = vpop.f32.mrf.mxu1  ;;  %v8318_v41 = vadd.f32 %v8116_v39, %v4716_v61 }
 0x18a   : > { %5276 = vmatprep.mubr.bf16.mxu1 %v6596_v35  ;;  %2752 = vst [vmem:[#allocation2 + $0x40c] sm:$0xf] %v2617_v45  ;;  %v1652_v48 = vrot.slane %v1650_v49, 6  ;;  %v1936_v9 = vrot.slane %v1798_v0, 6  ;;  %v1939_v29 = vrot.slane %v8294_v34, 6  ;;  %v2190_v22 = vrot.slane %v2188_v19, 4  ;;  %v8320_v49 = vpop.f32.mrf.mxu0 }
 0x18b   : > { %v2311_v11 = vld [vmem:[%s6776_s29 + $0x8c] sm:$0xf]  ;;  %5277 = vmatmul.mubr.bf16.gmra.mxu1 %v6594_v28  ;;  %v6598_v4 = vld [vmem:[#allocation2 + $0x400] ss:$36 sps:$4 sm:$0xff]   ;;  %v2627_v24 = vsel %vm7453_vm14, %v2618_v25, %v8299_v44  ;;  %v1643_v20 = vor.u32 %v1642_v37, %v1639_v58  ;;  %v2191_v23 = vrot.slane %v2056_v3, 6  ;;  %8914 = vst [vmem:[#allocation10_spill] sm:$0xff] %v8318_v41  ;;  %v8328_v35 = vpop.f32.mrf.mxu1 }
 0x18c   : > { %v6600_v30 = vld [vmem:[#allocation2 + $0x404] ss:$36 sps:$4 sm:$0xff]   ;;  %2753 = vst [vmem:[#allocation2 + $0x430] sm:$0xf] %v2627_v24  ;;  %v8322_v0 = vor.u32 %v1652_v48, %v1649_v32  ;;  %v1937_v19 = vsel %vm7398_vm10, %v1935_v36, %v1936_v9  ;;  %v1938_v26 = vrot.slane %v1936_v9, 4  ;;  %v8894_v34 = vrot.slane %v8310_v46, 6  ;;  %v4752_v45 = vpop.f32.mrf.mxu0 }
 0x18d   : > { %v2312_v28 = vld [vmem:[%s6776_s29 + $0x90] sm:$0xf]  ;;  %5107 = vmatprep.mubr.bf16.mxu0 %v6600_v30  ;;  %v1644_v39 = vsel %vm7405_vm11, %v1635_v17, %v1643_v20  ;;  %v1645_v3 = vrot.slane %v1643_v20, 4  ;;  %2019 = vst [vmem:[#allocation2 + $0x44c] sm:$0xf] %v1937_v19  ;;  %v2192_v58 = vsel %vm7398_vm10, %v2190_v22, %v2191_v23  ;;  %v2193_v61 = vrot.slane %v2191_v23, 4  ;;  %v4929_v32 = vpop.f32.mrf.mxu1 }
 0x18e   : > { %5108 = vmatmul.mubr.bf16.gmra.mxu0 %v6598_v4  ;;  %1761 = vst [vmem:[#allocation2 + $0x448] sm:$0xf] %v1644_v39  ;;  %v1940_v36 = vsel %vm7398_vm10, %v1938_v26, %v1939_v29  ;;  %2274 = vst [vmem:[#allocation2 + $0x450] sm:$0xf] %v2192_v58  ;;  %v2628_v25 = vrot.slane %v8299_v44, 4  ;;  %v2630_v30 = vshrl.u32 %v2311_v11, 16  ;;  %v8346_v22 = vpop.f32.mrf.mxu0  ;;  %v8349_v20 = vadd.f32 %v8147_v42, %v4719_v56 }
 0x18f   : > { %v2633_v37 = vshll.u32 %v2311_v11, 16  ;;  %v1320_v17 = vld [vmem:[%s6776_s29 + $0x8c] sm:$0xf]  ;;  %v1654_v18 = vsel %vm7405_vm11, %v1645_v3, %v8322_v0  ;;  %2020 = vst [vmem:[#allocation2 + $0x470] sm:$0xf] %v1940_v36  ;;  %v2195_v4 = vsel %vm7398_vm10, %v2193_v61, %v8894_v34  ;;  %v2640_v48 = vshrl.u32 %v2312_v28, 16  ;;  %v8356_v39 = vpop.f32.mrf.mxu1 }
 0x190   : > { %v2643_v9 = vshll.u32 %v2312_v28, 16  ;;  %v1321_v44 = vld [vmem:[%s6776_s29 + $0x90] sm:$0xf]  ;;  %1762 = vst [vmem:[#allocation2 + $0x46c] sm:$0xf] %v1654_v18  ;;  %v2632_v11 = vrot.slane %v2630_v30, 6  ;;  %v4757_v36 = vpop.f32.mrf.mxu0 }
 0x191   : > { %2275 = vst [vmem:[#allocation2 + $0x474] sm:$0xf] %v2195_v4  ;;  %v2635_v24 = vrot.slane %v2633_v37, 7  ;;  %8915 = vst [vmem:[#allocation11_spill] sm:$0xff] %v8349_v20  ;;  %v1655_v23 = vrot.slane %v8322_v0, 4  ;;  %v2642_v28 = vrot.slane %v2640_v48, 6  ;;  %v4934_v42 = vpop.f32.mrf.mxu1  ;;  %v4724_v48 = vadd.f32 %v8109_v15, %v8162_v13 }
 0x192   : > { %v1800_v19 = vld [vmem:[%s6776_s29 + $0x8c] sm:$0xf]  ;;  %v8354_v26 = vld [vmem:[%s6776_s29 + $0x90] sm:$0xf]  ;;  %v2645_v3 = vrot.slane %v2643_v9, 7  ;;  %v1657_v58 = vshrl.u32 %v1320_v17, 16  ;;  %v8368_v9 = vpop.f32.mrf.mxu0 }
 0x193   : > { %v1660_v61 = vshll.u32 %v1320_v17, 16  ;;  %v2058_v45 = vld [vmem:[%s6776_s29 + $0x94] sm:$0xf]  ;;  %v2636_v32 = vor.u32 %v2635_v24, %v2632_v11  ;;  %v1667_v30 = vshrl.u32 %v1321_v44, 16  ;;  %v1670_v37 = vshll.u32 %v1321_v44, 16  ;;  %v8372_v36 = vpop.f32.mrf.mxu1 }
 0x194   : > { %v1941_v18 = vrot.slane %v1939_v29, 4  ;;  %v8360_v4 = vld [vmem:[%s6776_s29 + $0x98] sm:$0xf]  ;;  %v6601_v56 = vld [vmem:[#allocation2 + $0x408] ss:$36 sps:$4 sm:$0xff]   ;;  %v8362_v34 = vor.u32 %v2645_v3, %v2642_v28  ;;  %v1659_v20 = vrot.slane %v1657_v58, 5  ;;  %v4727_v17 = vadd.f32 %v8109_v15, %v8186_v54  ;;  %v4760_v42 = vpop.f32.mrf.mxu0 }
 0x195   : > { %v6603_v0 = vld [vmem:[#allocation2 + $0x40c] ss:$36 sps:$4 sm:$0xff]   ;;  %v2637_v44 = vsel %vm7453_vm14, %v2628_v25, %v2636_v32  ;;  %v2638_v29 = vrot.slane %v2636_v32, 4  ;;  %v1662_v11 = vrot.slane %v1660_v61, 6  ;;  %v1669_v24 = vrot.slane %v1667_v30, 5 }
 0x196   : > { %5284 = vmatprep.mubr.bf16.mxu1 %v6603_v0  ;;  %2754 = vst [vmem:[#allocation2 + $0x454] sm:$0xf] %v2637_v44  ;;  %v1672_v28 = vrot.slane %v1670_v37, 6  ;;  %v1942_v3 = vrot.slane %v1800_v19, 6  ;;  %v1945_v13 = vrot.slane %v8354_v26, 6  ;;  %v8916_v54 = vrot.slane %v8310_v46, 6  ;;  %v4937_v44 = vpop.f32.mrf.mxu1  ;;  %v8394_v42 = vpop.f32.mrf.mxu0 }
 0x197   : > { %5285 = vmatmul.mubr.bf16.gmra.mxu1 %v6601_v56  ;;  %v2647_v25 = vsel %vm7453_vm14, %v2638_v29, %v8362_v34  ;;  %v1663_v61 = vor.u32 %v1662_v11, %v1659_v20  ;;  %v2197_v32 = vrot.slane %v2058_v45, 6  ;;  %v8895_v30 = vrot.slane %v8360_v4, 6  ;;  %v2313_v41 = vld [vmem:[%s6776_s29 + $0x94] sm:$0xf]  ;;  %v2314_v0 = vld [vmem:[%s6776_s29 + $0x98] sm:$0xf] }
 0x198   : > { %v2196_v58 = vrot.slane %v8916_v54, 4  ;;  %v6604_v37 = vld [vmem:[#allocation2 + $0x448] ss:$36 sps:$4 sm:$0xff]   ;;  %2755 = vst [vmem:[#allocation2 + $0x478] sm:$0xf] %v2647_v25  ;;  %v8383_v26 = vor.u32 %v1672_v28, %v1669_v24  ;;  %v1943_v46 = vsel %vm7398_vm10, %v1941_v18, %v1942_v3  ;;  %v1944_v56 = vrot.slane %v1942_v3, 4  ;;  %v8396_v24 = vpop.f32.mrf.mxu1 }
 0x199   : > { %v6606_v19 = vld [vmem:[#allocation2 + $0x44c] ss:$36 sps:$4 sm:$0xff]   ;;  %v8388_v54 = vadd.f32 %v8167_v27, %v4724_v48  ;;  %v1664_v20 = vsel %vm7405_vm11, %v1655_v23, %v1663_v61  ;;  %v1665_v45 = vrot.slane %v1663_v61, 4  ;;  %2021 = vst [vmem:[#allocation2 + $0x494] sm:$0xf] %v1943_v46  ;;  %v2199_v11 = vrot.slane %v2197_v32, 4 }
 0x19a   : > { %v2198_v29 = vsel %vm7398_vm10, %v2196_v58, %v2197_v32  ;;  %5115 = vmatprep.mubr.bf16.mxu0 %v6606_v19  ;;  %1763 = vst [vmem:[#allocation2 + $0x490] sm:$0xf] %v1664_v20  ;;  %v1946_v27 = vsel %vm7398_vm10, %v1944_v56, %v1945_v13  ;;  %v2648_v18 = vrot.slane %v8362_v34, 4  ;;  %v2650_v23 = vshrl.u32 %v2313_v41, 16  ;;  %v1322_v28 = vld [vmem:[%s6776_s29 + $0x94] sm:$0xf]  ;;  %v4765_v32 = vpop.f32.mrf.mxu0 }
 0x19b   : > { %8917 = vst [vmem:[#allocation12_spill] sm:$0xff] %v8388_v54  ;;  %2276 = vst [vmem:[#allocation2 + $0x498] sm:$0xf] %v2198_v29  ;;  %v2653_v48 = vshll.u32 %v2313_v41, 16  ;;  %5116 = vmatmul.mubr.bf16.gmra.mxu0 %v6604_v37  ;;  %v1674_v3 = vsel %vm7405_vm11, %v1665_v45, %v8383_v26  ;;  %v2201_v58 = vsel %vm7398_vm10, %v2199_v11, %v8895_v30  ;;  %v2660_v25 = vshrl.u32 %v2314_v0, 16  ;;  %v4942_v41 = vpop.f32.mrf.mxu1 }
 0x19c   : > { %2022 = vst [vmem:[#allocation2 + $0x4b8] sm:$0xf] %v1946_v27  ;;  %v2663_v61 = vshll.u32 %v2314_v0, 16  ;;  %v1323_v34 = vld [vmem:[%s6776_s29 + $0x98] sm:$0x3]  ;;  %v2652_v44 = vrot.slane %v2650_v23, 6  ;;  %v8411_v19 = vadd.f32 %v8191_v51, %v4727_v17  ;;  %v8417_v30 = vpop.f32.mrf.mxu0 }
 0x19d   : > { %1764 = vst [vmem:[#allocation2 + $0x4b4] sm:$0xf] %v1674_v3  ;;  %2277 = vst [vmem:[#allocation2 + $0x4bc] sm:$0xf] %v2201_v58  ;;  %v2655_v37 = vrot.slane %v2653_v48, 7  ;;  %v1675_v46 = vrot.slane %v8383_v26, 4  ;;  %v8419_v32 = vpop.f32.mrf.mxu1 }
 0x19e   : > { %8918 = vst [vmem:[#allocation13_spill] sm:$0xff] %v8411_v19  ;;  %v1802_v56 = vld [vmem:[%s6776_s29 + $0x94] sm:$0xf]  ;;  %v1803_v20 = vld [vmem:[%s6776_s29 + $0x98] sm:$0x3]  ;;  %v2662_v45 = vrot.slane %v2660_v25, 6  ;;  %v4732_v25 = vadd.f32 %v8109_v15, %v8213_v53 }
 0x19f   : > { %v2665_v29 = vrot.slane %v2663_v61, 7  ;;  %v1677_v11 = vshrl.u32 %v1322_v28, 16  ;;  %v1680_v0 = vshll.u32 %v1322_v28, 16  ;;  %v2060_v27 = vld [vmem:[%s6776_s29 + $0x9c] sm:$0xf]  ;;  %v2656_v3 = vor.u32 %v2655_v37, %v2652_v44  ;;  %v4768_v61 = vpop.f32.mrf.mxu0  ;;  %v4945_v54 = vpop.f32.mrf.mxu1 }
 0x1a0   : > { %v1687_v23 = vshrl.u32 %v1323_v34, 16  ;;  %v1690_v48 = vshll.u32 %v1323_v34, 16  ;;  %v1947_v58 = vrot.slane %v1945_v13, 4  ;;  %v2061_v41 = vld [vmem:[%s6776_s29 + $0xa0] sm:$0x3]  ;;  %v4735_v28 = vadd.f32 %v8109_v15, %v8231_v55 }
 0x1a1   : > { %v6607_v51 = vld [vmem:[#allocation2 + $0x450] ss:$36 sps:$4 sm:$0xff]   ;;  %v8422_v19 = vor.u32 %v2665_v29, %v2662_v45  ;;  %v1679_v26 = vrot.slane %v1677_v11, 5  ;;  %v2657_v44 = vsel %vm7453_vm14, %v2648_v18, %v2656_v3  ;;  %v2658_v34 = vrot.slane %v2656_v3, 4  ;;  %v8432_v10 = vpop.f32.mrf.mxu1 }
 0x1a2   : > { %v6609_v17 = vld [vmem:[#allocation2 + $0x454] ss:$36 sps:$4 sm:$0xff]   ;;  %v1682_v13 = vrot.slane %v1680_v0, 6  ;;  %v1689_v37 = vrot.slane %v1687_v23, 5  ;;  %2756 = vst [vmem:[#allocation2 + $0x49c] sm:$0xf] %v2657_v44  ;;  %v8444_v61 = vadd.f32 %v8220_v50, %v4732_v25  ;;  %v8469_v8 = vadd.f32 %v8236_v14, %v4735_v28 }
 0x1a3   : > { %5292 = vmatprep.mubr.bf16.mxu1 %v6609_v17  ;;  %v1692_v45 = vrot.slane %v1690_v48, 6  ;;  %v1948_v29 = vrot.slane %v1802_v56, 6  ;;  %v1951_v11 = vrot.slane %v1803_v20, 6  ;;  %v8919_v53 = vrot.slane %v8360_v4, 6  ;;  %v2315_v0 = vld [vmem:[%s6776_s29 + $0x9c] sm:$0xf]  ;;  %v8439_v48 = vpop.f32.mrf.mxu0 }
 0x1a4   : > { %5293 = vmatmul.mubr.bf16.gmra.mxu1 %v6607_v51  ;;  %v2667_v55 = vsel %vm7453_vm14, %v2658_v34, %v8422_v19  ;;  %v1683_v54 = vor.u32 %v1682_v13, %v1679_v26  ;;  %v2203_v18 = vrot.slane %v2060_v27, 6  ;;  %v2206_v3 = vrot.slane %v2061_v41, 6  ;;  %v2316_v23 = vld [vmem:[%s6776_s29 + $0xa0] sm:$0x7]  ;;  %v6611_v56 = vld [vmem:[#allocation2 + $0x490] ss:$36 sps:$4 sm:$0xff]   ;;  %v4950_v26 = vpop.f32.mrf.mxu1 }
 0x1a5   : > { %v2202_v16 = vrot.slane %v8919_v53, 4  ;;  %v6613_v20 = vld [vmem:[#allocation2 + $0x494] ss:$36 sps:$4 sm:$0xff]   ;;  %2757 = vst [vmem:[#allocation2 + $0x4c0] sm:$0xf] %v2667_v55  ;;  %v1693_v4 = vor.u32 %v1692_v45, %v1689_v37  ;;  %v1949_v51 = vsel %vm7398_vm10, %v1947_v58, %v1948_v29  ;;  %v1950_v17 = vrot.slane %v1948_v29, 4  ;;  %v4773_v45 = vpop.f32.mrf.mxu0 }
 0x1a6   : > { %v1684_v27 = vsel %vm7405_vm11, %v1675_v46, %v1683_v54  ;;  %v1685_v41 = vrot.slane %v1683_v54, 4  ;;  %2023 = vst [vmem:[#allocation2 + $0x4dc] sm:$0xf] %v1949_v51  ;;  %v2205_v34 = vrot.slane %v2203_v18, 4  ;;  %v2760_v13 = vld [vmem:[%s6776_s29 + $0x10] sm:$0x8]  ;;  %5123 = vmatprep.mubr.bf16.mxu0 %v6613_v20  ;;  %v8456_v53 = vpop.f32.mrf.mxu1 }
 0x1a7   : > { %v2204_v44 = vsel %vm7398_vm10, %v2202_v16, %v2203_v18  ;;  %v2761_v37 = vld [vmem:[%s6776_s29 + $0x14] sm:$0xf]  ;;  %1765 = vst [vmem:[#allocation2 + $0x4d8] sm:$0xf] %v1684_v27  ;;  %v1952_v50 = vsel %vm7398_vm10, %v1950_v17, %v1951_v11  ;;  %v2668_v58 = vrot.slane %v8422_v19, 4  ;;  %v2670_v46 = vshrl.u32 %v2315_v0, 16  ;;  %5124 = vmatmul.mubr.bf16.gmra.mxu0 %v6611_v56  ;;  %v8466_v19 = vpop.f32.mrf.mxu0 }
 0x1a8   : > { %2278 = vst [vmem:[#allocation2 + $0x4e0] sm:$0xf] %v2204_v44  ;;  %v2673_v25 = vshll.u32 %v2315_v0, 16  ;;  %v2762_v29 = vld [vmem:[%s6776_s29 + $0x18] sm:$0xf]  ;;  %v1694_v16 = vsel %vm7405_vm11, %v1685_v41, %v1693_v4  ;;  %v2207_v55 = vsel %vm7398_vm10, %v2205_v34, %v2206_v3  ;;  %v2680_v54 = vshrl.u32 %v2316_v23, 16  ;;  %v4953_v6 = vpop.f32.mrf.mxu1 }
 0x1a9   : > { %2024 = vst [vmem:[#allocation2 + $0x500] sm:$0xf] %v1952_v50  ;;  %v2683_v18 = vshll.u32 %v2316_v23, 16  ;;  %v2763_v11 = vld [vmem:[%s6776_s29 + $0x1c] sm:$0xf]  ;;  %v2672_v0 = vrot.slane %v2670_v46, 6  ;;  %v4776_v26 = vpop.f32.mrf.mxu0 }
 0x1aa   : > { %v8464_v20 = vld [vmem:[%s6776_s29 + $0x60] sm:$0xf]  ;;  %1766 = vst [vmem:[#allocation2 + $0x4fc] sm:$0xf] %v1694_v16  ;;  %2279 = vst [vmem:[#allocation2 + $0x504] sm:$0xf] %v2207_v55  ;;  %v8478_v45 = vpop.f32.mrf.mxu1  ;;  %v4740_v16 = vadd.f32 %v8109_v15, %v8253_v63  ;;  %v4743_v55 = vadd.f32 %v8109_v15, %v8279_v5 }
 0x1ab   : > { %v2675_v51 = vrot.slane %v2673_v25, 7  ;;  %v2781_v56 = vld [vmem:[%s6776_s29 + $0x64] sm:$0xf]  ;;  %v2682_v3 = vrot.slane %v2680_v54, 6  ;;  %v2685_v4 = vrot.slane %v2683_v18, 7  ;;  %v5825_v23 = vrot.slane %v2760_v13, 11  ;;  %v8485_v54 = vpop.f32.mrf.mxu0 }
 0x1ac   : > { %v2782_v17 = vld [vmem:[%s6776_s29 + $0x68] sm:$0xf]  ;;  %v2839_v44 = vrot.slane %v2761_v37, 7  ;;  %v2842_v34 = vrot.slane %v2762_v29, 7  ;;  %v2845_v14 = vrot.slane %v2763_v11, 7  ;;  %v2896_v13 = vrot.slane %v8464_v20, 7  ;;  %v4958_v6 = vpop.f32.mrf.mxu1 }
 0x1ad   : > { %v2676_v27 = vor.u32 %v2675_v51, %v2672_v0  ;;  %v2783_v28 = vld [vmem:[%s6776_s29 + $0x6c] sm:$0xf]  ;;  %v6614_v50 = vld [vmem:[#allocation2 + $0x498] ss:$36 sps:$4 sm:$0xff]   ;;  %v2686_v25 = vor.u32 %v2685_v4, %v2682_v3  ;;  %v2764_v0 = vld [vmem:[%s6776_s29 + $0x20] sm:$0xf] }
 0x1ae   : > { %v6616_v46 = vld [vmem:[#allocation2 + $0x49c] ss:$36 sps:$4 sm:$0xff]   ;;  %v2840_v18 = vsel %vm8473_vm1, %v5825_v23, %v2839_v44  ;;  %v2841_v11 = vrot.slane %v2839_v44, 4  ;;  %v2784_v51 = vld [vmem:[%s6776_s29 + $0x70] sm:$0xf]  ;;  %v2844_v63 = vrot.slane %v2842_v34, 4 }
 0x1af   : > { %v2677_v37 = vsel %vm7453_vm14, %v2668_v58, %v2676_v27  ;;  %v2678_v29 = vrot.slane %v2676_v27, 4  ;;  %5300 = vmatprep.mubr.bf16.mxu1 %v6616_v46  ;;  %v2847_v3 = vrot.slane %v2845_v14, 4  ;;  %2982 = vst [vmem:[#allocation2 + $0x20] sm:$0xf] %v2840_v18  ;;  %v2898_v15 = vrot.slane %v2896_v13, 4  ;;  %v4781_v58 = vpop.f32.mrf.mxu0 }
 0x1b0   : > { %2758 = vst [vmem:[#allocation2 + $0x4e4] sm:$0xf] %v2677_v37  ;;  %v2899_v5 = vrot.slane %v2781_v56, 7  ;;  %5301 = vmatmul.mubr.bf16.gmra.mxu1 %v6614_v50  ;;  %v2843_v23 = vsel %vm8473_vm1, %v2841_v11, %v2842_v34  ;;  %v2902_v26 = vrot.slane %v2782_v17, 7  ;;  %v2905_v27 = vrot.slane %v2783_v28, 7  ;;  %v8501_v37 = vpop.f32.mrf.mxu1 }
 0x1b1   : > { %v2687_v4 = vsel %vm7453_vm14, %v2678_v29, %v2686_v25  ;;  %v2765_v44 = vld [vmem:[%s6776_s29 + $0x24] sm:$0xf]  ;;  %v2766_v46 = vld [vmem:[%s6776_s29 + $0x28] sm:$0xf]  ;;  %v6617_v18 = vld [vmem:[#allocation2 + $0x4d8] ss:$36 sps:$4 sm:$0xff]   ;;  %v2846_v56 = vsel %vm8473_vm1, %v2844_v63, %v2845_v14  ;;  %v8508_v17 = vadd.f32 %v8265_v59, %v4740_v16  ;;  %v8510_v34 = vpop.f32.mrf.mxu0 }
 0x1b2   : > { %v6619_v6 = vld [vmem:[#allocation2 + $0x4dc] ss:$36 sps:$4 sm:$0xff]   ;;  %2759 = vst [vmem:[#allocation2 + $0x508] sm:$0xf] %v2687_v4  ;;  %2983 = vst [vmem:[#allocation2 + $0x44] sm:$0xf] %v2843_v23  ;;  %v2900_v60 = vsel %vm8473_vm1, %v2898_v15, %v2899_v5  ;;  %v4961_v14 = vpop.f32.mrf.mxu1  ;;  %v8516_v15 = vadd.f32 %v8284_v31, %v4743_v55 }
 0x1b3   : > { %v2901_v50 = vrot.slane %v2899_v5, 4  ;;  %2984 = vst [vmem:[#allocation2 + $0x68] sm:$0xf] %v2846_v56  ;;  %v2904_v28 = vrot.slane %v2902_v26, 4  ;;  %v2907_v25 = vrot.slane %v2905_v27, 4  ;;  %v2848_v29 = vrot.slane %v2764_v0, 7  ;;  %5131 = vmatprep.mubr.bf16.mxu0 %v6619_v6  ;;  %v4784_v23 = vpop.f32.mrf.mxu0 }
 0x1b4   : > { %3002 = vst [vmem:[#allocation2 + $0x2f0] sm:$0xf] %v2900_v60  ;;  %v2908_v11 = vrot.slane %v2784_v51, 7  ;;  %v2785_v58 = vld [vmem:[%s6776_s29 + $0x74] sm:$0xf]  ;;  %v2851_v59 = vrot.slane %v2765_v44, 7  ;;  %5132 = vmatmul.mubr.bf16.gmra.mxu0 %v6617_v18 }
 0x1b5   : > { %v2903_v63 = vsel %vm8473_vm1, %v2901_v50, %v2902_v26  ;;  %v2854_v16 = vrot.slane %v2766_v46, 7  ;;  %v2786_v5 = vld [vmem:[%s6776_s29 + $0x78] sm:$0xf]  ;;  %v2767_v4 = vld [vmem:[%s6776_s29 + $0x2c] sm:$0xf]  ;;  %v2906_v0 = vsel %vm8473_vm1, %v2904_v28, %v2905_v27  ;;  %v2849_v51 = vsel %vm8473_vm1, %v2847_v3, %v2848_v29 }
 0x1b6   : > { %3003 = vst [vmem:[#allocation2 + $0x314] sm:$0xf] %v2903_v63  ;;  %v2909_v26 = vsel %vm8473_vm1, %v2907_v25, %v2908_v11  ;;  %v2850_v6 = vrot.slane %v2848_v29, 4  ;;  %v2768_v31 = vld [vmem:[%s6776_s29 + $0x30] sm:$0xf]  ;;  %v2853_v55 = vrot.slane %v2851_v59, 4 }
 0x1b7   : > { %3004 = vst [vmem:[#allocation2 + $0x338] sm:$0xf] %v2906_v0  ;;  %2985 = vst [vmem:[#allocation2 + $0x8c] sm:$0xf] %v2849_v51  ;;  %v2856_v44 = vrot.slane %v2854_v16, 4  ;;  %v2910_v46 = vrot.slane %v2908_v11, 4 }
 0x1b8   : > { %3005 = vst [vmem:[#allocation2 + $0x35c] sm:$0xf] %v2909_v26  ;;  %v2911_v18 = vrot.slane %v2785_v58, 7  ;;  %v2787_v56 = vld [vmem:[%s6776_s29 + $0x7c] sm:$0xf]  ;;  %v2852_v27 = vsel %vm8473_vm1, %v2850_v6, %v2851_v59  ;;  %v2914_v60 = vrot.slane %v2786_v5, 7  ;;  %v2855_v25 = vsel %vm8473_vm1, %v2853_v55, %v2854_v16  ;;  %v8545_v59 = vpop.f32.mrf.mxu0 }
 0x1b9   : > { %v8533_v3 = vld [vmem:[%s8891_s2] ss:$0 sm:$0xff]  ;;  %v2857_v28 = vrot.slane %v2767_v4, 7  ;;  %2986 = vst [vmem:[#allocation2 + $0xb0] sm:$0xf] %v2852_v27  ;;  %v2860_v58 = vrot.slane %v2768_v31, 7 }
 0x1ba   : > { %v4748_v50 = vadd.f32 %v8533_v3, %v8297_v2  ;;  %v2912_v29 = vsel %vm8473_vm1, %v2910_v46, %v2911_v18  ;;  %v2913_v11 = vrot.slane %v2911_v18, 4  ;;  %v8542_v14 = vld [vmem:[%s6776_s29 + $0x80] sm:$0xf]  ;;  %v2769_v63 = vld [vmem:[%s6776_s29 + $0x34] sm:$0xf]  ;;  %v2916_v4 = vrot.slane %v2914_v60, 4  ;;  %v4999_v18 = vpop.f32.mrf.mxu0 }
 0x1bb   : > { %v6620_v5 = vld [vmem:[#allocation2 + $0x4e0] ss:$36 sps:$4 sm:$0xff]   ;;  %2987 = vst [vmem:[#allocation2 + $0xd4] sm:$0xf] %v2855_v25  ;;  %3006 = vst [vmem:[#allocation2 + $0x380] sm:$0xf] %v2912_v29  ;;  %v2858_v23 = vsel %vm8473_vm1, %v2856_v44, %v2857_v28  ;;  %v4751_v0 = vadd.f32 %v8533_v3, %v8320_v49  ;;  %v4756_v46 = vadd.f32 %v8533_v3, %v8346_v22 }
 0x1bc   : > { %v6622_v2 = vld [vmem:[#allocation2 + $0x4e4] ss:$36 sps:$4 sm:$0xff]   ;;  %v8548_v16 = vadd.f32 %v8305_v43, %v4748_v50  ;;  %v2915_v26 = vsel %vm8473_vm1, %v2913_v11, %v2914_v60  ;;  %2988 = vst [vmem:[#allocation2 + $0xf8] sm:$0xf] %v2858_v23  ;;  %v2770_v6 = vld [vmem:[%s6776_s29 + $0x38] sm:$0xf]  ;;  %v4759_v43 = vadd.f32 %v8533_v3, %v8368_v9  ;;  %v4764_v44 = vadd.f32 %v8533_v3, %v8394_v42 }
 0x1bd   : > { %v6623_v51 = vld [vmem:[#allocation2 + $0x20] ss:$36 sps:$4 sm:$0xff]   ;;  %v8559_v55 = vld [vmem:[%s6776_s29 + $0x88] sm:$0xf]  ;;  %5308 = vmatprep.mubr.bf16.mxu1 %v6622_v2  ;;  %3007 = vst [vmem:[#allocation2 + $0x3a4] sm:$0xf] %v2915_v26  ;;  %v8569_v50 = vadd.f32 %v8328_v35, %v4751_v0  ;;  %v8572_v9 = vadd.f32 %v8356_v39, %v4756_v46  ;;  %v4767_v39 = vadd.f32 %v8533_v3, %v8417_v30 }
 0x1be   : > { %v2789_v31 = vld [vmem:[%s6776_s29 + $0x84] sm:$0xf]  ;;  %v2859_v49 = vrot.slane %v2857_v28, 4  ;;  %v2917_v27 = vrot.slane %v2787_v56, 7  ;;  %v2920_v60 = vrot.slane %v8542_v14, 7  ;;  %5309 = vmatmul.mubr.bf16.gmra.mxu1 %v6620_v5  ;;  %6284 = vmatprep.mubr.bf16.mxu0 %v6623_v51  ;;  %v2862_v25 = vrot.slane %v2860_v58, 4  ;;  %v8577_v28 = vpop.f32.mrf.mxu0 }
 0x1bf   : > { %v6624_v22 = vld [vmem:[#allocation2 + $0x2f0] ss:$36 sps:$4 sm:$0xff]   ;;  %v2863_v29 = vrot.slane %v2769_v63, 7  ;;  %v8575_v42 = vadd.f32 %v8372_v36, %v4759_v43  ;;  %v6625_v56 = vld [vmem:[#allocation2 + $0x68] ss:$36 sps:$4 sm:$0xff]   ;;  %v8585_v63 = vadd.f32 %v8396_v24, %v4764_v44  ;;  %v4772_v24 = vadd.f32 %v8533_v3, %v8439_v48 }
 0x1c0   : > { %v2861_v35 = vsel %vm8473_vm1, %v2859_v49, %v2860_v58  ;;  %v2918_v11 = vsel %vm8473_vm1, %v2916_v4, %v2917_v27  ;;  %v2771_v14 = vld [vmem:[%s6776_s29 + $0x3c] sm:$0xf]  ;;  %6304 = vmatprep.mubr.bf16.mxu1 %v6624_v22  ;;  %v2919_v5 = vrot.slane %v2917_v27, 4  ;;  %v2772_v23 = vld [vmem:[%s6776_s29 + $0x40] sm:$0xf]  ;;  %v5002_v51 = vpop.f32.mrf.mxu0  ;;  %6285 = vmatmul.mubr.bf16.vlgmr.msra.gmra.mxu0 %v6625_v56  ;;  %v2866_v30 = vrot.slane %v2770_v6, 7 }
 0x1c1   : > { %v6626_v36 = vld [vmem:[#allocation2 + $0x338] ss:$36 sps:$4 sm:$0xff]   ;;  %2989 = vst [vmem:[#allocation2 + $0x11c] sm:$0xf] %v2861_v35  ;;  %3008 = vst [vmem:[#allocation2 + $0x3c8] sm:$0xf] %v2918_v11  ;;  %v2864_v2 = vsel %vm8473_vm1, %v2862_v25, %v2863_v29  ;;  %v8605_v27 = vadd.f32 %v8419_v32, %v4767_v39  ;;  %v8608_v48 = vadd.f32 %v8432_v10, %v4772_v24  ;;  %v5174_v11 = vpop.f32.mrf.mxu1 }
 0x1c2   : > { %v2865_v58 = vrot.slane %v2863_v29, 4  ;;  %v2791_v0 = vld [vmem:[%s6776_s29 + $0x8c] sm:$0xf]  ;;  %v8594_v4 = vld [vmem:[%s6776_s29 + $0x90] sm:$0xf]  ;;  %v2922_v26 = vrot.slane %v2920_v60, 4  ;;  %v2921_v49 = vsel %vm8473_vm1, %v2919_v5, %v2920_v60  ;;  %v4775_v6 = vadd.f32 %v8533_v3, %v8466_v19 }
 0x1c3   : > { %2990 = vst [vmem:[#allocation2 + $0x140] sm:$0xf] %v2864_v2  ;;  %v2923_v46 = vrot.slane %v2789_v31, 7  ;;  %v2926_v43 = vrot.slane %v8559_v55, 7  ;;  %v8600_v44 = vld [vmem:[%s6776_s29 + $0x44] sm:$0xf]  ;;  %v4780_v35 = vadd.f32 %v8533_v3, %v8485_v54 }
 0x1c4   : > { %v6627_v18 = vld [vmem:[#allocation2 + $0xb0] ss:$36 sps:$4 sm:$0xff]   ;;  %3009 = vst [vmem:[#allocation2 + $0x3ec] sm:$0xf] %v2921_v49  ;;  %v2867_v31 = vsel %vm8473_vm1, %v2865_v58, %v2866_v30  ;;  %v2868_v55 = vrot.slane %v2866_v30, 4  ;;  %v2869_v10 = vrot.slane %v2771_v14, 7  ;;  %v8619_v19 = vadd.f32 %v8456_v53, %v4775_v6 }
 0x1c5   : > { %v2924_v22 = vsel %vm8473_vm1, %v2922_v26, %v2923_v46  ;;  %v2925_v25 = vrot.slane %v2923_v46, 4  ;;  %v2774_v60 = vld [vmem:[%s6776_s29 + $0x48] sm:$0xf]  ;;  %6288 = vmatprep.mubr.bf16.mxu0 %v6627_v18  ;;  %v6628_v32 = vld [vmem:[#allocation2 + $0x380] ss:$36 sps:$4 sm:$0xff]   ;;  %v2928_v29 = vrot.slane %v2926_v43, 4  ;;  %v5176_v26 = vpop.f32.mrf.mxu1  ;;  %v5005_v46 = vpop.f32.mrf.mxu0 }
 0x1c6   : > { %2991 = vst [vmem:[#allocation2 + $0x164] sm:$0xf] %v2867_v31  ;;  %3010 = vst [vmem:[#allocation2 + $0x410] sm:$0xf] %v2924_v22  ;;  %v2793_v56 = vld [vmem:[%s6776_s29 + $0x94] sm:$0xf]  ;;  %6305 = vmatmul.mubr.bf16.vlgmr.msra.gmra.mxu1 %v6626_v36  ;;  %v2870_v14 = vsel %vm8473_vm1, %v2868_v55, %v2869_v10  ;;  %v8636_v36 = vadd.f32 %v8478_v45, %v4780_v35 }
 0x1c7   : > { %v2927_v39 = vsel %vm8473_vm1, %v2925_v25, %v2926_v43  ;;  %v2872_v5 = vrot.slane %v2772_v23, 7  ;;  %v2929_v2 = vrot.slane %v2791_v0, 7  ;;  %v2932_v58 = vrot.slane %v8594_v4, 7  ;;  %v8627_v24 = vld [vmem:[%s6776_s29 + $0x98] sm:$0xf]  ;;  %6308 = vmatprep.mubr.bf16.mxu1 %v6628_v32  ;;  %v5177_v45 = vpop.f32.mrf.mxu1  ;;  %v5007_v22 = vpop.f32.mrf.mxu0 }
 0x1c8   : > { %3011 = vst [vmem:[#allocation2 + $0x434] sm:$0xf] %v2927_v39  ;;  %v2871_v53 = vrot.slane %v2869_v10, 4  ;;  %v2875_v51 = vrot.slane %v8600_v44, 7  ;;  %v2878_v30 = vrot.slane %v2774_v60, 7  ;;  %v4783_v4 = vadd.f32 %v8533_v3, %v8510_v34 }
 0x1c9   : > { %v2775_v54 = vld [vmem:[%s6776_s29 + $0x4c] sm:$0xf]  ;;  %v6629_v23 = vld [vmem:[#allocation2 + $0xf8] ss:$36 sps:$4 sm:$0xff]   ;;  %2992 = vst [vmem:[#allocation2 + $0x188] sm:$0xf] %v2870_v14  ;;  %v2930_v0 = vsel %vm8473_vm1, %v2928_v29, %v2929_v2  ;;  %v4998_v43 = vadd.f32 %v8545_v59, %v7762_v33  ;;  %v5008_v14 = vpop.f32.mrf.mxu0 }
 0x1ca   : > { %v2873_v44 = vsel %vm8473_vm1, %v2871_v53, %v2872_v5  ;;  %v2931_v18 = vrot.slane %v2929_v2, 4  ;;  %3012 = vst [vmem:[#allocation2 + $0x458] sm:$0xf] %v2930_v0  ;;  %v2874_v49 = vrot.slane %v2872_v5, 4  ;;  %v2877_v6 = vrot.slane %v2875_v51, 4  ;;  %6289 = vmatmul.mubr.bf16.gmra.mxu0 %v6629_v23  ;;  %v5179_v2 = vpop.f32.mrf.mxu1 }
 0x1cb   : > { %v2776_v31 = vld [vmem:[%s6776_s29 + $0x50] sm:$0xf]  ;;  %v2795_v55 = vld [vmem:[%s6776_s29 + $0x9c] sm:$0xf]  ;;  %2993 = vst [vmem:[#allocation2 + $0x1ac] sm:$0xf] %v2873_v44  ;;  %v8659_v53 = vadd.f32 %v8501_v37, %v4783_v4  ;;  %v5010_v44 = vpop.f32.mrf.mxu0 }
 0x1cc   : > { %v2880_v34 = vrot.slane %v2878_v30, 4  ;;  %v2934_v3 = vrot.slane %v2932_v58, 4  ;;  %v2935_v25 = vrot.slane %v2793_v56, 7  ;;  %v2938_v33 = vrot.slane %v8627_v24, 7  ;;  %v2796_v59 = vld [vmem:[%s6776_s29 + $0xa0] sm:$0x7]  ;;  %v5182_v22 = vpop.f32.mrf.mxu1 }
 0x1cd   : > { %v2777_v60 = vld [vmem:[%s6776_s29 + $0x54] sm:$0xf]  ;;  %v2778_v32 = vld [vmem:[%s6776_s29 + $0x58] sm:$0xf]  ;;  %v6630_v29 = vld [vmem:[#allocation2 + $0x3c8] ss:$36 sps:$4 sm:$0xff]   ;;  %v2933_v10 = vsel %vm8473_vm1, %v2931_v18, %v2932_v58  ;;  %v2876_v35 = vsel %vm8473_vm1, %v2874_v49, %v2875_v51  ;;  %v2879_v39 = vsel %vm8473_vm1, %v2877_v6, %v2878_v30  ;;  %v8661_v58 = vadd.f32 %v5174_v11, %v4998_v43 }
 0x1ce   : > { %v2881_v5 = vrot.slane %v2775_v54, 7  ;;  %v6631_v56 = vld [vmem:[#allocation2 + $0x140] ss:$36 sps:$4 sm:$0xff]   ;;  %3013 = vst [vmem:[#allocation2 + $0x47c] sm:$0xf] %v2933_v10  ;;  %v2936_v24 = vsel %vm8473_vm1, %v2934_v3, %v2935_v25  ;;  %v5001_v51 = vadd.f32 %v8577_v28, %v7766_v57  ;;  %v2937_v30 = vrot.slane %v2935_v25, 4  ;;  %6309 = vmatmul.mubr.bf16.gmra.mxu1 %v6630_v29 }
 0x1cf   : > { %2994 = vst [vmem:[#allocation2 + $0x1d0] sm:$0xf] %v2876_v35  ;;  %2995 = vst [vmem:[#allocation2 + $0x1f4] sm:$0xf] %v2879_v39  ;;  %v2940_v54 = vrot.slane %v2938_v33, 4  ;;  %6292 = vmatprep.mubr.bf16.mxu0 %v6631_v56  ;;  %v2884_v49 = vrot.slane %v2776_v31, 7  ;;  %v5006_v11 = vadd.f32 %v5005_v46, %v7818_v47 }
 0x1d0   : > { %3014 = vst [vmem:[#allocation2 + $0x4a0] sm:$0xf] %v2936_v24  ;;  %v2882_v26 = vsel %vm8473_vm1, %v2880_v34, %v2881_v5  ;;  %v2883_v23 = vrot.slane %v2881_v5, 4  ;;  %v2779_v0 = vld [vmem:[%s6776_s29 + $0x5c] sm:$0xf]  ;;  %v2941_v37 = vrot.slane %v2795_v55, 7  ;;  %v8668_v4 = vadd.f32 %v5177_v45, %v5001_v51  ;;  %v5013_v5 = vpop.f32.mrf.mxu0 }
 0x1d1   : > { %v6632_v18 = vld [vmem:[#allocation2 + $0x410] ss:$36 sps:$4 sm:$0xff]   ;;  %2996 = vst [vmem:[#allocation2 + $0x218] sm:$0xf] %v2882_v26  ;;  %v2939_v57 = vsel %vm8473_vm1, %v2937_v30, %v2938_v33  ;;  %v2944_v28 = vrot.slane %v2796_v59, 7  ;;  %v2887_v43 = vrot.slane %v2777_v60, 7  ;;  %v8677_v25 = vadd.f32 %v5182_v22, %v5006_v11  ;;  %v5184_v33 = vpop.f32.mrf.mxu1 }
 0x1d2   : > { %v2890_v6 = vrot.slane %v2778_v32, 7  ;;  %6312 = vmatprep.mubr.bf16.mxu1 %v6632_v18  ;;  %3015 = vst [vmem:[#allocation2 + $0x4c4] sm:$0xf] %v2939_v57  ;;  %v2885_v34 = vsel %vm8473_vm1, %v2883_v23, %v2884_v49  ;;  %v2942_v31 = vsel %vm8473_vm1, %v2940_v54, %v2941_v37  ;;  %v2943_v55 = vrot.slane %v2941_v37, 4  ;;  %v6633_v3 = vld [vmem:[#allocation2 + $0x188] ss:$36 sps:$4 sm:$0xff]   ;;  %v5015_v30 = vpop.f32.mrf.mxu0 }
 0x1d3   : > { %v2886_v45 = vrot.slane %v2884_v49, 4  ;;  %2997 = vst [vmem:[#allocation2 + $0x23c] sm:$0xf] %v2885_v34  ;;  %3016 = vst [vmem:[#allocation2 + $0x4e8] sm:$0xf] %v2942_v31  ;;  %v2889_v47 = vrot.slane %v2887_v43, 4  ;;  %v5009_v59 = vadd.f32 %v5008_v14, %v7826_v38  ;;  %6293 = vmatmul.mubr.bf16.gmra.mxu0 %v6633_v3  ;;  %v5185_v39 = vpop.f32.mrf.mxu1  ;;  %v5014_v56 = vadd.f32 %v5013_v5, %v7890_v7 }
 0x1d4   : > { %v2892_v46 = vrot.slane %v2890_v6, 4  ;;  %v2945_v60 = vsel %vm8473_vm1, %v2943_v55, %v2944_v28  ;;  %v2893_v29 = vrot.slane %v2779_v0, 7  ;;  %v5016_v23 = vpop.f32.mrf.mxu0  ;;  %v8922_v30 = vld [vmem:[#allocation3_spill] sm:$0xff]  ;;  %s216_s29 = smul.u32 36, %s6657_s12 }
 0x1d5   : > { %v2888_v32 = vsel %vm8473_vm1, %v2886_v45, %v2887_v43  ;;  %v6634_v10 = vld [vmem:[#allocation2 + $0x458] ss:$36 sps:$4 sm:$0xff]   ;;  %3017 = vst [vmem:[#allocation2 + $0x50c] sm:$0xf] %v2945_v60  ;;  %v2891_v35 = vsel %vm8473_vm1, %v2889_v47, %v2890_v6  ;;  %v8688_v14 = vadd.f32 %v5185_v39, %v5009_v59  ;;  %v5187_v51 = vpop.f32.mrf.mxu1  ;;  %v5017_v44 = vadd.f32 %v5016_v23, %v7893_v12 }
 0x1d6   : > { %2998 = vst [vmem:[#allocation2 + $0x260] sm:$0xf] %v2888_v32  ;;  %v6635_v2 = vld [vmem:[#allocation2 + $0x1d0] ss:$36 sps:$4 sm:$0xff]   ;;  %2999 = vst [vmem:[#allocation2 + $0x284] sm:$0xf] %v2891_v35  ;;  %v2894_v38 = vsel %vm8473_vm1, %v2892_v46, %v2893_v29  ;;  %6313 = vmatmul.mubr.bf16.gmra.mxu1 %v6634_v10  ;;  %v5018_v18 = vpop.f32.mrf.mxu0 }
 0x1d7   : > { %v2895_v24 = vrot.slane %v2893_v29, 4  ;;  %3000 = vst [vmem:[#allocation2 + $0x2a8] sm:$0xf] %v2894_v38  ;;  %6296 = vmatprep.mubr.bf16.mxu0 %v6635_v2  ;;  %v5190_v7 = vpop.f32.mrf.mxu1  ;;  %p217_p5 = scmp.lt.s32.totalorder %s216_s29, 71 }
 0x1d8   : > { %v8696_v11 = vadd.f32 %v5190_v7, %v5014_v56  ;;  %v5021_v28 = vpop.f32.mrf.mxu0 }
 0x1d9   : > { %v6636_v54 = vld [vmem:[#allocation2 + $0x4a0] ss:$36 sps:$4 sm:$0xff]   ;;  %v2897_v26 = vsel %vm8473_vm1, %v2895_v24, %v2896_v13  ;;  %v5192_v57 = vpop.f32.mrf.mxu1  ;;  %v5022_v41 = vadd.f32 %v5021_v28, %v7956_v40  ;;  %s8950_s29 = smov (!%p217_p5, %s216_s29), 71 }
 0x1da   : > { %v6637_v0 = vld [vmem:[#allocation2 + $0x218] ss:$36 sps:$4 sm:$0xff]   ;;  %3001 = vst [vmem:[#allocation2 + $0x2cc] sm:$0xf] %v2897_v26  ;;  %6316 = vmatprep.mubr.bf16.mxu1 %v6636_v54  ;;  %v5023_v6 = vpop.f32.mrf.mxu0  ;;  %s5820_s12 = sshll.u32 %s8950_s29, 2 }
 0x1db   : > { %6297 = vmatmul.mubr.bf16.gmra.mxu0 %v6637_v0  ;;  %v5193_v20 = vpop.f32.mrf.mxu1  ;;  %s8812_s17 = scalar_lea.vmem %s8892_s3, %s5820_s12 }
 0x1dc   : > { %v6638_v49 = vld [vmem:[#allocation2 + $0x4e8] ss:$36 sps:$4 sm:$0xff]   ;;  %v8699_v43 = vadd.f32 %v5193_v20, %v5017_v44  ;;  %v5024_v22 = vpop.f32.mrf.mxu0  ;;  %v8924_v20 = vld [vmem:[#allocation5_spill] sm:$0xff] }
 0x1dd   : > { %v6639_v37 = vld [vmem:[#allocation2 + $0x260] ss:$36 sps:$4 sm:$0xff]   ;;  %v5195_v12 = vpop.f32.mrf.mxu1  ;;  %v5025_v34 = vadd.f32 %v5024_v22, %v7963_v1 }
 0x1de   : > { %6300 = vmatprep.mubr.bf16.mxu0 %v6639_v37  ;;  %6317 = vmatmul.mubr.bf16.gmra.mxu1 %v6638_v49  ;;  %v5026_v31 = vpop.f32.mrf.mxu0  ;;  %v8923_v49 = vld [vmem:[#allocation4_spill] sm:$0xff] }
 0x1df   : > { %v5198_v55 = vpop.f32.mrf.mxu1 }
 0x1e0   : > { %v8702_v45 = vadd.f32 %v5198_v55, %v5022_v41  ;;  %v5029_v47 = vpop.f32.mrf.mxu0 }
 0x1e1   : > { %v6640_v13 = vld [vmem:[#allocation2 + $0x2a8] ss:$36 sps:$4 sm:$0xff]   ;;  %v5200_v3 = vpop.f32.mrf.mxu1  ;;  %v5030_v46 = vadd.f32 %v5029_v47, %v8030_v21 }
 0x1e2   : > { %v5031_v40 = vpop.f32.mrf.mxu0  ;;  %v8925_v3 = vld [vmem:[#allocation6_spill] sm:$0xff] }
 0x1e3   : > { %6301 = vmatmul.mubr.bf16.gmra.mxu0 %v6640_v13  ;;  %v5201_v33 = vpop.f32.mrf.mxu1 }
 0x1e4   : > { %v8705_v59 = vadd.f32 %v5201_v33, %v5025_v34  ;;  %v5032_v32 = vpop.f32.mrf.mxu0 }
 0x1e5   : > { %v5203_v60 = vpop.f32.mrf.mxu1  ;;  %v5033_v29 = vadd.f32 %v5032_v32, %v8033_v62 }
 0x1e6   : > { %v5034_v10 = vpop.f32.mrf.mxu0  ;;  %v8926_v60 = vld [vmem:[#allocation7_spill] sm:$0xff] }
 0x1e7   : > { %v5206_v35 = vpop.f32.mrf.mxu1 }
 0x1e8   : > { %v8708_v1 = vadd.f32 %v5206_v35, %v5030_v46  ;;  %v5037_v5 = vpop.f32.mrf.mxu0 }
 0x1e9   : > { %v5208_v39 = vpop.f32.mrf.mxu1  ;;  %v5038_v38 = vadd.f32 %v5037_v5, %v8047_v52 }
 0x1ea   : > { %v5039_v21 = vpop.f32.mrf.mxu0 }
 0x1eb   : > { %v5209_v2 = vpop.f32.mrf.mxu1  ;;  %v8927_v21 = vld [vmem:[#allocation8_spill] sm:$0xff] }
 0x1ec   : > { %v8711_v56 = vadd.f32 %v5209_v2, %v5033_v29  ;;  %v5040_v51 = vpop.f32.mrf.mxu0 }
 0x1ed   : > { %v5211_v24 = vpop.f32.mrf.mxu1  ;;  %v5041_v54 = vadd.f32 %v5040_v51, %v8922_v30 }
 0x1ee   : > { %v5042_v26 = vpop.f32.mrf.mxu0 }
 0x1ef   : > { %v5214_v23 = vpop.f32.mrf.mxu1  ;;  %v8928_v26 = vld [vmem:[#allocation9_spill] sm:$0xff] }
 0x1f0   : > { %v8714_v0 = vadd.f32 %v5214_v23, %v5038_v38  ;;  %v5045_v18 = vpop.f32.mrf.mxu0 }
 0x1f1   : > { %v5216_v62 = vpop.f32.mrf.mxu1  ;;  %v5046_v37 = vadd.f32 %v5045_v18, %v8923_v49 }
 0x1f2   : > { %v5047_v52 = vpop.f32.mrf.mxu0 }
 0x1f3   : > { %v5217_v44 = vpop.f32.mrf.mxu1  ;;  %v8930_v52 = vld [vmem:[#allocation10_spill] sm:$0xff] }
 0x1f4   : > { %v8716_v7 = vadd.f32 %v5217_v44, %v5041_v54  ;;  %v5048_v28 = vpop.f32.mrf.mxu0 }
 0x1f5   : > { %v5219_v57 = vpop.f32.mrf.mxu1  ;;  %v5049_v41 = vadd.f32 %v5048_v28, %v8924_v20 }
 0x1f6   : > { %v5050_v13 = vpop.f32.mrf.mxu0 }
 0x1f7   : > { %v5222_v6 = vpop.f32.mrf.mxu1 }
 0x1f8   : > { %v8720_v12 = vadd.f32 %v5222_v6, %v5046_v37 }
 0x1f9   : > { %v5224_v22 = vpop.f32.mrf.mxu1 }
 0x1fa   : > { %v5053_v31 = vpop.f32.mrf.mxu0  ;;  %v8932_v22 = vld [vmem:[#allocation11_spill] sm:$0xff] }
 0x1fb   : > { %v5225_v34 = vpop.f32.mrf.mxu1  ;;  %v5054_v47 = vadd.f32 %v5053_v31, %v8925_v3 }
 0x1fc   : > { %v8722_v55 = vadd.f32 %v5225_v34, %v5049_v41  ;;  %v5055_v33 = vpop.f32.mrf.mxu0 }
 0x1fd   : > { %v5227_v46 = vpop.f32.mrf.mxu1 }
 0x1fe   : > { %v5056_v40 = vpop.f32.mrf.mxu0 }
 0x1ff   : > { %v5057_v32 = vadd.f32 %v5056_v40, %v8926_v60 }
 0x200   : > { %v5058_v29 = vpop.f32.mrf.mxu0 }
 0x201   : > { %v5230_v10 = vpop.f32.mrf.mxu1 }
 0x202   : > { %v8726_v35 = vadd.f32 %v5230_v10, %v5054_v47 }
 0x203   : > { %v5232_v39 = vpop.f32.mrf.mxu1 }
 0x205   : > { %v5233_v5 = vpop.f32.mrf.mxu1 }
 0x206   : > { %v5061_v2 = vpop.f32.mrf.mxu0  ;;  %v8728_v38 = vadd.f32 %v5233_v5, %v5057_v32  ;;  %v8935_v32 = vld [vmem:[#allocation12_spill] sm:$0xff] }
 0x207   : > { %v5062_v24 = vadd.f32 %v5061_v2, %v8927_v21  ;;  %v5235_v51 = vpop.f32.mrf.mxu1  ;;  %v8936_v2 = vld [vmem:[#allocation13_spill] sm:$0xff] }
 0x208   : > { %v5063_v30 = vpop.f32.mrf.mxu0 }
 0x20a   : > { %v5064_v54 = vpop.f32.mrf.mxu0 }
 0x20b   : > { %v5065_v23 = vadd.f32 %v5064_v54, %v8928_v26 }
 0x20c   : > { %v5066_v62 = vpop.f32.mrf.mxu0 }
 0x20d   : > { %v5238_v44 = vpop.f32.mrf.mxu1 }
 0x20e   : > { %v8732_v18 = vadd.f32 %v5238_v44, %v5062_v24 }
 0x20f   : > { %v5240_v49 = vpop.f32.mrf.mxu1 }
 0x210   : > { %8929 = vst [vmem:[#allocation3_spill] sm:$0xff] %v8732_v18 }
 0x211   : > { %v5241_v57 = vpop.f32.mrf.mxu1 }
 0x212   : > { %v5069_v37 = vpop.f32.mrf.mxu0  ;;  %v8735_v20 = vadd.f32 %v5241_v57, %v5065_v23 }
 0x213   : > { %v5070_v28 = vadd.f32 %v5069_v37, %v8930_v52  ;;  %v5243_v13 = vpop.f32.mrf.mxu1 }
 0x214   : > { %8931 = vst [vmem:[#allocation4_spill] sm:$0xff] %v8735_v20  ;;  %v5071_v41 = vpop.f32.mrf.mxu0 }
 0x216   : > { %v5072_v6 = vpop.f32.mrf.mxu0 }
 0x217   : > { %v5073_v34 = vadd.f32 %v5072_v6, %v8932_v22 }
 0x218   : > { %v5074_v31 = vpop.f32.mrf.mxu0 }
 0x219   : > { %v5246_v3 = vpop.f32.mrf.mxu1 }
 0x21a   : > { %v8738_v47 = vadd.f32 %v5246_v3, %v5070_v28 }
 0x21b   : > { %v5248_v46 = vpop.f32.mrf.mxu1 }
 0x21c   : > { %8933 = vst [vmem:[#allocation5_spill] sm:$0xff] %v8738_v47 }
 0x21d   : > { %v5249_v33 = vpop.f32.mrf.mxu1 }
 0x21e   : > { %v5077_v40 = vpop.f32.mrf.mxu0  ;;  %v8740_v60 = vadd.f32 %v5249_v33, %v5073_v34 }
 0x21f   : > { %v5078_v29 = vadd.f32 %v5077_v40, %v8935_v32  ;;  %v5251_v10 = vpop.f32.mrf.mxu1 }
 0x220   : > { %8934 = vst [vmem:[#allocation6_spill] sm:$0xff] %v8740_v60  ;;  %v5079_v39 = vpop.f32.mrf.mxu0 }
 0x222   : > { %v5080_v5 = vpop.f32.mrf.mxu0 }
 0x223   : > { %v5081_v21 = vadd.f32 %v5080_v5, %v8936_v2 }
 0x224   : > { %v5082_v24 = vpop.f32.mrf.mxu0 }
 0x226   : > { %v5254_v51 = vpop.f32.mrf.mxu1 }
 0x227   : > { %v8744_v30 = vadd.f32 %v5254_v51, %v5078_v29 }
 0x228   : > { %v5256_v54 = vpop.f32.mrf.mxu1 }
 0x22a   : > { %v5257_v26 = vpop.f32.mrf.mxu1  ;;  %v5085_v23 = vpop.f32.mrf.mxu0 }
 0x22b   : > { %v8746_v62 = vadd.f32 %v5257_v26, %v5081_v21  ;;  %v5086_v44 = vadd.f32 %v5085_v23, %v8444_v61 }
 0x22c   : > { %v5259_v49 = vpop.f32.mrf.mxu1  ;;  %v5087_v37 = vpop.f32.mrf.mxu0 }
 0x22e   : > { %v5088_v57 = vpop.f32.mrf.mxu0 }
 0x22f   : > { %v5089_v52 = vadd.f32 %v5088_v57, %v8469_v8 }
 0x230   : > { %v5090_v28 = vpop.f32.mrf.mxu0 }
 0x234   : > { %v5262_v41 = vpop.f32.mrf.mxu1 }
 0x235   : > { %v8750_v13 = vadd.f32 %v5262_v41, %v5086_v44 }
 0x236   : > { %v5264_v6 = vpop.f32.mrf.mxu1  ;;  %v5093_v22 = vpop.f32.mrf.mxu0 }
 0x237   : > { %v5094_v34 = vadd.f32 %v5093_v22, %v8508_v17 }
 0x238   : > { %v5265_v31 = vpop.f32.mrf.mxu1  ;;  %v5095_v3 = vpop.f32.mrf.mxu0 }
 0x239   : > { %v8753_v46 = vadd.f32 %v5265_v31, %v5089_v52 }
 0x23a   : > { %v5267_v33 = vpop.f32.mrf.mxu1  ;;  %v5096_v40 = vpop.f32.mrf.mxu0 }
 0x23b   : > { %v5097_v61 = vadd.f32 %v5096_v40, %v8516_v15 }
 0x23c   : > { %v5098_v32 = vpop.f32.mrf.mxu0 }
 0x23e   : > { %v5270_v29 = vpop.f32.mrf.mxu1 }
 0x23f   : > { %v8756_v10 = vadd.f32 %v5270_v29, %v5094_v34 }
 0x240   : > { %v5272_v8 = vpop.f32.mrf.mxu1 }
 0x242   : > { %v5101_v39 = vpop.f32.mrf.mxu0  ;;  %v5273_v5 = vpop.f32.mrf.mxu1 }
 0x243   : > { %v8759_v2 = vadd.f32 %v5101_v39, %v8548_v16  ;;  %v8761_v21 = vadd.f32 %v5273_v5, %v5097_v61 }
 0x244   : > { %v5103_v17 = vpop.f32.mrf.mxu0  ;;  %v5275_v24 = vpop.f32.mrf.mxu1 }
 0x246   : > { %v5104_v51 = vpop.f32.mrf.mxu0 }
 0x247   : > { %v8764_v54 = vadd.f32 %v5104_v51, %v8569_v50 }
 0x248   : > { %v5106_v26 = vpop.f32.mrf.mxu0 }
 0x24b   : > { %v8766_v15 = vpop.f32.mrf.mxu1 }
 0x24d   : > { %v5280_v23 = vpop.f32.mrf.mxu1 }
 0x24e   : > { %v5109_v44 = vpop.f32.mrf.mxu0 }
 0x24f   : > { %v8768_v49 = vpop.f32.mrf.mxu1  ;;  %v8771_v37 = vadd.f32 %v5109_v44, %v8572_v9 }
 0x250   : > { %v5111_v16 = vpop.f32.mrf.mxu0 }
 0x251   : > { %v5283_v57 = vpop.f32.mrf.mxu1 }
 0x252   : > { %v8773_v52 = vpop.f32.mrf.mxu0 }
 0x254   : > { %v5114_v28 = vpop.f32.mrf.mxu0 }
 0x257   : > { %v8775_v41 = vpop.f32.mrf.mxu1 }
 0x259   : > { %v5288_v6 = vpop.f32.mrf.mxu1 }
 0x25b   : > { %v8777_v50 = vpop.f32.mrf.mxu1  ;;  %v8779_v22 = vpop.f32.mrf.mxu0 }
 0x25d   : > { %v5291_v34 = vpop.f32.mrf.mxu1  ;;  %v5119_v31 = vpop.f32.mrf.mxu0 }
 0x25f   : > { %v8781_v3 = vpop.f32.mrf.mxu0 }
 0x261   : > { %v5122_v33 = vpop.f32.mrf.mxu0 }
 0x264   : > { %v8783_v9 = vpop.f32.mrf.mxu1 }
 0x266   : > { %v5296_v40 = vpop.f32.mrf.mxu1 }
 0x267   : > { %v8787_v32 = vpop.f32.mrf.mxu0 }
 0x268   : > { %v8785_v61 = vpop.f32.mrf.mxu1 }
 0x269   : > { %v5127_v8 = vpop.f32.mrf.mxu0 }
 0x26a   : > { %v5299_v29 = vpop.f32.mrf.mxu1 }
 0x26b   : > { %v8789_v39 = vpop.f32.mrf.mxu0 }
 0x26d   : > { %v5130_v5 = vpop.f32.mrf.mxu0 }
 0x270   : > { %v8791_v17 = vpop.f32.mrf.mxu1 }
 0x272   : > { %v5304_v24 = vpop.f32.mrf.mxu1 }
 0x274   : > { %v8793_v51 = vpop.f32.mrf.mxu1  ;;  %v8795_v26 = vpop.f32.mrf.mxu0 }
 0x275   : > { %8937 = vst [vmem:[#allocation7_spill] sm:$0xff] %v8793_v51 }
 0x276   : > { %v5307_v23 = vpop.f32.mrf.mxu1  ;;  %v5135_v44 = vpop.f32.mrf.mxu0 }
 0x278   : > { %v8798_v16 = vpop.f32.mrf.mxu0 }
 0x27a   : > { %v5138_v57 = vpop.f32.mrf.mxu0 }
 0x27e   : > { %v8800_v28 = vpop.f32.mrf.mxu1 }
 0x280   : > { %v5312_v6 = vpop.f32.mrf.mxu1  ;;  %v6286_v34 = vpop.f32.mrf.mxu0 }
 0x281   : > { %v5360_v29 = vadd.f32 %v6286_v34, %v8677_v25 }
 0x282   : > { %v8802_v31 = vpop.f32.mrf.mxu1  ;;  %v5351_v33 = vpop.f32.mrf.mxu0 }
 0x283   : > { %v5352_v24 = vadd.f32 %v5351_v33, %v8661_v58  ;;  %v5496_v57 = vmax.f32 %v5360_v29, 0.0 }
 0x284   : > { %v5315_v40 = vpop.f32.mrf.mxu1  ;;  %v6287_v8 = vpop.f32.mrf.mxu0 }
 0x285   : > { %v5363_v23 = vadd.f32 %v6287_v8, %v8688_v14  ;;  %v5494_v58 = vmax.f32 %v5352_v24, 0.0 }
 0x286   : > { %v6306_v5 = vpop.f32.mrf.mxu1  ;;  %v5354_v44 = vpop.f32.mrf.mxu0 }
 0x287   : > { %v5497_v60 = vmax.f32 %v5363_v23, 0.0  ;;  %v5355_v6 = vadd.f32 %v5354_v44, %v8668_v4  ;;  %v5440_v18 = vadd.f32 %v6306_v5, %v8750_v13 }
 0x288   : > { %v5431_v20 = vpop.f32.mrf.mxu1 }
 0x289   : > { %v6143_v34 = vpack.c.bf16 %v5497_v60, %v5496_v57  ;;  %v5495_v14 = vmax.f32 %v5355_v6, 0.0  ;;  %v5432_v40 = vadd.f32 %v5431_v20, %v8744_v30  ;;  %v5516_v23 = vmax.f32 %v5440_v18, 0.0 }
 0x28a   : > { %v6290_v25 = vpop.f32.mrf.mxu0  ;;  %v6307_v33 = vpop.f32.mrf.mxu1  ;;  %v5279_v30 = vadd.f32 %v8766_v15, %v8759_v2  ;;  %v5118_v2 = vadd.f32 %v8779_v22, %v8585_v63  ;;  %v5113_v22 = vadd.f32 %v8773_v52, %v8575_v42  ;;  %v5287_v42 = vadd.f32 %v8775_v41, %v8771_v37 }
 0x28b   : > { %v5443_v29 = vadd.f32 %v6307_v33, %v8753_v46  ;;  %6225 = vst [vmem:[%s8812_s17 + $0x8] sm:$0xff] %v6143_v34   ;;  %v6138_v4 = vpack.c.bf16 %v5495_v14, %v5494_v58  ;;  %v5376_v5 = vadd.f32 %v6290_v25, %v8702_v45  ;;  %v5514_v46 = vmax.f32 %v5432_v40, 0.0 }
 0x28c   : > { %v5367_v8 = vpop.f32.mrf.mxu0  ;;  %v5434_v13 = vpop.f32.mrf.mxu1  ;;  %v5282_v34 = vadd.f32 %v8768_v49, %v8764_v54  ;;  %v5121_v49 = vadd.f32 %v8781_v3, %v8605_v27 }
 0x28d   : > { %v5517_v44 = vmax.f32 %v5443_v29, 0.0  ;;  %v5435_v47 = vadd.f32 %v5434_v13, %v8746_v62  ;;  %6139 = vst [vmem:[%s8812_s17] sm:$0xff] %v6138_v4   ;;  %v5368_v24 = vadd.f32 %v5367_v8, %v8696_v11  ;;  %v5500_v18 = vmax.f32 %v5376_v5, 0.0 }
 0x28e   : > { %v6291_v51 = vpop.f32.mrf.mxu0  ;;  %v6310_v60 = vpop.f32.mrf.mxu1  ;;  %v5295_v5 = vadd.f32 %v8783_v9, %v5118_v2  ;;  %v5298_v52 = vadd.f32 %v8785_v61, %v5121_v49  ;;  %v5126_v61 = vadd.f32 %v8787_v32, %v8608_v48 }
 0x28f   : > { %v5379_v20 = vadd.f32 %v6291_v51, %v8705_v59  ;;  %v6193_v57 = vpack.c.bf16 %v5517_v44, %v5516_v23  ;;  %v5515_v6 = vmax.f32 %v5435_v47, 0.0  ;;  %v5456_v59 = vadd.f32 %v6310_v60, %v5279_v30 }
 0x290   : > { %v5370_v45 = vpop.f32.mrf.mxu0  ;;  %v5447_v25 = vpop.f32.mrf.mxu1  ;;  %v5498_v15 = vmax.f32 %v5368_v24, 0.0 }
 0x291   : > { %v5501_v62 = vmax.f32 %v5379_v20, 0.0  ;;  %v5371_v58 = vadd.f32 %v5370_v45, %v8699_v43  ;;  %6235 = vst [vmem:[%s8812_s17 + $0x58] sm:$0xff] %v6193_v57   ;;  %v6188_v11 = vpack.c.bf16 %v5515_v6, %v5514_v46  ;;  %v5448_v40 = vadd.f32 %v5447_v25, %v8756_v10 }
 0x292   : > { %v6311_v47 = vpop.f32.mrf.mxu1  ;;  %v5520_v4 = vmax.f32 %v5456_v59, 0.0  ;;  %v5290_v57 = vadd.f32 %v8777_v50, %v5113_v22 }
 0x293   : > { %v6153_v51 = vpack.c.bf16 %v5501_v62, %v5500_v18  ;;  %v5499_v33 = vmax.f32 %v5371_v58, 0.0  ;;  %v6294_v14 = vpop.f32.mrf.mxu0  ;;  %6234 = vst [vmem:[%s8812_s17 + $0x50] sm:$0xff] %v6188_v11   ;;  %v5459_v29 = vadd.f32 %v6311_v47, %v5282_v34  ;;  %v5518_v60 = vmax.f32 %v5448_v40, 0.0 }
 0x294   : > { %v5450_v8 = vpop.f32.mrf.mxu1  ;;  %v5392_v10 = vadd.f32 %v6294_v14, %v8714_v0  ;;  %v5303_v14 = vadd.f32 %v8791_v17, %v5126_v61 }
 0x295   : > { %6227 = vst [vmem:[%s8812_s17 + $0x18] sm:$0xff] %v6153_v51   ;;  %v6148_v43 = vpack.c.bf16 %v5499_v33, %v5498_v15  ;;  %v5383_v54 = vpop.f32.mrf.mxu0  ;;  %v5521_v13 = vmax.f32 %v5459_v29, 0.0  ;;  %v5451_v63 = vadd.f32 %v5450_v8, %v8761_v21  ;;  %v5129_v15 = vadd.f32 %v8789_v39, %v8619_v19 }
 0x296   : > { %v6314_v23 = vpop.f32.mrf.mxu1  ;;  %v5384_v27 = vadd.f32 %v5383_v54, %v8708_v1  ;;  %v5134_v1 = vadd.f32 %v8795_v26, %v8636_v36  ;;  %v5504_v6 = vmax.f32 %v5392_v10, 0.0 }
 0x297   : > { %6226 = vst [vmem:[%s8812_s17 + $0x10] sm:$0xff] %v6148_v43   ;;  %v6295_v44 = vpop.f32.mrf.mxu0  ;;  %v6203_v24 = vpack.c.bf16 %v5521_v13, %v5520_v4  ;;  %v5519_v20 = vmax.f32 %v5451_v63, 0.0  ;;  %v5472_v3 = vadd.f32 %v6314_v23, %v5295_v5  ;;  %v8938_v13 = vld [vmem:[#allocation7_spill] sm:$0xff] }
 0x298   : > { %v5463_v30 = vpop.f32.mrf.mxu1  ;;  %v5395_v21 = vadd.f32 %v6295_v44, %v8716_v7  ;;  %v5502_v7 = vmax.f32 %v5384_v27, 0.0  ;;  %v5311_v51 = vadd.f32 %v8800_v28, %v5134_v1  ;;  %v5306_v63 = vadd.f32 %v8938_v13, %v5129_v15 }
 0x299   : > { %v5386_v46 = vpop.f32.mrf.mxu0  ;;  %6237 = vst [vmem:[%s8812_s17 + $0x68] sm:$0xff] %v6203_v24   ;;  %v6198_v0 = vpack.c.bf16 %v5519_v20, %v5518_v60  ;;  %v5464_v62 = vadd.f32 %v5463_v30, %v5287_v42  ;;  %v5524_v50 = vmax.f32 %v5472_v3, 0.0  ;;  %v8939_v24 = vld [vmem:[#allocation5_spill] sm:$0xff] }
 0x29a   : > { %v5387_v9 = vadd.f32 %v5386_v46, %v8711_v56  ;;  %v5505_v45 = vmax.f32 %v5395_v21, 0.0  ;;  %v6315_v18 = vpop.f32.mrf.mxu1  ;;  %v5137_v56 = vadd.f32 %v8798_v16, %v8659_v53  ;;  %v8940_v46 = vld [vmem:[#allocation3_spill] sm:$0xff] }
 0x29b   : > { %v6298_v25 = vpop.f32.mrf.mxu0  ;;  %6236 = vst [vmem:[%s8812_s17 + $0x60] sm:$0xff] %v6198_v0   ;;  %v5475_v37 = vadd.f32 %v6315_v18, %v5298_v52  ;;  %v5522_v53 = vmax.f32 %v5464_v62, 0.0  ;;  %v8941_v52 = vld [vmem:[#allocation6_spill] sm:$0xff] }
 0x29c   : > { %v5503_v41 = vmax.f32 %v5387_v9, 0.0  ;;  %v6163_v58 = vpack.c.bf16 %v5505_v45, %v5504_v6  ;;  %v5466_v36 = vpop.f32.mrf.mxu1  ;;  %v5408_v2 = vadd.f32 %v6298_v25, %v8726_v35  ;;  %v5314_v35 = vadd.f32 %v8802_v31, %v5137_v56  ;;  %v8942_v45 = vld [vmem:[#allocation4_spill] sm:$0xff] }
 0x29d   : > { %v5399_v26 = vpop.f32.mrf.mxu0  ;;  %v5525_v34 = vmax.f32 %v5475_v37, 0.0  ;;  %v5467_v59 = vadd.f32 %v5466_v36, %v5290_v57 }
 0x29e   : > { %v6158_v11 = vpack.c.bf16 %v5503_v41, %v5502_v7  ;;  %6229 = vst [vmem:[%s8812_s17 + $0x28] sm:$0xff] %v6163_v58   ;;  %v6318_v48 = vpop.f32.mrf.mxu1  ;;  %v5400_v40 = vadd.f32 %v5399_v26, %v8720_v12  ;;  %v5508_v28 = vmax.f32 %v5408_v2, 0.0 }
 0x29f   : > { %v6299_v32 = vpop.f32.mrf.mxu0  ;;  %v6213_v16 = vpack.c.bf16 %v5525_v34, %v5524_v50  ;;  %v5523_v47 = vmax.f32 %v5467_v59, 0.0  ;;  %v5488_v43 = vadd.f32 %v6318_v48, %v5311_v51 }
 0x2a0   : > { %6228 = vst [vmem:[%s8812_s17 + $0x20] sm:$0xff] %v6158_v11   ;;  %v5411_v33 = vadd.f32 %v6299_v32, %v8728_v38  ;;  %v5479_v29 = vpop.f32.mrf.mxu1  ;;  %v5506_v22 = vmax.f32 %v5400_v40, 0.0 }
 0x2a1   : > { %v5402_v19 = vpop.f32.mrf.mxu0  ;;  %6239 = vst [vmem:[%s8812_s17 + $0x78] sm:$0xff] %v6213_v16   ;;  %v6208_v39 = vpack.c.bf16 %v5523_v47, %v5522_v53  ;;  %v5480_v54 = vadd.f32 %v5479_v29, %v5303_v14  ;;  %v5528_v23 = vmax.f32 %v5488_v43, 0.0 }
 0x2a2   : > { %v5509_v8 = vmax.f32 %v5411_v33, 0.0  ;;  %v6319_v49 = vpop.f32.mrf.mxu1  ;;  %v5403_v4 = vadd.f32 %v5402_v19, %v8722_v55 }
 0x2a3   : > { %v6302_v38 = vpop.f32.mrf.mxu0  ;;  %6238 = vst [vmem:[%s8812_s17 + $0x70] sm:$0xff] %v6208_v39   ;;  %v5491_v31 = vadd.f32 %v6319_v49, %v5314_v35  ;;  %v5526_v55 = vmax.f32 %v5480_v54, 0.0 }
 0x2a4   : > { %v6173_v17 = vpack.c.bf16 %v5509_v8, %v5508_v28  ;;  %v5507_v12 = vmax.f32 %v5403_v4, 0.0  ;;  %v5482_v5 = vpop.f32.mrf.mxu1  ;;  %v5424_v20 = vadd.f32 %v6302_v38, %v8939_v24 }
 0x2a5   : > { %v5415_v10 = vpop.f32.mrf.mxu0  ;;  %v5529_v44 = vmax.f32 %v5491_v31, 0.0  ;;  %v5483_v60 = vadd.f32 %v5482_v5, %v5306_v63 }
 0x2a6   : > { %6231 = vst [vmem:[%s8812_s17 + $0x38] sm:$0xff] %v6173_v17   ;;  %v6168_v27 = vpack.c.bf16 %v5507_v12, %v5506_v22  ;;  %v5416_v42 = vadd.f32 %v5415_v10, %v8940_v46  ;;  %v5512_v1 = vmax.f32 %v5424_v20, 0.0 }
 0x2a7   : > { %v6303_v3 = vpop.f32.mrf.mxu0  ;;  %v6223_v30 = vpack.c.bf16 %v5529_v44, %v5528_v23  ;;  %v5527_v21 = vmax.f32 %v5483_v60, 0.0 }
 0x2a8   : > { %v5427_v0 = vadd.f32 %v6303_v3, %v8941_v52  ;;  %6230 = vst [vmem:[%s8812_s17 + $0x30] sm:$0xff] %v6168_v27   ;;  %v5510_v25 = vmax.f32 %v5416_v42, 0.0 }
 0x2a9   : > { %v5418_v9 = vpop.f32.mrf.mxu0  ;;  %6241 = vst [vmem:[%s8812_s17 + $0x88] sm:$0xff] %v6223_v30   ;;  %v6218_v57 = vpack.c.bf16 %v5527_v21, %v5526_v55 }
 0x2aa   : > { %v5513_v6 = vmax.f32 %v5427_v0, 0.0  ;;  %v5419_v18 = vadd.f32 %v5418_v9, %v8942_v45 }
 0x2ab   : > { %6240 = vst [vmem:[%s8812_s17 + $0x80] sm:$0xff] %v6218_v57  }
 0x2ac   : > { %v6183_v7 = vpack.c.bf16 %v5513_v6, %v5512_v1  ;;  %v5511_v62 = vmax.f32 %v5419_v18, 0.0 }
 0x2ae   : > { %6233 = vst [vmem:[%s8812_s17 + $0x48] sm:$0xff] %v6183_v7   ;;  %v6178_v37 = vpack.c.bf16 %v5511_v62, %v5510_v25 }
 0x2b0   : > { %6232 = vst [vmem:[%s8812_s17 + $0x40] sm:$0xff] %v6178_v37  }
 0x2b1 PF: > { %s13_s14 = sadd.s32 1, %s6665_s14   ;;  %s8943_s12 = smov %s6661_s13 }
 0x2b2   : > { %p10_p6 = scmp.ge.s32.totalorder %s13_s14, 4   ;;  %s8944_s13 = smov %s8946_s15 }
 0x2b4   :  { %12 = sbr.rel (!%p10_p6) target bundleno = 2 (0x2), region = 68 }

// kernel: basic_block_forward.3
= control target key start
LH: loop header
LB: loop body
LE: loop exit
PB: predicated region body
PF: predicated region fallthrough
CT: control target
= control target key end

     0   :  { %s6966_s15 = smov 0   ;;  %s6968_s16 = smov 0   ;;  %s9326_s0 = inlined_call_operand.vmem [shape: bf16[672,128], index: 0, kind: input, shape index: {}]   ;;  %s9327_s1 = inlined_call_operand.vmem [shape: bf16[1152,128], index: 1, kind: input, shape index: {}]   ;;  %s9328_s2 = inlined_call_operand.vmem [shape: f32[1,128], index: 2, kind: input, shape index: {}]   ;;  %s9329_s3 = inlined_call_operand.vmem [shape: bf16[576,128], index: 3, kind: input, shape index: {}]   ;;  %s9330_s4 = inlined_call_operand.vmem [shape: bf16[576,128], index: 4, kind: output, shape index: {}]  }
   0x1   :  { %s6970_s17 = smov 0  }
   0x2 LB: > { %s26_s18 = sadd.s32 1, %s6934_s16  ;;  %p6001_p0 = scmp.ge.s32.totalorder %s6938_s17, 1  ;;  %s6938_s17 = sphi %s6970_s17, %s14_s17   ;;  %s6934_s16 = sphi %s6968_s16, %s9438_s16   ;;  %s6930_s15 = sphi %s6966_s15, %s9437_s15  }
   0x3   : > { %p28_p1 = scmp.ge.s32.totalorder %s26_s18, 2  ;;  %p210_p2 = scmp.lt.s32.totalorder %s6938_s17, 3 }
   0x5   : > { %s9440_s18 = smov (%p28_p1, %s26_s18), 0  ;;  %p211_p3 = pnand %p6001_p0, %p210_p2 }
   0x7   : > { %214 = sbr.rel (%p211_p3) target bundleno = 694 (0x2b6), region = 36 }
   0xc   : > { %v6634_v0 = vld [vmem:[%s9327_s1 + $0x38] sm:$0xff]   ;;  %v6940_v1 = vmov 0   ;;  %v6636_v3 = vld [vmem:[%s9327_s1 + $0x30] sm:$0xff]   ;;  %v6638_v5 = vld [vmem:[%s9327_s1 + $0x28] sm:$0xff]   ;;  %s254_s11 = smul.u32 42, %s6930_s15  ;;  %vm908_vm0 = vcmask 1042432  }
   0xd   : > { %4669 = vmatprep.subr.bf16.mxu0 %v6940_v1  ;;  %4846 = vmatprep.subr.bf16.mxu1 %v6940_v1  ;;  %v6635_v2 = vld [vmem:[%s9327_s1 + $0xb8] sm:$0xff]   ;;  %v6637_v4 = vld [vmem:[%s9327_s1 + $0xb0] sm:$0xff]   ;;  %v6639_v6 = vld [vmem:[%s9327_s1 + $0xa8] sm:$0xff]   ;;  %vm909_vm1 = vcmask 1046532   ;;  %vm395_vm2 = vsmask.f32 3328 }
   0xe   : > { %4670 = vmatpush1.bf16.msra.mxu0 %v6634_v0  ;;  %4847 = vmatpush1.bf16.msra.mxu1 %v6635_v2  ;;  %v6640_v7 = vld [vmem:[%s9327_s1 + $0x20] sm:$0xff]   ;;  %v6642_v9 = vld [vmem:[%s9327_s1 + $0x18] sm:$0xff]   ;;  %v6644_v11 = vld [vmem:[%s9327_s1 + $0x10] sm:$0xff]   ;;  %p255_p4 = scmp.lt.s32.totalorder %s254_s11, 83  ;;  %vm396_vm3 = vsmask.f32 7440 }
   0xf   : > { %4671 = vmatprep.subr.bf16.mxu0 %v6940_v1  ;;  %4848 = vmatprep.subr.bf16.mxu1 %v6940_v1  ;;  %v6641_v8 = vld [vmem:[%s9327_s1 + $0xa0] sm:$0xff]   ;;  %v6643_v10 = vld [vmem:[%s9327_s1 + $0x98] sm:$0xff]   ;;  %v6645_v12 = vld [vmem:[%s9327_s1 + $0x90] sm:$0xff]   ;;  %vm1384_vm6 = vsmask.f32 2304  ;;  %vm1901_vm8 = vcmask 1041408  }
  0x10   : > { %v6646_v13 = vld [vmem:[%s9327_s1 + $0x8] sm:$0xff]   ;;  %s9442_s11 = smov (!%p255_p4, %s254_s11), 83  ;;  %v6648_v15 = vld [vmem:[%s9327_s1] sm:$0xff]   ;;  %v6650_v17 = vld [vmem:[%s9327_s1 + $0x78] sm:$0xff]   ;;  %vm1385_vm7 = vsmask.f32 6416 }
  0x11   : > { %v6647_v14 = vld [vmem:[%s9327_s1 + $0x88] sm:$0xff]   ;;  %s6002_s28 = sshll.u32 %s9442_s11, 2  ;;  %v6649_v16 = vld [vmem:[%s9327_s1 + $0x80] sm:$0xff]   ;;  %v6651_v18 = vld [vmem:[%s9327_s1 + $0xf8] sm:$0xff]   ;;  %vm1902_vm9 = vcmask 1045508   ;;  %vm2894_vm15 = vcmask 1040384  }
  0x12   : > { %4672 = vmatpush1.bf16.msra.mxu0 %v6636_v3  ;;  %4849 = vmatpush1.bf16.msra.mxu1 %v6637_v4  ;;  %s7054_s7 = scalar_lea.vmem %s9326_s0, %s6002_s28  ;;  %v6652_v24 = vld [vmem:[%s9327_s1 + $0x70] sm:$0xff]   ;;  %v6654_v33 = vld [vmem:[%s9327_s1 + $0x68] sm:$0xff]   ;;  %vm7084_vm4 = vmor %vm908_vm0, %vm909_vm1  ;;  %vm2377_vm12 = vsmask.f32 1280  ;;  %vm2378_vm13 = vsmask.f32 5392 }
  0x13   : > { %4673 = vmatprep.subr.bf16.mxu0 %v6940_v1  ;;  %4850 = vmatprep.subr.bf16.mxu1 %v6940_v1  ;;  %v286_v19 = vld [vmem:[%s7054_s7] sm:$0xf]  ;;  %v287_v20 = vld [vmem:[%s7054_s7 + $0x4] sm:$0xf]  ;;  %v360_v23 = vld [vmem:[%s7054_s7 + $0x8] sm:$0xf] }
  0x14   : > { %v358_v21 = vld [vmem:[%s7054_s7] sm:$0xf]  ;;  %322 = vst [vmem:[#allocation2] sm:$0xf] %v286_v19  ;;  %323 = vst [vmem:[#allocation2 + $0x24] sm:$0xf] %v287_v20 }
  0x15   : > { %v359_v22 = vld [vmem:[%s7054_s7 + $0x4] sm:$0xf]  ;;  %v399_v25 = vshrl.u32 %v358_v21, 16  ;;  %v402_v26 = vshll.u32 %v358_v21, 16  ;;  %v6653_v28 = vld [vmem:[%s9327_s1 + $0xf0] sm:$0xff]   ;;  %v418_v30 = vshll.u32 %v360_v23, 16  ;;  %vm7097_vm5 = vmor %vm395_vm2, %vm396_vm3 }
  0x16   : > { %4674 = vmatpush1.bf16.msra.mxu0 %v6638_v5  ;;  %4851 = vmatpush1.bf16.msra.mxu1 %v6639_v6  ;;  %v408_v27 = vshll.u32 %v359_v22, 16  ;;  %v412_v29 = vshrl.u32 %v359_v22, 16  ;;  %v422_v31 = vshrl.u32 %v360_v23, 16  ;;  %v834_v32 = vld [vmem:[%s7054_s7] sm:$0xe]  ;;  %v6655_v45 = vld [vmem:[%s9327_s1 + $0xe8] sm:$0xff]   ;;  %vm7676_vm10 = vmor %vm1901_vm8, %vm1902_vm9 }
  0x17   : > { %4675 = vmatprep.subr.bf16.mxu0 %v6940_v1  ;;  %4852 = vmatprep.subr.bf16.mxu1 %v6940_v1  ;;  %v401_v34 = vrot.slane %v399_v25, 4  ;;  %v404_v35 = vrot.slane %v402_v26, 5  ;;  %v835_v37 = vld [vmem:[%s7054_s7 + $0x4] sm:$0xf]  ;;  %v6005_v39 = vrot.slane %v834_v32, 9  ;;  %v420_v41 = vrot.slane %v418_v30, 5  ;;  %vm7683_vm11 = vmor %vm1384_vm6, %vm1385_vm7 }
  0x18   : > { %v410_v36 = vrot.slane %v408_v27, 5  ;;  %v414_v40 = vrot.slane %v412_v29, 4  ;;  %v424_v42 = vrot.slane %v422_v31, 4  ;;  %v836_v43 = vld [vmem:[%s7054_s7 + $0x8] sm:$0xf]  ;;  %v913_v44 = vrot.slane %v835_v37, 5  ;;  %vm7731_vm14 = vmor %vm2377_vm12, %vm2378_vm13 }
  0x19   : > { %v405_v46 = vor.u32 %v404_v35, %v401_v34  ;;  %v916_v47 = vrot.slane %v836_v43, 5  ;;  %v1092_v48 = vld [vmem:[%s7054_s7 + $0x8] sm:$0xe]  ;;  %v1093_v49 = vld [vmem:[%s7054_s7 + $0xc] sm:$0xf]  ;;  %v6656_v59 = vld [vmem:[%s9327_s1 + $0x60] sm:$0xff]  }
  0x1a   : > { %4676 = vmatpush1.bf16.msra.mxu0 %v6640_v7  ;;  %4853 = vmatpush1.bf16.msra.mxu1 %v6641_v8  ;;  %v415_v51 = vor.u32 %v414_v40, %v410_v36  ;;  %v425_v52 = vor.u32 %v424_v42, %v420_v41  ;;  %v914_v53 = vsel %vm7084_vm4, %v6005_v39, %v913_v44  ;;  %v915_v54 = vrot.slane %v913_v44, 4  ;;  %v1094_v55 = vld [vmem:[%s7054_s7 + $0x10] sm:$0xf]  ;;  %v288_v0 = vld [vmem:[%s7054_s7 + $0x8] sm:$0xf]  ;;  %v6657_v8 = vld [vmem:[%s9327_s1 + $0xe0] sm:$0xff]  }
  0x1b   : > { %4677 = vmatprep.subr.bf16.mxu0 %v6940_v1  ;;  %4854 = vmatprep.subr.bf16.mxu1 %v6940_v1  ;;  %v406_v56 = vrot.slane %v405_v46, 4  ;;  %1056 = vst [vmem:[#allocation2 + $0x8] sm:$0xf] %v914_v53  ;;  %v6006_v57 = vrot.slane %v1092_v48, 9  ;;  %v1168_v58 = vrot.slane %v1093_v49, 5  ;;  %v918_v62 = vrot.slane %v916_v47, 4 }
  0x1c   : > { %v416_v60 = vrot.slane %v415_v51, 4  ;;  %v917_v61 = vsel %vm7084_vm4, %v915_v54, %v916_v47  ;;  %v1171_v63 = vrot.slane %v1094_v55, 5  ;;  %v426_v3 = vrot.slane %v425_v52, 4  ;;  %v289_v6 = vld [vmem:[%s7054_s7 + $0xc] sm:$0xf]  ;;  %v6661_v48 = vld [vmem:[%s9327_s1 + $0xd0] sm:$0xff]  }
  0x1d   : > { %v411_v2 = vsel %vm7097_vm5, %v406_v56, %v410_v36  ;;  %1057 = vst [vmem:[#allocation2 + $0x2c] sm:$0xf] %v917_v61  ;;  %v1169_v4 = vsel %vm7084_vm4, %v6006_v57, %v1168_v58  ;;  %v1170_v5 = vrot.slane %v1168_v58, 4  ;;  %324 = vst [vmem:[#allocation2 + $0x48] sm:$0xf] %v288_v0  ;;  %v6662_v54 = vld [vmem:[%s9327_s1 + $0x48] sm:$0xff]  }
  0x1e   : > { %4678 = vmatpush1.bf16.msra.mxu0 %v6642_v9  ;;  %4855 = vmatpush1.bf16.msra.mxu1 %v6643_v10  ;;  %v361_v7 = vld [vmem:[%s7054_s7 + $0xc] sm:$0xf]  ;;  %v421_v9 = vsel %vm7097_vm5, %v416_v60, %v420_v41  ;;  %798 = vst [vmem:[#allocation2 + $0x4] sm:$0xf] %v411_v2  ;;  %v1173_v10 = vrot.slane %v1171_v63, 4  ;;  %vm2895_vm0 = vcmask 1044484  }
  0x1f   : > { %4679 = vmatprep.subr.bf16.mxu0 %v6940_v1  ;;  %4856 = vmatprep.subr.bf16.mxu1 %v6940_v1  ;;  %1311 = vst [vmem:[#allocation2 + $0xc] sm:$0xf] %v1169_v4  ;;  %325 = vst [vmem:[#allocation2 + $0x6c] sm:$0xf] %v289_v6  ;;  %v838_v19 = vld [vmem:[%s7054_s7 + $0x10] sm:$0xf] }
  0x20   : > { %799 = vst [vmem:[#allocation2 + $0x28] sm:$0xf] %v421_v9  ;;  %v922_v23 = vrot.slane %v838_v19, 5  ;;  %v7134_v26 = vld [vmem:[%s7054_s7 + $0x18] sm:$0xf]  ;;  %v6665_v19 = vld [vmem:[%s9327_s1 + $0xc0] sm:$0xff]   ;;  %vm8751_vm1 = vmor %vm2894_vm15, %vm2895_vm0 }
  0x21   : > { %v1177_v36 = vrot.slane %v7134_v26, 5  ;;  %v290_v37 = vld [vmem:[%s7054_s7 + $0x10] sm:$0xf]  ;;  %v291_v41 = vld [vmem:[%s7054_s7 + $0x14] sm:$0xf] }
  0x22   : > { %4680 = vmatpush1.bf16.msra.mxu0 %v6644_v11  ;;  %4857 = vmatpush1.bf16.msra.mxu1 %v6645_v12  ;;  %v362_v11 = vld [vmem:[%s7054_s7 + $0x10] sm:$0xf]  ;;  %v428_v12 = vshll.u32 %v361_v7, 16  ;;  %326 = vst [vmem:[#allocation2 + $0x90] sm:$0xf] %v290_v37 }
  0x23   : > { %4681 = vmatprep.subr.bf16.mxu0 %v6940_v1  ;;  %4858 = vmatprep.subr.bf16.mxu1 %v6940_v1  ;;  %v363_v42 = vld [vmem:[%s7054_s7 + $0x14] sm:$0xf]  ;;  %327 = vst [vmem:[#allocation2 + $0xb4] sm:$0xf] %v291_v41  ;;  %v1097_v2 = vld [vmem:[%s7054_s7 + $0x1c] sm:$0xf] }
  0x24   : > { %v430_v20 = vrot.slane %v428_v12, 5  ;;  %v448_v46 = vshll.u32 %v363_v42, 16  ;;  %v452_v47 = vshrl.u32 %v363_v42, 16  ;;  %v839_v61 = vld [vmem:[%s7054_s7 + $0x14] sm:$0xf] }
  0x25   : > { %v925_v0 = vrot.slane %v839_v61, 5  ;;  %v842_v41 = vld [vmem:[%s7054_s7 + $0x20] sm:$0xf] }
  0x26   : > { %4682 = vmatpush1.bf16.msra.mxu0 %v6646_v13  ;;  %4859 = vmatpush1.bf16.msra.mxu1 %v6647_v14  ;;  %v432_v13 = vshrl.u32 %v361_v7, 16  ;;  %v6658_v14 = vld [vmem:[%s9327_s1 + $0x58] sm:$0xff]   ;;  %v431_v29 = vsel %vm7097_vm5, %v426_v3, %v430_v20  ;;  %v450_v56 = vrot.slane %v448_v46, 5  ;;  %v454_v58 = vrot.slane %v452_v47, 4  ;;  %v6663_v3 = vld [vmem:[%s9327_s1 + $0xc8] sm:$0xff]   ;;  %v6679_v47 = vld [vmem:[%s9327_s1 + $0x130] sm:$0xff]  }
  0x27   : > { %4683 = vmatprep.subr.bf16.mxu0 %v6940_v1  ;;  %4860 = vmatprep.subr.bf16.mxu1 %v6940_v1  ;;  %800 = vst [vmem:[#allocation2 + $0x4c] sm:$0xf] %v431_v29  ;;  %v6668_v49 = vld [vmem:[#allocation2 + $0x4] ss:$36 sps:$4 sm:$0xff]   ;;  %v1098_v7 = vld [vmem:[%s7054_s7 + $0x20] sm:$0xf] }
  0x28   : > { %v434_v21 = vrot.slane %v432_v13, 4  ;;  %4701 = vmatprep.mubr.bf16.mxu0 %v6668_v49  ;;  %v1183_v12 = vrot.slane %v1098_v7, 5  ;;  %v365_v29 = vld [vmem:[%s7054_s7 + $0x1c] sm:$0xf]  ;;  %v934_v46 = vrot.slane %v842_v41, 5  ;;  %v6699_v41 = vld [vmem:[%s9327_s1 + $0x1a0] sm:$0xff]  }
  0x29   : > { %v1099_v49 = vld [vmem:[%s7054_s7 + $0x24] sm:$0xf] }
  0x2a   : > { %4684 = vmatpush1.bf16.msra.mxu0 %v6648_v15  ;;  %4861 = vmatpush1.bf16.msra.mxu1 %v6649_v16  ;;  %v1172_v15 = vsel %vm7084_vm4, %v1170_v5, %v1171_v63  ;;  %v438_v16 = vshll.u32 %v362_v11, 16  ;;  %v435_v30 = vor.u32 %v434_v21, %v430_v20  ;;  %v924_v63 = vrot.slane %v922_v23, 4  ;;  %v6666_v20 = vld [vmem:[#allocation2] ss:$36 sps:$4 sm:$0xff]  }
  0x2b   : > { %4685 = vmatprep.subr.bf16.mxu0 %v6940_v1  ;;  %4862 = vmatprep.subr.bf16.mxu1 %v6940_v1  ;;  %1312 = vst [vmem:[#allocation2 + $0x30] sm:$0xf] %v1172_v15  ;;  %v455_v5 = vor.u32 %v454_v58, %v450_v56  ;;  %v6664_v15 = vld [vmem:[%s9327_s1 + $0x40] sm:$0xff]  }
  0x2c   : > { %v440_v25 = vrot.slane %v438_v16, 5  ;;  %v436_v39 = vrot.slane %v435_v30, 4  ;;  %v926_v9 = vsel %vm7084_vm4, %v924_v63, %v925_v0 }
  0x2d   : > { %v456_v13 = vrot.slane %v455_v5, 4  ;;  %1060 = vst [vmem:[#allocation2 + $0x98] sm:$0xf] %v926_v9 }
  0x2e   : > { %4686 = vmatpush2.bf16.msra.mxu0 %v6650_v17  ;;  %4863 = vmatpush2.bf16.msra.mxu1 %v6651_v18  ;;  %v442_v17 = vshrl.u32 %v362_v11, 16  ;;  %v837_v18 = vld [vmem:[%s7054_s7 + $0xc] sm:$0xf]  ;;  %v441_v51 = vsel %vm7097_vm5, %v436_v39, %v440_v25  ;;  %v1180_v11 = vrot.slane %v1097_v2, 5 }
  0x2f   : > { %4687 = vmatprep.subr.bf16.mxu0 %v6940_v1  ;;  %4864 = vmatprep.subr.bf16.mxu1 %v6940_v1  ;;  %v919_v22 = vrot.slane %v837_v18, 5  ;;  %801 = vst [vmem:[#allocation2 + $0x70] sm:$0xf] %v441_v51  ;;  %v7217_v51 = vld [vmem:[%s7054_s7 + $0x28] sm:$0xf] }
  0x30   : > { %v444_v43 = vrot.slane %v442_v17, 4  ;;  %v1182_v18 = vrot.slane %v1180_v11, 4 }
  0x31   : > { %v920_v31 = vsel %vm7084_vm4, %v918_v62, %v919_v22  ;;  %v921_v32 = vrot.slane %v919_v22, 4  ;;  %v840_v62 = vld [vmem:[%s7054_s7 + $0x18] sm:$0xf] }
  0x32   : > { %4688 = vmatpush2.bf16.msra.mxu0 %v6652_v24  ;;  %4865 = vmatpush2.bf16.msra.mxu1 %v6653_v28  ;;  %v1095_v24 = vld [vmem:[%s7054_s7 + $0x14] sm:$0xf]  ;;  %v6659_v28 = vld [vmem:[%s9327_s1 + $0xd8] sm:$0xff]   ;;  %1058 = vst [vmem:[#allocation2 + $0x50] sm:$0xf] %v920_v31  ;;  %v445_v52 = vor.u32 %v444_v43, %v440_v25  ;;  %v928_v6 = vrot.slane %v840_v62, 5  ;;  %v1184_v26 = vsel %vm7084_vm4, %v1182_v18, %v1183_v12 }
  0x33   : > { %4689 = vmatprep.subr.bf16.mxu0 %v6940_v1  ;;  %4866 = vmatprep.subr.bf16.mxu1 %v6940_v1  ;;  %v1174_v27 = vrot.slane %v1095_v24, 5  ;;  %v923_v40 = vsel %vm7084_vm4, %v921_v32, %v922_v23  ;;  %v6671_v55 = vld [vmem:[#allocation2 + $0xc] ss:$36 sps:$4 sm:$0xff]   ;;  %v6672_v25 = vld [vmem:[%s9327_s1 + $0x138] sm:$0xff]   ;;  %1316 = vst [vmem:[#allocation2 + $0xc0] sm:$0xf] %v1184_v26 }
  0x34   : > { %1059 = vst [vmem:[#allocation2 + $0x74] sm:$0xf] %v923_v40  ;;  %v446_v57 = vrot.slane %v445_v52, 4  ;;  %4878 = vmatprep.mubr.bf16.mxu1 %v6671_v55  ;;  %v930_v23 = vrot.slane %v928_v6, 4  ;;  %v6669_v24 = vld [vmem:[#allocation2 + $0x8] ss:$36 sps:$4 sm:$0xff]  }
  0x35   : > { %v1175_v34 = vsel %vm7084_vm4, %v1173_v10, %v1174_v27  ;;  %v1176_v35 = vrot.slane %v1174_v27, 4  ;;  %v927_v10 = vrot.slane %v925_v0, 4  ;;  %v292_v27 = vld [vmem:[%s7054_s7 + $0x18] sm:$0xf]  ;;  %v366_v31 = vld [vmem:[%s7054_s7 + $0x20] sm:$0xf] }
  0x36   : > { %4690 = vmatpush2.bf16.msra.mxu0 %v6654_v33  ;;  %4867 = vmatpush2.bf16.msra.mxu1 %v6655_v45  ;;  %v6660_v33 = vld [vmem:[%s9327_s1 + $0x50] sm:$0xff]   ;;  %1313 = vst [vmem:[#allocation2 + $0x54] sm:$0xf] %v1175_v34  ;;  %v364_v45 = vld [vmem:[%s7054_s7 + $0x18] sm:$0xf]  ;;  %v451_v4 = vsel %vm7097_vm5, %v446_v57, %v450_v56  ;;  %v472_v34 = vshrl.u32 %v365_v29, 16 }
  0x37   : > { %4691 = vmatprep.subr.bf16.mxu0 %v6940_v1  ;;  %4868 = vmatprep.subr.bf16.mxu1 %v6940_v1  ;;  %v1178_v44 = vsel %vm7084_vm4, %v1176_v35, %v1177_v36  ;;  %v458_v53 = vshll.u32 %v364_v45, 16  ;;  %v462_v60 = vshrl.u32 %v364_v45, 16  ;;  %802 = vst [vmem:[#allocation2 + $0x94] sm:$0xf] %v451_v4  ;;  %v929_v16 = vsel %vm7084_vm4, %v927_v10, %v928_v6  ;;  %v841_v40 = vld [vmem:[%s7054_s7 + $0x1c] sm:$0xf] }
  0x38   : > { %1314 = vst [vmem:[#allocation2 + $0x78] sm:$0xf] %v1178_v44  ;;  %1061 = vst [vmem:[#allocation2 + $0xbc] sm:$0xf] %v929_v16  ;;  %v1185_v35 = vrot.slane %v1183_v12, 4  ;;  %v478_v37 = vshll.u32 %v366_v31, 16 }
  0x39   : > { %328 = vst [vmem:[#allocation2 + $0xd8] sm:$0xf] %v292_v27  ;;  %v482_v39 = vshrl.u32 %v366_v31, 16  ;;  %v6673_v42 = vld [vmem:[#allocation2 + $0x4c] ss:$36 sps:$4 sm:$0xff]   ;;  %v474_v44 = vrot.slane %v472_v34, 4 }
  0x3a   : > { %4692 = vmatpush2.bf16.msra.mxu0 %v6656_v59  ;;  %4869 = vmatpush2.bf16.msra.mxu1 %v6657_v8  ;;  %v460_v59 = vrot.slane %v458_v53, 5  ;;  %v1179_v8 = vrot.slane %v1177_v36, 4  ;;  %v6678_v36 = vld [vmem:[%s9327_s1 + $0x1b8] sm:$0xff]   ;;  %v931_v45 = vrot.slane %v841_v40, 5  ;;  %v3088_v53 = vld [vmem:[#allocation2 + $0x48] sm:$0xff]  ;;  %v936_v6 = vrot.slane %v934_v46, 4 }
  0x3b   : > { %4693 = vmatprep.subr.bf16.mxu0 %v6940_v1  ;;  %4870 = vmatprep.subr.bf16.mxu1 %v6940_v1  ;;  %v484_v52 = vrot.slane %v482_v39, 4  ;;  %v3093_v58 = vld [vmem:[#allocation2 + $0x6c] sm:$0xff]  ;;  %v294_v10 = vld [vmem:[%s7054_s7 + $0x20] sm:$0xf]  ;;  %v367_v12 = vld [vmem:[%s7054_s7 + $0x24] sm:$0xf] }
  0x3c   : > { %v1181_v17 = vsel %vm7084_vm4, %v1179_v8, %v1180_v11  ;;  %v461_v21 = vsel %vm7097_vm5, %v456_v13, %v460_v59  ;;  %v932_v56 = vsel %vm7084_vm4, %v930_v23, %v931_v45  ;;  %v933_v57 = vrot.slane %v931_v45, 4  ;;  %v6677_v0 = vld [vmem:[#allocation2 + $0x50] ss:$36 sps:$4 sm:$0xff]   ;;  %v295_v11 = vld [vmem:[%s7054_s7 + $0x24] sm:$0xf]  ;;  %v6686_v13 = vld [vmem:[%s9327_s1 + $0x128] sm:$0xff]  }
  0x3d   : > { %1315 = vst [vmem:[#allocation2 + $0x9c] sm:$0xf] %v1181_v17  ;;  %803 = vst [vmem:[#allocation2 + $0xb8] sm:$0xf] %v461_v21  ;;  %v6020_v7 = vcombine.low %v3088_v53, %v3093_v58  ;;  %v488_v17 = vshll.u32 %v367_v12, 16  ;;  %v492_v18 = vshrl.u32 %v367_v12, 16 }
  0x3e   : > { %4694 = vmatpush2.bf16.msra.mxu0 %v6658_v14  ;;  %4871 = vmatpush2.bf16.msra.mxu1 %v6659_v28  ;;  %v464_v14 = vrot.slane %v462_v60, 4  ;;  %v293_v28 = vld [vmem:[%s7054_s7 + $0x1c] sm:$0xf]  ;;  %1062 = vst [vmem:[#allocation2 + $0xe0] sm:$0xf] %v932_v56  ;;  %v1189_v60 = vrot.slane %v7217_v51, 5  ;;  %v935_v63 = vsel %vm7084_vm4, %v933_v57, %v934_v46 }
  0x3f   : > { %4695 = vmatprep.subr.bf16.mxu0 %v6940_v1  ;;  %4872 = vmatprep.subr.bf16.mxu1 %v6940_v1  ;;  %v6675_v30 = vld [vmem:[#allocation2 + $0x54] ss:$36 sps:$4 sm:$0xff]   ;;  %329 = vst [vmem:[#allocation2 + $0xfc] sm:$0xf] %v293_v28  ;;  %1063 = vst [vmem:[#allocation2 + $0x104] sm:$0xf] %v935_v63 }
  0x40   : > { %v465_v22 = vor.u32 %v464_v14, %v460_v59  ;;  %v1186_v59 = vrot.slane %v1099_v49, 5  ;;  %330 = vst [vmem:[#allocation2 + $0x120] sm:$0xf] %v294_v10  ;;  %331 = vst [vmem:[#allocation2 + $0x144] sm:$0xf] %v295_v11  ;;  %v7250_v23 = vld [vmem:[#allocation2 + $0x90] sm:$0xff] }
  0x41   : > { %v843_v21 = vld [vmem:[%s7054_s7 + $0x24] sm:$0xf]  ;;  %v1101_v28 = vld [vmem:[%s7054_s7 + $0x2c] sm:$0xf]  ;;  %v6684_v51 = vld [vmem:[#allocation2 + $0x98] ss:$36 sps:$4 sm:$0xff]  }
  0x42   : > { %4696 = vmatpush2.bf16.msra.mxu0 %v6660_v33  ;;  %4873 = vmatpush2.bf16.msra.mxu1 %v6661_v48  ;;  %v466_v32 = vrot.slane %v465_v22, 4  ;;  %v468_v33 = vshll.u32 %v365_v29, 16  ;;  %v480_v48 = vrot.slane %v478_v37, 5  ;;  %v1187_v4 = vsel %vm7084_vm4, %v1185_v35, %v1186_v59  ;;  %v844_v22 = vld [vmem:[%s7054_s7 + $0x28] sm:$0xf]  ;;  %v6693_v29 = vld [vmem:[%s9327_s1 + $0x120] sm:$0xff]  }
  0x43   : > { %4697 = vmatprep.subr.bf16.mxu0 %v6940_v1  ;;  %4874 = vmatprep.subr.bf16.mxu1 %v6940_v1  ;;  %v1188_v5 = vrot.slane %v1186_v59, 4  ;;  %1317 = vst [vmem:[#allocation2 + $0xe4] sm:$0xf] %v1187_v4  ;;  %v937_v26 = vrot.slane %v843_v21, 5  ;;  %v940_v27 = vrot.slane %v844_v22, 5  ;;  %v1192_v34 = vrot.slane %v1101_v28, 5 }
  0x44   : > { %v470_v43 = vrot.slane %v468_v33, 5  ;;  %v485_v61 = vor.u32 %v484_v52, %v480_v48  ;;  %v6680_v2 = vld [vmem:[#allocation2 + $0x94] ss:$36 sps:$4 sm:$0xff]   ;;  %v6682_v8 = vld [vmem:[#allocation2 + $0x9c] ss:$36 sps:$4 sm:$0xff]   ;;  %v1191_v33 = vrot.slane %v1189_v60, 4 }
  0x45   : > { %v1190_v14 = vsel %vm7084_vm4, %v1188_v5, %v1189_v60  ;;  %v3103_v35 = vld [vmem:[#allocation2 + $0xb4] sm:$0xff]  ;;  %v938_v39 = vsel %vm7084_vm4, %v936_v6, %v937_v26  ;;  %v939_v40 = vrot.slane %v937_v26, 4 }
  0x46   : > { %4698 = vmatpush2.bf16.msra.mxu0 %v6662_v54  ;;  %4875 = vmatpush2.bf16.msra.mxu1 %v6663_v3  ;;  %v471_v54 = vsel %vm7097_vm5, %v466_v32, %v470_v43  ;;  %v475_v55 = vor.u32 %v474_v44, %v470_v43  ;;  %v6685_v3 = vld [vmem:[%s9327_s1 + $0x1b0] sm:$0xff]   ;;  %v486_v16 = vrot.slane %v485_v61, 4  ;;  %1318 = vst [vmem:[#allocation2 + $0x108] sm:$0xf] %v1190_v14  ;;  %1064 = vst [vmem:[#allocation2 + $0x128] sm:$0xf] %v938_v39 }
  0x47   : > { %4699 = vmatprep.subr.bf16.mxu0 %v6940_v1  ;;  %4876 = vmatprep.subr.bf16.mxu1 %v6940_v1  ;;  %804 = vst [vmem:[#allocation2 + $0xdc] sm:$0xf] %v471_v54  ;;  %v1102_v32 = vld [vmem:[%s7054_s7 + $0x30] sm:$0xf]  ;;  %v1194_v43 = vrot.slane %v1192_v34, 4  ;;  %v941_v46 = vsel %vm7084_vm4, %v939_v40, %v940_v27  ;;  %v6029_v49 = vcombine.low %v7250_v23, %v3103_v35  ;;  %v6700_v53 = vld [vmem:[%s9327_s1 + $0x118] sm:$0xff]  }
  0x48   : > { %v476_v62 = vrot.slane %v475_v55, 4  ;;  %v1195_v44 = vrot.slane %v1102_v32, 5  ;;  %1065 = vst [vmem:[#allocation2 + $0x14c] sm:$0xf] %v941_v46  ;;  %v369_v54 = vld [vmem:[%s7054_s7 + $0x2c] sm:$0xf] }
  0x49   : > { %v508_v59 = vshll.u32 %v369_v54, 16  ;;  %v6706_v60 = vld [vmem:[%s9327_s1 + $0x198] sm:$0xff]   ;;  %v370_v61 = vld [vmem:[%s7054_s7 + $0x30] sm:$0xf]  ;;  %v512_v63 = vshrl.u32 %v369_v54, 16  ;;  %v6718_v39 = vld [vmem:[%s9327_s1 + $0x108] sm:$0xff]  }
  0x4a   : > { %4700 = vmatpush2.bf16.msra.mxu0 %v6664_v15  ;;  %4877 = vmatpush2.bf16.msra.mxu1 %v6665_v19  ;;  %v481_v9 = vsel %vm7097_vm5, %v476_v62, %v480_v48  ;;  %v368_v15 = vld [vmem:[%s7054_s7 + $0x28] sm:$0xf]  ;;  %v297_v48 = vld [vmem:[%s7054_s7 + $0x2c] sm:$0xf]  ;;  %v1196_v52 = vsel %vm7084_vm4, %v1194_v43, %v1195_v44  ;;  %v518_v5 = vshll.u32 %v370_v61, 16  ;;  %v522_v6 = vshrl.u32 %v370_v61, 16 }
  0x4b   : > { %5023 = vmatprep.subr.bf16.mxu0 %v6940_v1  ;;  %5200 = vmatprep.subr.bf16.mxu1 %v6940_v1  ;;  %805 = vst [vmem:[#allocation2 + $0x100] sm:$0xf] %v481_v9  ;;  %v6692_v19 = vld [vmem:[%s9327_s1 + $0x1a8] sm:$0xff]   ;;  %v502_v31 = vshrl.u32 %v368_v15, 16  ;;  %333 = vst [vmem:[#allocation2 + $0x18c] sm:$0xf] %v297_v48 }
  0x4c   : > { %1320 = vst [vmem:[#allocation2 + $0x150] sm:$0xf] %v1196_v52  ;;  %v510_v4 = vrot.slane %v508_v59, 5  ;;  %v514_v10 = vrot.slane %v512_v63, 4  ;;  %v1103_v12 = vld [vmem:[%s7054_s7 + $0x34] sm:$0xf] }
  0x4d   : > { %4702 = vmatmul.mubr.bf16.vlgmr.msra.gmra.mxu0 %v6666_v20  ;;  %4879 = vmatmul.mubr.bf16.vlgmr.msra.gmra.mxu1 %v6669_v24  ;;  %v498_v20 = vshll.u32 %v368_v15, 16  ;;  %v490_v24 = vrot.slane %v488_v17, 5  ;;  %v504_v55 = vrot.slane %v502_v31, 4  ;;  %v6689_v57 = vld [vmem:[#allocation2 + $0xe4] ss:$36 sps:$4 sm:$0xff]   ;;  %v6707_v14 = vld [vmem:[%s9327_s1 + $0x110] sm:$0xff]  }
  0x4e   : > { %5024 = vmatpush1.bf16.msra.mxu0 %v6672_v25  ;;  %4709 = vmatprep.mubr.bf16.mxu0 %v6673_v42  ;;  %v494_v25 = vrot.slane %v492_v18, 4  ;;  %v1193_v42 = vsel %vm7084_vm4, %v1191_v33, %v1192_v34  ;;  %v6713_v21 = vld [vmem:[%s9327_s1 + $0x190] sm:$0xff]   ;;  %v515_v23 = vor.u32 %v514_v10, %v510_v4  ;;  %v524_v28 = vrot.slane %v522_v6, 4  ;;  %v300_v6 = vld [vmem:[%s7054_s7 + $0x38] sm:$0xf] }
  0x4f   : > { %4886 = vmatprep.mubr.bf16.mxu1 %v6675_v30  ;;  %5025 = vmatprep.subr.bf16.mxu0 %v6940_v1  ;;  %v500_v30 = vrot.slane %v498_v20, 5  ;;  %1319 = vst [vmem:[#allocation2 + $0x12c] sm:$0xf] %v1193_v42  ;;  %v1198_v20 = vrot.slane %v1103_v12, 5  ;;  %v298_v35 = vld [vmem:[%s7054_s7 + $0x30] sm:$0xf] }
  0x50   : > { %5201 = vmatpush1.bf16.msra.mxu1 %v6678_v36  ;;  %v491_v36 = vsel %vm7097_vm5, %v486_v16, %v490_v24  ;;  %v495_v37 = vor.u32 %v494_v25, %v490_v24  ;;  %v520_v16 = vrot.slane %v518_v5, 5  ;;  %v516_v32 = vrot.slane %v515_v23, 4  ;;  %v299_v43 = vld [vmem:[%s7054_s7 + $0x34] sm:$0xf]  ;;  %334 = vst [vmem:[#allocation2 + $0x1b0] sm:$0xf] %v298_v35 }
  0x51   : > { %5202 = vmatprep.subr.bf16.mxu1 %v6940_v1  ;;  %806 = vst [vmem:[#allocation2 + $0x124] sm:$0xf] %v491_v36  ;;  %v505_v62 = vor.u32 %v504_v55, %v500_v30  ;;  %335 = vst [vmem:[#allocation2 + $0x1d4] sm:$0xf] %v299_v43  ;;  %v1105_v55 = vld [vmem:[%s7054_s7 + $0x3c] sm:$0xf] }
  0x52   : > { %5026 = vmatpush1.bf16.msra.mxu0 %v6679_v47  ;;  %v496_v45 = vrot.slane %v495_v37, 4  ;;  %v296_v47 = vld [vmem:[%s7054_s7 + $0x28] sm:$0xf]  ;;  %v6687_v56 = vld [vmem:[#allocation2 + $0xdc] ss:$36 sps:$4 sm:$0xff]   ;;  %v525_v36 = vor.u32 %v524_v28, %v520_v16  ;;  %v521_v42 = vsel %vm7097_vm5, %v516_v32, %v520_v16 }
  0x53   : > { %5027 = vmatprep.subr.bf16.mxu0 %v6940_v1  ;;  %332 = vst [vmem:[#allocation2 + $0x168] sm:$0xf] %v296_v47  ;;  %v506_v9 = vrot.slane %v505_v62, 4  ;;  %v3113_v15 = vld [vmem:[#allocation2 + $0xfc] sm:$0xff]  ;;  %809 = vst [vmem:[#allocation2 + $0x190] sm:$0xf] %v521_v42 }
  0x54   : > { %5203 = vmatpush1.bf16.msra.mxu1 %v6685_v3  ;;  %v501_v58 = vsel %vm7097_vm5, %v496_v45, %v500_v30  ;;  %v7287_v3 = vld [vmem:[#allocation2 + $0xd8] sm:$0xff]  ;;  %v6691_v30 = vld [vmem:[#allocation2 + $0xe0] ss:$36 sps:$4 sm:$0xff]   ;;  %v526_v46 = vrot.slane %v525_v36, 4  ;;  %336 = vst [vmem:[#allocation2 + $0x1f8] sm:$0xf] %v300_v6 }
  0x55   : > { %4710 = vmatmul.mubr.bf16.gmra.mxu0 %v6020_v7  ;;  %5204 = vmatprep.subr.bf16.mxu1 %v6940_v1  ;;  %807 = vst [vmem:[#allocation2 + $0x148] sm:$0xf] %v501_v58  ;;  %v846_v7 = vld [vmem:[%s7054_s7 + $0x30] sm:$0xf]  ;;  %v511_v22 = vsel %vm7097_vm5, %v506_v9, %v510_v4  ;;  %v372_v45 = vld [vmem:[%s7054_s7 + $0x38] sm:$0xf] }
  0x56   : > { %4887 = vmatmul.mubr.bf16.gmra.mxu1 %v6677_v0  ;;  %4717 = vmatprep.mubr.bf16.mxu0 %v6680_v2  ;;  %v845_v0 = vld [vmem:[%s7054_s7 + $0x2c] sm:$0xf]  ;;  %v942_v2 = vrot.slane %v940_v27, 4  ;;  %v946_v11 = vrot.slane %v846_v7, 5  ;;  %808 = vst [vmem:[#allocation2 + $0x16c] sm:$0xf] %v511_v22 }
  0x57   : > { %4894 = vmatprep.mubr.bf16.mxu1 %v6682_v8  ;;  %5028 = vmatpush1.bf16.msra.mxu0 %v6686_v13  ;;  %v943_v8 = vrot.slane %v845_v0, 5  ;;  %v1197_v13 = vrot.slane %v1195_v44, 4  ;;  %v1200_v27 = vrot.slane %v1198_v20, 4  ;;  %v6696_v31 = vld [vmem:[#allocation2 + $0x12c] ss:$36 sps:$4 sm:$0xff]   ;;  %v542_v52 = vshrl.u32 %v372_v45, 16 }
  0x58   : > { %5029 = vmatprep.subr.bf16.mxu0 %v6940_v1  ;;  %5205 = vmatpush1.bf16.msra.mxu1 %v6692_v19  ;;  %v7299_v19 = vld [vmem:[%s7054_s7 + $0x38] sm:$0xf]  ;;  %v948_v37 = vrot.slane %v946_v11, 4  ;;  %v7320_v40 = vld [vmem:[#allocation2 + $0x120] sm:$0xff]  ;;  %v371_v44 = vld [vmem:[%s7054_s7 + $0x34] sm:$0xf] }
  0x59   : > { %5206 = vmatprep.subr.bf16.mxu1 %v6940_v1  ;;  %v944_v17 = vsel %vm7084_vm4, %v942_v2, %v943_v8  ;;  %v945_v18 = vrot.slane %v943_v8, 4  ;;  %v1201_v24 = vrot.slane %v7299_v19, 5  ;;  %v1199_v26 = vsel %vm7084_vm4, %v1197_v13, %v1198_v20  ;;  %v301_v10 = vld [vmem:[%s7054_s7 + $0x3c] sm:$0xf]  ;;  %v6698_v13 = vld [vmem:[#allocation2 + $0x128] ss:$36 sps:$4 sm:$0xff]  }
  0x5a   : > { %1066 = vst [vmem:[#allocation2 + $0x170] sm:$0xf] %v944_v17  ;;  %1321 = vst [vmem:[#allocation2 + $0x174] sm:$0xf] %v1199_v26  ;;  %v528_v47 = vshll.u32 %v371_v44, 16  ;;  %v532_v48 = vshrl.u32 %v371_v44, 16 }
  0x5b   : > { %5030 = vmatpush1.bf16.msra.mxu0 %v6693_v29  ;;  %v947_v25 = vsel %vm7084_vm4, %v945_v18, %v946_v11  ;;  %v6038_v29 = vcombine.low %v7287_v3, %v3113_v15  ;;  %v1202_v34 = vsel %vm7084_vm4, %v1200_v27, %v1201_v24  ;;  %v1203_v63 = vrot.slane %v1201_v24, 4  ;;  %v373_v11 = vld [vmem:[%s7054_s7 + $0x3c] sm:$0xf]  ;;  %337 = vst [vmem:[#allocation2 + $0x21c] sm:$0xf] %v301_v10  ;;  %v7354_v22 = vld [vmem:[#allocation2 + $0x18c] sm:$0xff] }
  0x5c   : > { %5031 = vmatprep.subr.bf16.mxu0 %v6940_v1  ;;  %5207 = vmatpush1.bf16.msra.mxu1 %v6699_v41  ;;  %1067 = vst [vmem:[#allocation2 + $0x194] sm:$0xf] %v947_v25  ;;  %v6694_v33 = vld [vmem:[#allocation2 + $0x124] ss:$36 sps:$4 sm:$0xff]   ;;  %1322 = vst [vmem:[#allocation2 + $0x198] sm:$0xf] %v1202_v34 }
  0x5d   : > { %4718 = vmatmul.mubr.bf16.gmra.mxu0 %v6029_v49  ;;  %5208 = vmatprep.subr.bf16.mxu1 %v6940_v1  ;;  %v7322_v41 = vld [vmem:[#allocation2 + $0x144] sm:$0xff]  ;;  %v538_v49 = vshll.u32 %v372_v45, 16  ;;  %v1204_v0 = vrot.slane %v1105_v55, 5  ;;  %v544_v12 = vrot.slane %v542_v52, 4  ;;  %v6701_v16 = vld [vmem:[#allocation2 + $0x16c] ss:$36 sps:$4 sm:$0xff]  }
  0x5e   : > { %4895 = vmatmul.mubr.bf16.gmra.mxu1 %v6684_v51  ;;  %4725 = vmatprep.mubr.bf16.mxu0 %v6687_v56  ;;  %v847_v51 = vld [vmem:[%s7054_s7 + $0x34] sm:$0xf]  ;;  %v530_v56 = vrot.slane %v528_v47, 5  ;;  %v6047_v2 = vcombine.low %v7320_v40, %v7322_v41  ;;  %v374_v18 = vld [vmem:[%s7054_s7 + $0x40] sm:$0xf]  ;;  %v548_v20 = vshll.u32 %v373_v11, 16 }
  0x5f   : > { %4902 = vmatprep.mubr.bf16.mxu1 %v6689_v57  ;;  %5032 = vmatpush1.bf16.msra.mxu0 %v6700_v53  ;;  %v848_v53 = vld [vmem:[%s7054_s7 + $0x38] sm:$0xf]  ;;  %v949_v54 = vrot.slane %v847_v51, 5  ;;  %v534_v57 = vrot.slane %v532_v48, 4  ;;  %v540_v58 = vrot.slane %v538_v49, 5  ;;  %v1205_v8 = vsel %vm7084_vm4, %v1203_v63, %v1204_v0  ;;  %v6724_v43 = vld [vmem:[%s9327_s1 + $0x188] sm:$0xff]  }
  0x60   : > { %5033 = vmatprep.subr.bf16.mxu0 %v6940_v1  ;;  %5209 = vmatpush1.bf16.msra.mxu1 %v6706_v60  ;;  %v952_v59 = vrot.slane %v848_v53, 5  ;;  %v1106_v60 = vld [vmem:[%s7054_s7 + $0x40] sm:$0xf]  ;;  %v531_v3 = vsel %vm7097_vm5, %v526_v46, %v530_v56  ;;  %v1206_v9 = vrot.slane %v1204_v0, 4  ;;  %1323 = vst [vmem:[#allocation2 + $0x1bc] sm:$0xf] %v1205_v8 }
  0x61   : > { %5210 = vmatprep.subr.bf16.mxu1 %v6940_v1  ;;  %v950_v61 = vsel %vm7084_vm4, %v948_v37, %v949_v54  ;;  %v951_v62 = vrot.slane %v949_v54, 4  ;;  %v535_v4 = vor.u32 %v534_v57, %v530_v56  ;;  %v1207_v5 = vrot.slane %v1106_v60, 5  ;;  %810 = vst [vmem:[#allocation2 + $0x1b4] sm:$0xf] %v531_v3  ;;  %v849_v26 = vld [vmem:[%s7054_s7 + $0x3c] sm:$0xf] }
  0x62   : > { %1068 = vst [vmem:[#allocation2 + $0x1b8] sm:$0xf] %v950_v61  ;;  %v545_v19 = vor.u32 %v544_v12, %v540_v58  ;;  %v552_v24 = vshrl.u32 %v373_v11, 16  ;;  %v558_v25 = vshll.u32 %v374_v18, 16  ;;  %v7360_v27 = vld [vmem:[%s7054_s7 + $0x40] sm:$0xf] }
  0x63   : > { %5034 = vmatpush1.bf16.msra.mxu0 %v6707_v14  ;;  %v953_v7 = vsel %vm7084_vm4, %v951_v62, %v952_v59  ;;  %v6703_v14 = vld [vmem:[#allocation2 + $0x174] ss:$36 sps:$4 sm:$0xff]   ;;  %v536_v15 = vrot.slane %v535_v4, 4  ;;  %v1208_v17 = vsel %vm7084_vm4, %v1206_v9, %v1207_v5  ;;  %v1107_v32 = vld [vmem:[%s7054_s7 + $0x44] sm:$0xf]  ;;  %v955_v35 = vrot.slane %v849_v26, 5 }
  0x64   : > { %5035 = vmatprep.subr.bf16.mxu0 %v6940_v1  ;;  %5211 = vmatpush1.bf16.msra.mxu1 %v6713_v21  ;;  %1069 = vst [vmem:[#allocation2 + $0x1dc] sm:$0xf] %v953_v7  ;;  %v7352_v21 = vld [vmem:[#allocation2 + $0x168] sm:$0xff]  ;;  %1324 = vst [vmem:[#allocation2 + $0x1e0] sm:$0xf] %v1208_v17  ;;  %v546_v28 = vrot.slane %v545_v19, 4 }
  0x65   : > { %4726 = vmatmul.mubr.bf16.gmra.mxu0 %v6038_v29  ;;  %5212 = vmatprep.subr.bf16.mxu1 %v6940_v1  ;;  %v541_v23 = vsel %vm7097_vm5, %v536_v15, %v540_v58  ;;  %v550_v29 = vrot.slane %v548_v20, 5  ;;  %v560_v34 = vrot.slane %v558_v25, 5  ;;  %v958_v36 = vrot.slane %v7360_v27, 5  ;;  %v7365_v37 = vld [vmem:[%s7054_s7 + $0x48] sm:$0xf]  ;;  %v6726_v61 = vld [vmem:[%s9327_s1 + $0x100] sm:$0xff]  }
  0x66   : > { %4903 = vmatmul.mubr.bf16.gmra.mxu1 %v6691_v30  ;;  %4733 = vmatprep.mubr.bf16.mxu0 %v6694_v33  ;;  %811 = vst [vmem:[#allocation2 + $0x1d8] sm:$0xf] %v541_v23  ;;  %v562_v30 = vshrl.u32 %v374_v18, 16  ;;  %v554_v33 = vrot.slane %v552_v24, 4  ;;  %v1209_v40 = vrot.slane %v1207_v5, 4  ;;  %v1210_v41 = vrot.slane %v1107_v32, 5 }
  0x67   : > { %4910 = vmatprep.mubr.bf16.mxu1 %v6696_v31  ;;  %5036 = vmatpush1.bf16.msra.mxu0 %v6718_v39  ;;  %v954_v31 = vrot.slane %v952_v59, 4  ;;  %v551_v39 = vsel %vm7097_vm5, %v546_v28, %v550_v29  ;;  %v1213_v42 = vrot.slane %v7365_v37, 5  ;;  %v6705_v44 = vld [vmem:[#allocation2 + $0x170] ss:$36 sps:$4 sm:$0xff]   ;;  %v957_v48 = vrot.slane %v955_v35, 4  ;;  %v6732_v8 = vld [vmem:[%s9327_s1 + $0x180] sm:$0xff]  }
  0x68   : > { %5037 = vmatprep.subr.bf16.mxu0 %v6940_v1  ;;  %v7373_v45 = vld [vmem:[#allocation2 + $0x1b0] sm:$0xff]  ;;  %v555_v46 = vor.u32 %v554_v33, %v550_v29  ;;  %812 = vst [vmem:[#allocation2 + $0x1fc] sm:$0xf] %v551_v39  ;;  %v302_v49 = vld [vmem:[%s7054_s7 + $0x40] sm:$0xf]  ;;  %v6056_v51 = vcombine.low %v7352_v21, %v7354_v22  ;;  %v1211_v52 = vsel %vm7084_vm4, %v1209_v40, %v1210_v41  ;;  %v1212_v53 = vrot.slane %v1210_v41, 4 }
  0x69   : > { %v956_v47 = vsel %vm7084_vm4, %v954_v31, %v955_v35  ;;  %v303_v54 = vld [vmem:[%s7054_s7 + $0x44] sm:$0xf]  ;;  %338 = vst [vmem:[#allocation2 + $0x240] sm:$0xf] %v302_v49  ;;  %5213 = vmatpush1.bf16.msra.mxu1 %v6724_v43  ;;  %v959_v57 = vsel %vm7084_vm4, %v957_v48, %v958_v36  ;;  %1325 = vst [vmem:[#allocation2 + $0x204] sm:$0xf] %v1211_v52 }
  0x6a   : > { %1070 = vst [vmem:[#allocation2 + $0x200] sm:$0xf] %v956_v47  ;;  %v375_v55 = vld [vmem:[%s7054_s7 + $0x44] sm:$0xf]  ;;  %v556_v56 = vrot.slane %v555_v46, 4  ;;  %v564_v59 = vrot.slane %v562_v30, 4  ;;  %5214 = vmatprep.subr.bf16.mxu1 %v6940_v1  ;;  %v1214_v63 = vsel %vm7084_vm4, %v1212_v53, %v1213_v42 }
  0x6b   : > { %339 = vst [vmem:[#allocation2 + $0x264] sm:$0xf] %v303_v54  ;;  %v376_v58 = vld [vmem:[%s7054_s7 + $0x48] sm:$0xf]  ;;  %v568_v60 = vshll.u32 %v375_v55, 16  ;;  %v572_v0 = vshrl.u32 %v375_v55, 16  ;;  %5038 = vmatpush1.bf16.msra.mxu0 %v6726_v61 }
  0x6c   : > { %v6710_v62 = vld [vmem:[#allocation2 + $0x1bc] ss:$36 sps:$4 sm:$0xff]   ;;  %1071 = vst [vmem:[#allocation2 + $0x224] sm:$0xf] %v959_v57  ;;  %v561_v4 = vsel %vm7097_vm5, %v556_v56, %v560_v34  ;;  %1326 = vst [vmem:[#allocation2 + $0x228] sm:$0xf] %v1214_v63  ;;  %v565_v5 = vor.u32 %v564_v59, %v560_v34  ;;  %5039 = vmatprep.subr.bf16.mxu0 %v6940_v1 }
  0x6d   : > { %4734 = vmatmul.mubr.bf16.gmra.mxu0 %v6047_v2  ;;  %v3143_v2 = vld [vmem:[#allocation2 + $0x1d4] sm:$0xff]  ;;  %v570_v6 = vrot.slane %v568_v60, 5  ;;  %v578_v7 = vshll.u32 %v376_v58, 16  ;;  %813 = vst [vmem:[#allocation2 + $0x220] sm:$0xf] %v561_v4  ;;  %v574_v10 = vrot.slane %v572_v0, 4  ;;  %5215 = vmatpush1.bf16.msra.mxu1 %v6732_v8 }
  0x6e   : > { %4911 = vmatmul.mubr.bf16.gmra.mxu1 %v6698_v13  ;;  %4741 = vmatprep.mubr.bf16.mxu0 %v6701_v16  ;;  %v6708_v3 = vld [vmem:[#allocation2 + $0x1b4] ss:$36 sps:$4 sm:$0xff]   ;;  %v6065_v9 = vcombine.low %v7373_v45, %v3143_v2  ;;  %v582_v11 = vshrl.u32 %v376_v58, 16  ;;  %v851_v12 = vld [vmem:[%s7054_s7 + $0x44] sm:$0xf]  ;;  %v960_v16 = vrot.slane %v958_v36, 4 }
  0x6f   : > { %4918 = vmatprep.mubr.bf16.mxu1 %v6703_v14  ;;  %v852_v13 = vld [vmem:[%s7054_s7 + $0x48] sm:$0xf]  ;;  %v566_v14 = vrot.slane %v565_v5, 4  ;;  %v580_v15 = vrot.slane %v578_v7, 5  ;;  %v961_v17 = vrot.slane %v851_v12, 5  ;;  %v575_v19 = vor.u32 %v574_v10, %v570_v6  ;;  %5216 = vmatprep.subr.bf16.mxu1 %v6940_v1  ;;  %v3148_v36 = vld [vmem:[#allocation2 + $0x1f8] sm:$0xff] }
  0x70   : > { %v1109_v18 = vld [vmem:[%s7054_s7 + $0x4c] sm:$0xf]  ;;  %v964_v20 = vrot.slane %v852_v13, 5  ;;  %v1110_v21 = vld [vmem:[%s7054_s7 + $0x50] sm:$0xf]  ;;  %v1215_v22 = vrot.slane %v1213_v42, 4 }
  0x71   : > { %v1216_v23 = vrot.slane %v1109_v18, 5  ;;  %v6712_v24 = vld [vmem:[#allocation2 + $0x1b8] ss:$36 sps:$4 sm:$0xff]   ;;  %v571_v25 = vsel %vm7097_vm5, %v566_v14, %v570_v6  ;;  %v962_v26 = vsel %vm7084_vm4, %v960_v16, %v961_v17  ;;  %v963_v27 = vrot.slane %v961_v17, 4  ;;  %v304_v34 = vld [vmem:[%s7054_s7 + $0x48] sm:$0xf] }
  0x72   : > { %v1219_v28 = vrot.slane %v1110_v21, 5  ;;  %v576_v29 = vrot.slane %v575_v19, 4  ;;  %814 = vst [vmem:[#allocation2 + $0x244] sm:$0xf] %v571_v25  ;;  %1072 = vst [vmem:[#allocation2 + $0x248] sm:$0xf] %v962_v26 }
  0x73   : > { %v1217_v30 = vsel %vm7084_vm4, %v1215_v22, %v1216_v23  ;;  %v1218_v31 = vrot.slane %v1216_v23, 4  ;;  %v584_v32 = vrot.slane %v582_v11, 4  ;;  %v965_v33 = vsel %vm7084_vm4, %v963_v27, %v964_v20  ;;  %v305_v35 = vld [vmem:[%s7054_s7 + $0x4c] sm:$0xf]  ;;  %v6716_v37 = vld [vmem:[#allocation2 + $0x204] ss:$36 sps:$4 sm:$0xff]  }
  0x74   : > { %1327 = vst [vmem:[#allocation2 + $0x24c] sm:$0xf] %v1217_v30  ;;  %v581_v39 = vsel %vm7097_vm5, %v576_v29, %v580_v15  ;;  %1073 = vst [vmem:[#allocation2 + $0x26c] sm:$0xf] %v965_v33  ;;  %v966_v42 = vrot.slane %v964_v20, 4  ;;  %v3153_v43 = vld [vmem:[#allocation2 + $0x21c] sm:$0xff] }
  0x75   : > { %4742 = vmatmul.mubr.bf16.gmra.mxu0 %v6056_v51  ;;  %v1220_v40 = vsel %vm7084_vm4, %v1218_v31, %v1219_v28  ;;  %340 = vst [vmem:[#allocation2 + $0x288] sm:$0xf] %v304_v34  ;;  %341 = vst [vmem:[#allocation2 + $0x2ac] sm:$0xf] %v305_v35  ;;  %v585_v41 = vor.u32 %v584_v32, %v580_v15  ;;  %v377_v45 = vld [vmem:[%s7054_s7 + $0x4c] sm:$0xf] }
  0x76   : > { %4919 = vmatmul.mubr.bf16.gmra.mxu1 %v6705_v44  ;;  %4749 = vmatprep.mubr.bf16.mxu0 %v6708_v3  ;;  %v6714_v44 = vld [vmem:[#allocation2 + $0x1fc] ss:$36 sps:$4 sm:$0xff]   ;;  %815 = vst [vmem:[#allocation2 + $0x268] sm:$0xf] %v581_v39  ;;  %1328 = vst [vmem:[#allocation2 + $0x270] sm:$0xf] %v1220_v40 }
  0x77   : > { %4926 = vmatprep.mubr.bf16.mxu1 %v6710_v62  ;;  %v1221_v46 = vrot.slane %v1219_v28, 4  ;;  %v378_v47 = vld [vmem:[%s7054_s7 + $0x50] sm:$0xf]  ;;  %v586_v48 = vrot.slane %v585_v41, 4  ;;  %v588_v49 = vshll.u32 %v377_v45, 16  ;;  %v592_v51 = vshrl.u32 %v377_v45, 16 }
  0x78   : > { %v6733_v52 = vld [vmem:[%s9327_s1 + $0x178] sm:$0xff]   ;;  %v598_v53 = vshll.u32 %v378_v47, 16  ;;  %v602_v54 = vshrl.u32 %v378_v47, 16  ;;  %v853_v55 = vld [vmem:[%s7054_s7 + $0x4c] sm:$0xf]  ;;  %v6074_v62 = vcombine.low %v3148_v36, %v3153_v43 }
  0x79   : > { %v854_v56 = vld [vmem:[%s7054_s7 + $0x50] sm:$0xf]  ;;  %v590_v57 = vrot.slane %v588_v49, 5  ;;  %v594_v58 = vrot.slane %v592_v51, 4  ;;  %v967_v59 = vrot.slane %v853_v55, 5  ;;  %5040 = vmatpush2.bf16.msra.mxu0 %v6733_v52  ;;  %v3158_v13 = vld [vmem:[#allocation2 + $0x240] sm:$0xff] }
  0x7a   : > { %v970_v60 = vrot.slane %v854_v56, 5  ;;  %v1111_v61 = vld [vmem:[%s7054_s7 + $0x54] sm:$0xf]  ;;  %v6719_v63 = vld [vmem:[#allocation2 + $0x200] ss:$36 sps:$4 sm:$0xff]   ;;  %v600_v0 = vrot.slane %v598_v53, 5  ;;  %5041 = vmatprep.subr.bf16.mxu0 %v6940_v1 }
  0x7b   : > { %v1112_v2 = vld [vmem:[%s7054_s7 + $0x58] sm:$0xf]  ;;  %v1222_v3 = vrot.slane %v1111_v61, 5  ;;  %v604_v4 = vrot.slane %v602_v54, 4  ;;  %v591_v5 = vsel %vm7097_vm5, %v586_v48, %v590_v57  ;;  %v595_v6 = vor.u32 %v594_v58, %v590_v57  ;;  %v306_v20 = vld [vmem:[%s7054_s7 + $0x50] sm:$0xf] }
  0x7c   : > { %v968_v7 = vsel %vm7084_vm4, %v966_v42, %v967_v59  ;;  %v969_v8 = vrot.slane %v967_v59, 4  ;;  %816 = vst [vmem:[#allocation2 + $0x28c] sm:$0xf] %v591_v5  ;;  %v1225_v11 = vrot.slane %v1112_v2, 5  ;;  %v972_v21 = vrot.slane %v970_v60, 4  ;;  %v6739_v51 = vld [vmem:[%s9327_s1 + $0x1f8] sm:$0xff]  }
  0x7d   : > { %4750 = vmatmul.mubr.bf16.gmra.mxu0 %v6065_v9  ;;  %1074 = vst [vmem:[#allocation2 + $0x290] sm:$0xf] %v968_v7  ;;  %v1223_v9 = vsel %vm7084_vm4, %v1221_v46, %v1222_v3  ;;  %v1224_v10 = vrot.slane %v1222_v3, 4  ;;  %v605_v12 = vor.u32 %v604_v4, %v600_v0  ;;  %v6720_v14 = vld [vmem:[#allocation2 + $0x244] ss:$36 sps:$4 sm:$0xff]   ;;  %v596_v15 = vrot.slane %v595_v6, 4  ;;  %5217 = vmatpush2.bf16.msra.mxu1 %v6739_v51 }
  0x7e   : > { %4927 = vmatmul.mubr.bf16.gmra.mxu1 %v6712_v24  ;;  %4757 = vmatprep.mubr.bf16.mxu0 %v6714_v44  ;;  %v971_v16 = vsel %vm7084_vm4, %v969_v8, %v970_v60  ;;  %1329 = vst [vmem:[#allocation2 + $0x294] sm:$0xf] %v1223_v9  ;;  %v3163_v17 = vld [vmem:[#allocation2 + $0x264] sm:$0xff]  ;;  %v6722_v18 = vld [vmem:[#allocation2 + $0x24c] ss:$36 sps:$4 sm:$0xff]   ;;  %v1227_v45 = vrot.slane %v1225_v11, 4 }
  0x7f   : > { %4934 = vmatprep.mubr.bf16.mxu1 %v6716_v37  ;;  %1075 = vst [vmem:[#allocation2 + $0x2b4] sm:$0xf] %v971_v16  ;;  %v1226_v19 = vsel %vm7084_vm4, %v1224_v10, %v1225_v11  ;;  %v601_v22 = vsel %vm7097_vm5, %v596_v15, %v600_v0  ;;  %v307_v23 = vld [vmem:[%s7054_s7 + $0x54] sm:$0xf]  ;;  %342 = vst [vmem:[#allocation2 + $0x2d0] sm:$0xf] %v306_v20  ;;  %v6083_v31 = vcombine.low %v3158_v13, %v3163_v17 }
  0x80   : > { %1330 = vst [vmem:[#allocation2 + $0x2b8] sm:$0xf] %v1226_v19  ;;  %v379_v24 = vld [vmem:[%s7054_s7 + $0x54] sm:$0xf]  ;;  %v380_v25 = vld [vmem:[%s7054_s7 + $0x58] sm:$0xf]  ;;  %5218 = vmatprep.subr.bf16.mxu1 %v6940_v1 }
  0x81   : > { %817 = vst [vmem:[#allocation2 + $0x2b0] sm:$0xf] %v601_v22  ;;  %343 = vst [vmem:[#allocation2 + $0x2f4] sm:$0xf] %v307_v23  ;;  %v606_v26 = vrot.slane %v605_v12, 4  ;;  %v608_v27 = vshll.u32 %v379_v24, 16 }
  0x82   : > { %v612_v28 = vshrl.u32 %v379_v24, 16  ;;  %v618_v29 = vshll.u32 %v380_v25, 16  ;;  %v855_v30 = vld [vmem:[%s7054_s7 + $0x54] sm:$0xf]  ;;  %v622_v32 = vshrl.u32 %v380_v25, 16 }
  0x83   : > { %v856_v33 = vld [vmem:[%s7054_s7 + $0x58] sm:$0xf]  ;;  %v973_v34 = vrot.slane %v855_v30, 5  ;;  %v1113_v35 = vld [vmem:[%s7054_s7 + $0x5c] sm:$0xf]  ;;  %v610_v37 = vrot.slane %v608_v27, 5 }
  0x84   : > { %v6725_v36 = vld [vmem:[#allocation2 + $0x248] ss:$36 sps:$4 sm:$0xff]   ;;  %v614_v39 = vrot.slane %v612_v28, 4  ;;  %v620_v40 = vrot.slane %v618_v29, 5  ;;  %v976_v41 = vrot.slane %v856_v33, 5  ;;  %v1228_v46 = vrot.slane %v1113_v35, 5 }
  0x85   : > { %4758 = vmatmul.mubr.bf16.gmra.mxu0 %v6074_v62  ;;  %v1114_v42 = vld [vmem:[%s7054_s7 + $0x60] sm:$0xf]  ;;  %v974_v43 = vsel %vm7084_vm4, %v972_v21, %v973_v34  ;;  %v975_v44 = vrot.slane %v973_v34, 4  ;;  %v611_v47 = vsel %vm7097_vm5, %v606_v26, %v610_v37  ;;  %v624_v52 = vrot.slane %v622_v32, 4  ;;  %v6740_v56 = vld [vmem:[%s9327_s1 + $0x170] sm:$0xff]   ;;  %v3168_v57 = vld [vmem:[#allocation2 + $0x288] sm:$0xff] }
  0x86   : > { %4935 = vmatmul.mubr.bf16.gmra.mxu1 %v6719_v63  ;;  %4765 = vmatprep.mubr.bf16.mxu0 %v6720_v14  ;;  %v615_v48 = vor.u32 %v614_v39, %v610_v37  ;;  %1076 = vst [vmem:[#allocation2 + $0x2d8] sm:$0xf] %v974_v43  ;;  %v1231_v49 = vrot.slane %v1114_v42, 5  ;;  %818 = vst [vmem:[#allocation2 + $0x2d4] sm:$0xf] %v611_v47  ;;  %v1229_v54 = vsel %vm7084_vm4, %v1227_v45, %v1228_v46  ;;  %v6746_v30 = vld [vmem:[%s9327_s1 + $0x1f0] sm:$0xff]  }
  0x87   : > { %4942 = vmatprep.mubr.bf16.mxu1 %v6722_v18  ;;  %v977_v53 = vsel %vm7084_vm4, %v975_v44, %v976_v41  ;;  %v1230_v55 = vrot.slane %v1228_v46, 4  ;;  %v6729_v58 = vld [vmem:[#allocation2 + $0x294] ss:$36 sps:$4 sm:$0xff]   ;;  %1331 = vst [vmem:[#allocation2 + $0x2dc] sm:$0xf] %v1229_v54  ;;  %v625_v60 = vor.u32 %v624_v52, %v620_v40  ;;  %v978_v2 = vrot.slane %v976_v41, 4  ;;  %5042 = vmatpush2.bf16.msra.mxu0 %v6740_v56 }
  0x88   : > { %v616_v59 = vrot.slane %v615_v48, 4  ;;  %1077 = vst [vmem:[#allocation2 + $0x2fc] sm:$0xf] %v977_v53  ;;  %v3173_v61 = vld [vmem:[#allocation2 + $0x2ac] sm:$0xff]  ;;  %v308_v0 = vld [vmem:[%s7054_s7 + $0x58] sm:$0xf]  ;;  %5043 = vmatprep.subr.bf16.mxu0 %v6940_v1  ;;  %5219 = vmatpush2.bf16.msra.mxu1 %v6746_v30 }
  0x89   : > { %v6727_v62 = vld [vmem:[#allocation2 + $0x28c] ss:$36 sps:$4 sm:$0xff]   ;;  %v1232_v63 = vsel %vm7084_vm4, %v1230_v55, %v1231_v49  ;;  %v309_v4 = vld [vmem:[%s7054_s7 + $0x5c] sm:$0xf]  ;;  %344 = vst [vmem:[#allocation2 + $0x318] sm:$0xf] %v308_v0  ;;  %v6092_v12 = vcombine.low %v3168_v57, %v3173_v61  ;;  %5220 = vmatprep.subr.bf16.mxu1 %v6940_v1 }
  0x8a   : > { %v621_v3 = vsel %vm7097_vm5, %v616_v59, %v620_v40  ;;  %1332 = vst [vmem:[#allocation2 + $0x300] sm:$0xf] %v1232_v63  ;;  %v381_v5 = vld [vmem:[%s7054_s7 + $0x5c] sm:$0xf]  ;;  %v382_v6 = vld [vmem:[%s7054_s7 + $0x60] sm:$0xf] }
  0x8b   : > { %819 = vst [vmem:[#allocation2 + $0x2f8] sm:$0xf] %v621_v3  ;;  %345 = vst [vmem:[#allocation2 + $0x33c] sm:$0xf] %v309_v4  ;;  %v626_v7 = vrot.slane %v625_v60, 4  ;;  %v628_v8 = vshll.u32 %v381_v5, 16 }
  0x8c   : > { %v632_v9 = vshrl.u32 %v381_v5, 16  ;;  %v638_v10 = vshll.u32 %v382_v6, 16  ;;  %v857_v11 = vld [vmem:[%s7054_s7 + $0x5c] sm:$0xf]  ;;  %v6731_v13 = vld [vmem:[#allocation2 + $0x290] ss:$36 sps:$4 sm:$0xff]  }
  0x8d   : > { %4766 = vmatmul.mubr.bf16.gmra.mxu0 %v6083_v31  ;;  %v642_v14 = vshrl.u32 %v382_v6, 16  ;;  %v858_v15 = vld [vmem:[%s7054_s7 + $0x60] sm:$0xf]  ;;  %v979_v16 = vrot.slane %v857_v11, 5  ;;  %v1115_v17 = vld [vmem:[%s7054_s7 + $0x64] sm:$0xf] }
  0x8e   : > { %4943 = vmatmul.mubr.bf16.gmra.mxu1 %v6725_v36  ;;  %4773 = vmatprep.mubr.bf16.mxu0 %v6727_v62  ;;  %v630_v18 = vrot.slane %v628_v8, 5  ;;  %v634_v19 = vrot.slane %v632_v9, 4  ;;  %v640_v20 = vrot.slane %v638_v10, 5  ;;  %v982_v21 = vrot.slane %v858_v15, 5  ;;  %v1116_v22 = vld [vmem:[%s7054_s7 + $0x68] sm:$0xf] }
  0x8f   : > { %4950 = vmatprep.mubr.bf16.mxu1 %v6729_v58  ;;  %v980_v23 = vsel %vm7084_vm4, %v978_v2, %v979_v16  ;;  %v981_v24 = vrot.slane %v979_v16, 4  ;;  %v1233_v25 = vrot.slane %v1231_v49, 4  ;;  %v1234_v26 = vrot.slane %v1115_v17, 5  ;;  %v6747_v35 = vld [vmem:[%s9327_s1 + $0x168] sm:$0xff]   ;;  %v3178_v36 = vld [vmem:[#allocation2 + $0x2d0] sm:$0xff]  ;;  %v6754_v17 = vld [vmem:[%s9327_s1 + $0x160] sm:$0xff]  }
  0x90   : > { %v631_v27 = vsel %vm7097_vm5, %v626_v7, %v630_v18  ;;  %v635_v28 = vor.u32 %v634_v19, %v630_v18  ;;  %1078 = vst [vmem:[#allocation2 + $0x320] sm:$0xf] %v980_v23  ;;  %v1237_v29 = vrot.slane %v1116_v22, 5  ;;  %v644_v31 = vrot.slane %v642_v14, 4  ;;  %5044 = vmatpush2.bf16.msra.mxu0 %v6747_v35  ;;  %v310_v44 = vld [vmem:[%s7054_s7 + $0x60] sm:$0xf] }
  0x91   : > { %820 = vst [vmem:[#allocation2 + $0x31c] sm:$0xf] %v631_v27  ;;  %v983_v32 = vsel %vm7084_vm4, %v981_v24, %v982_v21  ;;  %v1235_v33 = vsel %vm7084_vm4, %v1233_v25, %v1234_v26  ;;  %v1236_v34 = vrot.slane %v1234_v26, 4  ;;  %v6736_v37 = vld [vmem:[#allocation2 + $0x2dc] ss:$36 sps:$4 sm:$0xff]   ;;  %v984_v45 = vrot.slane %v982_v21, 4  ;;  %5045 = vmatprep.subr.bf16.mxu0 %v6940_v1 }
  0x92   : > { %v636_v39 = vrot.slane %v635_v28, 4  ;;  %1079 = vst [vmem:[#allocation2 + $0x344] sm:$0xf] %v983_v32  ;;  %1333 = vst [vmem:[#allocation2 + $0x324] sm:$0xf] %v1235_v33  ;;  %v645_v40 = vor.u32 %v644_v31, %v640_v20  ;;  %v3183_v41 = vld [vmem:[#allocation2 + $0x2f4] sm:$0xff] }
  0x93   : > { %v6734_v42 = vld [vmem:[#allocation2 + $0x2d4] ss:$36 sps:$4 sm:$0xff]   ;;  %v1238_v43 = vsel %vm7084_vm4, %v1236_v34, %v1237_v29  ;;  %v311_v47 = vld [vmem:[%s7054_s7 + $0x64] sm:$0xf]  ;;  %346 = vst [vmem:[#allocation2 + $0x360] sm:$0xf] %v310_v44  ;;  %v6101_v57 = vcombine.low %v3178_v36, %v3183_v41 }
  0x94   : > { %v641_v46 = vsel %vm7097_vm5, %v636_v39, %v640_v20  ;;  %1334 = vst [vmem:[#allocation2 + $0x348] sm:$0xf] %v1238_v43  ;;  %v383_v48 = vld [vmem:[%s7054_s7 + $0x64] sm:$0xf]  ;;  %v384_v49 = vld [vmem:[%s7054_s7 + $0x68] sm:$0xf]  ;;  %5046 = vmatpush2.bf16.msra.mxu0 %v6754_v17 }
  0x95   : > { %4774 = vmatmul.mubr.bf16.gmra.mxu0 %v6092_v12  ;;  %v6738_v51 = vld [vmem:[#allocation2 + $0x2d8] ss:$36 sps:$4 sm:$0xff]   ;;  %821 = vst [vmem:[#allocation2 + $0x340] sm:$0xf] %v641_v46  ;;  %347 = vst [vmem:[#allocation2 + $0x384] sm:$0xf] %v311_v47  ;;  %5047 = vmatprep.subr.bf16.mxu0 %v6940_v1 }
  0x96   : > { %4951 = vmatmul.mubr.bf16.gmra.mxu1 %v6731_v13  ;;  %4781 = vmatprep.mubr.bf16.mxu0 %v6734_v42  ;;  %v646_v52 = vrot.slane %v645_v40, 4  ;;  %v648_v53 = vshll.u32 %v383_v48, 16  ;;  %v652_v54 = vshrl.u32 %v383_v48, 16  ;;  %v658_v55 = vshll.u32 %v384_v49, 16  ;;  %v859_v56 = vld [vmem:[%s7054_s7 + $0x64] sm:$0xf] }
  0x97   : > { %4958 = vmatprep.mubr.bf16.mxu1 %v6736_v37  ;;  %v662_v58 = vshrl.u32 %v384_v49, 16  ;;  %v860_v59 = vld [vmem:[%s7054_s7 + $0x68] sm:$0xf]  ;;  %v985_v60 = vrot.slane %v859_v56, 5  ;;  %v1117_v61 = vld [vmem:[%s7054_s7 + $0x6c] sm:$0xf] }
  0x98   : > { %v650_v62 = vrot.slane %v648_v53, 5  ;;  %v654_v63 = vrot.slane %v652_v54, 4  ;;  %v660_v0 = vrot.slane %v658_v55, 5  ;;  %v988_v2 = vrot.slane %v860_v59, 5  ;;  %v1118_v3 = vld [vmem:[%s7054_s7 + $0x70] sm:$0xf] }
  0x99   : > { %v7505_v4 = vld [vmem:[#allocation2 + $0x318] sm:$0xff]  ;;  %v986_v5 = vsel %vm7084_vm4, %v984_v45, %v985_v60  ;;  %v987_v6 = vrot.slane %v985_v60, 4  ;;  %v1239_v7 = vrot.slane %v1237_v29, 4  ;;  %v1240_v8 = vrot.slane %v1117_v61, 5  ;;  %v6753_v12 = vld [vmem:[%s9327_s1 + $0x1e8] sm:$0xff]   ;;  %v6760_v56 = vld [vmem:[%s9327_s1 + $0x1e0] sm:$0xff]  }
  0x9a   : > { %v651_v9 = vsel %vm7097_vm5, %v646_v52, %v650_v62  ;;  %v655_v10 = vor.u32 %v654_v63, %v650_v62  ;;  %1080 = vst [vmem:[#allocation2 + $0x368] sm:$0xf] %v986_v5  ;;  %v1243_v11 = vrot.slane %v1118_v3, 5  ;;  %v664_v13 = vrot.slane %v662_v58, 4  ;;  %5221 = vmatpush2.bf16.msra.mxu1 %v6753_v12  ;;  %v312_v24 = vld [vmem:[%s7054_s7 + $0x68] sm:$0xf] }
  0x9b   : > { %822 = vst [vmem:[#allocation2 + $0x364] sm:$0xf] %v651_v9  ;;  %v989_v14 = vsel %vm7084_vm4, %v987_v6, %v988_v2  ;;  %v1241_v15 = vsel %vm7084_vm4, %v1239_v7, %v1240_v8  ;;  %v1242_v16 = vrot.slane %v1240_v8, 4  ;;  %v6743_v18 = vld [vmem:[#allocation2 + $0x324] ss:$36 sps:$4 sm:$0xff]   ;;  %v990_v25 = vrot.slane %v988_v2, 4  ;;  %5222 = vmatprep.subr.bf16.mxu1 %v6940_v1 }
  0x9c   : > { %v656_v19 = vrot.slane %v655_v10, 4  ;;  %1081 = vst [vmem:[#allocation2 + $0x38c] sm:$0xf] %v989_v14  ;;  %1335 = vst [vmem:[#allocation2 + $0x36c] sm:$0xf] %v1241_v15  ;;  %v665_v20 = vor.u32 %v664_v13, %v660_v0  ;;  %v3193_v21 = vld [vmem:[#allocation2 + $0x33c] sm:$0xff] }
  0x9d   : > { %4782 = vmatmul.mubr.bf16.gmra.mxu0 %v6101_v57  ;;  %v6741_v22 = vld [vmem:[#allocation2 + $0x31c] ss:$36 sps:$4 sm:$0xff]   ;;  %v1244_v23 = vsel %vm7084_vm4, %v1242_v16, %v1243_v11  ;;  %v6110_v26 = vcombine.low %v7505_v4, %v3193_v21  ;;  %v313_v29 = vld [vmem:[%s7054_s7 + $0x6c] sm:$0xf]  ;;  %348 = vst [vmem:[#allocation2 + $0x3a8] sm:$0xf] %v312_v24 }
  0x9e   : > { %4959 = vmatmul.mubr.bf16.gmra.mxu1 %v6738_v51  ;;  %v6745_v27 = vld [vmem:[#allocation2 + $0x320] ss:$36 sps:$4 sm:$0xff]   ;;  %v661_v28 = vsel %vm7097_vm5, %v656_v19, %v660_v0  ;;  %1336 = vst [vmem:[#allocation2 + $0x390] sm:$0xf] %v1244_v23  ;;  %v385_v30 = vld [vmem:[%s7054_s7 + $0x6c] sm:$0xf]  ;;  %4789 = vmatprep.mubr.bf16.mxu0 %v6741_v22 }
  0x9f   : > { %4966 = vmatprep.mubr.bf16.mxu1 %v6743_v18  ;;  %v386_v31 = vld [vmem:[%s7054_s7 + $0x70] sm:$0xf]  ;;  %823 = vst [vmem:[#allocation2 + $0x388] sm:$0xf] %v661_v28  ;;  %349 = vst [vmem:[#allocation2 + $0x3cc] sm:$0xf] %v313_v29  ;;  %5223 = vmatpush2.bf16.msra.mxu1 %v6760_v56 }
  0xa0   : > { %v666_v32 = vrot.slane %v665_v20, 4  ;;  %v668_v33 = vshll.u32 %v385_v30, 16  ;;  %v672_v34 = vshrl.u32 %v385_v30, 16  ;;  %v678_v35 = vshll.u32 %v386_v31, 16  ;;  %v861_v36 = vld [vmem:[%s7054_s7 + $0x6c] sm:$0xf]  ;;  %5224 = vmatprep.subr.bf16.mxu1 %v6940_v1 }
  0xa1   : > { %v682_v37 = vshrl.u32 %v386_v31, 16  ;;  %v862_v39 = vld [vmem:[%s7054_s7 + $0x70] sm:$0xf]  ;;  %v991_v40 = vrot.slane %v861_v36, 5  ;;  %v1119_v41 = vld [vmem:[%s7054_s7 + $0x74] sm:$0xf] }
  0xa2   : > { %v670_v42 = vrot.slane %v668_v33, 5  ;;  %v674_v43 = vrot.slane %v672_v34, 4  ;;  %v680_v44 = vrot.slane %v678_v35, 5  ;;  %v994_v45 = vrot.slane %v862_v39, 5  ;;  %v7536_v46 = vld [vmem:[%s7054_s7 + $0x78] sm:$0xf] }
  0xa3   : > { %v3198_v47 = vld [vmem:[#allocation2 + $0x360] sm:$0xff]  ;;  %v992_v48 = vsel %vm7084_vm4, %v990_v25, %v991_v40  ;;  %v993_v49 = vrot.slane %v991_v40, 4  ;;  %v1245_v51 = vrot.slane %v1243_v11, 4  ;;  %v1246_v52 = vrot.slane %v1119_v41, 5  ;;  %v6761_v61 = vld [vmem:[%s9327_s1 + $0x158] sm:$0xff]   ;;  %v6768_v41 = vld [vmem:[%s9327_s1 + $0x150] sm:$0xff]  }
  0xa4   : > { %v671_v53 = vsel %vm7097_vm5, %v666_v32, %v670_v42  ;;  %v675_v54 = vor.u32 %v674_v43, %v670_v42  ;;  %1082 = vst [vmem:[#allocation2 + $0x3b0] sm:$0xf] %v992_v48  ;;  %v1249_v55 = vrot.slane %v7536_v46, 5  ;;  %v684_v57 = vrot.slane %v682_v37, 4  ;;  %v6752_v4 = vld [vmem:[#allocation2 + $0x368] ss:$36 sps:$4 sm:$0xff]   ;;  %5048 = vmatpush2.bf16.msra.mxu0 %v6761_v61 }
  0xa5   : > { %4790 = vmatmul.mubr.bf16.gmra.mxu0 %v6110_v26  ;;  %824 = vst [vmem:[#allocation2 + $0x3ac] sm:$0xf] %v671_v53  ;;  %v995_v58 = vsel %vm7084_vm4, %v993_v49, %v994_v45  ;;  %v1247_v59 = vsel %vm7084_vm4, %v1245_v51, %v1246_v52  ;;  %v1248_v60 = vrot.slane %v1246_v52, 4  ;;  %v6750_v62 = vld [vmem:[#allocation2 + $0x36c] ss:$36 sps:$4 sm:$0xff]   ;;  %v996_v7 = vrot.slane %v994_v45, 4  ;;  %5049 = vmatprep.subr.bf16.mxu0 %v6940_v1 }
  0xa6   : > { %4967 = vmatmul.mubr.bf16.gmra.mxu1 %v6745_v27  ;;  %v676_v63 = vrot.slane %v675_v54, 4  ;;  %1083 = vst [vmem:[#allocation2 + $0x3d4] sm:$0xf] %v995_v58  ;;  %1337 = vst [vmem:[#allocation2 + $0x3b4] sm:$0xf] %v1247_v59  ;;  %v685_v0 = vor.u32 %v684_v57, %v680_v44  ;;  %v3203_v2 = vld [vmem:[#allocation2 + $0x384] sm:$0xff] }
  0xa7   : > { %v6748_v3 = vld [vmem:[#allocation2 + $0x364] ss:$36 sps:$4 sm:$0xff]   ;;  %v1250_v5 = vsel %vm7084_vm4, %v1248_v60, %v1249_v55  ;;  %v314_v6 = vld [vmem:[%s7054_s7 + $0x70] sm:$0xf]  ;;  %4974 = vmatprep.mubr.bf16.mxu1 %v6750_v62  ;;  %v6119_v8 = vcombine.low %v3198_v47, %v3203_v2  ;;  %v315_v10 = vld [vmem:[%s7054_s7 + $0x74] sm:$0xf] }
  0xa8   : > { %v681_v9 = vsel %vm7097_vm5, %v676_v63, %v680_v44  ;;  %1338 = vst [vmem:[#allocation2 + $0x3d8] sm:$0xf] %v1250_v5  ;;  %350 = vst [vmem:[#allocation2 + $0x3f0] sm:$0xf] %v314_v6  ;;  %v387_v11 = vld [vmem:[%s7054_s7 + $0x74] sm:$0xf]  ;;  %4797 = vmatprep.mubr.bf16.mxu0 %v6748_v3  ;;  %5050 = vmatpush2.bf16.msra.mxu0 %v6768_v41 }
  0xa9   : > { %v388_v12 = vld [vmem:[%s7054_s7 + $0x78] sm:$0xf]  ;;  %825 = vst [vmem:[#allocation2 + $0x3d0] sm:$0xf] %v681_v9  ;;  %351 = vst [vmem:[#allocation2 + $0x414] sm:$0xf] %v315_v10  ;;  %5051 = vmatprep.subr.bf16.mxu0 %v6940_v1 }
  0xaa   : > { %v686_v13 = vrot.slane %v685_v0, 4  ;;  %v688_v14 = vshll.u32 %v387_v11, 16  ;;  %v692_v15 = vshrl.u32 %v387_v11, 16  ;;  %v698_v16 = vshll.u32 %v388_v12, 16  ;;  %v863_v17 = vld [vmem:[%s7054_s7 + $0x74] sm:$0xf] }
  0xab   : > { %v702_v18 = vshrl.u32 %v388_v12, 16  ;;  %v864_v19 = vld [vmem:[%s7054_s7 + $0x78] sm:$0xf]  ;;  %v997_v20 = vrot.slane %v863_v17, 5  ;;  %v1121_v21 = vld [vmem:[%s7054_s7 + $0x7c] sm:$0xf] }
  0xac   : > { %v690_v22 = vrot.slane %v688_v14, 5  ;;  %v694_v23 = vrot.slane %v692_v15, 4  ;;  %v700_v24 = vrot.slane %v698_v16, 5  ;;  %v1000_v25 = vrot.slane %v864_v19, 5  ;;  %v7567_v26 = vld [vmem:[%s7054_s7 + $0x80] sm:$0xf] }
  0xad   : > { %4798 = vmatmul.mubr.bf16.gmra.mxu0 %v6119_v8  ;;  %v3208_v27 = vld [vmem:[#allocation2 + $0x3a8] sm:$0xff]  ;;  %v998_v28 = vsel %vm7084_vm4, %v996_v7, %v997_v20  ;;  %v999_v29 = vrot.slane %v997_v20, 4  ;;  %v1251_v30 = vrot.slane %v1249_v55, 4  ;;  %v1252_v31 = vrot.slane %v1121_v21, 5  ;;  %v6767_v35 = vld [vmem:[%s9327_s1 + $0x1d8] sm:$0xff]   ;;  %v6774_v16 = vld [vmem:[%s9327_s1 + $0x1d0] sm:$0xff]  }
  0xae   : > { %4975 = vmatmul.mubr.bf16.gmra.mxu1 %v6752_v4  ;;  %v691_v32 = vsel %vm7097_vm5, %v686_v13, %v690_v22  ;;  %v695_v33 = vor.u32 %v694_v23, %v690_v22  ;;  %1084 = vst [vmem:[#allocation2 + $0x3f8] sm:$0xf] %v998_v28  ;;  %v1255_v34 = vrot.slane %v7567_v26, 5  ;;  %v704_v36 = vrot.slane %v702_v18, 4  ;;  %v6759_v43 = vld [vmem:[#allocation2 + $0x3b0] ss:$36 sps:$4 sm:$0xff]  }
  0xaf   : > { %826 = vst [vmem:[#allocation2 + $0x3f4] sm:$0xf] %v691_v32  ;;  %v1001_v37 = vsel %vm7084_vm4, %v999_v29, %v1000_v25  ;;  %v1253_v39 = vsel %vm7084_vm4, %v1251_v30, %v1252_v31  ;;  %v1254_v40 = vrot.slane %v1252_v31, 4  ;;  %v6757_v42 = vld [vmem:[#allocation2 + $0x3b4] ss:$36 sps:$4 sm:$0xff]   ;;  %5225 = vmatpush2.bf16.msra.mxu1 %v6767_v35  ;;  %v1002_v51 = vrot.slane %v1000_v25, 4 }
  0xb0   : > { %v696_v44 = vrot.slane %v695_v33, 4  ;;  %1085 = vst [vmem:[#allocation2 + $0x41c] sm:$0xf] %v1001_v37  ;;  %1339 = vst [vmem:[#allocation2 + $0x3fc] sm:$0xf] %v1253_v39  ;;  %v705_v45 = vor.u32 %v704_v36, %v700_v24  ;;  %v3213_v46 = vld [vmem:[#allocation2 + $0x3cc] sm:$0xff]  ;;  %5226 = vmatprep.subr.bf16.mxu1 %v6940_v1  ;;  %4982 = vmatprep.mubr.bf16.mxu1 %v6757_v42 }
  0xb1   : > { %v6755_v47 = vld [vmem:[#allocation2 + $0x3ac] ss:$36 sps:$4 sm:$0xff]   ;;  %v1256_v48 = vsel %vm7084_vm4, %v1254_v40, %v1255_v34  ;;  %v316_v49 = vld [vmem:[%s7054_s7 + $0x78] sm:$0xf]  ;;  %v6128_v52 = vcombine.low %v3208_v27, %v3213_v46  ;;  %v317_v54 = vld [vmem:[%s7054_s7 + $0x7c] sm:$0xf] }
  0xb2   : > { %v701_v53 = vsel %vm7097_vm5, %v696_v44, %v700_v24  ;;  %1340 = vst [vmem:[#allocation2 + $0x420] sm:$0xf] %v1256_v48  ;;  %352 = vst [vmem:[#allocation2 + $0x438] sm:$0xf] %v316_v49  ;;  %v389_v55 = vld [vmem:[%s7054_s7 + $0x7c] sm:$0xf]  ;;  %4805 = vmatprep.mubr.bf16.mxu0 %v6755_v47 }
  0xb3   : > { %v390_v56 = vld [vmem:[%s7054_s7 + $0x80] sm:$0xf]  ;;  %827 = vst [vmem:[#allocation2 + $0x418] sm:$0xf] %v701_v53  ;;  %353 = vst [vmem:[#allocation2 + $0x45c] sm:$0xf] %v317_v54  ;;  %5227 = vmatpush2.bf16.msra.mxu1 %v6774_v16 }
  0xb4   : > { %v706_v57 = vrot.slane %v705_v45, 4  ;;  %v708_v58 = vshll.u32 %v389_v55, 16  ;;  %v712_v59 = vshrl.u32 %v389_v55, 16  ;;  %v718_v60 = vshll.u32 %v390_v56, 16  ;;  %v865_v61 = vld [vmem:[%s7054_s7 + $0x7c] sm:$0xf]  ;;  %5228 = vmatprep.subr.bf16.mxu1 %v6940_v1 }
  0xb5   : > { %v722_v62 = vshrl.u32 %v390_v56, 16  ;;  %v866_v63 = vld [vmem:[%s7054_s7 + $0x80] sm:$0xf]  ;;  %v1003_v0 = vrot.slane %v865_v61, 5  ;;  %v1123_v2 = vld [vmem:[%s7054_s7 + $0x84] sm:$0xf]  ;;  %4806 = vmatmul.mubr.bf16.gmra.mxu0 %v6128_v52 }
  0xb6   : > { %v710_v3 = vrot.slane %v708_v58, 5  ;;  %v714_v4 = vrot.slane %v712_v59, 4  ;;  %v720_v5 = vrot.slane %v718_v60, 5  ;;  %v1006_v6 = vrot.slane %v866_v63, 5  ;;  %v1124_v7 = vld [vmem:[%s7054_s7 + $0x88] sm:$0xf]  ;;  %4983 = vmatmul.mubr.bf16.gmra.mxu1 %v6759_v43 }
  0xb7   : > { %v3218_v8 = vld [vmem:[#allocation2 + $0x3f0] sm:$0xff]  ;;  %v1004_v9 = vsel %vm7084_vm4, %v1002_v51, %v1003_v0  ;;  %v1005_v10 = vrot.slane %v1003_v0, 4  ;;  %v1257_v11 = vrot.slane %v1255_v34, 4  ;;  %v1258_v12 = vrot.slane %v1123_v2, 5  ;;  %v318_v21 = vld [vmem:[%s7054_s7 + $0x80] sm:$0xf] }
  0xb8   : > { %v711_v13 = vsel %vm7097_vm5, %v706_v57, %v710_v3  ;;  %v715_v14 = vor.u32 %v714_v4, %v710_v3  ;;  %1086 = vst [vmem:[#allocation2 + $0x440] sm:$0xf] %v1004_v9  ;;  %v1261_v15 = vrot.slane %v1124_v7, 5  ;;  %v724_v17 = vrot.slane %v722_v62, 4  ;;  %v319_v22 = vld [vmem:[%s7054_s7 + $0x84] sm:$0xf] }
  0xb9   : > { %828 = vst [vmem:[#allocation2 + $0x43c] sm:$0xf] %v711_v13  ;;  %v1007_v18 = vsel %vm7084_vm4, %v1005_v10, %v1006_v6  ;;  %v1259_v19 = vsel %vm7084_vm4, %v1257_v11, %v1258_v12  ;;  %v1260_v20 = vrot.slane %v1258_v12, 4  ;;  %v1008_v23 = vrot.slane %v1006_v6, 4  ;;  %v6764_v24 = vld [vmem:[#allocation2 + $0x3fc] ss:$36 sps:$4 sm:$0xff]  }
  0xba   : > { %v6766_v25 = vld [vmem:[#allocation2 + $0x3f8] ss:$36 sps:$4 sm:$0xff]   ;;  %v716_v26 = vrot.slane %v715_v14, 4  ;;  %1087 = vst [vmem:[#allocation2 + $0x464] sm:$0xf] %v1007_v18  ;;  %v725_v27 = vor.u32 %v724_v17, %v720_v5  ;;  %v1263_v32 = vrot.slane %v1261_v15, 4  ;;  %4990 = vmatprep.mubr.bf16.mxu1 %v6764_v24 }
  0xbb   : > { %1341 = vst [vmem:[#allocation2 + $0x444] sm:$0xf] %v1259_v19  ;;  %354 = vst [vmem:[#allocation2 + $0x480] sm:$0xf] %v318_v21  ;;  %v3223_v28 = vld [vmem:[#allocation2 + $0x414] sm:$0xff]  ;;  %v1262_v30 = vsel %vm7084_vm4, %v1260_v20, %v1261_v15  ;;  %v6779_v54 = vld [vmem:[%s9327_s1 + $0x148] sm:$0xff]  }
  0xbc   : > { %355 = vst [vmem:[#allocation2 + $0x4a4] sm:$0xf] %v319_v22  ;;  %v6762_v29 = vld [vmem:[#allocation2 + $0x3f4] ss:$36 sps:$4 sm:$0xff]   ;;  %v391_v31 = vld [vmem:[%s7054_s7 + $0x84] sm:$0xf]  ;;  %v6137_v33 = vcombine.low %v3218_v8, %v3223_v28  ;;  %v721_v34 = vsel %vm7097_vm5, %v716_v26, %v720_v5  ;;  %5052 = vmatpush2.bf16.msra.mxu0 %v6779_v54 }
  0xbd   : > { %1342 = vst [vmem:[#allocation2 + $0x468] sm:$0xf] %v1262_v30  ;;  %v392_v35 = vld [vmem:[%s7054_s7 + $0x88] sm:$0xf]  ;;  %v726_v36 = vrot.slane %v725_v27, 4  ;;  %v728_v37 = vshll.u32 %v391_v31, 16  ;;  %4813 = vmatprep.mubr.bf16.mxu0 %v6762_v29  ;;  %5053 = vmatprep.subr.bf16.mxu0 %v6940_v1 }
  0xbe   : > { %v867_v39 = vld [vmem:[%s7054_s7 + $0x84] sm:$0xf]  ;;  %829 = vst [vmem:[#allocation2 + $0x460] sm:$0xf] %v721_v34  ;;  %v732_v40 = vshrl.u32 %v391_v31, 16  ;;  %v738_v41 = vshll.u32 %v392_v35, 16  ;;  %4814 = vmatmul.mubr.bf16.gmra.mxu0 %v6137_v33  ;;  %4991 = vmatmul.mubr.bf16.gmra.mxu1 %v6766_v25 }
  0xbf   : > { %v742_v42 = vshrl.u32 %v392_v35, 16  ;;  %v868_v43 = vld [vmem:[%s7054_s7 + $0x88] sm:$0xf]  ;;  %v1009_v44 = vrot.slane %v867_v39, 5  ;;  %v730_v45 = vrot.slane %v728_v37, 5 }
  0xc0   : > { %v1012_v46 = vrot.slane %v868_v43, 5  ;;  %v1125_v47 = vld [vmem:[%s7054_s7 + $0x8c] sm:$0xf]  ;;  %v1126_v48 = vld [vmem:[%s7054_s7 + $0x90] sm:$0xf]  ;;  %v734_v49 = vrot.slane %v732_v40, 4 }
  0xc1   : > { %v740_v51 = vrot.slane %v738_v41, 5  ;;  %v1010_v52 = vsel %vm7084_vm4, %v1008_v23, %v1009_v44  ;;  %v1011_v53 = vrot.slane %v1009_v44, 4  ;;  %v3228_v55 = vld [vmem:[#allocation2 + $0x438] sm:$0xff]  ;;  %v731_v56 = vsel %vm7097_vm5, %v726_v36, %v730_v45  ;;  %v320_v62 = vld [vmem:[%s7054_s7 + $0x88] sm:$0xf]  ;;  %v6787_v40 = vld [vmem:[%s9327_s1 + $0x140] sm:$0xff]  }
  0xc2   : > { %1088 = vst [vmem:[#allocation2 + $0x488] sm:$0xf] %v1010_v52  ;;  %v1264_v57 = vrot.slane %v1125_v47, 5  ;;  %v1267_v58 = vrot.slane %v1126_v48, 5  ;;  %v744_v59 = vrot.slane %v742_v42, 4  ;;  %v735_v60 = vor.u32 %v734_v49, %v730_v45  ;;  %v6785_v22 = vld [vmem:[%s9327_s1 + $0x1c8] sm:$0xff]   ;;  %5054 = vmatpush2.bf16.msra.mxu0 %v6787_v40 }
  0xc3   : > { %830 = vst [vmem:[#allocation2 + $0x484] sm:$0xf] %v731_v56  ;;  %v1013_v61 = vsel %vm7084_vm4, %v1011_v53, %v1012_v46  ;;  %v321_v63 = vld [vmem:[%s7054_s7 + $0x8c] sm:$0xf]  ;;  %v1014_v0 = vrot.slane %v1012_v46, 4  ;;  %5229 = vmatpush2.bf16.msra.mxu1 %v6785_v22  ;;  %v6788_v41 = vld [vmem:[%s9327_s1 + $0x1c0] sm:$0xff]  }
  0xc4   : > { %1089 = vst [vmem:[#allocation2 + $0x4ac] sm:$0xf] %v1013_v61  ;;  %v1265_v2 = vsel %vm7084_vm4, %v1263_v32, %v1264_v57  ;;  %v1266_v3 = vrot.slane %v1264_v57, 4  ;;  %356 = vst [vmem:[#allocation2 + $0x4c8] sm:$0xf] %v320_v62  ;;  %v745_v6 = vor.u32 %v744_v59, %v740_v51  ;;  %v1269_v7 = vrot.slane %v1267_v58, 4  ;;  %5230 = vmatprep.subr.bf16.mxu1 %v6940_v1 }
  0xc5   : > { %357 = vst [vmem:[#allocation2 + $0x4ec] sm:$0xf] %v321_v63  ;;  %v393_v4 = vld [vmem:[%s7054_s7 + $0x8c] sm:$0xf]  ;;  %v394_v5 = vld [vmem:[%s7054_s7 + $0x90] sm:$0x1] }
  0xc6   : > { %v6771_v8 = vld [vmem:[#allocation2 + $0x444] ss:$36 sps:$4 sm:$0xff]   ;;  %v736_v10 = vrot.slane %v735_v60, 4  ;;  %1343 = vst [vmem:[#allocation2 + $0x48c] sm:$0xf] %v1265_v2  ;;  %v3233_v11 = vld [vmem:[#allocation2 + $0x45c] sm:$0xff]  ;;  %v1268_v13 = vsel %vm7084_vm4, %v1266_v3, %v1267_v58 }
  0xc7   : > { %v6773_v9 = vld [vmem:[#allocation2 + $0x440] ss:$36 sps:$4 sm:$0xff]   ;;  %v746_v14 = vrot.slane %v745_v6, 4  ;;  %v748_v15 = vshll.u32 %v393_v4, 16  ;;  %v752_v16 = vshrl.u32 %v393_v4, 16  ;;  %4998 = vmatprep.mubr.bf16.mxu1 %v6771_v8  ;;  %v6146_v17 = vcombine.low %v3228_v55, %v3233_v11  ;;  %5231 = vmatpush2.bf16.msra.mxu1 %v6788_v41 }
  0xc8   : > { %v6769_v12 = vld [vmem:[#allocation2 + $0x43c] ss:$36 sps:$4 sm:$0xff]   ;;  %v741_v18 = vsel %vm7097_vm5, %v736_v10, %v740_v51  ;;  %1344 = vst [vmem:[#allocation2 + $0x4b0] sm:$0xf] %v1268_v13  ;;  %v758_v19 = vshll.u32 %v394_v5, 16  ;;  %4999 = vmatmul.mubr.bf16.gmra.mxu1 %v6773_v9 }
  0xc9   : > { %v869_v20 = vld [vmem:[%s7054_s7 + $0x8c] sm:$0xf]  ;;  %v870_v21 = vld [vmem:[%s7054_s7 + $0x90] sm:$0x1]  ;;  %4821 = vmatprep.mubr.bf16.mxu0 %v6769_v12  ;;  %831 = vst [vmem:[#allocation2 + $0x4a8] sm:$0xf] %v741_v18 }
  0xca   : > { %v750_v23 = vrot.slane %v748_v15, 5  ;;  %v754_v24 = vrot.slane %v752_v16, 4  ;;  %v1015_v25 = vrot.slane %v869_v20, 5  ;;  %v1018_v26 = vrot.slane %v870_v21, 5  ;;  %v1127_v27 = vld [vmem:[%s7054_s7 + $0x94] sm:$0xf]  ;;  %4822 = vmatmul.mubr.bf16.gmra.mxu0 %v6146_v17 }
  0xcb   : > { %v760_v28 = vrot.slane %v758_v19, 5  ;;  %v1128_v29 = vld [vmem:[%s7054_s7 + $0x98] sm:$0x1]  ;;  %v1270_v30 = vrot.slane %v1127_v27, 5  ;;  %v3238_v35 = vld [vmem:[#allocation2 + $0x480] sm:$0xff] }
  0xcc   : > { %v751_v31 = vsel %vm7097_vm5, %v746_v14, %v750_v23  ;;  %v755_v32 = vor.u32 %v754_v24, %v750_v23  ;;  %v1016_v33 = vsel %vm7084_vm4, %v1014_v0, %v1015_v25  ;;  %v1017_v34 = vrot.slane %v1015_v25, 4  ;;  %v1347_v45 = vld [vmem:[%s7054_s7 + $0x8] sm:$0xe]  ;;  %v1348_v46 = vld [vmem:[%s7054_s7 + $0xc] sm:$0xf] }
  0xcd   : > { %832 = vst [vmem:[#allocation2 + $0x4cc] sm:$0xf] %v751_v31  ;;  %1090 = vst [vmem:[#allocation2 + $0x4d0] sm:$0xf] %v1016_v33  ;;  %v1271_v36 = vsel %vm7084_vm4, %v1269_v7, %v1270_v30  ;;  %v1272_v37 = vrot.slane %v1270_v30, 4  ;;  %v1273_v39 = vrot.slane %v1128_v29, 5 }
  0xce   : > { %v756_v42 = vrot.slane %v755_v32, 4  ;;  %v1019_v43 = vsel %vm7084_vm4, %v1017_v34, %v1018_v26  ;;  %1345 = vst [vmem:[#allocation2 + $0x4d4] sm:$0xf] %v1271_v36  ;;  %v1349_v47 = vld [vmem:[%s7054_s7 + $0x10] sm:$0xf]  ;;  %v1388_v51 = vshrl.u32 %v1347_v45, 16 }
  0xcf   : > { %1091 = vst [vmem:[#allocation2 + $0x4f4] sm:$0xf] %v1019_v43  ;;  %v1274_v44 = vsel %vm7084_vm4, %v1272_v37, %v1273_v39  ;;  %v6777_v48 = vld [vmem:[#allocation2 + $0x48c] ss:$36 sps:$4 sm:$0xff]   ;;  %v1391_v38 = vshll.u32 %v1347_v45, 16  ;;  %v1397_v56 = vshrl.u32 %v1348_v46, 16 }
  0xd0   : > { %v6780_v1 = vld [vmem:[#allocation2 + $0x488] ss:$36 sps:$4 sm:$0xff]   ;;  %v761_v49 = vsel %vm7097_vm5, %v756_v42, %v760_v28  ;;  %1346 = vst [vmem:[#allocation2 + $0x4f8] sm:$0xf] %v1274_v44  ;;  %5006 = vmatprep.mubr.bf16.mxu1 %v6777_v48  ;;  %v1390_v55 = vrot.slane %v1388_v51, 5  ;;  %v1400_v58 = vshll.u32 %v1348_v46, 16 }
  0xd1   : > { %v3243_v52 = vld [vmem:[#allocation2 + $0x4a4] sm:$0xff]  ;;  %833 = vst [vmem:[#allocation2 + $0x4f0] sm:$0xf] %v761_v49  ;;  %5007 = vmatmul.mubr.bf16.gmra.mxu1 %v6780_v1  ;;  %v1393_v50 = vrot.slane %v1391_v38, 6  ;;  %v1407_v59 = vshrl.u32 %v1349_v47, 16  ;;  %v1410_v60 = vshll.u32 %v1349_v47, 16 }
  0xd2   : > { %v6775_v53 = vld [vmem:[#allocation2 + $0x484] ss:$36 sps:$4 sm:$0xff]   ;;  %v6155_v54 = vcombine.low %v3238_v35, %v3243_v52  ;;  %v1828_v61 = vld [vmem:[%s7054_s7 + $0xc] sm:$0xf]  ;;  %v1399_v63 = vrot.slane %v1397_v56, 5  ;;  %v1402_v3 = vrot.slane %v1400_v58, 6 }
  0xd3   : > { %v1827_v57 = vld [vmem:[%s7054_s7 + $0x8] sm:$0xc]  ;;  %4829 = vmatprep.mubr.bf16.mxu0 %v6775_v53  ;;  %v7674_v0 = vld [vmem:[%s7054_s7 + $0x10] sm:$0xf]  ;;  %v1394_v2 = vor.u32 %v1393_v50, %v1390_v55  ;;  %v1409_v4 = vrot.slane %v1407_v59, 5  ;;  %v1412_v5 = vrot.slane %v1410_v60, 6 }
  0xd4   : > { %4830 = vmatmul.mubr.bf16.gmra.mxu0 %v6155_v54  ;;  %v3248_v62 = vld [vmem:[#allocation2 + $0x4c8] sm:$0xff]  ;;  %v2085_v7 = vld [vmem:[%s7054_s7 + $0x10] sm:$0xc]  ;;  %v6007_v9 = vrot.slane %v1827_v57, 10  ;;  %v1906_v10 = vrot.slane %v1828_v61, 6  ;;  %v1909_v11 = vrot.slane %v7674_v0, 6  ;;  %v1403_v17 = vor.u32 %v1402_v3, %v1399_v63 }
  0xd5   : > { %v2086_v12 = vld [vmem:[%s7054_s7 + $0x14] sm:$0xf]  ;;  %v6008_v13 = vrot.slane %v2085_v7, 10  ;;  %v1395_v16 = vrot.slane %v1394_v2, 4  ;;  %v7689_v18 = vor.u32 %v1412_v5, %v1409_v4  ;;  %v7694_v23 = vld [vmem:[%s7054_s7 + $0x18] sm:$0xf] }
  0xd6   : > { %v6786_v15 = vld [vmem:[#allocation2 + $0x4d0] ss:$36 sps:$4 sm:$0xff]   ;;  %v1907_v21 = vsel %vm7676_vm10, %v6007_v9, %v1906_v10  ;;  %v1908_v22 = vrot.slane %v1906_v10, 4  ;;  %v1405_v26 = vrot.slane %v1403_v17, 4  ;;  %v2161_v27 = vrot.slane %v2086_v12, 6  ;;  %v7714_v37 = vld [vmem:[%s9327_s1 + $0x238] sm:$0xff]  }
  0xd7   : > { %v6783_v14 = vld [vmem:[#allocation2 + $0x4d4] ss:$36 sps:$4 sm:$0xff]   ;;  %v1404_v25 = vsel %vm7683_vm11, %v1395_v16, %v1403_v17  ;;  %2049 = vst [vmem:[#allocation2 + $0x14] sm:$0xf] %v1907_v21  ;;  %v2340_v28 = vld [vmem:[%s7054_s7 + $0x10] sm:$0xc]  ;;  %6541 = vmatprep.subr.bf16.mxu0 %v7714_v37  ;;  %6593 = vmatprep.subr.bf16.mxu1 %v7714_v37 }
  0xd8   : > { %v3253_v19 = vld [vmem:[#allocation2 + $0x4ec] sm:$0xff]  ;;  %5014 = vmatprep.mubr.bf16.mxu1 %v6783_v14  ;;  %v2341_v29 = vld [vmem:[%s7054_s7 + $0x14] sm:$0xf]  ;;  %1791 = vst [vmem:[#allocation2 + $0x10] sm:$0xf] %v1404_v25  ;;  %v1910_v30 = vsel %vm7676_vm10, %v1908_v22, %v1909_v11  ;;  %v2164_v31 = vrot.slane %v7694_v23, 6  ;;  %v1414_v34 = vsel %vm7683_vm11, %v1405_v26, %v7689_v18  ;;  %v2162_v35 = vsel %vm7676_vm10, %v6008_v13, %v2161_v27 }
  0xd9   : > { %v6781_v20 = vld [vmem:[#allocation2 + $0x4cc] ss:$36 sps:$4 sm:$0xff]   ;;  %v6164_v24 = vcombine.low %v3248_v62, %v3253_v19  ;;  %v2342_v32 = vld [vmem:[%s7054_s7 + $0x18] sm:$0xf]  ;;  %v2381_v33 = vshrl.u32 %v2340_v28, 16  ;;  %5015 = vmatmul.mubr.bf16.gmra.mxu1 %v6786_v15  ;;  %v2163_v36 = vrot.slane %v2161_v27, 4 }
  0xda   : > { %4837 = vmatprep.mubr.bf16.mxu0 %v6781_v20  ;;  %2050 = vst [vmem:[#allocation2 + $0x38] sm:$0xf] %v1910_v30  ;;  %1792 = vst [vmem:[#allocation2 + $0x34] sm:$0xf] %v1414_v34  ;;  %v2384_v40 = vshll.u32 %v2340_v28, 16  ;;  %v2390_v41 = vshrl.u32 %v2341_v29, 16 }
  0xdb   : > { %2304 = vst [vmem:[#allocation2 + $0x18] sm:$0xf] %v2162_v35  ;;  %v2383_v39 = vrot.slane %v2381_v33, 6  ;;  %v2393_v42 = vshll.u32 %v2341_v29, 16  ;;  %v2165_v43 = vsel %vm7676_vm10, %v2163_v36, %v2164_v31  ;;  %v2400_v44 = vshrl.u32 %v2342_v32, 16  ;;  %v7755_v19 = vld [vmem:[%s9327_s1 + $0x230] sm:$0xff]  }
  0xdc   : > { %4838 = vmatmul.mubr.bf16.gmra.mxu0 %v6164_v24  ;;  %v2403_v45 = vshll.u32 %v2342_v32, 16  ;;  %v1350_v46 = vld [vmem:[%s7054_s7 + $0x14] sm:$0xf]  ;;  %v1351_v47 = vld [vmem:[%s7054_s7 + $0x18] sm:$0xf]  ;;  %v2386_v48 = vrot.slane %v2384_v40, 7 }
  0xdd   : > { %2305 = vst [vmem:[#allocation2 + $0x3c] sm:$0xf] %v2165_v43  ;;  %v2392_v1 = vrot.slane %v2390_v41, 6  ;;  %v2395_v49 = vrot.slane %v2393_v42, 7  ;;  %v1415_v51 = vrot.slane %v7689_v18, 4  ;;  %v2402_v52 = vrot.slane %v2400_v44, 6 }
  0xde   : > { %v2405_v53 = vrot.slane %v2403_v45, 7  ;;  %v1417_v38 = vshrl.u32 %v1350_v46, 16  ;;  %v1420_v54 = vshll.u32 %v1350_v46, 16  ;;  %v2387_v55 = vor.u32 %v2386_v48, %v2383_v39  ;;  %v1830_v58 = vld [vmem:[%s7054_s7 + $0x14] sm:$0xf]  ;;  %v7780_v41 = vld [vmem:[%s9327_s1 + $0x228] sm:$0xff]  }
  0xdf   : > { %v2396_v56 = vor.u32 %v2395_v49, %v2392_v1  ;;  %v1427_v57 = vshrl.u32 %v1351_v47, 16  ;;  %v1430_v50 = vshll.u32 %v1351_v47, 16  ;;  %v7727_v59 = vld [vmem:[%s7054_s7 + $0x18] sm:$0xf]  ;;  %v1911_v2 = vrot.slane %v1909_v11, 4 }
  0xe0   : > { %v7735_v61 = vor.u32 %v2405_v53, %v2402_v52  ;;  %v1419_v62 = vrot.slane %v1417_v38, 5  ;;  %v1422_v63 = vrot.slane %v1420_v54, 6  ;;  %v2088_v3 = vld [vmem:[%s7054_s7 + $0x1c] sm:$0xf]  ;;  %v2388_v4 = vrot.slane %v2387_v55, 4 }
  0xe1   : > { %v2398_v5 = vrot.slane %v2396_v56, 4  ;;  %v1429_v7 = vrot.slane %v1427_v57, 5  ;;  %v1432_v9 = vrot.slane %v1430_v50, 6  ;;  %v7741_v10 = vld [vmem:[%s7054_s7 + $0x20] sm:$0xf]  ;;  %v1912_v15 = vrot.slane %v1830_v58, 6 }
  0xe2   : > { %v6789_v12 = vld [vmem:[#allocation2 + $0x10] ss:$36 sps:$4 sm:$0xff]   ;;  %v1423_v14 = vor.u32 %v1422_v63, %v1419_v62  ;;  %v2397_v16 = vsel %vm7731_vm14, %v2388_v4, %v2396_v56  ;;  %v1915_v17 = vrot.slane %v7727_v59, 6  ;;  %v2343_v18 = vld [vmem:[%s7054_s7 + $0x1c] sm:$0xf]  ;;  %v2166_v26 = vrot.slane %v2164_v31, 4 }
  0xe3   : > { %v6791_v13 = vld [vmem:[#allocation2 + $0x14] ss:$36 sps:$4 sm:$0xff]   ;;  %v2407_v0 = vsel %vm7731_vm14, %v2398_v5, %v7735_v61  ;;  %v7748_v11 = vor.u32 %v1432_v9, %v1429_v7  ;;  %2784 = vst [vmem:[#allocation2 + $0x1c] sm:$0xf] %v2397_v16  ;;  %v1913_v22 = vsel %vm7676_vm10, %v1911_v2, %v1912_v15  ;;  %v1914_v24 = vrot.slane %v1912_v15, 4  ;;  %v7797_v57 = vld [vmem:[%s9327_s1 + $0x220] sm:$0xff]  }
  0xe4   : > { %5055 = vmatprep.mubr.bf16.mxu0 %v6791_v13  ;;  %2785 = vst [vmem:[#allocation2 + $0x40] sm:$0xf] %v2407_v0  ;;  %v1424_v20 = vsel %vm7683_vm11, %v1415_v51, %v1423_v14  ;;  %v1425_v21 = vrot.slane %v1423_v14, 4  ;;  %v2344_v25 = vld [vmem:[%s7054_s7 + $0x20] sm:$0xf]  ;;  %v2167_v27 = vrot.slane %v2088_v3, 6 }
  0xe5   : > { %5056 = vmatmul.mubr.bf16.vlgmr.msra.gmra.mxu0 %v6789_v12  ;;  %1793 = vst [vmem:[#allocation2 + $0x58] sm:$0xf] %v1424_v20  ;;  %2051 = vst [vmem:[#allocation2 + $0x5c] sm:$0xf] %v1913_v22  ;;  %v2170_v28 = vrot.slane %v7741_v10, 6  ;;  %v2408_v29 = vrot.slane %v7735_v61, 4  ;;  %v1916_v33 = vsel %vm7676_vm10, %v1914_v24, %v1915_v17 }
  0xe6   : > { %v1352_v30 = vld [vmem:[%s7054_s7 + $0x1c] sm:$0xf]  ;;  %6542 = vmatpush3.bf16.msra.mxu0 %v7714_v37  ;;  %v1434_v32 = vsel %vm7683_vm11, %v1425_v21, %v7748_v11  ;;  %v2410_v34 = vshrl.u32 %v2343_v18, 16  ;;  %v2413_v23 = vshll.u32 %v2343_v18, 16  ;;  %2052 = vst [vmem:[#allocation2 + $0x80] sm:$0xf] %v1916_v33  ;;  %v2168_v31 = vsel %vm7676_vm10, %v2166_v26, %v2167_v27 }
  0xe7   : > { %1794 = vst [vmem:[#allocation2 + $0x7c] sm:$0xf] %v1434_v32  ;;  %v2169_v35 = vrot.slane %v2167_v27, 4  ;;  %v2420_v36 = vshrl.u32 %v2344_v25, 16  ;;  %v2423_v39 = vshll.u32 %v2344_v25, 16  ;;  %6543 = vmatprep.subr.bf16.mxu0 %v7755_v19  ;;  %v1435_v44 = vrot.slane %v7748_v11, 4 }
  0xe8   : > { %v1353_v40 = vld [vmem:[%s7054_s7 + $0x20] sm:$0xf]  ;;  %2306 = vst [vmem:[#allocation2 + $0x60] sm:$0xf] %v2168_v31  ;;  %v2412_v42 = vrot.slane %v2410_v34, 6  ;;  %v2415_v43 = vrot.slane %v2413_v23, 7 }
  0xe9   : > { %v1437_v45 = vshrl.u32 %v1352_v30, 16  ;;  %v1832_v46 = vld [vmem:[%s7054_s7 + $0x1c] sm:$0xf]  ;;  %v7785_v47 = vld [vmem:[%s7054_s7 + $0x20] sm:$0xf]  ;;  %v2171_v48 = vsel %vm7676_vm10, %v2169_v35, %v2170_v28  ;;  %v2422_v1 = vrot.slane %v2420_v36, 6 }
  0xea   : > { %v2425_v49 = vrot.slane %v2423_v39, 7  ;;  %v1440_v51 = vshll.u32 %v1352_v30, 16  ;;  %v2090_v52 = vld [vmem:[%s7054_s7 + $0x24] sm:$0xf]  ;;  %2307 = vst [vmem:[#allocation2 + $0x84] sm:$0xf] %v2171_v48  ;;  %v2416_v53 = vor.u32 %v2415_v43, %v2412_v42  ;;  %6544 = vmatpush3.bf16.msra.mxu0 %v7755_v19 }
  0xeb   : > { %v1439_v38 = vrot.slane %v1437_v45, 5  ;;  %v1447_v54 = vshrl.u32 %v1353_v40, 16  ;;  %v1450_v55 = vshll.u32 %v1353_v40, 16  ;;  %v7791_v56 = vld [vmem:[%s7054_s7 + $0x28] sm:$0xf]  ;;  %v1917_v61 = vrot.slane %v1915_v17, 4  ;;  %6545 = vmatprep.subr.bf16.mxu0 %v7780_v41 }
  0xec   : > { %v6792_v50 = vld [vmem:[#allocation2 + $0x18] ss:$36 sps:$4 sm:$0xff]   ;;  %v7799_v58 = vor.u32 %v2425_v49, %v2422_v1  ;;  %v1442_v59 = vrot.slane %v1440_v51, 6  ;;  %v2417_v2 = vsel %vm7731_vm14, %v2408_v29, %v2416_v53  ;;  %v2418_v3 = vrot.slane %v2416_v53, 4  ;;  %v2345_v7 = vld [vmem:[%s7054_s7 + $0x24] sm:$0xf] }
  0xed   : > { %v6794_v62 = vld [vmem:[#allocation2 + $0x1c] ss:$36 sps:$4 sm:$0xff]   ;;  %v1449_v4 = vrot.slane %v1447_v54, 5  ;;  %v1452_v5 = vrot.slane %v1450_v55, 6  ;;  %2786 = vst [vmem:[#allocation2 + $0x64] sm:$0xf] %v2417_v2 }
  0xee   : > { %v3090_v63 = vld [vmem:[#allocation2 + $0x58] sm:$0xff]  ;;  %v1443_v9 = vor.u32 %v1442_v59, %v1439_v38  ;;  %v1918_v10 = vrot.slane %v1832_v46, 6  ;;  %v1921_v12 = vrot.slane %v7785_v47, 6  ;;  %v2172_v13 = vrot.slane %v2170_v28, 4  ;;  %v2346_v14 = vld [vmem:[%s7054_s7 + $0x28] sm:$0xf]  ;;  %5232 = vmatprep.mubr.bf16.mxu1 %v6794_v62  ;;  %6546 = vmatpush3.bf16.msra.mxu0 %v7780_v41 }
  0xef   : > { %v3095_v15 = vld [vmem:[#allocation2 + $0x7c] sm:$0xff]  ;;  %v2427_v0 = vsel %vm7731_vm14, %v2418_v3, %v7799_v58  ;;  %v7810_v11 = vor.u32 %v1452_v5, %v1449_v4  ;;  %v2173_v17 = vrot.slane %v2090_v52, 6  ;;  %v2176_v18 = vrot.slane %v7791_v56, 6  ;;  %5233 = vmatmul.mubr.bf16.vlgmr.msra.gmra.mxu1 %v6792_v50  ;;  %6547 = vmatprep.subr.bf16.mxu0 %v7797_v57  ;;  %v1354_v30 = vld [vmem:[%s7054_s7 + $0x24] sm:$0xf]  ;;  %v7846_v42 = vld [vmem:[%s9327_s1 + $0x210] sm:$0xff]  }
  0xf0   : > { %v6796_v16 = vld [vmem:[#allocation2 + $0x5c] ss:$36 sps:$4 sm:$0xff]   ;;  %2787 = vst [vmem:[#allocation2 + $0x88] sm:$0xf] %v2427_v0  ;;  %v6024_v20 = vcombine.low %v3090_v63, %v3095_v15  ;;  %v1444_v21 = vsel %vm7683_vm11, %v1435_v44, %v1443_v9  ;;  %v1445_v22 = vrot.slane %v1443_v9, 4  ;;  %v1919_v24 = vsel %vm7676_vm10, %v1917_v61, %v1918_v10  ;;  %6601 = vmatpush3.bf16.msra.mxu1 %v7714_v37 }
  0xf1   : > { %v7822_v25 = vld [vmem:[%s9327_s1 + $0x218] sm:$0xff]   ;;  %5063 = vmatprep.mubr.bf16.mxu0 %v6796_v16  ;;  %1795 = vst [vmem:[#allocation2 + $0xa0] sm:$0xf] %v1444_v21  ;;  %v1920_v26 = vrot.slane %v1918_v10, 4  ;;  %2053 = vst [vmem:[#allocation2 + $0xa4] sm:$0xf] %v1919_v24  ;;  %v2174_v27 = vsel %vm7676_vm10, %v2172_v13, %v2173_v17  ;;  %6594 = vmatprep.subr.bf16.mxu1 %v7755_v19 }
  0xf2   : > { %v2175_v28 = vrot.slane %v2173_v17, 4  ;;  %v2428_v29 = vrot.slane %v7799_v58, 4  ;;  %5064 = vmatmul.mubr.bf16.gmra.mxu0 %v6024_v20  ;;  %v1454_v32 = vsel %vm7683_vm11, %v1445_v22, %v7810_v11  ;;  %2308 = vst [vmem:[#allocation2 + $0xa8] sm:$0xf] %v2174_v27  ;;  %v2430_v33 = vshrl.u32 %v2345_v7, 16 }
  0xf3   : > { %v2433_v34 = vshll.u32 %v2345_v7, 16  ;;  %v2440_v37 = vshrl.u32 %v2346_v14, 16  ;;  %v1355_v23 = vld [vmem:[%s7054_s7 + $0x28] sm:$0xf]  ;;  %1796 = vst [vmem:[#allocation2 + $0xc4] sm:$0xf] %v1454_v32  ;;  %v1922_v31 = vsel %vm7676_vm10, %v1920_v26, %v1921_v12  ;;  %6548 = vmatpush3.bf16.msra.mxu0 %v7797_v57 }
  0xf4   : > { %v2177_v35 = vsel %vm7676_vm10, %v2175_v28, %v2176_v18  ;;  %v2443_v36 = vshll.u32 %v2346_v14, 16  ;;  %v1455_v39 = vrot.slane %v7810_v11, 4  ;;  %v1834_v40 = vld [vmem:[%s7054_s7 + $0x24] sm:$0xf]  ;;  %2054 = vst [vmem:[#allocation2 + $0xc8] sm:$0xf] %v1922_v31  ;;  %6549 = vmatprep.subr.bf16.mxu0 %v7822_v25  ;;  %6602 = vmatpush3.bf16.msra.mxu1 %v7755_v19 }
  0xf5   : > { %2309 = vst [vmem:[#allocation2 + $0xcc] sm:$0xf] %v2177_v35  ;;  %v2432_v43 = vrot.slane %v2430_v33, 6  ;;  %v2435_v44 = vrot.slane %v2433_v34, 7  ;;  %v2442_v45 = vrot.slane %v2440_v37, 6  ;;  %v1457_v46 = vshrl.u32 %v1354_v30, 16  ;;  %6595 = vmatprep.subr.bf16.mxu1 %v7780_v41 }
  0xf6   : > { %v7849_v47 = vld [vmem:[%s7054_s7 + $0x28] sm:$0xf]  ;;  %v2445_v48 = vrot.slane %v2443_v36, 7  ;;  %v1460_v1 = vshll.u32 %v1354_v30, 16  ;;  %v1467_v49 = vshrl.u32 %v1355_v23, 16  ;;  %v1470_v51 = vshll.u32 %v1355_v23, 16 }
  0xf7   : > { %v2436_v52 = vor.u32 %v2435_v44, %v2432_v43  ;;  %v1459_v53 = vrot.slane %v1457_v46, 5  ;;  %v1923_v38 = vrot.slane %v1921_v12, 4  ;;  %v1924_v54 = vrot.slane %v1834_v40, 6  ;;  %v2092_v55 = vld [vmem:[%s7054_s7 + $0x2c] sm:$0xf]  ;;  %6550 = vmatpush3.bf16.msra.mxu0 %v7822_v25 }
  0xf8   : > { %v6798_v50 = vld [vmem:[#allocation2 + $0x64] ss:$36 sps:$4 sm:$0xff]   ;;  %v7855_v59 = vor.u32 %v2445_v48, %v2442_v45  ;;  %v1462_v61 = vrot.slane %v1460_v1, 6  ;;  %v1469_v63 = vrot.slane %v1467_v49, 5  ;;  %v1472_v2 = vrot.slane %v1470_v51, 6  ;;  %6551 = vmatprep.subr.bf16.mxu0 %v7846_v42  ;;  %6603 = vmatpush3.bf16.msra.mxu1 %v7780_v41 }
  0xf9   : > { %v6800_v58 = vld [vmem:[#allocation2 + $0x60] ss:$36 sps:$4 sm:$0xff]   ;;  %v2437_v62 = vsel %vm7731_vm14, %v2428_v29, %v2436_v52  ;;  %v2438_v19 = vrot.slane %v2436_v52, 4  ;;  %v7861_v3 = vld [vmem:[%s7054_s7 + $0x30] sm:$0xf]  ;;  %5240 = vmatprep.mubr.bf16.mxu1 %v6798_v50  ;;  %v1925_v7 = vsel %vm7676_vm10, %v1923_v38, %v1924_v54  ;;  %v1926_v9 = vrot.slane %v1924_v54, 4  ;;  %6596 = vmatprep.subr.bf16.mxu1 %v7797_v57 }
  0xfa   : > { %v3100_v4 = vld [vmem:[#allocation2 + $0xa0] sm:$0xff]  ;;  %2788 = vst [vmem:[#allocation2 + $0xac] sm:$0xf] %v2437_v62  ;;  %v1463_v5 = vor.u32 %v1462_v61, %v1459_v53  ;;  %v1927_v10 = vrot.slane %v7849_v47, 6  ;;  %v2347_v12 = vld [vmem:[%s7054_s7 + $0x2c] sm:$0xf]  ;;  %5241 = vmatmul.mubr.bf16.gmra.mxu1 %v6800_v58  ;;  %v7872_v14 = vor.u32 %v1472_v2, %v1469_v63 }
  0xfb   : > { %v2447_v13 = vsel %vm7731_vm14, %v2438_v19, %v7855_v59  ;;  %2055 = vst [vmem:[#allocation2 + $0xec] sm:$0xf] %v1925_v7  ;;  %v2178_v15 = vrot.slane %v2176_v18, 4  ;;  %v2179_v16 = vrot.slane %v2092_v55, 6  ;;  %v2348_v0 = vld [vmem:[%s7054_s7 + $0x30] sm:$0xf]  ;;  %6552 = vmatpush3.bf16.msra.mxu0 %v7846_v42 }
  0xfc   : > { %v1356_v11 = vld [vmem:[%s7054_s7 + $0x2c] sm:$0xf]  ;;  %v3105_v17 = vld [vmem:[#allocation2 + $0xc4] sm:$0xff]  ;;  %2789 = vst [vmem:[#allocation2 + $0xd0] sm:$0xf] %v2447_v13  ;;  %v1464_v41 = vsel %vm7683_vm11, %v1455_v39, %v1463_v5  ;;  %v1465_v21 = vrot.slane %v1463_v5, 4  ;;  %v1928_v22 = vsel %vm7676_vm10, %v1926_v9, %v1927_v10  ;;  %6604 = vmatpush3.bf16.msra.mxu1 %v7797_v57 }
  0xfd   : > { %v6801_v20 = vld [vmem:[#allocation2 + $0xa4] ss:$36 sps:$4 sm:$0xff]   ;;  %v2182_v24 = vrot.slane %v7861_v3, 6  ;;  %v6033_v56 = vcombine.low %v3100_v4, %v3105_v17  ;;  %1797 = vst [vmem:[#allocation2 + $0xe8] sm:$0xf] %v1464_v41  ;;  %v2180_v18 = vsel %vm7676_vm10, %v2178_v15, %v2179_v16  ;;  %v2181_v26 = vrot.slane %v2179_v16, 4  ;;  %6597 = vmatprep.subr.bf16.mxu1 %v7822_v25 }
  0xfe   : > { %2056 = vst [vmem:[#allocation2 + $0x110] sm:$0xf] %v1928_v22  ;;  %v2448_v27 = vrot.slane %v7855_v59, 4  ;;  %v1357_v28 = vld [vmem:[%s7054_s7 + $0x30] sm:$0xf]  ;;  %5071 = vmatprep.mubr.bf16.mxu0 %v6801_v20  ;;  %v1474_v29 = vsel %vm7683_vm11, %v1465_v21, %v7872_v14  ;;  %v2450_v30 = vshrl.u32 %v2347_v12, 16 }
  0xff   : > { %2310 = vst [vmem:[#allocation2 + $0xf0] sm:$0xf] %v2180_v18  ;;  %v2453_v32 = vshll.u32 %v2347_v12, 16  ;;  %v2460_v33 = vshrl.u32 %v2348_v0, 16  ;;  %5072 = vmatmul.mubr.bf16.gmra.mxu0 %v6033_v56  ;;  %1798 = vst [vmem:[#allocation2 + $0x10c] sm:$0xf] %v1474_v29  ;;  %v2183_v34 = vsel %vm7676_vm10, %v2181_v26, %v2182_v24 }
 0x100   : > { %v2463_v37 = vshll.u32 %v2348_v0, 16  ;;  %v1475_v23 = vrot.slane %v7872_v14, 4  ;;  %v1477_v31 = vshrl.u32 %v1356_v11, 16  ;;  %v1836_v35 = vld [vmem:[%s7054_s7 + $0x2c] sm:$0xf]  ;;  %v2452_v57 = vrot.slane %v2450_v30, 6  ;;  %6605 = vmatpush3.bf16.msra.mxu1 %v7822_v25 }
 0x101   : > { %v7901_v36 = vld [vmem:[%s9327_s1 + $0x208] sm:$0xff]   ;;  %2311 = vst [vmem:[#allocation2 + $0x114] sm:$0xf] %v2183_v34  ;;  %v2455_v39 = vrot.slane %v2453_v32, 7  ;;  %v2462_v40 = vrot.slane %v2460_v33, 6  ;;  %v1480_v43 = vshll.u32 %v1356_v11, 16  ;;  %6598 = vmatprep.subr.bf16.mxu1 %v7846_v42 }
 0x102   : > { %v7904_v44 = vld [vmem:[%s7054_s7 + $0x30] sm:$0xf]  ;;  %v2465_v45 = vrot.slane %v2463_v37, 7  ;;  %v1479_v46 = vrot.slane %v1477_v31, 5  ;;  %v1487_v47 = vshrl.u32 %v1357_v28, 16  ;;  %v1490_v48 = vshll.u32 %v1357_v28, 16  ;;  %6553 = vmatprep.subr.bf16.mxu0 %v7901_v36 }
 0x103   : > { %v2456_v1 = vor.u32 %v2455_v39, %v2452_v57  ;;  %v1482_v49 = vrot.slane %v1480_v43, 6  ;;  %v1929_v51 = vrot.slane %v1927_v10, 4  ;;  %v1930_v52 = vrot.slane %v1836_v35, 6  ;;  %v2094_v53 = vld [vmem:[%s7054_s7 + $0x34] sm:$0xf]  ;;  %6554 = vmatpush3.bf16.msra.mxu0 %v7901_v36 }
 0x104   : > { %v6803_v38 = vld [vmem:[#allocation2 + $0xac] ss:$36 sps:$4 sm:$0xff]   ;;  %v7910_v55 = vor.u32 %v2465_v45, %v2462_v40  ;;  %v1489_v50 = vrot.slane %v1487_v47, 5  ;;  %v1492_v19 = vrot.slane %v1490_v48, 6  ;;  %v7916_v63 = vld [vmem:[%s7054_s7 + $0x38] sm:$0xf]  ;;  %6606 = vmatpush3.bf16.msra.mxu1 %v7846_v42 }
 0x105   : > { %v6805_v54 = vld [vmem:[#allocation2 + $0xa8] ss:$36 sps:$4 sm:$0xff]   ;;  %v2457_v59 = vsel %vm7731_vm14, %v2448_v27, %v2456_v1  ;;  %v2458_v61 = vrot.slane %v2456_v1, 4  ;;  %v1483_v62 = vor.u32 %v1482_v49, %v1479_v46  ;;  %5248 = vmatprep.mubr.bf16.mxu1 %v6803_v38  ;;  %v1931_v25 = vsel %vm7676_vm10, %v1929_v51, %v1930_v52  ;;  %v2349_v5 = vld [vmem:[%s7054_s7 + $0x34] sm:$0xf]  ;;  %6599 = vmatprep.subr.bf16.mxu1 %v7901_v36 }
 0x106   : > { %v3110_v58 = vld [vmem:[#allocation2 + $0xe8] sm:$0xff]  ;;  %2790 = vst [vmem:[#allocation2 + $0xf4] sm:$0xf] %v2457_v59  ;;  %v1932_v2 = vrot.slane %v1930_v52, 4  ;;  %v1933_v3 = vrot.slane %v7904_v44, 6  ;;  %v2184_v4 = vrot.slane %v2182_v24, 4  ;;  %5249 = vmatmul.mubr.bf16.gmra.mxu1 %v6805_v54  ;;  %v7927_v14 = vor.u32 %v1492_v19, %v1489_v50 }
 0x107   : > { %v3115_v7 = vld [vmem:[#allocation2 + $0x10c] sm:$0xff]  ;;  %v2467_v10 = vsel %vm7731_vm14, %v2458_v61, %v7910_v55  ;;  %v1484_v12 = vsel %vm7683_vm11, %v1475_v23, %v1483_v62  ;;  %v1485_v13 = vrot.slane %v1483_v62, 4  ;;  %2057 = vst [vmem:[#allocation2 + $0x134] sm:$0xf] %v1931_v25  ;;  %v2350_v15 = vld [vmem:[%s7054_s7 + $0x38] sm:$0xf] }
 0x108   : > { %v6807_v9 = vld [vmem:[#allocation2 + $0xec] ss:$36 sps:$4 sm:$0xff]   ;;  %2791 = vst [vmem:[#allocation2 + $0x118] sm:$0xf] %v2467_v10  ;;  %v6042_v16 = vcombine.low %v3110_v58, %v3115_v7  ;;  %1799 = vst [vmem:[#allocation2 + $0x130] sm:$0xf] %v1484_v12  ;;  %v1934_v0 = vsel %vm7676_vm10, %v1932_v2, %v1933_v3  ;;  %6607 = vmatpush3.bf16.msra.mxu1 %v7901_v36 }
 0x109   : > { %v2185_v11 = vrot.slane %v2094_v53, 6  ;;  %v2188_v17 = vrot.slane %v7916_v63, 6  ;;  %v1358_v20 = vld [vmem:[%s7054_s7 + $0x34] sm:$0xf]  ;;  %5079 = vmatprep.mubr.bf16.mxu0 %v6807_v9  ;;  %v1494_v41 = vsel %vm7683_vm11, %v1485_v13, %v7927_v14  ;;  %2058 = vst [vmem:[#allocation2 + $0x158] sm:$0xf] %v1934_v0 }
 0x10a   : > { %v2468_v21 = vrot.slane %v7910_v55, 4  ;;  %v2470_v22 = vshrl.u32 %v2349_v5, 16  ;;  %v2473_v24 = vshll.u32 %v2349_v5, 16  ;;  %5080 = vmatmul.mubr.bf16.gmra.mxu0 %v6042_v16  ;;  %1800 = vst [vmem:[#allocation2 + $0x154] sm:$0xf] %v1494_v41  ;;  %v2480_v42 = vshrl.u32 %v2350_v15, 16 }
 0x10b   : > { %v2186_v56 = vsel %vm7676_vm10, %v2184_v4, %v2185_v11  ;;  %v2187_v18 = vrot.slane %v2185_v11, 4  ;;  %v2483_v26 = vshll.u32 %v2350_v15, 16  ;;  %v1359_v27 = vld [vmem:[%s7054_s7 + $0x38] sm:$0xf]  ;;  %v1495_v30 = vrot.slane %v7927_v14, 4 }
 0x10c   : > { %2312 = vst [vmem:[#allocation2 + $0x138] sm:$0xf] %v2186_v56  ;;  %v2472_v28 = vrot.slane %v2470_v22, 6  ;;  %v2475_v29 = vrot.slane %v2473_v24, 7  ;;  %v1497_v32 = vshrl.u32 %v1358_v20, 16  ;;  %v2482_v37 = vrot.slane %v2480_v42, 6 }
 0x10d   : > { %v1838_v33 = vld [vmem:[%s7054_s7 + $0x34] sm:$0xf]  ;;  %v2189_v34 = vsel %vm7676_vm10, %v2187_v18, %v2188_v17  ;;  %v2485_v23 = vrot.slane %v2483_v26, 7  ;;  %v1500_v31 = vshll.u32 %v1358_v20, 16  ;;  %v1507_v39 = vshrl.u32 %v1359_v27, 16  ;;  %v4703_v20 = vpop.f32.mrf.mxu0  ;;  %v7983_v56 = vpop.f32.mrf.mxu1 }
 0x10e   : > { %2313 = vst [vmem:[#allocation2 + $0x15c] sm:$0xf] %v2189_v34  ;;  %v2476_v35 = vor.u32 %v2475_v29, %v2472_v28  ;;  %v1499_v57 = vrot.slane %v1497_v32, 5  ;;  %v1510_v40 = vshll.u32 %v1359_v27, 16  ;;  %v7949_v43 = vld [vmem:[%s7054_s7 + $0x38] sm:$0xf] }
 0x10f   : > { %v7951_v44 = vor.u32 %v2485_v23, %v2482_v37  ;;  %v1502_v45 = vrot.slane %v1500_v31, 6  ;;  %v1935_v46 = vrot.slane %v1933_v3, 4  ;;  %v1936_v47 = vrot.slane %v1838_v33, 6  ;;  %v2096_v48 = vld [vmem:[%s7054_s7 + $0x3c] sm:$0xf]  ;;  %v3120_v38 = vld [vmem:[#allocation2 + $0x130] sm:$0xff]  ;;  %v4705_v32 = vpop.f32.mrf.mxu0 }
 0x110   : > { %v7955_v1 = vld [vmem:[%s7054_s7 + $0x40] sm:$0xf]  ;;  %v6809_v49 = vld [vmem:[#allocation2 + $0xf4] ss:$36 sps:$4 sm:$0xff]   ;;  %v2477_v36 = vsel %vm7731_vm14, %v2468_v21, %v2476_v35  ;;  %v2478_v52 = vrot.slane %v2476_v35, 4  ;;  %v1509_v55 = vrot.slane %v1507_v39, 5  ;;  %v4882_v35 = vpop.f32.mrf.mxu1 }
 0x111   : > { %v6811_v51 = vld [vmem:[#allocation2 + $0xf0] ss:$36 sps:$4 sm:$0xff]   ;;  %v2351_v53 = vld [vmem:[%s7054_s7 + $0x3c] sm:$0xf]  ;;  %2792 = vst [vmem:[#allocation2 + $0x13c] sm:$0xf] %v2477_v36  ;;  %v1503_v54 = vor.u32 %v1502_v45, %v1499_v57  ;;  %v1937_v58 = vsel %vm7676_vm10, %v1935_v46, %v1936_v47  ;;  %5256 = vmatprep.mubr.bf16.mxu1 %v6809_v49  ;;  %v4706_v45 = vpop.f32.mrf.mxu0 }
 0x112   : > { %v1512_v50 = vrot.slane %v1510_v40, 6  ;;  %v2352_v59 = vld [vmem:[%s7054_s7 + $0x40] sm:$0xf]  ;;  %v3125_v61 = vld [vmem:[#allocation2 + $0x154] sm:$0xff]  ;;  %v2487_v19 = vsel %vm7731_vm14, %v2478_v52, %v7951_v44  ;;  %v1938_v63 = vrot.slane %v1936_v47, 4  ;;  %v1939_v25 = vrot.slane %v7949_v43, 6  ;;  %5257 = vmatmul.mubr.bf16.gmra.mxu1 %v6811_v51  ;;  %v4883_v52 = vpop.f32.mrf.mxu1 }
 0x113   : > { %v6812_v62 = vld [vmem:[#allocation2 + $0x134] ss:$36 sps:$4 sm:$0xff]   ;;  %2059 = vst [vmem:[#allocation2 + $0x17c] sm:$0xf] %v1937_v58  ;;  %v2190_v2 = vrot.slane %v2188_v17, 4  ;;  %v6051_v3 = vcombine.low %v3120_v38, %v3125_v61  ;;  %v1504_v4 = vsel %vm7683_vm11, %v1495_v30, %v1503_v54  ;;  %v1505_v5 = vrot.slane %v1503_v54, 4 }
 0x114   : > { %2793 = vst [vmem:[#allocation2 + $0x160] sm:$0xf] %v2487_v19  ;;  %v7969_v7 = vor.u32 %v1512_v50, %v1509_v55  ;;  %v1360_v9 = vld [vmem:[%s7054_s7 + $0x3c] sm:$0xf]  ;;  %v1361_v10 = vld [vmem:[%s7054_s7 + $0x40] sm:$0xf]  ;;  %5087 = vmatprep.mubr.bf16.mxu0 %v6812_v62  ;;  %v1940_v12 = vsel %vm7676_vm10, %v1938_v63, %v1939_v25 }
 0x115   : > { %1801 = vst [vmem:[#allocation2 + $0x178] sm:$0xf] %v1504_v4  ;;  %v2191_v13 = vrot.slane %v2096_v48, 6  ;;  %v2194_v14 = vrot.slane %v7955_v1, 6  ;;  %v2488_v15 = vrot.slane %v7951_v44, 4  ;;  %5088 = vmatmul.mubr.bf16.gmra.mxu0 %v6051_v3  ;;  %v2490_v0 = vshrl.u32 %v2351_v53, 16 }
 0x116   : > { %v1514_v16 = vsel %vm7683_vm11, %v1505_v5, %v7969_v7  ;;  %2060 = vst [vmem:[#allocation2 + $0x1a0] sm:$0xf] %v1940_v12  ;;  %v2493_v11 = vshll.u32 %v2351_v53, 16  ;;  %v2500_v17 = vshrl.u32 %v2352_v59, 16  ;;  %v2503_v22 = vshll.u32 %v2352_v59, 16  ;;  %v6883_v46 = vld [vmem:[%s9327_s1 + $0x200] sm:$0xff]   ;;  %v4708_v59 = vpop.f32.mrf.mxu0 }
 0x117   : > { %1802 = vst [vmem:[#allocation2 + $0x19c] sm:$0xf] %v1514_v16  ;;  %v2192_v41 = vsel %vm7676_vm10, %v2190_v2, %v2191_v13  ;;  %v2193_v21 = vrot.slane %v2191_v13, 4  ;;  %v1515_v24 = vrot.slane %v7969_v7, 4  ;;  %v2492_v18 = vrot.slane %v2490_v0, 6  ;;  %6555 = vmatprep.subr.bf16.mxu0 %v6883_v46  ;;  %6600 = vmatprep.subr.bf16.mxu1 %v6883_v46  ;;  %v4885_v2 = vpop.f32.mrf.mxu1 }
 0x118   : > { %2314 = vst [vmem:[#allocation2 + $0x180] sm:$0xf] %v2192_v41  ;;  %v2495_v42 = vrot.slane %v2493_v11, 7  ;;  %v2502_v26 = vrot.slane %v2500_v17, 6  ;;  %v1517_v27 = vshrl.u32 %v1360_v9, 16  ;;  %v2505_v34 = vrot.slane %v2503_v22, 7  ;;  %6556 = vmatpush3.bf16.msra.mxu0 %v6883_v46  ;;  %v4711_v12 = vpop.f32.mrf.mxu0  ;;  %6608 = vmatpush3.bf16.msra.mxu1 %v6883_v46 }
 0x119   : > { %v1840_v28 = vld [vmem:[%s7054_s7 + $0x3c] sm:$0xf]  ;;  %v7987_v29 = vld [vmem:[%s7054_s7 + $0x40] sm:$0xf]  ;;  %v2195_v33 = vsel %vm7676_vm10, %v2193_v21, %v2194_v14  ;;  %v1520_v37 = vshll.u32 %v1360_v9, 16  ;;  %v1527_v23 = vshrl.u32 %v1361_v10, 16  ;;  %v8024_v0 = vpop.f32.mrf.mxu1 }
 0x11a   : > { %v7992_v30 = vld [vmem:[%s9328_s2] ss:$0 sm:$0xff]  ;;  %v2098_v31 = vld [vmem:[%s7054_s7 + $0x44] sm:$0xf]  ;;  %2315 = vst [vmem:[#allocation2 + $0x1a4] sm:$0xf] %v2195_v33  ;;  %v2496_v57 = vor.u32 %v2495_v42, %v2492_v18  ;;  %v8003_v1 = vor.u32 %v2505_v34, %v2502_v26  ;;  %v4713_v21 = vpop.f32.mrf.mxu0 }
 0x11b   : > { %v1519_v39 = vrot.slane %v1517_v27, 5  ;;  %v1530_v40 = vshll.u32 %v1361_v10, 16  ;;  %v1941_v43 = vrot.slane %v1939_v25, 4  ;;  %v7998_v44 = vld [vmem:[%s7054_s7 + $0x48] sm:$0xf]  ;;  %v1522_v49 = vrot.slane %v1520_v37, 6  ;;  %v4890_v27 = vpop.f32.mrf.mxu1 }
 0x11c   : > { %v6814_v47 = vld [vmem:[#allocation2 + $0x13c] ss:$36 sps:$4 sm:$0xff]   ;;  %v4704_v51 = vadd.f32 %v7992_v30, %v4703_v20  ;;  %v8007_v36 = vadd.f32 %v7992_v30, %v4706_v45  ;;  %v2497_v38 = vsel %vm7731_vm14, %v2488_v15, %v2496_v57  ;;  %v2498_v54 = vrot.slane %v2496_v57, 4  ;;  %v2353_v58 = vld [vmem:[%s7054_s7 + $0x44] sm:$0xf]  ;;  %v4714_v37 = vpop.f32.mrf.mxu0 }
 0x11d   : > { %v6816_v48 = vld [vmem:[#allocation2 + $0x138] ss:$36 sps:$4 sm:$0xff]   ;;  %v1529_v55 = vrot.slane %v1527_v23, 5  ;;  %v1532_v50 = vrot.slane %v1530_v40, 6  ;;  %5264 = vmatprep.mubr.bf16.mxu1 %v6814_v47  ;;  %2794 = vst [vmem:[#allocation2 + $0x184] sm:$0xf] %v2497_v38  ;;  %v1523_v61 = vor.u32 %v1522_v49, %v1519_v39  ;;  %v4712_v59 = vadd.f32 %v7992_v30, %v4711_v12 }
 0x11e   : > { %v3130_v53 = vld [vmem:[#allocation2 + $0x178] sm:$0xff]  ;;  %v1942_v62 = vrot.slane %v1840_v28, 6  ;;  %v1945_v19 = vrot.slane %v7987_v29, 6  ;;  %v2196_v63 = vrot.slane %v2194_v14, 4  ;;  %v2354_v25 = vld [vmem:[%s7054_s7 + $0x48] sm:$0xf]  ;;  %5265 = vmatmul.mubr.bf16.gmra.mxu1 %v6816_v48  ;;  %v2507_v5 = vsel %vm7731_vm14, %v2498_v54, %v8003_v1 }
 0x11f   : > { %v3135_v3 = vld [vmem:[#allocation2 + $0x19c] sm:$0xff]  ;;  %v8017_v7 = vor.u32 %v1532_v50, %v1529_v55  ;;  %v2197_v9 = vrot.slane %v2098_v31, 6  ;;  %v2200_v10 = vrot.slane %v7998_v44, 6  ;;  %2795 = vst [vmem:[#allocation2 + $0x1a8] sm:$0xf] %v2507_v5  ;;  %v1524_v14 = vsel %vm7683_vm11, %v1515_v24, %v1523_v61 }
 0x120   : > { %v6818_v4 = vld [vmem:[#allocation2 + $0x17c] ss:$36 sps:$4 sm:$0xff]   ;;  %v6060_v13 = vcombine.low %v3130_v53, %v3135_v3  ;;  %v1525_v15 = vrot.slane %v1523_v61, 4  ;;  %v1943_v16 = vsel %vm7676_vm10, %v1941_v43, %v1942_v62  ;;  %1803 = vst [vmem:[#allocation2 + $0x1c0] sm:$0xf] %v1524_v14  ;;  %v1944_v11 = vrot.slane %v1942_v62, 4  ;;  %v8050_v43 = vpop.f32.mrf.mxu1 }
 0x121   : > { %5095 = vmatprep.mubr.bf16.mxu0 %v6818_v4  ;;  %2061 = vst [vmem:[#allocation2 + $0x1c4] sm:$0xf] %v1943_v16  ;;  %v2198_v17 = vsel %vm7676_vm10, %v2196_v63, %v2197_v9  ;;  %v2199_v20 = vrot.slane %v2197_v9, 4  ;;  %v2508_v41 = vrot.slane %v8003_v1, 4  ;;  %v2510_v24 = vshrl.u32 %v2353_v58, 16  ;;  %v4716_v1 = vpop.f32.mrf.mxu0 }
 0x122   : > { %5096 = vmatmul.mubr.bf16.gmra.mxu0 %v6060_v13  ;;  %v1534_v22 = vsel %vm7683_vm11, %v1525_v15, %v8017_v7  ;;  %2316 = vst [vmem:[#allocation2 + $0x1c8] sm:$0xf] %v2198_v17  ;;  %v2513_v18 = vshll.u32 %v2353_v58, 16  ;;  %v2520_v42 = vshrl.u32 %v2354_v25, 16  ;;  %v1362_v26 = vld [vmem:[%s7054_s7 + $0x44] sm:$0xf]  ;;  %v1946_v28 = vsel %vm7676_vm10, %v1944_v11, %v1945_v19 }
 0x123   : > { %1804 = vst [vmem:[#allocation2 + $0x1e4] sm:$0xf] %v1534_v22  ;;  %v2201_v29 = vsel %vm7676_vm10, %v2199_v20, %v2200_v10  ;;  %v2523_v32 = vshll.u32 %v2354_v25, 16  ;;  %v8040_v33 = vadd.f32 %v7983_v56, %v4704_v51  ;;  %v1363_v34 = vld [vmem:[%s7054_s7 + $0x48] sm:$0xf]  ;;  %v2512_v23 = vrot.slane %v2510_v24, 6  ;;  %v8061_v62 = vpop.f32.mrf.mxu0 }
 0x124   : > { %2062 = vst [vmem:[#allocation2 + $0x1e8] sm:$0xf] %v1946_v28  ;;  %2317 = vst [vmem:[#allocation2 + $0x1ec] sm:$0xf] %v2201_v29  ;;  %v2515_v31 = vrot.slane %v2513_v18, 7  ;;  %v2522_v35 = vrot.slane %v2520_v42, 6  ;;  %v8044_v57 = vadd.f32 %v4883_v52, %v8007_v36  ;;  %v4893_v36 = vpop.f32.mrf.mxu1  ;;  %v4715_v61 = vadd.f32 %v7992_v30, %v4714_v37 }
 0x125   : > { %v1842_v39 = vld [vmem:[%s7054_s7 + $0x44] sm:$0xf]  ;;  %v8048_v40 = vld [vmem:[%s7054_s7 + $0x48] sm:$0xf]  ;;  %v2525_v45 = vrot.slane %v2523_v32, 7  ;;  %v1535_v56 = vrot.slane %v8017_v7, 4  ;;  %v4721_v13 = vpop.f32.mrf.mxu0 }
 0x126   : > { %v1537_v46 = vshrl.u32 %v1362_v26, 16  ;;  %v1540_v47 = vshll.u32 %v1362_v26, 16  ;;  %v2100_v48 = vld [vmem:[%s7054_s7 + $0x4c] sm:$0xf]  ;;  %v2516_v49 = vor.u32 %v2515_v31, %v2512_v23  ;;  %v1547_v51 = vshrl.u32 %v1363_v34, 16  ;;  %v8065_v3 = vpop.f32.mrf.mxu1 }
 0x127   : > { %v1550_v53 = vshll.u32 %v1363_v34, 16  ;;  %v1947_v38 = vrot.slane %v1945_v19, 4  ;;  %v8055_v54 = vld [vmem:[%s7054_s7 + $0x50] sm:$0xf]  ;;  %v6820_v52 = vld [vmem:[#allocation2 + $0x184] ss:$36 sps:$4 sm:$0xff]   ;;  %v8057_v50 = vor.u32 %v2525_v45, %v2522_v35  ;;  %v4722_v42 = vpop.f32.mrf.mxu0 }
 0x128   : > { %v6822_v55 = vld [vmem:[#allocation2 + $0x180] ss:$36 sps:$4 sm:$0xff]   ;;  %v1539_v58 = vrot.slane %v1537_v46, 5  ;;  %v2517_v63 = vsel %vm7731_vm14, %v2508_v41, %v2516_v49  ;;  %v2518_v25 = vrot.slane %v2516_v49, 4  ;;  %v1542_v2 = vrot.slane %v1540_v47, 6  ;;  %5272 = vmatprep.mubr.bf16.mxu1 %v6820_v52  ;;  %v4898_v41 = vpop.f32.mrf.mxu1 }
 0x129   : > { %v1549_v19 = vrot.slane %v1547_v51, 5  ;;  %v3140_v4 = vld [vmem:[#allocation2 + $0x1c0] sm:$0xff]  ;;  %2796 = vst [vmem:[#allocation2 + $0x1cc] sm:$0xf] %v2517_v63  ;;  %v1552_v5 = vrot.slane %v1550_v53, 6  ;;  %v1948_v7 = vrot.slane %v1842_v39, 6  ;;  %5273 = vmatmul.mubr.bf16.gmra.mxu1 %v6822_v55  ;;  %v4724_v39 = vpop.f32.mrf.mxu0  ;;  %v8096_v47 = vadd.f32 %v8024_v0, %v4712_v59 }
 0x12a   : > { %v1951_v9 = vrot.slane %v8048_v40, 6  ;;  %v2202_v12 = vrot.slane %v2200_v10, 4  ;;  %v2527_v14 = vsel %vm7731_vm14, %v2518_v25, %v8057_v50  ;;  %v1543_v15 = vor.u32 %v1542_v2, %v1539_v58  ;;  %v2355_v17 = vld [vmem:[%s7054_s7 + $0x4c] sm:$0xf]  ;;  %v2356_v20 = vld [vmem:[%s7054_s7 + $0x50] sm:$0xf]  ;;  %v8085_v32 = vpop.f32.mrf.mxu1 }
 0x12b   : > { %v2203_v16 = vrot.slane %v2100_v48, 6  ;;  %v2206_v11 = vrot.slane %v8055_v54, 6  ;;  %v3145_v21 = vld [vmem:[#allocation2 + $0x1e4] sm:$0xff]  ;;  %2797 = vst [vmem:[#allocation2 + $0x1f0] sm:$0xf] %v2527_v14  ;;  %v8076_v24 = vor.u32 %v1552_v5, %v1549_v19  ;;  %v1949_v44 = vsel %vm7676_vm10, %v1947_v38, %v1948_v7  ;;  %v8110_v55 = vpop.f32.mrf.mxu0 }
 0x12c   : > { %v6823_v22 = vld [vmem:[#allocation2 + $0x1c4] ss:$36 sps:$4 sm:$0xff]   ;;  %v1950_v10 = vrot.slane %v1948_v7, 4  ;;  %v2528_v18 = vrot.slane %v8057_v50, 4  ;;  %v6069_v26 = vcombine.low %v3140_v4, %v3145_v21  ;;  %v1544_v27 = vsel %vm7683_vm11, %v1535_v56, %v1543_v15  ;;  %2063 = vst [vmem:[#allocation2 + $0x20c] sm:$0xf] %v1949_v44  ;;  %v4901_v1 = vpop.f32.mrf.mxu1 }
 0x12d   : > { %v1545_v28 = vrot.slane %v1543_v15, 4  ;;  %v2204_v29 = vsel %vm7676_vm10, %v2202_v12, %v2203_v16  ;;  %5103 = vmatprep.mubr.bf16.mxu0 %v6823_v22  ;;  %1805 = vst [vmem:[#allocation2 + $0x208] sm:$0xf] %v1544_v27  ;;  %v2205_v37 = vrot.slane %v2203_v16, 4  ;;  %v2530_v23 = vshrl.u32 %v2355_v17, 16 }
 0x12e   : > { %v1952_v34 = vsel %vm7676_vm10, %v1950_v10, %v1951_v9  ;;  %2318 = vst [vmem:[#allocation2 + $0x210] sm:$0xf] %v2204_v29  ;;  %v2533_v31 = vshll.u32 %v2355_v17, 16  ;;  %v1364_v35 = vld [vmem:[%s7054_s7 + $0x4c] sm:$0xf]  ;;  %5104 = vmatmul.mubr.bf16.gmra.mxu0 %v6069_v26  ;;  %v2540_v56 = vshrl.u32 %v2356_v20, 16  ;;  %v8104_v38 = vadd.f32 %v8050_v43, %v4715_v61  ;;  %v8114_v25 = vpop.f32.mrf.mxu1  ;;  %v4729_v61 = vpop.f32.mrf.mxu0 }
 0x12f   : > { %v1554_v45 = vsel %vm7683_vm11, %v1545_v28, %v8076_v24  ;;  %2064 = vst [vmem:[#allocation2 + $0x230] sm:$0xf] %v1952_v34  ;;  %v2543_v46 = vshll.u32 %v2356_v20, 16  ;;  %v1365_v48 = vld [vmem:[%s7054_s7 + $0x50] sm:$0xf]  ;;  %v2207_v49 = vsel %vm7676_vm10, %v2205_v37, %v2206_v11  ;;  %v2532_v51 = vrot.slane %v2530_v23, 6 }
 0x130   : > { %1806 = vst [vmem:[#allocation2 + $0x22c] sm:$0xf] %v1554_v45  ;;  %v2535_v53 = vrot.slane %v2533_v31, 7  ;;  %v1844_v36 = vld [vmem:[%s7054_s7 + $0x4c] sm:$0xf]  ;;  %v2542_v0 = vrot.slane %v2540_v56, 6  ;;  %v4720_v14 = vadd.f32 %v7992_v30, %v8061_v62  ;;  %v4723_v15 = vadd.f32 %v7992_v30, %v4722_v42  ;;  %v4906_v16 = vpop.f32.mrf.mxu1 }
 0x131   : > { %v8108_v52 = vld [vmem:[%s7054_s7 + $0x50] sm:$0xf]  ;;  %2319 = vst [vmem:[#allocation2 + $0x234] sm:$0xf] %v2207_v49  ;;  %v2545_v50 = vrot.slane %v2543_v46, 7  ;;  %v1555_v58 = vrot.slane %v8076_v24, 4  ;;  %v8126_v24 = vpop.f32.mrf.mxu0 }
 0x132   : > { %v1557_v59 = vshrl.u32 %v1364_v35, 16  ;;  %v2102_v63 = vld [vmem:[%s7054_s7 + $0x54] sm:$0xf]  ;;  %v2536_v2 = vor.u32 %v2535_v53, %v2532_v51  ;;  %v1560_v19 = vshll.u32 %v1364_v35, 16  ;;  %v1567_v4 = vshrl.u32 %v1365_v48, 16 }
 0x133   : > { %v1570_v43 = vshll.u32 %v1365_v48, 16  ;;  %v6825_v5 = vld [vmem:[#allocation2 + $0x1cc] ss:$36 sps:$4 sm:$0xff]   ;;  %v8116_v12 = vor.u32 %v2545_v50, %v2542_v0  ;;  %v8124_v22 = vld [vmem:[%s7054_s7 + $0x58] sm:$0xf]  ;;  %v1953_v62 = vrot.slane %v1951_v9, 4  ;;  %v4732_v31 = vpop.f32.mrf.mxu0 }
 0x134   : > { %v6827_v7 = vld [vmem:[#allocation2 + $0x1c8] ss:$36 sps:$4 sm:$0xff]   ;;  %v1559_v13 = vrot.slane %v1557_v59, 5  ;;  %v2537_v17 = vsel %vm7731_vm14, %v2528_v18, %v2536_v2  ;;  %v2538_v20 = vrot.slane %v2536_v2, 4  ;;  %v1562_v41 = vrot.slane %v1560_v19, 6  ;;  %5280 = vmatprep.mubr.bf16.mxu1 %v6825_v5  ;;  %v8131_v18 = vpop.f32.mrf.mxu1 }
 0x135   : > { %v1569_v21 = vrot.slane %v1567_v4, 5  ;;  %v3150_v44 = vld [vmem:[#allocation2 + $0x208] sm:$0xff]  ;;  %2798 = vst [vmem:[#allocation2 + $0x214] sm:$0xf] %v2537_v17  ;;  %v1572_v10 = vrot.slane %v1570_v43, 6  ;;  %v1954_v42 = vrot.slane %v1844_v36, 6  ;;  %5281 = vmatmul.mubr.bf16.gmra.mxu1 %v6827_v7  ;;  %v8149_v49 = vpop.f32.mrf.mxu0  ;;  %v8168_v7 = vadd.f32 %v8065_v3, %v4720_v14 }
 0x136   : > { %v1957_v26 = vrot.slane %v8108_v52, 6  ;;  %v2547_v27 = vsel %vm7731_vm14, %v2538_v20, %v8116_v12  ;;  %v1563_v28 = vor.u32 %v1562_v41, %v1559_v13  ;;  %v2208_v29 = vrot.slane %v2206_v11, 4  ;;  %v2357_v37 = vld [vmem:[%s7054_s7 + $0x54] sm:$0xf]  ;;  %v2358_v23 = vld [vmem:[%s7054_s7 + $0x58] sm:$0xf]  ;;  %v4909_v46 = vpop.f32.mrf.mxu1 }
 0x137   : > { %v2209_v34 = vrot.slane %v2102_v63, 6  ;;  %v3155_v40 = vld [vmem:[#allocation2 + $0x22c] sm:$0xff]  ;;  %2799 = vst [vmem:[#allocation2 + $0x238] sm:$0xf] %v2547_v27  ;;  %v8140_v35 = vor.u32 %v1572_v10, %v1569_v21  ;;  %v1955_v39 = vsel %vm7676_vm10, %v1953_v62, %v1954_v42  ;;  %v1956_v45 = vrot.slane %v1954_v42, 4  ;;  %v4737_v43 = vpop.f32.mrf.mxu0 }
 0x138   : > { %v6829_v9 = vld [vmem:[#allocation2 + $0x20c] ss:$36 sps:$4 sm:$0xff]   ;;  %v2212_v56 = vrot.slane %v8124_v22, 6  ;;  %v6078_v48 = vcombine.low %v3150_v44, %v3155_v40  ;;  %v1564_v54 = vsel %vm7683_vm11, %v1555_v58, %v1563_v28  ;;  %v1565_v11 = vrot.slane %v1563_v28, 4  ;;  %2065 = vst [vmem:[#allocation2 + $0x254] sm:$0xf] %v1955_v39  ;;  %v8157_v58 = vpop.f32.mrf.mxu1 }
 0x139   : > { %v2210_v1 = vsel %vm7676_vm10, %v2208_v29, %v2209_v34  ;;  %5111 = vmatprep.mubr.bf16.mxu0 %v6829_v9  ;;  %1807 = vst [vmem:[#allocation2 + $0x250] sm:$0xf] %v1564_v54  ;;  %v1958_v51 = vsel %vm7676_vm10, %v1956_v45, %v1957_v26  ;;  %v2211_v53 = vrot.slane %v2209_v34, 4  ;;  %v2548_v36 = vrot.slane %v8116_v12, 4  ;;  %v1366_v50 = vld [vmem:[%s7054_s7 + $0x54] sm:$0xf]  ;;  %v8178_v10 = vpop.f32.mrf.mxu0 }
 0x13a   : > { %2320 = vst [vmem:[#allocation2 + $0x258] sm:$0xf] %v2210_v1  ;;  %v2550_v0 = vshrl.u32 %v2357_v37, 16  ;;  %5112 = vmatmul.mubr.bf16.gmra.mxu0 %v6078_v48  ;;  %v1574_v59 = vsel %vm7683_vm11, %v1565_v11, %v8140_v35  ;;  %2066 = vst [vmem:[#allocation2 + $0x278] sm:$0xf] %v1958_v51  ;;  %v2553_v63 = vshll.u32 %v2357_v37, 16  ;;  %v8171_v12 = vadd.f32 %v8085_v32, %v4723_v15  ;;  %v4914_v17 = vpop.f32.mrf.mxu1 }
 0x13b   : > { %v2560_v2 = vshrl.u32 %v2358_v23, 16  ;;  %v2563_v19 = vshll.u32 %v2358_v23, 16  ;;  %v1367_v4 = vld [vmem:[%s7054_s7 + $0x58] sm:$0xf]  ;;  %1808 = vst [vmem:[#allocation2 + $0x274] sm:$0xf] %v1574_v59  ;;  %v2213_v61 = vsel %vm7676_vm10, %v2211_v53, %v2212_v56  ;;  %v4728_v23 = vadd.f32 %v7992_v30, %v8110_v55  ;;  %v4740_v31 = vpop.f32.mrf.mxu0 }
 0x13c   : > { %v2552_v5 = vrot.slane %v2550_v0, 6  ;;  %v1846_v13 = vld [vmem:[%s7054_s7 + $0x54] sm:$0xf]  ;;  %v8175_v16 = vld [vmem:[%s7054_s7 + $0x58] sm:$0xf]  ;;  %v2555_v20 = vrot.slane %v2553_v63, 7  ;;  %v8181_v32 = vpop.f32.mrf.mxu1 }
 0x13d   : > { %2321 = vst [vmem:[#allocation2 + $0x27c] sm:$0xf] %v2213_v61  ;;  %v2562_v41 = vrot.slane %v2560_v2, 6  ;;  %v2565_v21 = vrot.slane %v2563_v19, 7  ;;  %v1575_v44 = vrot.slane %v8140_v35, 4  ;;  %v1577_v62 = vshrl.u32 %v1366_v50, 16  ;;  %v8195_v55 = vpop.f32.mrf.mxu0 }
 0x13e   : > { %v1580_v42 = vshll.u32 %v1366_v50, 16  ;;  %v1587_v3 = vshrl.u32 %v1367_v4, 16  ;;  %v1590_v14 = vshll.u32 %v1367_v4, 16  ;;  %v2104_v27 = vld [vmem:[%s7054_s7 + $0x5c] sm:$0xf]  ;;  %v2556_v29 = vor.u32 %v2555_v20, %v2552_v5  ;;  %v4917_v46 = vpop.f32.mrf.mxu1 }
 0x13f   : > { %v6831_v15 = vld [vmem:[#allocation2 + $0x214] ss:$36 sps:$4 sm:$0xff]   ;;  %v8183_v34 = vor.u32 %v2565_v21, %v2562_v41  ;;  %v1959_v37 = vrot.slane %v1957_v26, 4  ;;  %v1579_v40 = vrot.slane %v1577_v62, 5  ;;  %v8190_v45 = vld [vmem:[%s7054_s7 + $0x60] sm:$0xf] }
 0x140   : > { %v6833_v28 = vld [vmem:[#allocation2 + $0x210] ss:$36 sps:$4 sm:$0xff]   ;;  %v1582_v9 = vrot.slane %v1580_v42, 6  ;;  %v1589_v35 = vrot.slane %v1587_v3, 5  ;;  %v1592_v39 = vrot.slane %v1590_v14, 6  ;;  %5288 = vmatprep.mubr.bf16.mxu1 %v6831_v15  ;;  %v2557_v54 = vsel %vm7731_vm14, %v2548_v36, %v2556_v29  ;;  %v8203_v36 = vpop.f32.mrf.mxu1 }
 0x141   : > { %v3160_v48 = vld [vmem:[#allocation2 + $0x250] sm:$0xff]  ;;  %v2558_v52 = vrot.slane %v2556_v29, 4  ;;  %v1960_v26 = vrot.slane %v1846_v13, 6  ;;  %v1963_v11 = vrot.slane %v8175_v16, 6  ;;  %5289 = vmatmul.mubr.bf16.gmra.mxu1 %v6833_v28  ;;  %2800 = vst [vmem:[#allocation2 + $0x25c] sm:$0xf] %v2557_v54 }
 0x142   : > { %v1583_v1 = vor.u32 %v1582_v9, %v1579_v40  ;;  %v8197_v51 = vor.u32 %v1592_v39, %v1589_v35  ;;  %v2214_v53 = vrot.slane %v2212_v56, 4  ;;  %v2215_v0 = vrot.slane %v2104_v27, 6  ;;  %v2359_v50 = vld [vmem:[%s7054_s7 + $0x5c] sm:$0xf]  ;;  %v2360_v59 = vld [vmem:[%s7054_s7 + $0x60] sm:$0xf]  ;;  %v4745_v56 = vpop.f32.mrf.mxu0  ;;  %v4922_v21 = vpop.f32.mrf.mxu1 }
 0x143   : > { %v3165_v63 = vld [vmem:[#allocation2 + $0x274] sm:$0xff]  ;;  %v2567_v19 = vsel %vm7731_vm14, %v2558_v52, %v8183_v34  ;;  %v1961_v4 = vsel %vm7676_vm10, %v1959_v37, %v1960_v26  ;;  %v1962_v43 = vrot.slane %v1960_v26, 4  ;;  %v2218_v22 = vrot.slane %v8190_v45, 6  ;;  %v1368_v20 = vld [vmem:[%s7054_s7 + $0x5c] sm:$0xf] }
 0x144   : > { %v6834_v2 = vld [vmem:[#allocation2 + $0x254] ss:$36 sps:$4 sm:$0xff]   ;;  %2801 = vst [vmem:[#allocation2 + $0x280] sm:$0xf] %v2567_v19  ;;  %v6087_v61 = vcombine.low %v3160_v48, %v3165_v63  ;;  %v1584_v5 = vsel %vm7683_vm11, %v1575_v44, %v1583_v1  ;;  %v1585_v13 = vrot.slane %v1583_v1, 4  ;;  %v2216_v17 = vsel %vm7676_vm10, %v2214_v53, %v2215_v0  ;;  %v8222_v14 = vpop.f32.mrf.mxu0  ;;  %v8227_v37 = vpop.f32.mrf.mxu1 }
 0x145   : > { %2067 = vst [vmem:[#allocation2 + $0x29c] sm:$0xf] %v1961_v4  ;;  %v1369_v41 = vld [vmem:[%s7054_s7 + $0x60] sm:$0xf]  ;;  %5119 = vmatprep.mubr.bf16.mxu0 %v6834_v2  ;;  %1809 = vst [vmem:[#allocation2 + $0x298] sm:$0xf] %v1584_v5  ;;  %v1964_v62 = vsel %vm7676_vm10, %v1962_v43, %v1963_v11  ;;  %v8234_v40 = vadd.f32 %v8114_v25, %v4728_v23  ;;  %v4731_v9 = vadd.f32 %v7992_v30, %v8126_v24 }
 0x146   : > { %v2217_v42 = vrot.slane %v2215_v0, 4  ;;  %2322 = vst [vmem:[#allocation2 + $0x2a0] sm:$0xf] %v2216_v17  ;;  %v2568_v3 = vrot.slane %v8183_v34, 4  ;;  %v2570_v44 = vshrl.u32 %v2359_v50, 16  ;;  %5120 = vmatmul.mubr.bf16.gmra.mxu0 %v6087_v61  ;;  %v1594_v27 = vsel %vm7683_vm11, %v1585_v13, %v8197_v51  ;;  %v4748_v35 = vpop.f32.mrf.mxu0  ;;  %v4925_v26 = vpop.f32.mrf.mxu1 }
 0x147   : > { %2068 = vst [vmem:[#allocation2 + $0x2c0] sm:$0xf] %v1964_v62  ;;  %v2573_v15 = vshll.u32 %v2359_v50, 16  ;;  %v2580_v28 = vshrl.u32 %v2360_v59, 16  ;;  %v2583_v29 = vshll.u32 %v2360_v59, 16  ;;  %v1595_v54 = vrot.slane %v8197_v51, 4 }
 0x148   : > { %1810 = vst [vmem:[#allocation2 + $0x2bc] sm:$0xf] %v1594_v27  ;;  %v2219_v34 = vsel %vm7676_vm10, %v2217_v42, %v2218_v22  ;;  %v2572_v31 = vrot.slane %v2570_v44, 6  ;;  %v1848_v52 = vld [vmem:[%s7054_s7 + $0x5c] sm:$0xf]  ;;  %v8241_v1 = vadd.f32 %v8131_v18, %v4731_v9  ;;  %v1597_v53 = vshrl.u32 %v1368_v20, 16  ;;  %v8246_v24 = vpop.f32.mrf.mxu0  ;;  %v8256_v4 = vpop.f32.mrf.mxu1 }
 0x149   : > { %2323 = vst [vmem:[#allocation2 + $0x2c4] sm:$0xf] %v2219_v34  ;;  %v2575_v39 = vrot.slane %v2573_v15, 7  ;;  %v2582_v46 = vrot.slane %v2580_v28, 6  ;;  %v2585_v48 = vrot.slane %v2583_v29, 7  ;;  %v1600_v25 = vshll.u32 %v1368_v20, 16 }
 0x14a   : > { %v1607_v23 = vshrl.u32 %v1369_v41, 16  ;;  %v8244_v0 = vld [vmem:[%s7054_s7 + $0x60] sm:$0xf]  ;;  %v1610_v63 = vshll.u32 %v1369_v41, 16  ;;  %v1965_v2 = vrot.slane %v1963_v11, 4  ;;  %v1599_v56 = vrot.slane %v1597_v53, 5  ;;  %v4753_v16 = vpop.f32.mrf.mxu0  ;;  %v4930_v62 = vpop.f32.mrf.mxu1 }
 0x14b   : > { %v2576_v50 = vor.u32 %v2575_v39, %v2572_v31  ;;  %v8248_v59 = vor.u32 %v2585_v48, %v2582_v46  ;;  %v2106_v51 = vld [vmem:[%s7054_s7 + $0x64] sm:$0xf]  ;;  %v8254_v19 = vld [vmem:[%s7054_s7 + $0x68] sm:$0xf]  ;;  %v6836_v18 = vld [vmem:[#allocation2 + $0x25c] ss:$36 sps:$4 sm:$0xff]   ;;  %v4736_v61 = vadd.f32 %v7992_v30, %v8149_v49  ;;  %v4739_v5 = vadd.f32 %v7992_v30, %v8178_v10 }
 0x14c   : > { %v6838_v43 = vld [vmem:[#allocation2 + $0x258] ss:$36 sps:$4 sm:$0xff]   ;;  %v8264_v13 = vadd.f32 %v7992_v30, %v8195_v55  ;;  %v1602_v41 = vrot.slane %v1600_v25, 6  ;;  %v1609_v21 = vrot.slane %v1607_v23, 5  ;;  %5296 = vmatprep.mubr.bf16.mxu1 %v6836_v18  ;;  %v1612_v49 = vrot.slane %v1610_v63, 6  ;;  %v8272_v27 = vpop.f32.mrf.mxu0  ;;  %v8278_v9 = vpop.f32.mrf.mxu1 }
 0x14d   : > { %v3170_v11 = vld [vmem:[#allocation2 + $0x298] sm:$0xff]  ;;  %v2577_v17 = vsel %vm7731_vm14, %v2568_v3, %v2576_v50  ;;  %v2578_v20 = vrot.slane %v2576_v50, 4  ;;  %v1966_v42 = vrot.slane %v1848_v52, 6  ;;  %v1969_v44 = vrot.slane %v8244_v0, 6  ;;  %v2361_v55 = vld [vmem:[%s7054_s7 + $0x64] sm:$0xf]  ;;  %5297 = vmatmul.mubr.bf16.gmra.mxu1 %v6838_v43 }
 0x14e   : > { %2802 = vst [vmem:[#allocation2 + $0x2a4] sm:$0xf] %v2577_v17  ;;  %v2220_v10 = vrot.slane %v2218_v22, 4  ;;  %v6839_v3 = vld [vmem:[#allocation2 + $0x29c] ss:$36 sps:$4 sm:$0xff]   ;;  %v1603_v29 = vor.u32 %v1602_v41, %v1599_v56  ;;  %v2221_v34 = vrot.slane %v2106_v51, 6  ;;  %v8280_v22 = vor.u32 %v1612_v49, %v1609_v21  ;;  %v4756_v48 = vpop.f32.mrf.mxu0  ;;  %v4933_v23 = vpop.f32.mrf.mxu1 }
 0x14f   : > { %v3175_v15 = vld [vmem:[#allocation2 + $0x2bc] sm:$0xff]  ;;  %v2587_v28 = vsel %vm7731_vm14, %v2578_v20, %v8248_v59  ;;  %v2224_v31 = vrot.slane %v8254_v19, 6  ;;  %v1967_v35 = vsel %vm7676_vm10, %v1965_v2, %v1966_v42  ;;  %v1968_v39 = vrot.slane %v1966_v42, 4  ;;  %v2362_v46 = vld [vmem:[%s7054_s7 + $0x68] sm:$0xf]  ;;  %5127 = vmatprep.mubr.bf16.mxu0 %v6839_v3 }
 0x150   : > { %2803 = vst [vmem:[#allocation2 + $0x2c8] sm:$0xf] %v2587_v28  ;;  %v6096_v45 = vcombine.low %v3170_v11, %v3175_v15  ;;  %v1604_v52 = vsel %vm7683_vm11, %v1595_v54, %v1603_v29  ;;  %v1605_v26 = vrot.slane %v1603_v29, 4  ;;  %2069 = vst [vmem:[#allocation2 + $0x2e4] sm:$0xf] %v1967_v35  ;;  %v2222_v53 = vsel %vm7676_vm10, %v2220_v10, %v2221_v34  ;;  %v8295_v18 = vpop.f32.mrf.mxu0  ;;  %v8305_v17 = vpop.f32.mrf.mxu1 }
 0x151   : > { %v2223_v25 = vrot.slane %v2221_v34, 4  ;;  %1811 = vst [vmem:[#allocation2 + $0x2e0] sm:$0xf] %v1604_v52  ;;  %v1970_v50 = vsel %vm7676_vm10, %v1968_v39, %v1969_v44  ;;  %2324 = vst [vmem:[#allocation2 + $0x2e8] sm:$0xf] %v2222_v53  ;;  %v2588_v63 = vrot.slane %v8248_v59, 4  ;;  %v8308_v21 = vadd.f32 %v8157_v58, %v4736_v61 }
 0x152   : > { %5128 = vmatmul.mubr.bf16.gmra.mxu0 %v6096_v45  ;;  %v2590_v2 = vshrl.u32 %v2361_v55, 16  ;;  %v2593_v54 = vshll.u32 %v2361_v55, 16  ;;  %v1370_v51 = vld [vmem:[%s7054_s7 + $0x64] sm:$0xf]  ;;  %v1614_v43 = vsel %vm7683_vm11, %v1605_v26, %v8280_v22  ;;  %2070 = vst [vmem:[#allocation2 + $0x308] sm:$0xf] %v1970_v50  ;;  %v8311_v62 = vadd.f32 %v8181_v32, %v4739_v5  ;;  %v4761_v10 = vpop.f32.mrf.mxu0  ;;  %v4938_v34 = vpop.f32.mrf.mxu1 }
 0x153   : > { %v2225_v56 = vsel %vm7676_vm10, %v2223_v25, %v2224_v31  ;;  %v2600_v16 = vshrl.u32 %v2362_v46, 16  ;;  %v2603_v11 = vshll.u32 %v2362_v46, 16  ;;  %v1371_v59 = vld [vmem:[%s7054_s7 + $0x68] sm:$0xf]  ;;  %1812 = vst [vmem:[#allocation2 + $0x304] sm:$0xf] %v1614_v43  ;;  %v8325_v52 = vadd.f32 %v8203_v36, %v8264_v13 }
 0x154   : > { %2325 = vst [vmem:[#allocation2 + $0x30c] sm:$0xf] %v2225_v56  ;;  %v2592_v20 = vrot.slane %v2590_v2, 6  ;;  %v2595_v41 = vrot.slane %v2593_v54, 7  ;;  %v1850_v49 = vld [vmem:[%s7054_s7 + $0x64] sm:$0xf]  ;;  %v8319_v61 = vpop.f32.mrf.mxu0  ;;  %v8329_v26 = vpop.f32.mrf.mxu1 }
 0x155   : > { %v8315_v42 = vld [vmem:[%s7054_s7 + $0x68] sm:$0xf]  ;;  %v2602_v55 = vrot.slane %v2600_v16, 6  ;;  %v2605_v15 = vrot.slane %v2603_v11, 7  ;;  %v1615_v3 = vrot.slane %v8280_v22, 4  ;;  %v1617_v28 = vshrl.u32 %v1370_v51, 16 }
 0x156   : > { %v2108_v29 = vld [vmem:[%s7054_s7 + $0x6c] sm:$0xf]  ;;  %v2596_v45 = vor.u32 %v2595_v41, %v2592_v20  ;;  %v1620_v35 = vshll.u32 %v1370_v51, 16  ;;  %v1627_v39 = vshrl.u32 %v1371_v59, 16  ;;  %v1630_v58 = vshll.u32 %v1371_v59, 16  ;;  %v4764_v54 = vpop.f32.mrf.mxu0  ;;  %v4941_v51 = vpop.f32.mrf.mxu1 }
 0x157   : > { %v6841_v32 = vld [vmem:[#allocation2 + $0x2a4] ss:$36 sps:$4 sm:$0xff]   ;;  %v8321_v46 = vor.u32 %v2605_v15, %v2602_v55  ;;  %v1619_v48 = vrot.slane %v1617_v28, 5  ;;  %v4747_v22 = vadd.f32 %v7992_v30, %v8222_v14  ;;  %v8334_v2 = vld [vmem:[%s7054_s7 + $0x70] sm:$0xf]  ;;  %v1971_v13 = vrot.slane %v1969_v44, 4 }
 0x158   : > { %v6843_v5 = vld [vmem:[#allocation2 + $0x2a0] ss:$36 sps:$4 sm:$0xff]   ;;  %v2597_v53 = vsel %vm7731_vm14, %v2588_v63, %v2596_v45  ;;  %v2598_v25 = vrot.slane %v2596_v45, 4  ;;  %v1622_v23 = vrot.slane %v1620_v35, 6  ;;  %v1629_v50 = vrot.slane %v1627_v39, 5  ;;  %5304 = vmatprep.mubr.bf16.mxu1 %v6841_v32  ;;  %v8346_v20 = vpop.f32.mrf.mxu0  ;;  %v8355_v19 = vpop.f32.mrf.mxu1 }
 0x159   : > { %2804 = vst [vmem:[#allocation2 + $0x2ec] sm:$0xf] %v2597_v53  ;;  %v1632_v36 = vrot.slane %v1630_v58, 6  ;;  %v1972_v30 = vrot.slane %v1850_v49, 6  ;;  %v1975_v14 = vrot.slane %v8315_v42, 6  ;;  %5305 = vmatmul.mubr.bf16.gmra.mxu1 %v6843_v5  ;;  %v2226_v56 = vrot.slane %v2224_v31, 4 }
 0x15a   : > { %v2607_v63 = vsel %vm7731_vm14, %v2598_v25, %v8321_v46  ;;  %v1623_v43 = vor.u32 %v1622_v23, %v1619_v48  ;;  %v2227_v16 = vrot.slane %v2108_v29, 6  ;;  %v2363_v11 = vld [vmem:[%s7054_s7 + $0x6c] sm:$0xf]  ;;  %v2364_v59 = vld [vmem:[%s7054_s7 + $0x70] sm:$0xf]  ;;  %v8353_v10 = vadd.f32 %v8227_v37, %v4747_v22  ;;  %v4769_v34 = vpop.f32.mrf.mxu0  ;;  %v4946_v58 = vpop.f32.mrf.mxu1 }
 0x15b   : > { %v6845_v0 = vld [vmem:[#allocation2 + $0x2e0] ss:$36 sps:$4 sm:$0xff]   ;;  %2805 = vst [vmem:[#allocation2 + $0x310] sm:$0xf] %v2607_v63  ;;  %v8348_v41 = vor.u32 %v1632_v36, %v1629_v50  ;;  %v1973_v49 = vsel %vm7676_vm10, %v1971_v13, %v1972_v30  ;;  %v1974_v42 = vrot.slane %v1972_v30, 4  ;;  %v2230_v45 = vrot.slane %v8334_v2, 6 }
 0x15c   : > { %v6847_v44 = vld [vmem:[#allocation2 + $0x2e4] ss:$36 sps:$4 sm:$0xff]   ;;  %9344 = vst [vmem:[#allocation3_spill] sm:$0xff] %v8353_v10  ;;  %v1624_v31 = vsel %vm7683_vm11, %v1615_v3, %v1623_v43  ;;  %v1625_v55 = vrot.slane %v1623_v43, 4  ;;  %2071 = vst [vmem:[#allocation2 + $0x32c] sm:$0xf] %v1973_v49  ;;  %v2228_v15 = vsel %vm7676_vm10, %v2226_v56, %v2227_v16  ;;  %v8371_v25 = vpop.f32.mrf.mxu0  ;;  %v8379_v36 = vpop.f32.mrf.mxu1 }
 0x15d   : > { %v2229_v28 = vrot.slane %v2227_v16, 4  ;;  %v1372_v29 = vld [vmem:[%s7054_s7 + $0x6c] sm:$0xf]  ;;  %5135 = vmatprep.mubr.bf16.mxu0 %v6847_v44  ;;  %1813 = vst [vmem:[#allocation2 + $0x328] sm:$0xf] %v1624_v31  ;;  %v1976_v37 = vsel %vm7676_vm10, %v1974_v42, %v1975_v14  ;;  %v2608_v35 = vrot.slane %v8321_v46, 4 }
 0x15e   : > { %2326 = vst [vmem:[#allocation2 + $0x330] sm:$0xf] %v2228_v15  ;;  %v2610_v3 = vshrl.u32 %v2363_v11, 16  ;;  %v1373_v39 = vld [vmem:[%s7054_s7 + $0x70] sm:$0xf]  ;;  %5136 = vmatmul.mubr.bf16.gmra.mxu0 %v6845_v0  ;;  %v1634_v32 = vsel %vm7683_vm11, %v1625_v55, %v8348_v41  ;;  %v2613_v5 = vshll.u32 %v2363_v11, 16  ;;  %v4772_v43 = vpop.f32.mrf.mxu0  ;;  %v4949_v44 = vpop.f32.mrf.mxu1 }
 0x15f   : > { %2072 = vst [vmem:[#allocation2 + $0x350] sm:$0xf] %v1976_v37  ;;  %v2620_v48 = vshrl.u32 %v2364_v59, 16  ;;  %v2623_v22 = vshll.u32 %v2364_v59, 16  ;;  %v1852_v53 = vld [vmem:[%s7054_s7 + $0x6c] sm:$0xf]  ;;  %v2231_v46 = vsel %vm7676_vm10, %v2229_v28, %v2230_v45 }
 0x160   : > { %1814 = vst [vmem:[#allocation2 + $0x34c] sm:$0xf] %v1634_v32  ;;  %v2612_v23 = vrot.slane %v2610_v3, 6  ;;  %v1635_v50 = vrot.slane %v8348_v41, 4  ;;  %v1637_v2 = vshrl.u32 %v1372_v29, 16  ;;  %v2615_v13 = vrot.slane %v2613_v5, 7 }
 0x161   : > { %v8377_v54 = vld [vmem:[%s7054_s7 + $0x70] sm:$0xf]  ;;  %2327 = vst [vmem:[#allocation2 + $0x354] sm:$0xf] %v2231_v46  ;;  %v2622_v30 = vrot.slane %v2620_v48, 6  ;;  %v2625_v51 = vrot.slane %v2623_v22, 7 }
 0x162   : > { %v1640_v63 = vshll.u32 %v1372_v29, 16  ;;  %v1639_v56 = vrot.slane %v1637_v2, 5  ;;  %v1647_v16 = vshrl.u32 %v1373_v39, 16  ;;  %v1650_v11 = vshll.u32 %v1373_v39, 16  ;;  %v2110_v0 = vld [vmem:[%s7054_s7 + $0x74] sm:$0xf]  ;;  %v8391_v29 = vpop.f32.mrf.mxu0  ;;  %v8394_v39 = vpop.f32.mrf.mxu1 }
 0x163   : > { %v1977_v59 = vrot.slane %v1975_v14, 4  ;;  %v6848_v49 = vld [vmem:[#allocation2 + $0x2e8] ss:$36 sps:$4 sm:$0xff]   ;;  %v2616_v41 = vor.u32 %v2615_v13, %v2612_v23  ;;  %v8382_v31 = vor.u32 %v2625_v51, %v2622_v30  ;;  %v8387_v15 = vld [vmem:[%s9328_s2] ss:$0 sm:$0xff]  ;;  %v1978_v37 = vrot.slane %v1852_v53, 6 }
 0x164   : > { %v6850_v42 = vld [vmem:[#allocation2 + $0x2ec] ss:$36 sps:$4 sm:$0xff]   ;;  %v1642_v55 = vrot.slane %v1640_v63, 6  ;;  %v4752_v28 = vadd.f32 %v8387_v15, %v8246_v24  ;;  %v1649_v14 = vrot.slane %v1647_v16, 5  ;;  %v1652_v34 = vrot.slane %v1650_v11, 6  ;;  %v4777_v22 = vpop.f32.mrf.mxu0  ;;  %v4954_v51 = vpop.f32.mrf.mxu1 }
 0x165   : > { %v1981_v3 = vrot.slane %v8377_v54, 6  ;;  %5312 = vmatprep.mubr.bf16.mxu1 %v6850_v42  ;;  %v2617_v58 = vsel %vm7731_vm14, %v2608_v35, %v2616_v41  ;;  %v2618_v32 = vrot.slane %v2616_v41, 4  ;;  %v8399_v48 = vld [vmem:[%s7054_s7 + $0x78] sm:$0xf]  ;;  %v2232_v24 = vrot.slane %v2230_v45, 4 }
 0x166   : > { %v1643_v5 = vor.u32 %v1642_v55, %v1639_v56  ;;  %5313 = vmatmul.mubr.bf16.gmra.mxu1 %v6848_v49  ;;  %2806 = vst [vmem:[#allocation2 + $0x334] sm:$0xf] %v2617_v58  ;;  %v8401_v46 = vor.u32 %v1652_v34, %v1649_v14  ;;  %v1979_v53 = vsel %vm7676_vm10, %v1977_v59, %v1978_v37  ;;  %v1980_v23 = vrot.slane %v1978_v37, 4  ;;  %v2365_v13 = vld [vmem:[%s7054_s7 + $0x74] sm:$0xf]  ;;  %v8415_v11 = vpop.f32.mrf.mxu0  ;;  %v8425_v42 = vpop.f32.mrf.mxu1 }
 0x167   : > { %v2233_v2 = vrot.slane %v2110_v0, 6  ;;  %v2366_v30 = vld [vmem:[%s7054_s7 + $0x78] sm:$0xf]  ;;  %v6851_v35 = vld [vmem:[#allocation2 + $0x328] ss:$36 sps:$4 sm:$0xff]   ;;  %v2627_v45 = vsel %vm7731_vm14, %v2618_v32, %v8382_v31  ;;  %v8413_v16 = vadd.f32 %v8256_v4, %v4752_v28  ;;  %v2628_v41 = vrot.slane %v8382_v31, 4 }
 0x168   : > { %v6853_v63 = vld [vmem:[#allocation2 + $0x32c] ss:$36 sps:$4 sm:$0xff]   ;;  %v1644_v43 = vsel %vm7683_vm11, %v1635_v50, %v1643_v5  ;;  %v1645_v56 = vrot.slane %v1643_v5, 4  ;;  %2073 = vst [vmem:[#allocation2 + $0x374] sm:$0xf] %v1979_v53  ;;  %v1982_v59 = vsel %vm7676_vm10, %v1980_v23, %v1981_v3  ;;  %v2236_v50 = vrot.slane %v8399_v48, 6  ;;  %v4780_v34 = vpop.f32.mrf.mxu0 }
 0x169   : > { %9345 = vst [vmem:[#allocation4_spill] sm:$0xff] %v8413_v16  ;;  %2807 = vst [vmem:[#allocation2 + $0x358] sm:$0xf] %v2627_v45  ;;  %v2234_v0 = vsel %vm7676_vm10, %v2232_v24, %v2233_v2  ;;  %v2235_v44 = vrot.slane %v2233_v2, 4  ;;  %v1374_v49 = vld [vmem:[%s7054_s7 + $0x74] sm:$0xf]  ;;  %5143 = vmatprep.mubr.bf16.mxu0 %v6853_v63  ;;  %v4755_v5 = vadd.f32 %v8387_v15, %v8272_v27  ;;  %v4957_v24 = vpop.f32.mrf.mxu1 }
 0x16a   : > { %1815 = vst [vmem:[#allocation2 + $0x370] sm:$0xf] %v1644_v43  ;;  %v1654_v4 = vsel %vm7683_vm11, %v1645_v56, %v8401_v46  ;;  %2074 = vst [vmem:[#allocation2 + $0x398] sm:$0xf] %v1982_v59  ;;  %v2630_v55 = vshrl.u32 %v2365_v13, 16  ;;  %v2633_v28 = vshll.u32 %v2365_v13, 16  ;;  %5144 = vmatmul.mubr.bf16.gmra.mxu0 %v6851_v35  ;;  %v8440_v13 = vpop.f32.mrf.mxu0  ;;  %v4763_v24 = vadd.f32 %v8387_v15, %v8319_v61 }
 0x16b   : > { %2328 = vst [vmem:[#allocation2 + $0x378] sm:$0xf] %v2234_v0  ;;  %v1375_v14 = vld [vmem:[%s7054_s7 + $0x78] sm:$0xf]  ;;  %1816 = vst [vmem:[#allocation2 + $0x394] sm:$0xf] %v1654_v4  ;;  %v2237_v37 = vsel %vm7676_vm10, %v2235_v44, %v2236_v50  ;;  %v8445_v27 = vpop.f32.mrf.mxu1 }
 0x16c   : > { %v2640_v58 = vshrl.u32 %v2366_v30, 16  ;;  %v2643_v32 = vshll.u32 %v2366_v30, 16  ;;  %2329 = vst [vmem:[#allocation2 + $0x39c] sm:$0xf] %v2237_v37  ;;  %v2632_v31 = vrot.slane %v2630_v55, 6  ;;  %v2635_v22 = vrot.slane %v2633_v28, 7 }
 0x16d   : > { %v1655_v53 = vrot.slane %v8401_v46, 4  ;;  %v1657_v23 = vshrl.u32 %v1374_v49, 16  ;;  %v1854_v2 = vld [vmem:[%s7054_s7 + $0x74] sm:$0xf]  ;;  %v8443_v30 = vadd.f32 %v8278_v9, %v4755_v5  ;;  %v1660_v63 = vshll.u32 %v1374_v49, 16  ;;  %v4785_v46 = vpop.f32.mrf.mxu0  ;;  %v4962_v49 = vpop.f32.mrf.mxu1 }
 0x16e   : > { %v2642_v51 = vrot.slane %v2640_v58, 6  ;;  %v2645_v35 = vrot.slane %v2643_v32, 7  ;;  %v2636_v45 = vor.u32 %v2635_v22, %v2632_v31  ;;  %v1667_v56 = vshrl.u32 %v1375_v14, 16  ;;  %v8448_v0 = vld [vmem:[%s7054_s7 + $0x78] sm:$0xf] }
 0x16f   : > { %9346 = vst [vmem:[#allocation5_spill] sm:$0xff] %v8443_v30  ;;  %v1659_v43 = vrot.slane %v1657_v23, 5  ;;  %v1670_v59 = vshll.u32 %v1375_v14, 16  ;;  %v1662_v4 = vrot.slane %v1660_v63, 6  ;;  %v1983_v55 = vrot.slane %v1981_v3, 4  ;;  %v8464_v54 = vpop.f32.mrf.mxu0 }
 0x170   : > { %v8450_v44 = vor.u32 %v2645_v35, %v2642_v51  ;;  %v1984_v28 = vrot.slane %v1854_v2, 6  ;;  %v2112_v9 = vld [vmem:[%s7054_s7 + $0x7c] sm:$0xf]  ;;  %v8456_v34 = vld [vmem:[%s7054_s7 + $0x80] sm:$0xf]  ;;  %v2637_v14 = vsel %vm7731_vm14, %v2628_v41, %v2636_v45  ;;  %v2638_v32 = vrot.slane %v2636_v45, 4  ;;  %v8469_v51 = vpop.f32.mrf.mxu1 }
 0x171   : > { %v6854_v37 = vld [vmem:[#allocation2 + $0x330] ss:$36 sps:$4 sm:$0xff]   ;;  %v4760_v5 = vadd.f32 %v8387_v15, %v8295_v18  ;;  %2808 = vst [vmem:[#allocation2 + $0x37c] sm:$0xf] %v2637_v14  ;;  %v1663_v3 = vor.u32 %v1662_v4, %v1659_v43  ;;  %v1669_v31 = vrot.slane %v1667_v56, 5  ;;  %v1672_v22 = vrot.slane %v1670_v59, 6  ;;  %v4788_v43 = vpop.f32.mrf.mxu0 }
 0x172   : > { %v6856_v58 = vld [vmem:[#allocation2 + $0x334] ss:$36 sps:$4 sm:$0xff]   ;;  %v1985_v23 = vsel %vm7676_vm10, %v1983_v55, %v1984_v28  ;;  %v2367_v2 = vld [vmem:[%s7054_s7 + $0x7c] sm:$0xf]  ;;  %v2647_v18 = vsel %vm7731_vm14, %v2638_v32, %v8450_v44  ;;  %v1986_v61 = vrot.slane %v1984_v28, 4  ;;  %v8478_v45 = vadd.f32 %v8329_v26, %v4763_v24  ;;  %v4965_v28 = vpop.f32.mrf.mxu1 }
 0x173   : > { %5320 = vmatprep.mubr.bf16.mxu1 %v6856_v58  ;;  %v6858_v41 = vld [vmem:[#allocation2 + $0x370] ss:$36 sps:$4 sm:$0xff]   ;;  %2075 = vst [vmem:[#allocation2 + $0x3bc] sm:$0xf] %v1985_v23  ;;  %v8475_v63 = vadd.f32 %v8305_v17, %v4760_v5  ;;  %2809 = vst [vmem:[#allocation2 + $0x3a0] sm:$0xf] %v2647_v18  ;;  %v1664_v56 = vsel %vm7683_vm11, %v1655_v53, %v1663_v3  ;;  %v8482_v46 = vor.u32 %v1672_v22, %v1669_v31  ;;  %v8491_v53 = vpop.f32.mrf.mxu0 }
 0x174   : > { %v6860_v35 = vld [vmem:[#allocation2 + $0x374] ss:$36 sps:$4 sm:$0xff]   ;;  %9348 = vst [vmem:[#allocation7_spill] sm:$0xff] %v8478_v45  ;;  %5321 = vmatmul.mubr.bf16.gmra.mxu1 %v6854_v37  ;;  %v1665_v59 = vrot.slane %v1663_v3, 4  ;;  %v1987_v4 = vrot.slane %v8448_v0, 6  ;;  %v2238_v17 = vrot.slane %v2236_v50, 4  ;;  %v8498_v50 = vpop.f32.mrf.mxu1 }
 0x175   : > { %9347 = vst [vmem:[#allocation6_spill] sm:$0xff] %v8475_v63  ;;  %v2368_v55 = vld [vmem:[%s7054_s7 + $0x80] sm:$0xf]  ;;  %5151 = vmatprep.mubr.bf16.mxu0 %v6860_v35  ;;  %1817 = vst [vmem:[#allocation2 + $0x3b8] sm:$0xf] %v1664_v56  ;;  %v2239_v26 = vrot.slane %v2112_v9, 6  ;;  %v4793_v31 = vpop.f32.mrf.mxu0 }
 0x176   : > { %v9331_v49 = vrot.slane %v8456_v34, 6  ;;  %v2648_v37 = vrot.slane %v8450_v44, 4  ;;  %v1376_v58 = vld [vmem:[%s7054_s7 + $0x7c] sm:$0xf]  ;;  %5152 = vmatmul.mubr.bf16.gmra.mxu0 %v6858_v41  ;;  %v1674_v0 = vsel %vm7683_vm11, %v1665_v59, %v8482_v46  ;;  %v1988_v14 = vsel %vm7676_vm10, %v1986_v61, %v1987_v4  ;;  %v1377_v3 = vld [vmem:[%s7054_s7 + $0x80] sm:$0xf]  ;;  %v4970_v35 = vpop.f32.mrf.mxu1 }
 0x177   : > { %v2650_v32 = vshrl.u32 %v2367_v2, 16  ;;  %v2653_v48 = vshll.u32 %v2367_v2, 16  ;;  %1818 = vst [vmem:[#allocation2 + $0x3dc] sm:$0xf] %v1674_v0  ;;  %2076 = vst [vmem:[#allocation2 + $0x3e0] sm:$0xf] %v1988_v14  ;;  %v2240_v44 = vsel %vm7676_vm10, %v2238_v17, %v2239_v26 }
 0x178   : > { %v2241_v9 = vrot.slane %v2239_v26, 4  ;;  %v2660_v5 = vshrl.u32 %v2368_v55, 16  ;;  %v2663_v24 = vshll.u32 %v2368_v55, 16  ;;  %2330 = vst [vmem:[#allocation2 + $0x3c0] sm:$0xf] %v2240_v44  ;;  %v1675_v41 = vrot.slane %v8482_v46, 4  ;;  %v8509_v55 = vpop.f32.mrf.mxu0  ;;  %v8514_v14 = vpop.f32.mrf.mxu1 }
 0x179   : > { %v2652_v22 = vrot.slane %v2650_v32, 6  ;;  %v2655_v23 = vrot.slane %v2653_v48, 7  ;;  %v1677_v2 = vshrl.u32 %v1376_v58, 16  ;;  %v1680_v56 = vshll.u32 %v1376_v58, 16  ;;  %v1856_v59 = vld [vmem:[%s7054_s7 + $0x7c] sm:$0xf] }
 0x17a   : > { %v2243_v18 = vsel %vm7676_vm10, %v2241_v9, %v9331_v49  ;;  %v2662_v61 = vrot.slane %v2660_v5, 6  ;;  %v2665_v43 = vrot.slane %v2663_v24, 7  ;;  %v1687_v26 = vshrl.u32 %v1377_v3, 16  ;;  %v8512_v0 = vld [vmem:[%s7054_s7 + $0x80] sm:$0xf]  ;;  %v4796_v31 = vpop.f32.mrf.mxu0 }
 0x17b   : > { %2331 = vst [vmem:[#allocation2 + $0x3e4] sm:$0xf] %v2243_v18  ;;  %v2656_v28 = vor.u32 %v2655_v23, %v2652_v22  ;;  %v1679_v17 = vrot.slane %v1677_v2, 5  ;;  %v1690_v46 = vshll.u32 %v1377_v3, 16  ;;  %v6861_v32 = vld [vmem:[#allocation2 + $0x378] ss:$36 sps:$4 sm:$0xff]   ;;  %v4768_v24 = vadd.f32 %v8387_v15, %v8346_v20 }
 0x17c   : > { %v6863_v48 = vld [vmem:[#allocation2 + $0x37c] ss:$36 sps:$4 sm:$0xff]   ;;  %v8516_v44 = vor.u32 %v2665_v43, %v2662_v61  ;;  %v1682_v9 = vrot.slane %v1680_v56, 6  ;;  %v2114_v5 = vld [vmem:[%s7054_s7 + $0x84] sm:$0xf]  ;;  %v4771_v3 = vadd.f32 %v8387_v15, %v8371_v25  ;;  %v1689_v2 = vrot.slane %v1687_v26, 5  ;;  %v4973_v61 = vpop.f32.mrf.mxu1  ;;  %v8531_v63 = vpop.f32.mrf.mxu0 }
 0x17d   : > { %v8520_v58 = vld [vmem:[%s7054_s7 + $0x88] sm:$0xf]  ;;  %v2657_v22 = vsel %vm7731_vm14, %v2648_v37, %v2656_v28  ;;  %v2658_v23 = vrot.slane %v2656_v28, 4  ;;  %v1692_v35 = vrot.slane %v1690_v46, 6  ;;  %v2369_v18 = vld [vmem:[%s7054_s7 + $0x84] sm:$0xf]  ;;  %5328 = vmatprep.mubr.bf16.mxu1 %v6863_v48 }
 0x17e   : > { %2810 = vst [vmem:[#allocation2 + $0x3c4] sm:$0xf] %v2657_v22  ;;  %v1683_v43 = vor.u32 %v1682_v9, %v1679_v17  ;;  %v1989_v56 = vrot.slane %v1987_v4, 4  ;;  %v1990_v49 = vrot.slane %v1856_v59, 6  ;;  %v1993_v45 = vrot.slane %v8512_v0, 6  ;;  %5329 = vmatmul.mubr.bf16.gmra.mxu1 %v6861_v32  ;;  %v8543_v59 = vpop.f32.mrf.mxu1  ;;  %v4801_v9 = vpop.f32.mrf.mxu0 }
 0x17f   : > { %v2370_v20 = vld [vmem:[%s7054_s7 + $0x88] sm:$0xf]  ;;  %v6864_v25 = vld [vmem:[#allocation2 + $0x3b8] ss:$36 sps:$4 sm:$0xff]   ;;  %v2667_v37 = vsel %vm7731_vm14, %v2658_v23, %v8516_v44  ;;  %v8536_v28 = vor.u32 %v1692_v35, %v1689_v2  ;;  %v9349_v26 = vrot.slane %v8456_v34, 6  ;;  %v8541_v4 = vadd.f32 %v8355_v19, %v4768_v24 }
 0x180   : > { %v6866_v31 = vld [vmem:[#allocation2 + $0x3bc] ss:$36 sps:$4 sm:$0xff]   ;;  %2811 = vst [vmem:[#allocation2 + $0x3e8] sm:$0xf] %v2667_v37  ;;  %v1684_v17 = vsel %vm7683_vm11, %v1675_v41, %v1683_v43  ;;  %v1685_v0 = vrot.slane %v1683_v43, 4  ;;  %v1991_v32 = vsel %vm7676_vm10, %v1989_v56, %v1990_v49  ;;  %v1992_v48 = vrot.slane %v1990_v49, 4  ;;  %v4978_v23 = vpop.f32.mrf.mxu1 }
 0x181   : > { %v2244_v46 = vrot.slane %v9349_v26, 4  ;;  %9350 = vst [vmem:[#allocation8_spill] sm:$0xff] %v8541_v4  ;;  %5159 = vmatprep.mubr.bf16.mxu0 %v6866_v31  ;;  %1819 = vst [vmem:[#allocation2 + $0x400] sm:$0xf] %v1684_v17  ;;  %v2245_v34 = vrot.slane %v2114_v5, 6  ;;  %v2248_v19 = vrot.slane %v8520_v58, 6  ;;  %v8557_v5 = vpop.f32.mrf.mxu0  ;;  %v8565_v26 = vadd.f32 %v8379_v36, %v4771_v3 }
 0x182   : > { %2077 = vst [vmem:[#allocation2 + $0x404] sm:$0xf] %v1991_v32  ;;  %v2668_v24 = vrot.slane %v8516_v44, 4  ;;  %v2670_v22 = vshrl.u32 %v2369_v18, 16  ;;  %5160 = vmatmul.mubr.bf16.gmra.mxu0 %v6864_v25  ;;  %v1694_v41 = vsel %vm7683_vm11, %v1685_v0, %v8536_v28  ;;  %v1994_v49 = vsel %vm7676_vm10, %v1992_v48, %v1993_v45  ;;  %v1378_v61 = vld [vmem:[%s7054_s7 + $0x84] sm:$0xf]  ;;  %v8562_v31 = vpop.f32.mrf.mxu1 }
 0x183   : > { %v2673_v2 = vshll.u32 %v2369_v18, 16  ;;  %v2680_v35 = vshrl.u32 %v2370_v20, 16  ;;  %1820 = vst [vmem:[#allocation2 + $0x424] sm:$0xf] %v1694_v41  ;;  %2078 = vst [vmem:[#allocation2 + $0x428] sm:$0xf] %v1994_v49  ;;  %v2246_v44 = vsel %vm7676_vm10, %v2244_v46, %v2245_v34  ;;  %v4804_v32 = vpop.f32.mrf.mxu0 }
 0x184   : > { %v2247_v58 = vrot.slane %v2245_v34, 4  ;;  %v2672_v43 = vrot.slane %v2670_v22, 6  ;;  %v2683_v56 = vshll.u32 %v2370_v20, 16  ;;  %v1379_v25 = vld [vmem:[%s7054_s7 + $0x88] sm:$0xf]  ;;  %9351 = vst [vmem:[#allocation9_spill] sm:$0xff] %v8565_v26  ;;  %v4981_v22 = vpop.f32.mrf.mxu1 }
 0x185   : > { %2332 = vst [vmem:[#allocation2 + $0x408] sm:$0xf] %v2246_v44  ;;  %v2675_v37 = vrot.slane %v2673_v2, 7  ;;  %v2682_v18 = vrot.slane %v2680_v35, 6  ;;  %v1695_v17 = vrot.slane %v8536_v28, 4  ;;  %v1697_v9 = vshrl.u32 %v1378_v61, 16  ;;  %v8575_v2 = vpop.f32.mrf.mxu0 }
 0x186   : > { %v1858_v0 = vld [vmem:[%s7054_s7 + $0x84] sm:$0xf]  ;;  %v2249_v46 = vsel %vm7676_vm10, %v2247_v58, %v2248_v19  ;;  %v2685_v48 = vrot.slane %v2683_v56, 7  ;;  %v1700_v20 = vshll.u32 %v1378_v61, 16  ;;  %v8572_v34 = vld [vmem:[%s7054_s7 + $0x88] sm:$0xf]  ;;  %v4776_v61 = vadd.f32 %v8387_v15, %v8391_v29 }
 0x187   : > { %2333 = vst [vmem:[#allocation2 + $0x42c] sm:$0xf] %v2249_v46  ;;  %v2676_v23 = vor.u32 %v2675_v37, %v2672_v43  ;;  %v1707_v41 = vshrl.u32 %v1379_v25, 16  ;;  %v1710_v49 = vshll.u32 %v1379_v25, 16  ;;  %v1995_v36 = vrot.slane %v1993_v45, 4  ;;  %v8583_v43 = vpop.f32.mrf.mxu1 }
 0x188   : > { %v2116_v3 = vld [vmem:[%s7054_s7 + $0x8c] sm:$0xf]  ;;  %v6867_v28 = vld [vmem:[#allocation2 + $0x3c0] ss:$36 sps:$4 sm:$0xff]   ;;  %v8577_v44 = vor.u32 %v2685_v48, %v2682_v18  ;;  %v1699_v58 = vrot.slane %v1697_v9, 5  ;;  %v4779_v56 = vadd.f32 %v8387_v15, %v8415_v11  ;;  %v1702_v37 = vrot.slane %v1700_v20, 6  ;;  %v4809_v18 = vpop.f32.mrf.mxu0 }
 0x189   : > { %v6869_v35 = vld [vmem:[#allocation2 + $0x3c4] ss:$36 sps:$4 sm:$0xff]   ;;  %v2677_v45 = vsel %vm7731_vm14, %v2668_v24, %v2676_v23  ;;  %v2678_v25 = vrot.slane %v2676_v23, 4  ;;  %v1709_v32 = vrot.slane %v1707_v41, 5  ;;  %v8588_v46 = vld [vmem:[%s7054_s7 + $0x90] sm:$0xf]  ;;  %v4986_v26 = vpop.f32.mrf.mxu1  ;;  %v8596_v41 = vadd.f32 %v8394_v39, %v4776_v61 }
 0x18a   : > { %5336 = vmatprep.mubr.bf16.mxu1 %v6869_v35  ;;  %2812 = vst [vmem:[#allocation2 + $0x40c] sm:$0xf] %v2677_v45  ;;  %v1712_v48 = vrot.slane %v1710_v49, 6  ;;  %v1996_v9 = vrot.slane %v1858_v0, 6  ;;  %v1999_v29 = vrot.slane %v8572_v34, 6  ;;  %v2250_v22 = vrot.slane %v2248_v19, 4  ;;  %v8598_v49 = vpop.f32.mrf.mxu0 }
 0x18b   : > { %v2371_v11 = vld [vmem:[%s7054_s7 + $0x8c] sm:$0xf]  ;;  %5337 = vmatmul.mubr.bf16.gmra.mxu1 %v6867_v28  ;;  %v6871_v4 = vld [vmem:[#allocation2 + $0x400] ss:$36 sps:$4 sm:$0xff]   ;;  %v2687_v24 = vsel %vm7731_vm14, %v2678_v25, %v8577_v44  ;;  %v1703_v20 = vor.u32 %v1702_v37, %v1699_v58  ;;  %v2251_v23 = vrot.slane %v2116_v3, 6  ;;  %9352 = vst [vmem:[#allocation10_spill] sm:$0xff] %v8596_v41  ;;  %v8606_v35 = vpop.f32.mrf.mxu1 }
 0x18c   : > { %v6873_v30 = vld [vmem:[#allocation2 + $0x404] ss:$36 sps:$4 sm:$0xff]   ;;  %2813 = vst [vmem:[#allocation2 + $0x430] sm:$0xf] %v2687_v24  ;;  %v8600_v0 = vor.u32 %v1712_v48, %v1709_v32  ;;  %v1997_v19 = vsel %vm7676_vm10, %v1995_v36, %v1996_v9  ;;  %v1998_v26 = vrot.slane %v1996_v9, 4  ;;  %v9332_v34 = vrot.slane %v8588_v46, 6  ;;  %v4812_v45 = vpop.f32.mrf.mxu0 }
 0x18d   : > { %v2372_v28 = vld [vmem:[%s7054_s7 + $0x90] sm:$0xf]  ;;  %5167 = vmatprep.mubr.bf16.mxu0 %v6873_v30  ;;  %v1704_v39 = vsel %vm7683_vm11, %v1695_v17, %v1703_v20  ;;  %v1705_v3 = vrot.slane %v1703_v20, 4  ;;  %2079 = vst [vmem:[#allocation2 + $0x44c] sm:$0xf] %v1997_v19  ;;  %v2252_v58 = vsel %vm7676_vm10, %v2250_v22, %v2251_v23  ;;  %v2253_v61 = vrot.slane %v2251_v23, 4  ;;  %v4989_v32 = vpop.f32.mrf.mxu1 }
 0x18e   : > { %5168 = vmatmul.mubr.bf16.gmra.mxu0 %v6871_v4  ;;  %1821 = vst [vmem:[#allocation2 + $0x448] sm:$0xf] %v1704_v39  ;;  %v2000_v36 = vsel %vm7676_vm10, %v1998_v26, %v1999_v29  ;;  %2334 = vst [vmem:[#allocation2 + $0x450] sm:$0xf] %v2252_v58  ;;  %v2688_v25 = vrot.slane %v8577_v44, 4  ;;  %v2690_v30 = vshrl.u32 %v2371_v11, 16  ;;  %v8624_v22 = vpop.f32.mrf.mxu0  ;;  %v8627_v20 = vadd.f32 %v8425_v42, %v4779_v56 }
 0x18f   : > { %v2693_v37 = vshll.u32 %v2371_v11, 16  ;;  %v1380_v17 = vld [vmem:[%s7054_s7 + $0x8c] sm:$0xf]  ;;  %v1714_v18 = vsel %vm7683_vm11, %v1705_v3, %v8600_v0  ;;  %2080 = vst [vmem:[#allocation2 + $0x470] sm:$0xf] %v2000_v36  ;;  %v2255_v4 = vsel %vm7676_vm10, %v2253_v61, %v9332_v34  ;;  %v2700_v48 = vshrl.u32 %v2372_v28, 16  ;;  %v8634_v39 = vpop.f32.mrf.mxu1 }
 0x190   : > { %v2703_v9 = vshll.u32 %v2372_v28, 16  ;;  %v1381_v44 = vld [vmem:[%s7054_s7 + $0x90] sm:$0xf]  ;;  %1822 = vst [vmem:[#allocation2 + $0x46c] sm:$0xf] %v1714_v18  ;;  %v2692_v11 = vrot.slane %v2690_v30, 6  ;;  %v4817_v36 = vpop.f32.mrf.mxu0 }
 0x191   : > { %2335 = vst [vmem:[#allocation2 + $0x474] sm:$0xf] %v2255_v4  ;;  %v2695_v24 = vrot.slane %v2693_v37, 7  ;;  %9353 = vst [vmem:[#allocation11_spill] sm:$0xff] %v8627_v20  ;;  %v1715_v23 = vrot.slane %v8600_v0, 4  ;;  %v2702_v28 = vrot.slane %v2700_v48, 6  ;;  %v4994_v42 = vpop.f32.mrf.mxu1  ;;  %v4784_v48 = vadd.f32 %v8387_v15, %v8440_v13 }
 0x192   : > { %v1860_v19 = vld [vmem:[%s7054_s7 + $0x8c] sm:$0xf]  ;;  %v8632_v26 = vld [vmem:[%s7054_s7 + $0x90] sm:$0xf]  ;;  %v2705_v3 = vrot.slane %v2703_v9, 7  ;;  %v1717_v58 = vshrl.u32 %v1380_v17, 16  ;;  %v8646_v9 = vpop.f32.mrf.mxu0 }
 0x193   : > { %v1720_v61 = vshll.u32 %v1380_v17, 16  ;;  %v2118_v45 = vld [vmem:[%s7054_s7 + $0x94] sm:$0xf]  ;;  %v2696_v32 = vor.u32 %v2695_v24, %v2692_v11  ;;  %v1727_v30 = vshrl.u32 %v1381_v44, 16  ;;  %v1730_v37 = vshll.u32 %v1381_v44, 16  ;;  %v8650_v36 = vpop.f32.mrf.mxu1 }
 0x194   : > { %v2001_v18 = vrot.slane %v1999_v29, 4  ;;  %v8638_v4 = vld [vmem:[%s7054_s7 + $0x98] sm:$0xf]  ;;  %v6874_v56 = vld [vmem:[#allocation2 + $0x408] ss:$36 sps:$4 sm:$0xff]   ;;  %v8640_v34 = vor.u32 %v2705_v3, %v2702_v28  ;;  %v1719_v20 = vrot.slane %v1717_v58, 5  ;;  %v4787_v17 = vadd.f32 %v8387_v15, %v8464_v54  ;;  %v4820_v42 = vpop.f32.mrf.mxu0 }
 0x195   : > { %v6876_v0 = vld [vmem:[#allocation2 + $0x40c] ss:$36 sps:$4 sm:$0xff]   ;;  %v2697_v44 = vsel %vm7731_vm14, %v2688_v25, %v2696_v32  ;;  %v2698_v29 = vrot.slane %v2696_v32, 4  ;;  %v1722_v11 = vrot.slane %v1720_v61, 6  ;;  %v1729_v24 = vrot.slane %v1727_v30, 5 }
 0x196   : > { %5344 = vmatprep.mubr.bf16.mxu1 %v6876_v0  ;;  %2814 = vst [vmem:[#allocation2 + $0x454] sm:$0xf] %v2697_v44  ;;  %v1732_v28 = vrot.slane %v1730_v37, 6  ;;  %v2002_v3 = vrot.slane %v1860_v19, 6  ;;  %v2005_v13 = vrot.slane %v8632_v26, 6  ;;  %v9354_v54 = vrot.slane %v8588_v46, 6  ;;  %v4997_v44 = vpop.f32.mrf.mxu1  ;;  %v8672_v42 = vpop.f32.mrf.mxu0 }
 0x197   : > { %5345 = vmatmul.mubr.bf16.gmra.mxu1 %v6874_v56  ;;  %v2707_v25 = vsel %vm7731_vm14, %v2698_v29, %v8640_v34  ;;  %v1723_v61 = vor.u32 %v1722_v11, %v1719_v20  ;;  %v2257_v32 = vrot.slane %v2118_v45, 6  ;;  %v9333_v30 = vrot.slane %v8638_v4, 6  ;;  %v2373_v41 = vld [vmem:[%s7054_s7 + $0x94] sm:$0xf]  ;;  %v2374_v0 = vld [vmem:[%s7054_s7 + $0x98] sm:$0xf] }
 0x198   : > { %v2256_v58 = vrot.slane %v9354_v54, 4  ;;  %v6877_v37 = vld [vmem:[#allocation2 + $0x448] ss:$36 sps:$4 sm:$0xff]   ;;  %2815 = vst [vmem:[#allocation2 + $0x478] sm:$0xf] %v2707_v25  ;;  %v8661_v26 = vor.u32 %v1732_v28, %v1729_v24  ;;  %v2003_v46 = vsel %vm7676_vm10, %v2001_v18, %v2002_v3  ;;  %v2004_v56 = vrot.slane %v2002_v3, 4  ;;  %v8674_v24 = vpop.f32.mrf.mxu1 }
 0x199   : > { %v6879_v19 = vld [vmem:[#allocation2 + $0x44c] ss:$36 sps:$4 sm:$0xff]   ;;  %v8666_v54 = vadd.f32 %v8445_v27, %v4784_v48  ;;  %v1724_v20 = vsel %vm7683_vm11, %v1715_v23, %v1723_v61  ;;  %v1725_v45 = vrot.slane %v1723_v61, 4  ;;  %2081 = vst [vmem:[#allocation2 + $0x494] sm:$0xf] %v2003_v46  ;;  %v2259_v11 = vrot.slane %v2257_v32, 4 }
 0x19a   : > { %v2258_v29 = vsel %vm7676_vm10, %v2256_v58, %v2257_v32  ;;  %5175 = vmatprep.mubr.bf16.mxu0 %v6879_v19  ;;  %1823 = vst [vmem:[#allocation2 + $0x490] sm:$0xf] %v1724_v20  ;;  %v2006_v27 = vsel %vm7676_vm10, %v2004_v56, %v2005_v13  ;;  %v2708_v18 = vrot.slane %v8640_v34, 4  ;;  %v2710_v23 = vshrl.u32 %v2373_v41, 16  ;;  %v1382_v28 = vld [vmem:[%s7054_s7 + $0x94] sm:$0xf]  ;;  %v4825_v32 = vpop.f32.mrf.mxu0 }
 0x19b   : > { %9355 = vst [vmem:[#allocation12_spill] sm:$0xff] %v8666_v54  ;;  %2336 = vst [vmem:[#allocation2 + $0x498] sm:$0xf] %v2258_v29  ;;  %v2713_v48 = vshll.u32 %v2373_v41, 16  ;;  %5176 = vmatmul.mubr.bf16.gmra.mxu0 %v6877_v37  ;;  %v1734_v3 = vsel %vm7683_vm11, %v1725_v45, %v8661_v26  ;;  %v2261_v58 = vsel %vm7676_vm10, %v2259_v11, %v9333_v30  ;;  %v2720_v25 = vshrl.u32 %v2374_v0, 16  ;;  %v5002_v41 = vpop.f32.mrf.mxu1 }
 0x19c   : > { %2082 = vst [vmem:[#allocation2 + $0x4b8] sm:$0xf] %v2006_v27  ;;  %v2723_v61 = vshll.u32 %v2374_v0, 16  ;;  %v1383_v34 = vld [vmem:[%s7054_s7 + $0x98] sm:$0x3]  ;;  %v2712_v44 = vrot.slane %v2710_v23, 6  ;;  %v8689_v19 = vadd.f32 %v8469_v51, %v4787_v17  ;;  %v8695_v30 = vpop.f32.mrf.mxu0 }
 0x19d   : > { %1824 = vst [vmem:[#allocation2 + $0x4b4] sm:$0xf] %v1734_v3  ;;  %2337 = vst [vmem:[#allocation2 + $0x4bc] sm:$0xf] %v2261_v58  ;;  %v2715_v37 = vrot.slane %v2713_v48, 7  ;;  %v1735_v46 = vrot.slane %v8661_v26, 4  ;;  %v8697_v32 = vpop.f32.mrf.mxu1 }
 0x19e   : > { %9356 = vst [vmem:[#allocation13_spill] sm:$0xff] %v8689_v19  ;;  %v1862_v56 = vld [vmem:[%s7054_s7 + $0x94] sm:$0xf]  ;;  %v1863_v20 = vld [vmem:[%s7054_s7 + $0x98] sm:$0x3]  ;;  %v2722_v45 = vrot.slane %v2720_v25, 6  ;;  %v4792_v25 = vadd.f32 %v8387_v15, %v8491_v53 }
 0x19f   : > { %v2725_v29 = vrot.slane %v2723_v61, 7  ;;  %v1737_v11 = vshrl.u32 %v1382_v28, 16  ;;  %v1740_v0 = vshll.u32 %v1382_v28, 16  ;;  %v2120_v27 = vld [vmem:[%s7054_s7 + $0x9c] sm:$0xf]  ;;  %v2716_v3 = vor.u32 %v2715_v37, %v2712_v44  ;;  %v4828_v61 = vpop.f32.mrf.mxu0  ;;  %v5005_v54 = vpop.f32.mrf.mxu1 }
 0x1a0   : > { %v1747_v23 = vshrl.u32 %v1383_v34, 16  ;;  %v1750_v48 = vshll.u32 %v1383_v34, 16  ;;  %v2007_v58 = vrot.slane %v2005_v13, 4  ;;  %v2121_v41 = vld [vmem:[%s7054_s7 + $0xa0] sm:$0x3]  ;;  %v4795_v28 = vadd.f32 %v8387_v15, %v8509_v55 }
 0x1a1   : > { %v6880_v51 = vld [vmem:[#allocation2 + $0x450] ss:$36 sps:$4 sm:$0xff]   ;;  %v8700_v19 = vor.u32 %v2725_v29, %v2722_v45  ;;  %v1739_v26 = vrot.slane %v1737_v11, 5  ;;  %v2717_v44 = vsel %vm7731_vm14, %v2708_v18, %v2716_v3  ;;  %v2718_v34 = vrot.slane %v2716_v3, 4  ;;  %v8710_v10 = vpop.f32.mrf.mxu1 }
 0x1a2   : > { %v6882_v17 = vld [vmem:[#allocation2 + $0x454] ss:$36 sps:$4 sm:$0xff]   ;;  %v1742_v13 = vrot.slane %v1740_v0, 6  ;;  %v1749_v37 = vrot.slane %v1747_v23, 5  ;;  %2816 = vst [vmem:[#allocation2 + $0x49c] sm:$0xf] %v2717_v44  ;;  %v8722_v61 = vadd.f32 %v8498_v50, %v4792_v25  ;;  %v8747_v8 = vadd.f32 %v8514_v14, %v4795_v28 }
 0x1a3   : > { %5352 = vmatprep.mubr.bf16.mxu1 %v6882_v17  ;;  %v1752_v45 = vrot.slane %v1750_v48, 6  ;;  %v2008_v29 = vrot.slane %v1862_v56, 6  ;;  %v2011_v11 = vrot.slane %v1863_v20, 6  ;;  %v9357_v53 = vrot.slane %v8638_v4, 6  ;;  %v2375_v0 = vld [vmem:[%s7054_s7 + $0x9c] sm:$0xf]  ;;  %v8717_v48 = vpop.f32.mrf.mxu0 }
 0x1a4   : > { %5353 = vmatmul.mubr.bf16.gmra.mxu1 %v6880_v51  ;;  %v2727_v55 = vsel %vm7731_vm14, %v2718_v34, %v8700_v19  ;;  %v1743_v54 = vor.u32 %v1742_v13, %v1739_v26  ;;  %v2263_v18 = vrot.slane %v2120_v27, 6  ;;  %v2266_v3 = vrot.slane %v2121_v41, 6  ;;  %v2376_v23 = vld [vmem:[%s7054_s7 + $0xa0] sm:$0x7]  ;;  %v6884_v56 = vld [vmem:[#allocation2 + $0x490] ss:$36 sps:$4 sm:$0xff]   ;;  %v5010_v26 = vpop.f32.mrf.mxu1 }
 0x1a5   : > { %v2262_v16 = vrot.slane %v9357_v53, 4  ;;  %v6886_v20 = vld [vmem:[#allocation2 + $0x494] ss:$36 sps:$4 sm:$0xff]   ;;  %2817 = vst [vmem:[#allocation2 + $0x4c0] sm:$0xf] %v2727_v55  ;;  %v1753_v4 = vor.u32 %v1752_v45, %v1749_v37  ;;  %v2009_v51 = vsel %vm7676_vm10, %v2007_v58, %v2008_v29  ;;  %v2010_v17 = vrot.slane %v2008_v29, 4  ;;  %v4833_v45 = vpop.f32.mrf.mxu0 }
 0x1a6   : > { %v1744_v27 = vsel %vm7683_vm11, %v1735_v46, %v1743_v54  ;;  %v1745_v41 = vrot.slane %v1743_v54, 4  ;;  %2083 = vst [vmem:[#allocation2 + $0x4dc] sm:$0xf] %v2009_v51  ;;  %v2265_v34 = vrot.slane %v2263_v18, 4  ;;  %v2820_v13 = vld [vmem:[%s7054_s7 + $0x10] sm:$0x8]  ;;  %5183 = vmatprep.mubr.bf16.mxu0 %v6886_v20  ;;  %v8734_v53 = vpop.f32.mrf.mxu1 }
 0x1a7   : > { %v2264_v44 = vsel %vm7676_vm10, %v2262_v16, %v2263_v18  ;;  %v2821_v37 = vld [vmem:[%s7054_s7 + $0x14] sm:$0xf]  ;;  %1825 = vst [vmem:[#allocation2 + $0x4d8] sm:$0xf] %v1744_v27  ;;  %v2012_v50 = vsel %vm7676_vm10, %v2010_v17, %v2011_v11  ;;  %v2728_v58 = vrot.slane %v8700_v19, 4  ;;  %v2730_v46 = vshrl.u32 %v2375_v0, 16  ;;  %5184 = vmatmul.mubr.bf16.gmra.mxu0 %v6884_v56  ;;  %v8744_v19 = vpop.f32.mrf.mxu0 }
 0x1a8   : > { %2338 = vst [vmem:[#allocation2 + $0x4e0] sm:$0xf] %v2264_v44  ;;  %v2733_v25 = vshll.u32 %v2375_v0, 16  ;;  %v2822_v29 = vld [vmem:[%s7054_s7 + $0x18] sm:$0xf]  ;;  %v1754_v16 = vsel %vm7683_vm11, %v1745_v41, %v1753_v4  ;;  %v2267_v55 = vsel %vm7676_vm10, %v2265_v34, %v2266_v3  ;;  %v2740_v54 = vshrl.u32 %v2376_v23, 16  ;;  %v5013_v6 = vpop.f32.mrf.mxu1 }
 0x1a9   : > { %2084 = vst [vmem:[#allocation2 + $0x500] sm:$0xf] %v2012_v50  ;;  %v2743_v18 = vshll.u32 %v2376_v23, 16  ;;  %v2823_v11 = vld [vmem:[%s7054_s7 + $0x1c] sm:$0xf]  ;;  %v2732_v0 = vrot.slane %v2730_v46, 6  ;;  %v4836_v26 = vpop.f32.mrf.mxu0 }
 0x1aa   : > { %v8742_v20 = vld [vmem:[%s7054_s7 + $0x60] sm:$0xf]  ;;  %1826 = vst [vmem:[#allocation2 + $0x4fc] sm:$0xf] %v1754_v16  ;;  %2339 = vst [vmem:[#allocation2 + $0x504] sm:$0xf] %v2267_v55  ;;  %v8756_v45 = vpop.f32.mrf.mxu1  ;;  %v4800_v16 = vadd.f32 %v8387_v15, %v8531_v63  ;;  %v4803_v55 = vadd.f32 %v8387_v15, %v8557_v5 }
 0x1ab   : > { %v2735_v51 = vrot.slane %v2733_v25, 7  ;;  %v2841_v56 = vld [vmem:[%s7054_s7 + $0x64] sm:$0xf]  ;;  %v2742_v3 = vrot.slane %v2740_v54, 6  ;;  %v2745_v4 = vrot.slane %v2743_v18, 7  ;;  %v6009_v23 = vrot.slane %v2820_v13, 11  ;;  %v8763_v54 = vpop.f32.mrf.mxu0 }
 0x1ac   : > { %v2842_v17 = vld [vmem:[%s7054_s7 + $0x68] sm:$0xf]  ;;  %v2899_v44 = vrot.slane %v2821_v37, 7  ;;  %v2902_v34 = vrot.slane %v2822_v29, 7  ;;  %v2905_v14 = vrot.slane %v2823_v11, 7  ;;  %v2956_v13 = vrot.slane %v8742_v20, 7  ;;  %v5018_v6 = vpop.f32.mrf.mxu1 }
 0x1ad   : > { %v2736_v27 = vor.u32 %v2735_v51, %v2732_v0  ;;  %v2843_v28 = vld [vmem:[%s7054_s7 + $0x6c] sm:$0xf]  ;;  %v6887_v50 = vld [vmem:[#allocation2 + $0x498] ss:$36 sps:$4 sm:$0xff]   ;;  %v2746_v25 = vor.u32 %v2745_v4, %v2742_v3  ;;  %v2824_v0 = vld [vmem:[%s7054_s7 + $0x20] sm:$0xf] }
 0x1ae   : > { %v6889_v46 = vld [vmem:[#allocation2 + $0x49c] ss:$36 sps:$4 sm:$0xff]   ;;  %v2900_v18 = vsel %vm8751_vm1, %v6009_v23, %v2899_v44  ;;  %v2901_v11 = vrot.slane %v2899_v44, 4  ;;  %v2844_v51 = vld [vmem:[%s7054_s7 + $0x70] sm:$0xf]  ;;  %v2904_v63 = vrot.slane %v2902_v34, 4 }
 0x1af   : > { %v2737_v37 = vsel %vm7731_vm14, %v2728_v58, %v2736_v27  ;;  %v2738_v29 = vrot.slane %v2736_v27, 4  ;;  %5360 = vmatprep.mubr.bf16.mxu1 %v6889_v46  ;;  %v2907_v3 = vrot.slane %v2905_v14, 4  ;;  %3042 = vst [vmem:[#allocation2 + $0x20] sm:$0xf] %v2900_v18  ;;  %v2958_v15 = vrot.slane %v2956_v13, 4  ;;  %v4841_v58 = vpop.f32.mrf.mxu0 }
 0x1b0   : > { %2818 = vst [vmem:[#allocation2 + $0x4e4] sm:$0xf] %v2737_v37  ;;  %v2959_v5 = vrot.slane %v2841_v56, 7  ;;  %5361 = vmatmul.mubr.bf16.gmra.mxu1 %v6887_v50  ;;  %v2903_v23 = vsel %vm8751_vm1, %v2901_v11, %v2902_v34  ;;  %v2962_v26 = vrot.slane %v2842_v17, 7  ;;  %v2965_v27 = vrot.slane %v2843_v28, 7  ;;  %v8779_v37 = vpop.f32.mrf.mxu1 }
 0x1b1   : > { %v2747_v4 = vsel %vm7731_vm14, %v2738_v29, %v2746_v25  ;;  %v2825_v44 = vld [vmem:[%s7054_s7 + $0x24] sm:$0xf]  ;;  %v2826_v46 = vld [vmem:[%s7054_s7 + $0x28] sm:$0xf]  ;;  %v6890_v18 = vld [vmem:[#allocation2 + $0x4d8] ss:$36 sps:$4 sm:$0xff]   ;;  %v2906_v56 = vsel %vm8751_vm1, %v2904_v63, %v2905_v14  ;;  %v8786_v17 = vadd.f32 %v8543_v59, %v4800_v16  ;;  %v8788_v34 = vpop.f32.mrf.mxu0 }
 0x1b2   : > { %v6892_v6 = vld [vmem:[#allocation2 + $0x4dc] ss:$36 sps:$4 sm:$0xff]   ;;  %2819 = vst [vmem:[#allocation2 + $0x508] sm:$0xf] %v2747_v4  ;;  %3043 = vst [vmem:[#allocation2 + $0x44] sm:$0xf] %v2903_v23  ;;  %v2960_v60 = vsel %vm8751_vm1, %v2958_v15, %v2959_v5  ;;  %v5021_v14 = vpop.f32.mrf.mxu1  ;;  %v8794_v15 = vadd.f32 %v8562_v31, %v4803_v55 }
 0x1b3   : > { %v2961_v50 = vrot.slane %v2959_v5, 4  ;;  %3044 = vst [vmem:[#allocation2 + $0x68] sm:$0xf] %v2906_v56  ;;  %v2964_v28 = vrot.slane %v2962_v26, 4  ;;  %v2967_v25 = vrot.slane %v2965_v27, 4  ;;  %v2908_v29 = vrot.slane %v2824_v0, 7  ;;  %5191 = vmatprep.mubr.bf16.mxu0 %v6892_v6  ;;  %v4844_v23 = vpop.f32.mrf.mxu0 }
 0x1b4   : > { %3062 = vst [vmem:[#allocation2 + $0x2f0] sm:$0xf] %v2960_v60  ;;  %v2968_v11 = vrot.slane %v2844_v51, 7  ;;  %v2845_v58 = vld [vmem:[%s7054_s7 + $0x74] sm:$0xf]  ;;  %v2911_v59 = vrot.slane %v2825_v44, 7  ;;  %5192 = vmatmul.mubr.bf16.gmra.mxu0 %v6890_v18 }
 0x1b5   : > { %v2963_v63 = vsel %vm8751_vm1, %v2961_v50, %v2962_v26  ;;  %v2914_v16 = vrot.slane %v2826_v46, 7  ;;  %v2846_v5 = vld [vmem:[%s7054_s7 + $0x78] sm:$0xf]  ;;  %v2827_v4 = vld [vmem:[%s7054_s7 + $0x2c] sm:$0xf]  ;;  %v2966_v0 = vsel %vm8751_vm1, %v2964_v28, %v2965_v27  ;;  %v2909_v51 = vsel %vm8751_vm1, %v2907_v3, %v2908_v29 }
 0x1b6   : > { %3063 = vst [vmem:[#allocation2 + $0x314] sm:$0xf] %v2963_v63  ;;  %v2969_v26 = vsel %vm8751_vm1, %v2967_v25, %v2968_v11  ;;  %v2910_v6 = vrot.slane %v2908_v29, 4  ;;  %v2828_v31 = vld [vmem:[%s7054_s7 + $0x30] sm:$0xf]  ;;  %v2913_v55 = vrot.slane %v2911_v59, 4 }
 0x1b7   : > { %3064 = vst [vmem:[#allocation2 + $0x338] sm:$0xf] %v2966_v0  ;;  %3045 = vst [vmem:[#allocation2 + $0x8c] sm:$0xf] %v2909_v51  ;;  %v2916_v44 = vrot.slane %v2914_v16, 4  ;;  %v2970_v46 = vrot.slane %v2968_v11, 4 }
 0x1b8   : > { %3065 = vst [vmem:[#allocation2 + $0x35c] sm:$0xf] %v2969_v26  ;;  %v2971_v18 = vrot.slane %v2845_v58, 7  ;;  %v2847_v56 = vld [vmem:[%s7054_s7 + $0x7c] sm:$0xf]  ;;  %v2912_v27 = vsel %vm8751_vm1, %v2910_v6, %v2911_v59  ;;  %v2974_v60 = vrot.slane %v2846_v5, 7  ;;  %v2915_v25 = vsel %vm8751_vm1, %v2913_v55, %v2914_v16  ;;  %v8823_v59 = vpop.f32.mrf.mxu0 }
 0x1b9   : > { %v8811_v3 = vld [vmem:[%s9328_s2] ss:$0 sm:$0xff]  ;;  %v2917_v28 = vrot.slane %v2827_v4, 7  ;;  %3046 = vst [vmem:[#allocation2 + $0xb0] sm:$0xf] %v2912_v27  ;;  %v2920_v58 = vrot.slane %v2828_v31, 7 }
 0x1ba   : > { %v4808_v50 = vadd.f32 %v8811_v3, %v8575_v2  ;;  %v2972_v29 = vsel %vm8751_vm1, %v2970_v46, %v2971_v18  ;;  %v2973_v11 = vrot.slane %v2971_v18, 4  ;;  %v8820_v14 = vld [vmem:[%s7054_s7 + $0x80] sm:$0xf]  ;;  %v2829_v63 = vld [vmem:[%s7054_s7 + $0x34] sm:$0xf]  ;;  %v2976_v4 = vrot.slane %v2974_v60, 4  ;;  %v5059_v18 = vpop.f32.mrf.mxu0 }
 0x1bb   : > { %v6893_v5 = vld [vmem:[#allocation2 + $0x4e0] ss:$36 sps:$4 sm:$0xff]   ;;  %3047 = vst [vmem:[#allocation2 + $0xd4] sm:$0xf] %v2915_v25  ;;  %3066 = vst [vmem:[#allocation2 + $0x380] sm:$0xf] %v2972_v29  ;;  %v2918_v23 = vsel %vm8751_vm1, %v2916_v44, %v2917_v28  ;;  %v4811_v0 = vadd.f32 %v8811_v3, %v8598_v49  ;;  %v4816_v46 = vadd.f32 %v8811_v3, %v8624_v22 }
 0x1bc   : > { %v6895_v2 = vld [vmem:[#allocation2 + $0x4e4] ss:$36 sps:$4 sm:$0xff]   ;;  %v8826_v16 = vadd.f32 %v8583_v43, %v4808_v50  ;;  %v2975_v26 = vsel %vm8751_vm1, %v2973_v11, %v2974_v60  ;;  %3048 = vst [vmem:[#allocation2 + $0xf8] sm:$0xf] %v2918_v23  ;;  %v2830_v6 = vld [vmem:[%s7054_s7 + $0x38] sm:$0xf]  ;;  %v4819_v43 = vadd.f32 %v8811_v3, %v8646_v9  ;;  %v4824_v44 = vadd.f32 %v8811_v3, %v8672_v42 }
 0x1bd   : > { %v6896_v51 = vld [vmem:[#allocation2 + $0x20] ss:$36 sps:$4 sm:$0xff]   ;;  %v8837_v55 = vld [vmem:[%s7054_s7 + $0x88] sm:$0xf]  ;;  %5368 = vmatprep.mubr.bf16.mxu1 %v6895_v2  ;;  %3067 = vst [vmem:[#allocation2 + $0x3a4] sm:$0xf] %v2975_v26  ;;  %v8847_v50 = vadd.f32 %v8606_v35, %v4811_v0  ;;  %v8850_v9 = vadd.f32 %v8634_v39, %v4816_v46  ;;  %v4827_v39 = vadd.f32 %v8811_v3, %v8695_v30 }
 0x1be   : > { %v2849_v31 = vld [vmem:[%s7054_s7 + $0x84] sm:$0xf]  ;;  %v2919_v49 = vrot.slane %v2917_v28, 4  ;;  %v2977_v27 = vrot.slane %v2847_v56, 7  ;;  %v2980_v60 = vrot.slane %v8820_v14, 7  ;;  %5369 = vmatmul.mubr.bf16.gmra.mxu1 %v6893_v5  ;;  %6557 = vmatprep.mubr.bf16.mxu0 %v6896_v51  ;;  %v2922_v25 = vrot.slane %v2920_v58, 4  ;;  %v8855_v28 = vpop.f32.mrf.mxu0 }
 0x1bf   : > { %v6897_v22 = vld [vmem:[#allocation2 + $0x2f0] ss:$36 sps:$4 sm:$0xff]   ;;  %v2923_v29 = vrot.slane %v2829_v63, 7  ;;  %v8853_v42 = vadd.f32 %v8650_v36, %v4819_v43  ;;  %v6898_v56 = vld [vmem:[#allocation2 + $0x68] ss:$36 sps:$4 sm:$0xff]   ;;  %v8863_v63 = vadd.f32 %v8674_v24, %v4824_v44  ;;  %v4832_v24 = vadd.f32 %v8811_v3, %v8717_v48 }
 0x1c0   : > { %v2921_v35 = vsel %vm8751_vm1, %v2919_v49, %v2920_v58  ;;  %v2978_v11 = vsel %vm8751_vm1, %v2976_v4, %v2977_v27  ;;  %v2831_v14 = vld [vmem:[%s7054_s7 + $0x3c] sm:$0xf]  ;;  %6577 = vmatprep.mubr.bf16.mxu1 %v6897_v22  ;;  %v2979_v5 = vrot.slane %v2977_v27, 4  ;;  %v2832_v23 = vld [vmem:[%s7054_s7 + $0x40] sm:$0xf]  ;;  %v5062_v51 = vpop.f32.mrf.mxu0  ;;  %6558 = vmatmul.mubr.bf16.vlgmr.msra.gmra.mxu0 %v6898_v56  ;;  %v2926_v30 = vrot.slane %v2830_v6, 7 }
 0x1c1   : > { %v6899_v36 = vld [vmem:[#allocation2 + $0x338] ss:$36 sps:$4 sm:$0xff]   ;;  %3049 = vst [vmem:[#allocation2 + $0x11c] sm:$0xf] %v2921_v35  ;;  %3068 = vst [vmem:[#allocation2 + $0x3c8] sm:$0xf] %v2978_v11  ;;  %v2924_v2 = vsel %vm8751_vm1, %v2922_v25, %v2923_v29  ;;  %v8883_v27 = vadd.f32 %v8697_v32, %v4827_v39  ;;  %v8886_v48 = vadd.f32 %v8710_v10, %v4832_v24  ;;  %v5234_v11 = vpop.f32.mrf.mxu1 }
 0x1c2   : > { %v2925_v58 = vrot.slane %v2923_v29, 4  ;;  %v2851_v0 = vld [vmem:[%s7054_s7 + $0x8c] sm:$0xf]  ;;  %v8872_v4 = vld [vmem:[%s7054_s7 + $0x90] sm:$0xf]  ;;  %v2982_v26 = vrot.slane %v2980_v60, 4  ;;  %v2981_v49 = vsel %vm8751_vm1, %v2979_v5, %v2980_v60  ;;  %v4835_v6 = vadd.f32 %v8811_v3, %v8744_v19 }
 0x1c3   : > { %3050 = vst [vmem:[#allocation2 + $0x140] sm:$0xf] %v2924_v2  ;;  %v2983_v46 = vrot.slane %v2849_v31, 7  ;;  %v2986_v43 = vrot.slane %v8837_v55, 7  ;;  %v8878_v44 = vld [vmem:[%s7054_s7 + $0x44] sm:$0xf]  ;;  %v4840_v35 = vadd.f32 %v8811_v3, %v8763_v54 }
 0x1c4   : > { %v6900_v18 = vld [vmem:[#allocation2 + $0xb0] ss:$36 sps:$4 sm:$0xff]   ;;  %3069 = vst [vmem:[#allocation2 + $0x3ec] sm:$0xf] %v2981_v49  ;;  %v2927_v31 = vsel %vm8751_vm1, %v2925_v58, %v2926_v30  ;;  %v2928_v55 = vrot.slane %v2926_v30, 4  ;;  %v2929_v10 = vrot.slane %v2831_v14, 7  ;;  %v8897_v19 = vadd.f32 %v8734_v53, %v4835_v6 }
 0x1c5   : > { %v2984_v22 = vsel %vm8751_vm1, %v2982_v26, %v2983_v46  ;;  %v2985_v25 = vrot.slane %v2983_v46, 4  ;;  %v2834_v60 = vld [vmem:[%s7054_s7 + $0x48] sm:$0xf]  ;;  %6561 = vmatprep.mubr.bf16.mxu0 %v6900_v18  ;;  %v6901_v32 = vld [vmem:[#allocation2 + $0x380] ss:$36 sps:$4 sm:$0xff]   ;;  %v2988_v29 = vrot.slane %v2986_v43, 4  ;;  %v5236_v26 = vpop.f32.mrf.mxu1  ;;  %v5065_v46 = vpop.f32.mrf.mxu0 }
 0x1c6   : > { %3051 = vst [vmem:[#allocation2 + $0x164] sm:$0xf] %v2927_v31  ;;  %3070 = vst [vmem:[#allocation2 + $0x410] sm:$0xf] %v2984_v22  ;;  %v2853_v56 = vld [vmem:[%s7054_s7 + $0x94] sm:$0xf]  ;;  %6578 = vmatmul.mubr.bf16.vlgmr.msra.gmra.mxu1 %v6899_v36  ;;  %v2930_v14 = vsel %vm8751_vm1, %v2928_v55, %v2929_v10  ;;  %v8914_v36 = vadd.f32 %v8756_v45, %v4840_v35 }
 0x1c7   : > { %9360 = vst [vmem:[#allocation14_spill] sm:$0xff] %v8897_v19  ;;  %v2987_v39 = vsel %vm8751_vm1, %v2985_v25, %v2986_v43  ;;  %v2932_v5 = vrot.slane %v2832_v23, 7  ;;  %v2989_v2 = vrot.slane %v2851_v0, 7  ;;  %v2992_v58 = vrot.slane %v8872_v4, 7  ;;  %v8905_v24 = vld [vmem:[%s7054_s7 + $0x98] sm:$0xf]  ;;  %6581 = vmatprep.mubr.bf16.mxu1 %v6901_v32  ;;  %v5237_v45 = vpop.f32.mrf.mxu1  ;;  %v5067_v22 = vpop.f32.mrf.mxu0 }
 0x1c8   : > { %3071 = vst [vmem:[#allocation2 + $0x434] sm:$0xf] %v2987_v39  ;;  %v2931_v53 = vrot.slane %v2929_v10, 4  ;;  %v2935_v51 = vrot.slane %v8878_v44, 7  ;;  %v2938_v30 = vrot.slane %v2834_v60, 7  ;;  %9361 = vst [vmem:[#allocation15_spill] sm:$0xff] %v8914_v36  ;;  %v4843_v4 = vadd.f32 %v8811_v3, %v8788_v34 }
 0x1c9   : > { %v2835_v54 = vld [vmem:[%s7054_s7 + $0x4c] sm:$0xf]  ;;  %v6902_v23 = vld [vmem:[#allocation2 + $0xf8] ss:$36 sps:$4 sm:$0xff]   ;;  %3052 = vst [vmem:[#allocation2 + $0x188] sm:$0xf] %v2930_v14  ;;  %v2990_v0 = vsel %vm8751_vm1, %v2988_v29, %v2989_v2  ;;  %v5058_v43 = vadd.f32 %v8823_v59, %v8040_v33  ;;  %v5068_v14 = vpop.f32.mrf.mxu0 }
 0x1ca   : > { %v2933_v44 = vsel %vm8751_vm1, %v2931_v53, %v2932_v5  ;;  %v2991_v18 = vrot.slane %v2989_v2, 4  ;;  %3072 = vst [vmem:[#allocation2 + $0x458] sm:$0xf] %v2990_v0  ;;  %v2934_v49 = vrot.slane %v2932_v5, 4  ;;  %v2937_v6 = vrot.slane %v2935_v51, 4  ;;  %6562 = vmatmul.mubr.bf16.gmra.mxu0 %v6902_v23  ;;  %v5239_v2 = vpop.f32.mrf.mxu1 }
 0x1cb   : > { %v2836_v31 = vld [vmem:[%s7054_s7 + $0x50] sm:$0xf]  ;;  %v2855_v55 = vld [vmem:[%s7054_s7 + $0x9c] sm:$0xf]  ;;  %3053 = vst [vmem:[#allocation2 + $0x1ac] sm:$0xf] %v2933_v44  ;;  %v8937_v53 = vadd.f32 %v8779_v37, %v4843_v4  ;;  %v5070_v44 = vpop.f32.mrf.mxu0 }
 0x1cc   : > { %v2940_v34 = vrot.slane %v2938_v30, 4  ;;  %v2994_v3 = vrot.slane %v2992_v58, 4  ;;  %v2995_v25 = vrot.slane %v2853_v56, 7  ;;  %v2998_v33 = vrot.slane %v8905_v24, 7  ;;  %v2856_v59 = vld [vmem:[%s7054_s7 + $0xa0] sm:$0x7]  ;;  %v5242_v22 = vpop.f32.mrf.mxu1 }
 0x1cd   : > { %v2837_v60 = vld [vmem:[%s7054_s7 + $0x54] sm:$0xf]  ;;  %v2838_v32 = vld [vmem:[%s7054_s7 + $0x58] sm:$0xf]  ;;  %v6903_v29 = vld [vmem:[#allocation2 + $0x3c8] ss:$36 sps:$4 sm:$0xff]   ;;  %v2993_v10 = vsel %vm8751_vm1, %v2991_v18, %v2992_v58  ;;  %v2936_v35 = vsel %vm8751_vm1, %v2934_v49, %v2935_v51  ;;  %v2939_v39 = vsel %vm8751_vm1, %v2937_v6, %v2938_v30  ;;  %v8939_v58 = vadd.f32 %v5234_v11, %v5058_v43 }
 0x1ce   : > { %v2941_v5 = vrot.slane %v2835_v54, 7  ;;  %v6904_v56 = vld [vmem:[#allocation2 + $0x140] ss:$36 sps:$4 sm:$0xff]   ;;  %3073 = vst [vmem:[#allocation2 + $0x47c] sm:$0xf] %v2993_v10  ;;  %v2996_v24 = vsel %vm8751_vm1, %v2994_v3, %v2995_v25  ;;  %9362 = vst [vmem:[#allocation16_spill] sm:$0xff] %v8937_v53  ;;  %v5061_v51 = vadd.f32 %v8855_v28, %v8044_v57  ;;  %v5066_v11 = vadd.f32 %v5065_v46, %v8096_v47 }
 0x1cf   : > { %3054 = vst [vmem:[#allocation2 + $0x1d0] sm:$0xf] %v2936_v35  ;;  %3055 = vst [vmem:[#allocation2 + $0x1f4] sm:$0xf] %v2939_v39  ;;  %v2997_v30 = vrot.slane %v2995_v25, 4  ;;  %v3000_v54 = vrot.slane %v2998_v33, 4  ;;  %6565 = vmatprep.mubr.bf16.mxu0 %v6904_v56  ;;  %6582 = vmatmul.mubr.bf16.gmra.mxu1 %v6903_v29 }
 0x1d0   : > { %3074 = vst [vmem:[#allocation2 + $0x4a0] sm:$0xf] %v2996_v24  ;;  %v2942_v26 = vsel %vm8751_vm1, %v2940_v34, %v2941_v5  ;;  %v2943_v23 = vrot.slane %v2941_v5, 4  ;;  %v2839_v0 = vld [vmem:[%s7054_s7 + $0x5c] sm:$0xf]  ;;  %v2944_v49 = vrot.slane %v2836_v31, 7  ;;  %v8946_v4 = vadd.f32 %v5237_v45, %v5061_v51  ;;  %v5073_v5 = vpop.f32.mrf.mxu0 }
 0x1d1   : > { %v6905_v18 = vld [vmem:[#allocation2 + $0x410] ss:$36 sps:$4 sm:$0xff]   ;;  %3056 = vst [vmem:[#allocation2 + $0x218] sm:$0xf] %v2942_v26  ;;  %v3001_v37 = vrot.slane %v2855_v55, 7  ;;  %v2999_v57 = vsel %vm8751_vm1, %v2997_v30, %v2998_v33  ;;  %v3004_v28 = vrot.slane %v2856_v59, 7  ;;  %v8955_v25 = vadd.f32 %v5242_v22, %v5066_v11  ;;  %v5244_v33 = vpop.f32.mrf.mxu1 }
 0x1d2   : > { %v2947_v43 = vrot.slane %v2837_v60, 7  ;;  %v2950_v6 = vrot.slane %v2838_v32, 7  ;;  %6585 = vmatprep.mubr.bf16.mxu1 %v6905_v18  ;;  %3075 = vst [vmem:[#allocation2 + $0x4c4] sm:$0xf] %v2999_v57  ;;  %v2945_v34 = vsel %vm8751_vm1, %v2943_v23, %v2944_v49  ;;  %v2946_v45 = vrot.slane %v2944_v49, 4  ;;  %v5075_v30 = vpop.f32.mrf.mxu0  ;;  %s267_s7 = smul.u32 36, %s6930_s15 }
 0x1d3   : > { %v3002_v31 = vsel %vm8751_vm1, %v3000_v54, %v3001_v37  ;;  %v3003_v55 = vrot.slane %v3001_v37, 4  ;;  %v6906_v3 = vld [vmem:[#allocation2 + $0x188] ss:$36 sps:$4 sm:$0xff]   ;;  %3057 = vst [vmem:[#allocation2 + $0x23c] sm:$0xf] %v2945_v34  ;;  %v5069_v59 = vadd.f32 %v5068_v14, %v8104_v38  ;;  %v2953_v29 = vrot.slane %v2839_v0, 7  ;;  %v5245_v39 = vpop.f32.mrf.mxu1 }
 0x1d4   : > { %3076 = vst [vmem:[#allocation2 + $0x4e8] sm:$0xf] %v3002_v31  ;;  %v2949_v47 = vrot.slane %v2947_v43, 4  ;;  %v2952_v46 = vrot.slane %v2950_v6, 4  ;;  %v2948_v32 = vsel %vm8751_vm1, %v2946_v45, %v2947_v43  ;;  %6566 = vmatmul.mubr.bf16.gmra.mxu0 %v6906_v3  ;;  %v5074_v56 = vadd.f32 %v5073_v5, %v8168_v7  ;;  %v5076_v23 = vpop.f32.mrf.mxu0  ;;  %v9364_v30 = vld [vmem:[#allocation3_spill] sm:$0xff]  ;;  %p268_p5 = scmp.lt.s32.totalorder %s267_s7, 71 }
 0x1d5   : > { %v3005_v60 = vsel %vm8751_vm1, %v3003_v55, %v3004_v28  ;;  %v6907_v10 = vld [vmem:[#allocation2 + $0x458] ss:$36 sps:$4 sm:$0xff]   ;;  %3058 = vst [vmem:[#allocation2 + $0x260] sm:$0xf] %v2948_v32  ;;  %v8966_v14 = vadd.f32 %v5245_v39, %v5069_v59  ;;  %v2955_v24 = vrot.slane %v2953_v29, 4  ;;  %v5247_v51 = vpop.f32.mrf.mxu1  ;;  %v5077_v44 = vadd.f32 %v5076_v23, %v8171_v12 }
 0x1d6   : > { %3077 = vst [vmem:[#allocation2 + $0x50c] sm:$0xf] %v3005_v60  ;;  %v2951_v35 = vsel %vm8751_vm1, %v2949_v47, %v2950_v6  ;;  %v6908_v2 = vld [vmem:[#allocation2 + $0x1d0] ss:$36 sps:$4 sm:$0xff]   ;;  %v2954_v38 = vsel %vm8751_vm1, %v2952_v46, %v2953_v29  ;;  %v5078_v18 = vpop.f32.mrf.mxu0  ;;  %s9444_s7 = smov (!%p268_p5, %s267_s7), 71 }
 0x1d7   : > { %3059 = vst [vmem:[#allocation2 + $0x284] sm:$0xf] %v2951_v35  ;;  %3060 = vst [vmem:[#allocation2 + $0x2a8] sm:$0xf] %v2954_v38  ;;  %6569 = vmatprep.mubr.bf16.mxu0 %v6908_v2  ;;  %6586 = vmatmul.mubr.bf16.gmra.mxu1 %v6907_v10  ;;  %v2957_v26 = vsel %vm8751_vm1, %v2955_v24, %v2956_v13  ;;  %v5250_v7 = vpop.f32.mrf.mxu1  ;;  %s6003_s25 = sshll.u32 %s9444_s7, 2 }
 0x1d8   : > { %3061 = vst [vmem:[#allocation2 + $0x2cc] sm:$0xf] %v2957_v26  ;;  %v8974_v11 = vadd.f32 %v5250_v7, %v5074_v56  ;;  %v5081_v28 = vpop.f32.mrf.mxu0  ;;  %s9084_s27 = scalar_lea.vmem %s9329_s3, %s6003_s25  ;;  %s9196_s30 = scalar_lea.vmem %s9330_s4, %s6003_s25 }
 0x1d9   : > { %v6909_v54 = vld [vmem:[#allocation2 + $0x4a0] ss:$36 sps:$4 sm:$0xff]   ;;  %v5252_v57 = vpop.f32.mrf.mxu1  ;;  %v5082_v41 = vadd.f32 %v5081_v28, %v8234_v40 }
 0x1da   : > { %v6910_v0 = vld [vmem:[#allocation2 + $0x218] ss:$36 sps:$4 sm:$0xff]   ;;  %6589 = vmatprep.mubr.bf16.mxu1 %v6909_v54  ;;  %v5083_v6 = vpop.f32.mrf.mxu0 }
 0x1db   : > { %v5253_v20 = vpop.f32.mrf.mxu1 }
 0x1dc   : > { %6570 = vmatmul.mubr.bf16.gmra.mxu0 %v6910_v0  ;;  %v8977_v43 = vadd.f32 %v5253_v20, %v5077_v44  ;;  %v5084_v22 = vpop.f32.mrf.mxu0  ;;  %v9367_v20 = vld [vmem:[#allocation5_spill] sm:$0xff] }
 0x1dd   : > { %v6911_v49 = vld [vmem:[#allocation2 + $0x4e8] ss:$36 sps:$4 sm:$0xff]   ;;  %v5255_v12 = vpop.f32.mrf.mxu1  ;;  %v5085_v34 = vadd.f32 %v5084_v22, %v8241_v1 }
 0x1de   : > { %v6912_v37 = vld [vmem:[#allocation2 + $0x260] ss:$36 sps:$4 sm:$0xff]   ;;  %v5086_v31 = vpop.f32.mrf.mxu0 }
 0x1df   : > { %6573 = vmatprep.mubr.bf16.mxu0 %v6912_v37  ;;  %6590 = vmatmul.mubr.bf16.gmra.mxu1 %v6911_v49  ;;  %v6913_v13 = vld [vmem:[#allocation2 + $0x2a8] ss:$36 sps:$4 sm:$0xff]   ;;  %v5258_v55 = vpop.f32.mrf.mxu1  ;;  %v9366_v49 = vld [vmem:[#allocation4_spill] sm:$0xff] }
 0x1e0   : > { %v8980_v45 = vadd.f32 %v5258_v55, %v5082_v41  ;;  %v5089_v47 = vpop.f32.mrf.mxu0 }
 0x1e1   : > { %v5260_v3 = vpop.f32.mrf.mxu1  ;;  %v5090_v46 = vadd.f32 %v5089_v47, %v8308_v21 }
 0x1e2   : > { %v5091_v40 = vpop.f32.mrf.mxu0  ;;  %v9370_v3 = vld [vmem:[#allocation6_spill] sm:$0xff] }
 0x1e3   : > { %v5261_v33 = vpop.f32.mrf.mxu1 }
 0x1e4   : > { %6574 = vmatmul.mubr.bf16.gmra.mxu0 %v6913_v13  ;;  %v8983_v59 = vadd.f32 %v5261_v33, %v5085_v34  ;;  %v5092_v32 = vpop.f32.mrf.mxu0 }
 0x1e5   : > { %v5263_v60 = vpop.f32.mrf.mxu1  ;;  %v5093_v29 = vadd.f32 %v5092_v32, %v8311_v62 }
 0x1e6   : > { %v5094_v10 = vpop.f32.mrf.mxu0  ;;  %v9371_v60 = vld [vmem:[#allocation7_spill] sm:$0xff] }
 0x1e7   : > { %v5266_v35 = vpop.f32.mrf.mxu1 }
 0x1e8   : > { %v8986_v1 = vadd.f32 %v5266_v35, %v5090_v46  ;;  %v5097_v5 = vpop.f32.mrf.mxu0 }
 0x1e9   : > { %v5268_v39 = vpop.f32.mrf.mxu1  ;;  %v5098_v38 = vadd.f32 %v5097_v5, %v8325_v52 }
 0x1ea   : > { %v5099_v21 = vpop.f32.mrf.mxu0 }
 0x1eb   : > { %v5269_v2 = vpop.f32.mrf.mxu1  ;;  %v9374_v21 = vld [vmem:[#allocation8_spill] sm:$0xff] }
 0x1ec   : > { %v8989_v56 = vadd.f32 %v5269_v2, %v5093_v29  ;;  %v5100_v51 = vpop.f32.mrf.mxu0 }
 0x1ed   : > { %v5271_v24 = vpop.f32.mrf.mxu1  ;;  %v5101_v54 = vadd.f32 %v5100_v51, %v9364_v30 }
 0x1ee   : > { %9363 = vst [vmem:[#allocation17_spill] sm:$0xff] %v8989_v56  ;;  %v5102_v26 = vpop.f32.mrf.mxu0  ;;  %v9144_v56 = vld [vmem:[%s9084_s27 + $0x38] sm:$0xff]  }
 0x1ef   : > { %v5274_v23 = vpop.f32.mrf.mxu1  ;;  %v9375_v26 = vld [vmem:[#allocation9_spill] sm:$0xff] }
 0x1f0   : > { %v8992_v0 = vadd.f32 %v5274_v23, %v5098_v38  ;;  %v5105_v18 = vpop.f32.mrf.mxu0 }
 0x1f1   : > { %v5276_v62 = vpop.f32.mrf.mxu1  ;;  %v5106_v37 = vadd.f32 %v5105_v18, %v9366_v49 }
 0x1f2   : > { %v5107_v52 = vpop.f32.mrf.mxu0 }
 0x1f3   : > { %v5277_v44 = vpop.f32.mrf.mxu1  ;;  %v9377_v52 = vld [vmem:[#allocation10_spill] sm:$0xff] }
 0x1f4   : > { %v8994_v7 = vadd.f32 %v5277_v44, %v5101_v54  ;;  %v5108_v28 = vpop.f32.mrf.mxu0 }
 0x1f5   : > { %v5279_v57 = vpop.f32.mrf.mxu1  ;;  %v5109_v41 = vadd.f32 %v5108_v28, %v9367_v20 }
 0x1f6   : > { %9365 = vst [vmem:[#allocation3_spill] sm:$0xff] %v8994_v7  ;;  %v5110_v13 = vpop.f32.mrf.mxu0  ;;  %v9151_v7 = vld [vmem:[%s9084_s27 + $0x88] sm:$0xff]  }
 0x1f7   : > { %v5282_v6 = vpop.f32.mrf.mxu1 }
 0x1f8   : > { %v8998_v12 = vadd.f32 %v5282_v6, %v5106_v37 }
 0x1f9   : > { %v5284_v22 = vpop.f32.mrf.mxu1 }
 0x1fa   : > { %9368 = vst [vmem:[#allocation4_spill] sm:$0xff] %v8998_v12  ;;  %v5113_v31 = vpop.f32.mrf.mxu0  ;;  %v9379_v22 = vld [vmem:[#allocation11_spill] sm:$0xff] }
 0x1fb   : > { %v5285_v34 = vpop.f32.mrf.mxu1  ;;  %v5114_v47 = vadd.f32 %v5113_v31, %v9370_v3 }
 0x1fc   : > { %v9000_v55 = vadd.f32 %v5285_v34, %v5109_v41  ;;  %v5115_v33 = vpop.f32.mrf.mxu0 }
 0x1fd   : > { %v5287_v46 = vpop.f32.mrf.mxu1 }
 0x1fe   : > { %9369 = vst [vmem:[#allocation5_spill] sm:$0xff] %v9000_v55  ;;  %v5116_v40 = vpop.f32.mrf.mxu0  ;;  %v9125_v55 = vld [vmem:[%s9084_s27 + $0x78] sm:$0xff]  }
 0x1ff   : > { %v5117_v32 = vadd.f32 %v5116_v40, %v9371_v60 }
 0x200   : > { %v5118_v29 = vpop.f32.mrf.mxu0 }
 0x201   : > { %v5290_v10 = vpop.f32.mrf.mxu1 }
 0x202   : > { %v9004_v35 = vadd.f32 %v5290_v10, %v5114_v47 }
 0x203   : > { %v5292_v39 = vpop.f32.mrf.mxu1 }
 0x204   : > { %9372 = vst [vmem:[#allocation6_spill] sm:$0xff] %v9004_v35 }
 0x205   : > { %v5293_v5 = vpop.f32.mrf.mxu1 }
 0x206   : > { %v5121_v2 = vpop.f32.mrf.mxu0  ;;  %v9006_v38 = vadd.f32 %v5293_v5, %v5117_v32  ;;  %v9382_v32 = vld [vmem:[#allocation12_spill] sm:$0xff] }
 0x207   : > { %v5122_v24 = vadd.f32 %v5121_v2, %v9374_v21  ;;  %v5295_v51 = vpop.f32.mrf.mxu1  ;;  %v9383_v2 = vld [vmem:[#allocation13_spill] sm:$0xff] }
 0x208   : > { %9373 = vst [vmem:[#allocation7_spill] sm:$0xff] %v9006_v38  ;;  %v5123_v30 = vpop.f32.mrf.mxu0 }
 0x20a   : > { %v5124_v54 = vpop.f32.mrf.mxu0 }
 0x20b   : > { %v5125_v23 = vadd.f32 %v5124_v54, %v9375_v26 }
 0x20c   : > { %v5126_v62 = vpop.f32.mrf.mxu0 }
 0x20d   : > { %v5298_v44 = vpop.f32.mrf.mxu1 }
 0x20e   : > { %v9010_v18 = vadd.f32 %v5298_v44, %v5122_v24 }
 0x20f   : > { %v5300_v49 = vpop.f32.mrf.mxu1 }
 0x210   : > { %9376 = vst [vmem:[#allocation8_spill] sm:$0xff] %v9010_v18  ;;  %v9135_v18 = vld [vmem:[%s9084_s27 + $0x70] sm:$0xff]  }
 0x211   : > { %v5301_v57 = vpop.f32.mrf.mxu1 }
 0x212   : > { %v5129_v37 = vpop.f32.mrf.mxu0  ;;  %v9013_v20 = vadd.f32 %v5301_v57, %v5125_v23 }
 0x213   : > { %v5130_v28 = vadd.f32 %v5129_v37, %v9377_v52  ;;  %v5303_v13 = vpop.f32.mrf.mxu1 }
 0x214   : > { %9378 = vst [vmem:[#allocation9_spill] sm:$0xff] %v9013_v20  ;;  %v5131_v41 = vpop.f32.mrf.mxu0  ;;  %v9132_v20 = vld [vmem:[%s9084_s27 + $0x20] sm:$0xff]  }
 0x216   : > { %v5132_v6 = vpop.f32.mrf.mxu0 }
 0x217   : > { %v5133_v34 = vadd.f32 %v5132_v6, %v9379_v22 }
 0x218   : > { %v5134_v31 = vpop.f32.mrf.mxu0 }
 0x219   : > { %v5306_v3 = vpop.f32.mrf.mxu1 }
 0x21a   : > { %v9016_v47 = vadd.f32 %v5306_v3, %v5130_v28 }
 0x21b   : > { %v5308_v46 = vpop.f32.mrf.mxu1 }
 0x21c   : > { %9380 = vst [vmem:[#allocation10_spill] sm:$0xff] %v9016_v47 }
 0x21d   : > { %v5309_v33 = vpop.f32.mrf.mxu1 }
 0x21e   : > { %v5137_v40 = vpop.f32.mrf.mxu0  ;;  %v9018_v60 = vadd.f32 %v5309_v33, %v5133_v34 }
 0x21f   : > { %v5138_v29 = vadd.f32 %v5137_v40, %v9382_v32  ;;  %v5311_v10 = vpop.f32.mrf.mxu1 }
 0x220   : > { %9381 = vst [vmem:[#allocation11_spill] sm:$0xff] %v9018_v60  ;;  %v5139_v39 = vpop.f32.mrf.mxu0 }
 0x222   : > { %v5140_v5 = vpop.f32.mrf.mxu0 }
 0x223   : > { %v5141_v21 = vadd.f32 %v5140_v5, %v9383_v2 }
 0x224   : > { %v5142_v24 = vpop.f32.mrf.mxu0 }
 0x226   : > { %v5314_v51 = vpop.f32.mrf.mxu1 }
 0x227   : > { %v9022_v30 = vadd.f32 %v5314_v51, %v5138_v29 }
 0x228   : > { %v5316_v54 = vpop.f32.mrf.mxu1 }
 0x22a   : > { %v5317_v26 = vpop.f32.mrf.mxu1  ;;  %v5145_v23 = vpop.f32.mrf.mxu0 }
 0x22b   : > { %v9024_v62 = vadd.f32 %v5317_v26, %v5141_v21  ;;  %v5146_v44 = vadd.f32 %v5145_v23, %v8722_v61 }
 0x22c   : > { %v5319_v49 = vpop.f32.mrf.mxu1  ;;  %v5147_v37 = vpop.f32.mrf.mxu0 }
 0x22e   : > { %v5148_v57 = vpop.f32.mrf.mxu0 }
 0x22f   : > { %v5149_v52 = vadd.f32 %v5148_v57, %v8747_v8 }
 0x230   : > { %v5150_v28 = vpop.f32.mrf.mxu0 }
 0x234   : > { %v5322_v41 = vpop.f32.mrf.mxu1 }
 0x235   : > { %v9028_v13 = vadd.f32 %v5322_v41, %v5146_v44 }
 0x236   : > { %v5324_v6 = vpop.f32.mrf.mxu1  ;;  %v5153_v22 = vpop.f32.mrf.mxu0 }
 0x237   : > { %v5154_v34 = vadd.f32 %v5153_v22, %v8786_v17 }
 0x238   : > { %v5325_v31 = vpop.f32.mrf.mxu1  ;;  %v5155_v3 = vpop.f32.mrf.mxu0 }
 0x239   : > { %v9031_v46 = vadd.f32 %v5325_v31, %v5149_v52 }
 0x23a   : > { %v5327_v33 = vpop.f32.mrf.mxu1  ;;  %v5156_v40 = vpop.f32.mrf.mxu0 }
 0x23b   : > { %v5157_v61 = vadd.f32 %v5156_v40, %v8794_v15 }
 0x23c   : > { %v5158_v32 = vpop.f32.mrf.mxu0 }
 0x23e   : > { %v5330_v29 = vpop.f32.mrf.mxu1 }
 0x23f   : > { %v9034_v10 = vadd.f32 %v5330_v29, %v5154_v34 }
 0x240   : > { %v5332_v8 = vpop.f32.mrf.mxu1 }
 0x242   : > { %v5161_v39 = vpop.f32.mrf.mxu0  ;;  %v5333_v5 = vpop.f32.mrf.mxu1 }
 0x243   : > { %v9037_v2 = vadd.f32 %v5161_v39, %v8826_v16  ;;  %v9039_v21 = vadd.f32 %v5333_v5, %v5157_v61 }
 0x244   : > { %v5163_v17 = vpop.f32.mrf.mxu0  ;;  %v5335_v24 = vpop.f32.mrf.mxu1 }
 0x246   : > { %v5164_v51 = vpop.f32.mrf.mxu0 }
 0x247   : > { %v9042_v54 = vadd.f32 %v5164_v51, %v8847_v50 }
 0x248   : > { %v5166_v26 = vpop.f32.mrf.mxu0 }
 0x24b   : > { %v9044_v15 = vpop.f32.mrf.mxu1 }
 0x24d   : > { %v5340_v23 = vpop.f32.mrf.mxu1 }
 0x24e   : > { %v5169_v44 = vpop.f32.mrf.mxu0 }
 0x24f   : > { %v9046_v49 = vpop.f32.mrf.mxu1  ;;  %v9049_v37 = vadd.f32 %v5169_v44, %v8850_v9 }
 0x250   : > { %v5171_v16 = vpop.f32.mrf.mxu0 }
 0x251   : > { %v5343_v57 = vpop.f32.mrf.mxu1 }
 0x252   : > { %v9051_v52 = vpop.f32.mrf.mxu0  ;;  %v9089_v57 = vld [vmem:[%s9084_s27 + $0x8] sm:$0xff]  }
 0x253   : > { %v6326_v60 = vunpack.c.h.bf16 %v9089_v57 }
 0x254   : > { %v5174_v28 = vpop.f32.mrf.mxu0 }
 0x255   : > { %v9092_v28 = vld [vmem:[%s9084_s27 + $0x58] sm:$0xff]  }
 0x257   : > { %v9053_v41 = vpop.f32.mrf.mxu1 }
 0x259   : > { %v5348_v50 = vpop.f32.mrf.mxu1 }
 0x25a   : > { %v9095_v50 = vld [vmem:[%s9084_s27] sm:$0xff]  }
 0x25b   : > { %v9055_v6 = vpop.f32.mrf.mxu1  ;;  %v9057_v22 = vpop.f32.mrf.mxu0  ;;  %v6322_v47 = vunpack.c.h.bf16 %v9095_v50 }
 0x25d   : > { %v5351_v34 = vpop.f32.mrf.mxu1  ;;  %v5179_v31 = vpop.f32.mrf.mxu0 }
 0x25e   : > { %v9098_v31 = vld [vmem:[%s9084_s27 + $0x50] sm:$0xff]  }
 0x25f   : > { %v9059_v3 = vpop.f32.mrf.mxu0 }
 0x261   : > { %v5182_v33 = vpop.f32.mrf.mxu0 }
 0x264   : > { %v9061_v40 = vpop.f32.mrf.mxu1 }
 0x266   : > { %v5356_v9 = vpop.f32.mrf.mxu1 }
 0x267   : > { %v9066_v32 = vpop.f32.mrf.mxu0  ;;  %v9103_v9 = vld [vmem:[%s9084_s27 + $0x18] sm:$0xff]  }
 0x268   : > { %v9064_v61 = vpop.f32.mrf.mxu1 }
 0x269   : > { %v5187_v8 = vpop.f32.mrf.mxu0 }
 0x26a   : > { %v5359_v29 = vpop.f32.mrf.mxu1  ;;  %v9109_v8 = vld [vmem:[%s9084_s27 + $0x10] sm:$0xff]  }
 0x26b   : > { %v9068_v39 = vpop.f32.mrf.mxu0  ;;  %v9106_v29 = vld [vmem:[%s9084_s27 + $0x68] sm:$0xff]  }
 0x26c   : > { %9384 = vst [vmem:[#allocation12_spill] sm:$0xff] %v9068_v39 }
 0x26d   : > { %v5190_v5 = vpop.f32.mrf.mxu0 }
 0x26e   : > { %v6325_v5 = vunpack.c.l.bf16 %v9089_v57  ;;  %v9171_v57 = vld [vmem:[%s9084_s27 + $0x48] sm:$0xff]  }
 0x270   : > { %v9072_v17 = vpop.f32.mrf.mxu1 }
 0x271   : > { %9385 = vst [vmem:[#allocation13_spill] sm:$0xff] %v9072_v17 }
 0x272   : > { %v5364_v24 = vpop.f32.mrf.mxu1 }
 0x274   : > { %v9075_v51 = vpop.f32.mrf.mxu1  ;;  %v9077_v26 = vpop.f32.mrf.mxu0 }
 0x275   : > { %9386 = vst [vmem:[#allocation18_spill] sm:$0xff] %v9075_v51  ;;  %9387 = vst [vmem:[#allocation19_spill] sm:$0xff] %v9077_v26  ;;  %v9122_v51 = vld [vmem:[%s9084_s27 + $0x28] sm:$0xff]   ;;  %v9161_v26 = vld [vmem:[%s9084_s27 + $0x80] sm:$0xff]  }
 0x276   : > { %v5367_v23 = vpop.f32.mrf.mxu1  ;;  %v5195_v44 = vpop.f32.mrf.mxu0  ;;  %v6386_v53 = vunpack.c.h.bf16 %v9161_v26 }
 0x277   : > { %v6321_v23 = vunpack.c.l.bf16 %v9095_v50  ;;  %v9115_v44 = vld [vmem:[%s9084_s27 + $0x60] sm:$0xff]  }
 0x278   : > { %v9086_v16 = vpop.f32.mrf.mxu0 }
 0x279   : > { %9388 = vst [vmem:[#allocation20_spill] sm:$0xff] %v9086_v16 }
 0x27a   : > { %v5198_v34 = vpop.f32.mrf.mxu0 }
 0x27e   : > { %v9100_v33 = vpop.f32.mrf.mxu1 }
 0x27f   : > { %9389 = vst [vmem:[#allocation21_spill] sm:$0xff] %v9100_v33 }
 0x280   : > { %v5372_v34 = vpop.f32.mrf.mxu1  ;;  %v6559_v24 = vpop.f32.mrf.mxu0 }
 0x281   : > { %v5420_v33 = vadd.f32 %v6559_v24, %v8955_v25  ;;  %v9154_v25 = vld [vmem:[%s9084_s27 + $0x30] sm:$0xff]  }
 0x282   : > { %v9137_v50 = vpop.f32.mrf.mxu1  ;;  %v5411_v34 = vpop.f32.mrf.mxu0 }
 0x283   : > { %9390 = vst [vmem:[#allocation22_spill] sm:$0xff] %v9137_v50  ;;  %v5412_v35 = vadd.f32 %v5411_v34, %v8939_v58  ;;  %v5628_v39 = vadd.f32 %v6325_v5, %v5420_v33  ;;  %v5339_v34 = vadd.f32 %v9044_v15, %v9037_v2  ;;  %v6357_v50 = vunpack.c.l.bf16 %v9171_v57 }
 0x284   : > { %v5375_v24 = vpop.f32.mrf.mxu1  ;;  %v6560_v16 = vpop.f32.mrf.mxu0  ;;  %v9391_v2 = vunpack.c.l.bf16 %v9092_v28 }
 0x285   : > { %v5423_v58 = vadd.f32 %v6560_v16, %v8966_v14  ;;  %v5626_v24 = vadd.f32 %v6321_v23, %v5412_v35  ;;  %v6346_v16 = vunpack.c.h.bf16 %v9154_v25  ;;  %v5664_v38 = vmax.f32 %v5628_v39, 0.0 }
 0x286   : > { %v6579_v19 = vpop.f32.mrf.mxu1  ;;  %v5414_v17 = vpop.f32.mrf.mxu0 }
 0x287   : > { %v5500_v12 = vadd.f32 %v6579_v19, %v9028_v13  ;;  %v5629_v5 = vadd.f32 %v6326_v60, %v5423_v58  ;;  %v5415_v14 = vadd.f32 %v5414_v17, %v8946_v4  ;;  %v5342_v4 = vadd.f32 %v9046_v49, %v9042_v54 }
 0x288   : > { %v5491_v33 = vpop.f32.mrf.mxu1  ;;  %v5173_v17 = vadd.f32 %v9051_v52, %v8853_v42  ;;  %v9202_v42 = vadd.f32 %v9053_v41, %v9049_v37 }
 0x289   : > { %v5492_v19 = vadd.f32 %v5491_v33, %v9022_v30  ;;  %v5665_v36 = vmax.f32 %v5629_v5, 0.0  ;;  %v5627_v23 = vadd.f32 %v6322_v47, %v5415_v14  ;;  %v5648_v30 = vadd.f32 %v9391_v2, %v5500_v12 }
 0x28a   : > { %v6563_v13 = vpop.f32.mrf.mxu0  ;;  %v6580_v35 = vpop.f32.mrf.mxu1  ;;  %v9392_v12 = vunpack.c.l.bf16 %v9098_v31  ;;  %v9393_v33 = vunpack.c.h.bf16 %v9092_v28  ;;  %v9395_v28 = vunpack.c.h.bf16 %v9098_v31 }
 0x28b   : > { %v5436_v60 = vadd.f32 %v6563_v13, %v8980_v45  ;;  %v5503_v47 = vadd.f32 %v6580_v35, %v9031_v46  ;;  %v5662_v45 = vmax.f32 %v5626_v24, 0.0  ;;  %v6399_v39 = vpack.c.bf16 %v5665_v36, %v5664_v38 }
 0x28c   : > { %v5427_v15 = vpop.f32.mrf.mxu0  ;;  %v5663_v58 = vmax.f32 %v5627_v23, 0.0  ;;  %v5494_v54 = vpop.f32.mrf.mxu1  ;;  %v5646_v52 = vadd.f32 %v9392_v12, %v5492_v19  ;;  %v5178_v36 = vadd.f32 %v9057_v22, %v8863_v63  ;;  %v5684_v13 = vmax.f32 %v5648_v30, 0.0 }
 0x28d   : > { %v5428_v49 = vadd.f32 %v5427_v15, %v8974_v11  ;;  %v5649_v5 = vadd.f32 %v9393_v33, %v5503_v47  ;;  %v5495_v46 = vadd.f32 %v5494_v54, %v9024_v62  ;;  %6498 = vst [vmem:[%s9196_s30 + $0x8] sm:$0xff] %v6399_v39   ;;  %v9394_v11 = vunpack.c.l.bf16 %v9103_v9 }
 0x28e   : > { %v6564_v14 = vpop.f32.mrf.mxu0  ;;  %v6394_v38 = vpack.c.bf16 %v5663_v58, %v5662_v45  ;;  %v5181_v62 = vadd.f32 %v9059_v3, %v8883_v27  ;;  %v9396_v63 = vunpack.c.l.bf16 %v9109_v8  ;;  %v5682_v30 = vmax.f32 %v5646_v52, 0.0 }
 0x28f   : > { %v5632_v24 = vadd.f32 %v9394_v11, %v5436_v60  ;;  %v6583_v37 = vpop.f32.mrf.mxu1  ;;  %v5439_v41 = vadd.f32 %v6564_v14, %v8983_v59  ;;  %v5685_v19 = vmax.f32 %v5649_v5, 0.0  ;;  %v5647_v35 = vadd.f32 %v9395_v28, %v5495_v46 }
 0x290   : > { %v5516_v23 = vadd.f32 %v6583_v37, %v5339_v34  ;;  %v5430_v2 = vpop.f32.mrf.mxu0  ;;  %6395 = vst [vmem:[%s9196_s30] sm:$0xff] %v6394_v38   ;;  %v5630_v22 = vadd.f32 %v9396_v63, %v5428_v49  ;;  %v9397_v60 = vunpack.c.h.bf16 %v9103_v9  ;;  %v9398_v58 = vunpack.c.l.bf16 %v9106_v29  ;;  %v9404_v63 = vld [vmem:[#allocation13_spill] sm:$0xff] }
 0x291   : > { %v5507_v47 = vpop.f32.mrf.mxu1  ;;  %v5431_v59 = vadd.f32 %v5430_v2, %v8977_v43  ;;  %v6449_v45 = vpack.c.bf16 %v5685_v19, %v5684_v13  ;;  %v5683_v31 = vmax.f32 %v5647_v35, 0.0  ;;  %v5668_v39 = vmax.f32 %v5632_v24, 0.0 }
 0x292   : > { %v5633_v15 = vadd.f32 %v9397_v60, %v5439_v41  ;;  %v5508_v34 = vadd.f32 %v5507_v47, %v9034_v10  ;;  %v5652_v27 = vadd.f32 %v9398_v58, %v5516_v23  ;;  %v9399_v49 = vunpack.c.h.bf16 %v9109_v8  ;;  %v9406_v47 = vld [vmem:[#allocation12_spill] sm:$0xff]  ;;  %v9408_v60 = vld [vmem:[#allocation19_spill] sm:$0xff] }
 0x293   : > { %v6584_v54 = vpop.f32.mrf.mxu1  ;;  %v5350_v9 = vadd.f32 %v9055_v6, %v5173_v17  ;;  %v5186_v43 = vadd.f32 %v9066_v32, %v8886_v48  ;;  %6508 = vst [vmem:[%s9196_s30 + $0x58] sm:$0xff] %v6449_v45   ;;  %v6444_v52 = vpack.c.bf16 %v5683_v31, %v5682_v30  ;;  %v5666_v5 = vmax.f32 %v5630_v22, 0.0  ;;  %v9411_v31 = vld [vmem:[#allocation20_spill] sm:$0xff] }
 0x294   : > { %v5669_v3 = vmax.f32 %v5633_v15, 0.0  ;;  %v5631_v12 = vadd.f32 %v9399_v49, %v5431_v59  ;;  %v6567_v33 = vpop.f32.mrf.mxu0  ;;  %v5519_v10 = vadd.f32 %v6584_v54, %v5342_v4  ;;  %v5355_v8 = vadd.f32 %v9061_v40, %v5178_v36  ;;  %v9409_v59 = vld [vmem:[#allocation3_spill] sm:$0xff] }
 0x295   : > { %v5510_v38 = vpop.f32.mrf.mxu1  ;;  %v5452_v11 = vadd.f32 %v6567_v33, %v8992_v0  ;;  %6507 = vst [vmem:[%s9196_s30 + $0x50] sm:$0xff] %v6444_v52   ;;  %v9400_v37 = vunpack.c.l.bf16 %v9115_v44  ;;  %v9401_v17 = vunpack.c.h.bf16 %v9106_v29  ;;  %v5358_v4 = vadd.f32 %v9064_v61, %v5181_v62  ;;  %v9407_v62 = vld [vmem:[#allocation15_spill] sm:$0xff]  ;;  %v9414_v52 = vld [vmem:[#allocation17_spill] sm:$0xff] }
 0x296   : > { %v6409_v46 = vpack.c.bf16 %v5669_v3, %v5668_v39  ;;  %v5667_v14 = vmax.f32 %v5631_v12, 0.0  ;;  %v5443_v24 = vpop.f32.mrf.mxu0  ;;  %v5511_v32 = vadd.f32 %v5510_v38, %v9039_v21  ;;  %v5688_v41 = vmax.f32 %v5652_v27, 0.0  ;;  %v9405_v21 = vld [vmem:[#allocation14_spill] sm:$0xff] }
 0x297   : > { %v5650_v6 = vadd.f32 %v9400_v37, %v5508_v34  ;;  %v5653_v48 = vadd.f32 %v9401_v17, %v5519_v10  ;;  %v6587_v19 = vpop.f32.mrf.mxu1  ;;  %v5444_v0 = vadd.f32 %v5443_v24, %v8986_v1  ;;  %v9402_v36 = vunpack.c.h.bf16 %v9115_v44  ;;  %v9410_v44 = vld [vmem:[#allocation16_spill] sm:$0xff] }
 0x298   : > { %6500 = vst [vmem:[%s9196_s30 + $0x18] sm:$0xff] %v6409_v46   ;;  %v6404_v13 = vpack.c.bf16 %v5667_v14, %v5666_v5  ;;  %v6568_v28 = vpop.f32.mrf.mxu0  ;;  %v9403_v23 = vunpack.c.l.bf16 %v9122_v51  ;;  %v5532_v2 = vadd.f32 %v6587_v19, %v5355_v8  ;;  %v5363_v22 = vadd.f32 %v9404_v63, %v5186_v43 }
 0x299   : > { %v5689_v40 = vmax.f32 %v5653_v48, 0.0  ;;  %v5651_v35 = vadd.f32 %v9402_v36, %v5511_v32  ;;  %v5189_v61 = vadd.f32 %v9406_v47, %v9405_v21  ;;  %v5194_v15 = vadd.f32 %v9408_v60, %v9407_v62  ;;  %v5523_v1 = vpop.f32.mrf.mxu1  ;;  %v9418_v48 = vld [vmem:[#allocation6_spill] sm:$0xff] }
 0x29a   : > { %v5636_v29 = vadd.f32 %v9403_v23, %v5452_v11  ;;  %6499 = vst [vmem:[%s9196_s30 + $0x10] sm:$0xff] %v6404_v13   ;;  %v5455_v30 = vadd.f32 %v6568_v28, %v9409_v59  ;;  %v5446_v45 = vpop.f32.mrf.mxu0  ;;  %v5197_v34 = vadd.f32 %v9411_v31, %v9410_v44  ;;  %v5686_v39 = vmax.f32 %v5650_v6, 0.0  ;;  %v9419_v13 = vld [vmem:[#allocation21_spill] sm:$0xff]  ;;  %v9425_v31 = vld [vmem:[#allocation7_spill] sm:$0xff] }
 0x29b   : > { %v6459_v58 = vpack.c.bf16 %v5689_v40, %v5688_v41  ;;  %v5687_v27 = vmax.f32 %v5651_v35, 0.0  ;;  %v9412_v3 = vunpack.c.l.bf16 %v9132_v20  ;;  %v5524_v49 = vadd.f32 %v5523_v1, %v9202_v42  ;;  %v6588_v43 = vpop.f32.mrf.mxu1  ;;  %v9421_v40 = vld [vmem:[#allocation4_spill] sm:$0xff]  ;;  %v9422_v35 = vld [vmem:[#allocation22_spill] sm:$0xff] }
 0x29c   : > { %v9413_v12 = vunpack.c.h.bf16 %v9122_v51  ;;  %v5447_v10 = vadd.f32 %v5446_v45, %v9414_v52  ;;  %v6571_v5 = vpop.f32.mrf.mxu0  ;;  %v5672_v14 = vmax.f32 %v5636_v29, 0.0  ;;  %v9415_v38 = vunpack.c.l.bf16 %v9125_v55 }
 0x29d   : > { %v5634_v54 = vadd.f32 %v9412_v3, %v5444_v0  ;;  %6510 = vst [vmem:[%s9196_s30 + $0x68] sm:$0xff] %v6459_v58   ;;  %v6454_v46 = vpack.c.bf16 %v5687_v27, %v5686_v39  ;;  %v5535_v24 = vadd.f32 %v6588_v43, %v5358_v4  ;;  %v9416_v8 = vunpack.c.l.bf16 %v9135_v18  ;;  %v5526_v17 = vpop.f32.mrf.mxu1 }
 0x29e   : > { %v5637_v33 = vadd.f32 %v9413_v12, %v5455_v30  ;;  %v5656_v11 = vadd.f32 %v9415_v38, %v5532_v2  ;;  %v9417_v42 = vunpack.c.h.bf16 %v9132_v20  ;;  %v5468_v32 = vadd.f32 %v6571_v5, %v9418_v48  ;;  %v5459_v41 = vpop.f32.mrf.mxu0  ;;  %v9430_v38 = vld [vmem:[#allocation18_spill] sm:$0xff] }
 0x29f   : > { %v5654_v37 = vadd.f32 %v9416_v8, %v5524_v49  ;;  %v5371_v19 = vadd.f32 %v9419_v13, %v5194_v15  ;;  %6509 = vst [vmem:[%s9196_s30 + $0x60] sm:$0xff] %v6454_v46   ;;  %v9420_v0 = vunpack.c.h.bf16 %v9125_v55  ;;  %v5527_v4 = vadd.f32 %v5526_v17, %v5350_v9  ;;  %v6591_v63 = vpop.f32.mrf.mxu1  ;;  %v6488_v55 = vld [vmem:[%s9084_s27 + $0x40] sm:$0xff]  }
 0x2a0   : > { %v5673_v6 = vmax.f32 %v5637_v33, 0.0  ;;  %v5635_v51 = vadd.f32 %v9417_v42, %v5447_v10  ;;  %v5460_v36 = vadd.f32 %v5459_v41, %v9421_v40  ;;  %v5374_v23 = vadd.f32 %v9422_v35, %v5197_v34  ;;  %v6572_v21 = vpop.f32.mrf.mxu0  ;;  %v9429_v10 = vld [vmem:[#allocation5_spill] sm:$0xff] }
 0x2a1   : > { %v5657_v28 = vadd.f32 %v9420_v0, %v5535_v24  ;;  %v5670_v29 = vmax.f32 %v5634_v54, 0.0  ;;  %v5692_v47 = vmax.f32 %v5656_v11, 0.0  ;;  %v9423_v60 = vunpack.c.h.bf16 %v9135_v18  ;;  %v5539_v44 = vpop.f32.mrf.mxu1 }
 0x2a2   : > { %v6419_v20 = vpack.c.bf16 %v5673_v6, %v5672_v14  ;;  %v5671_v2 = vmax.f32 %v5635_v51, 0.0  ;;  %v5548_v1 = vadd.f32 %v6591_v63, %v5371_v19  ;;  %v5690_v59 = vmax.f32 %v5654_v37, 0.0  ;;  %v5462_v39 = vpop.f32.mrf.mxu0  ;;  %v9431_v51 = vld [vmem:[#allocation10_spill] sm:$0xff] }
 0x2a3   : > { %v5693_v62 = vmax.f32 %v5657_v28, 0.0  ;;  %v5655_v15 = vadd.f32 %v9423_v60, %v5527_v4  ;;  %v9424_v30 = vunpack.c.l.bf16 %v9144_v56  ;;  %v5471_v34 = vadd.f32 %v6572_v21, %v9425_v31  ;;  %v6592_v52 = vpop.f32.mrf.mxu1 }
 0x2a4   : > { %6502 = vst [vmem:[%s9196_s30 + $0x28] sm:$0xff] %v6419_v20   ;;  %v6414_v9 = vpack.c.bf16 %v5671_v2, %v5670_v29  ;;  %v9426_v3 = vunpack.c.l.bf16 %v9154_v25  ;;  %v5540_v18 = vadd.f32 %v5539_v44, %v5363_v22  ;;  %v9427_v49 = vunpack.c.l.bf16 %v9151_v7  ;;  %v6575_v46 = vpop.f32.mrf.mxu0  ;;  %v9434_v25 = vld [vmem:[#allocation8_spill] sm:$0xff]  ;;  %v9435_v20 = vld [vmem:[#allocation11_spill] sm:$0xff] }
 0x2a5   : > { %v5640_v45 = vadd.f32 %v9424_v30, %v5468_v32  ;;  %v6469_v58 = vpack.c.bf16 %v5693_v62, %v5692_v47  ;;  %v5691_v27 = vmax.f32 %v5655_v15, 0.0  ;;  %v9428_v33 = vunpack.c.h.bf16 %v9144_v56  ;;  %v5542_v56 = vpop.f32.mrf.mxu1 }
 0x2a6   : > { %v5638_v54 = vadd.f32 %v9426_v3, %v5460_v36  ;;  %6501 = vst [vmem:[%s9196_s30 + $0x20] sm:$0xff] %v6414_v9   ;;  %v5660_v12 = vadd.f32 %v9427_v49, %v5548_v1  ;;  %v5463_v5 = vadd.f32 %v5462_v39, %v9429_v10  ;;  %v6353_v14 = vunpack.c.l.bf16 %v6488_v55  ;;  %v5475_v48 = vpop.f32.mrf.mxu0 }
 0x2a7   : > { %v5641_v43 = vadd.f32 %v9428_v33, %v5471_v34  ;;  %v5366_v11 = vadd.f32 %v9430_v38, %v5189_v61  ;;  %6512 = vst [vmem:[%s9196_s30 + $0x78] sm:$0xff] %v6469_v58   ;;  %v6464_v24 = vpack.c.bf16 %v5691_v27, %v5690_v59  ;;  %v5551_v8 = vadd.f32 %v6592_v52, %v5374_v23 }
 0x2a8   : > { %v6358_v22 = vunpack.c.h.bf16 %v9171_v57  ;;  %v5676_v37 = vmax.f32 %v5640_v45, 0.0  ;;  %v5639_v42 = vadd.f32 %v6346_v16, %v5463_v5  ;;  %v5484_v17 = vadd.f32 %v6575_v46, %v9431_v51  ;;  %v6576_v36 = vpop.f32.mrf.mxu0 }
 0x2a9   : > { %v5677_v6 = vmax.f32 %v5641_v43, 0.0  ;;  %6511 = vst [vmem:[%s9196_s30 + $0x70] sm:$0xff] %v6464_v24   ;;  %v5674_v32 = vmax.f32 %v5638_v54, 0.0  ;;  %v9432_v41 = vunpack.c.l.bf16 %v9161_v26  ;;  %v9433_v13 = vunpack.c.h.bf16 %v9151_v7  ;;  %v9436_v26 = vld [vmem:[#allocation9_spill] sm:$0xff] }
 0x2aa   : > { %v5543_v0 = vadd.f32 %v5542_v56, %v5366_v11  ;;  %v5696_v28 = vmax.f32 %v5660_v12, 0.0  ;;  %v5675_v40 = vmax.f32 %v5639_v42, 0.0  ;;  %v5476_v16 = vadd.f32 %v5475_v48, %v9434_v25  ;;  %v5478_v63 = vpop.f32.mrf.mxu0 }
 0x2ab   : > { %v5658_v61 = vadd.f32 %v9432_v41, %v5540_v18  ;;  %v5661_v19 = vadd.f32 %v9433_v13, %v5551_v8  ;;  %v6429_v4 = vpack.c.bf16 %v5677_v6, %v5676_v37  ;;  %v5644_v29 = vadd.f32 %v6357_v50, %v5484_v17 }
 0x2ac   : > { %v5659_v23 = vadd.f32 %v6386_v53, %v5543_v0  ;;  %v5487_v2 = vadd.f32 %v6576_v36, %v9435_v20  ;;  %v6424_v7 = vpack.c.bf16 %v5675_v40, %v5674_v32  ;;  %v6354_v21 = vunpack.c.h.bf16 %v6488_v55 }
 0x2ad   : > { %v5697_v35 = vmax.f32 %v5661_v19, 0.0  ;;  %6504 = vst [vmem:[%s9196_s30 + $0x38] sm:$0xff] %v6429_v4   ;;  %v5694_v47 = vmax.f32 %v5658_v61, 0.0  ;;  %v5642_v1 = vadd.f32 %v6353_v14, %v5476_v16  ;;  %v5479_v53 = vadd.f32 %v5478_v63, %v9436_v26 }
 0x2ae   : > { %v5695_v60 = vmax.f32 %v5659_v23, 0.0  ;;  %v5645_v15 = vadd.f32 %v6358_v22, %v5487_v2  ;;  %6503 = vst [vmem:[%s9196_s30 + $0x30] sm:$0xff] %v6424_v7   ;;  %v5680_v50 = vmax.f32 %v5644_v29, 0.0 }
 0x2af   : > { %v6479_v62 = vpack.c.bf16 %v5697_v35, %v5696_v28  ;;  %v5643_v9 = vadd.f32 %v6354_v21, %v5479_v53  ;;  %v5678_v45 = vmax.f32 %v5642_v1, 0.0 }
 0x2b0   : > { %v6474_v57 = vpack.c.bf16 %v5695_v60, %v5694_v47  ;;  %v5681_v59 = vmax.f32 %v5645_v15, 0.0 }
 0x2b1   : > { %6514 = vst [vmem:[%s9196_s30 + $0x88] sm:$0xff] %v6479_v62   ;;  %v5679_v44 = vmax.f32 %v5643_v9, 0.0 }
 0x2b2   : > { %6513 = vst [vmem:[%s9196_s30 + $0x80] sm:$0xff] %v6474_v57   ;;  %v6439_v30 = vpack.c.bf16 %v5681_v59, %v5680_v50 }
 0x2b3   : > { %v6434_v55 = vpack.c.bf16 %v5679_v44, %v5678_v45 }
 0x2b4   : > { %6506 = vst [vmem:[%s9196_s30 + $0x48] sm:$0xff] %v6439_v30  }
 0x2b5   : > { %6505 = vst [vmem:[%s9196_s30 + $0x40] sm:$0xff] %v6434_v55  }
 0x2b6 PF: > { %s14_s17 = sadd.s32 1, %s6938_s17   ;;  %s9437_s15 = smov %s6934_s16 }
 0x2b7   : > { %p11_p6 = scmp.ge.s32.totalorder %s14_s17, 4   ;;  %s9438_s16 = smov %s9440_s18 }
 0x2b9   :  { %13 = sbr.rel (!%p11_p6) target bundleno = 2 (0x2), region = 75 }

</bundles_post_ra>
